<compile_context>
chip_gen: v5e
topology: v5e:2x2
jax: 0.10.0
libtpu: 0.0.40
codegen_flags: <defaults>
</compile_context>

<pallas_src>
import functools

import jax
import jax.numpy as jnp
from jax.experimental import pallas as pl
from jax.experimental.pallas import tpu as pltpu

_LANES = 128
_INT32_MIN = -(1 << 31)


def _i32c(v: int) -> int:
    """Fold an unsigned 32-bit Python constant into int32 two's complement."""
    v &= 0xFFFFFFFF
    return v - (1 << 32) if v >= (1 << 31) else v


def _radix_select_largest(keys, r, shifts):
    """MSB-first 4-bit radix select of the r-th largest key (unsigned order).

    `keys` is an int32 array whose bit patterns are compared as unsigned
    integers over the bit range covered by `shifts` (descending multiples
    of 4).  Returns (prefix, r_rem): `prefix` holds the selected key's bits
    over that range; `r_rem` is how many elements equal to `prefix` (over the
    processed bits) are still needed among the ties.
    """
    prefix = jnp.int32(0)
    for shift in shifts:
        mask_ge = _i32c(~((1 << shift) - 1))          # bits >= shift
        base = keys & mask_ge                         # hoisted once per step
        # 15 independent fused candidate tests + int32 reductions (pipeline).
        counts = [
            jnp.sum((base == (prefix | _i32c(v << shift))).astype(jnp.int32))
            for v in range(15, 0, -1)
        ]
        # Scalar cumulative pick of this step's digit.
        digit = jnp.int32(0)
        above = jnp.int32(0)        # elements strictly above the chosen digit
        cum = jnp.int32(0)
        for i, v in enumerate(range(15, 0, -1)):
            new_cum = cum + counts[i]
            take = jnp.logical_and(new_cum >= r, digit == 0)
            digit = jnp.where(take, jnp.int32(v), digit)
            above = jnp.where(take, cum, above)
            cum = new_cum
        above = jnp.where(digit == 0, cum, above)     # digit value 0 chosen
        r = r - above
        prefix = prefix | (digit << shift)
    return prefix, r


def _kwta_kernel(x_ref, y_ref, *, k_active, n_valid, pad_n,
                 key_shifts, idx_shifts):
    rows, cols = x_ref.shape

    # Order-preserving float -> unsigned-comparable int32 key.  Only `ukey`
    # stays live across the radix loop.
    bits = pltpu.bitcast(x_ref[...].astype(jnp.float32), jnp.int32)
    ukey = jnp.where(bits < 0, ~bits, bits | _INT32_MIN)

    if n_valid < pad_n:
        # Padded tail (last row only) can never win: force the minimum key.
        rowi = jax.lax.broadcasted_iota(jnp.int32, (rows, cols), 0)
        coli = jax.lax.broadcasted_iota(jnp.int32, (rows, cols), 1)
        ukey = jnp.where(rowi * cols + coli < n_valid, ukey, 0)

    # ---- main select: key of the k-th largest element ----------------------
    prefix, r = _radix_select_largest(ukey, jnp.int32(k_active), key_shifts)

    key_mask = _i32c(~((1 << key_shifts[-1]) - 1))
    mkey = ukey if key_shifts[-1] == 0 else (ukey & key_mask)
    eq = mkey == prefix
    gt = (mkey ^ _INT32_MIN) > (prefix ^ _INT32_MIN)   # unsigned > via sign flip

    # ---- deterministic tie-break: first r ties in flat-index order ---------
    # Radix-select the r-th largest of (pad_n - flat_index) among the ties
    # (non-ties get key 0 < any tie key), i.e. the r-th SMALLEST index.
    rowi = jax.lax.broadcasted_iota(jnp.int32, (rows, cols), 0)
    coli = jax.lax.broadcasted_iota(jnp.int32, (rows, cols), 1)
    idx_key = jnp.where(eq, pad_n - (rowi * cols + coli), 0)
    cut_key, _ = _radix_select_largest(idx_key, r, idx_shifts)

    y_ref[...] = (gt | (idx_key >= cut_key)).astype(y_ref.dtype)


def kwinners_take_all(x: jax.Array, k_active: int = 50) -> jax.Array:
    """JAX wrapper: y = kwta(x) with exactly `k_active` ones."""
    assert x.ndim == 1, "KWinnersTakeAll.forward expects a 1-D vector"
    n = x.shape[0]
    k_active = int(k_active)
    assert 0 < k_active <= n

    pad_n = ((n + _LANES - 1) // _LANES) * _LANES      # lane multiple only
    rows = pad_n // _LANES

    # Lane-dense (R, 128) view; pad (value irrelevant -- kernel masks the
    # tail) only when needed so aligned inputs skip the extra HBM round trip.
    if pad_n != n:
        x2 = jnp.concatenate(
            [x, jnp.zeros((pad_n - n,), x.dtype)]).reshape(rows, _LANES)
    else:
        x2 = x.reshape(rows, _LANES)

    if x.dtype == jnp.bfloat16:
        key_shifts = (28, 24, 20, 16)                  # bf16: high 16 key bits
    else:
        key_shifts = (28, 24, 20, 16, 12, 8, 4, 0)     # full 32-bit keys
    n_idx_digits = max(1, -(-pad_n.bit_length() // 4))
    idx_shifts = tuple(range(4 * (n_idx_digits - 1), -1, -4))

    kernel = functools.partial(
        _kwta_kernel, k_active=k_active, n_valid=int(n), pad_n=int(pad_n),
        key_shifts=key_shifts, idx_shifts=idx_shifts)

    # Explicit VMEM budget: in/out blocks + a couple of live pad_n-sized int32
    # intermediates.
    # TODO(synk): for pad_n >~ 1M elements switch to a row-tiled grid with
    # per-tile digit histograms (restores pipelining and enables the second
    # TensorCore on v7x, where physical VMEM is only 64 MiB).
    vmem_limit = int(min(112 << 20, max(8 << 20, 12 * pad_n * 4)))

    out = pl.pallas_call(
        kernel,
        out_shape=jax.ShapeDtypeStruct((rows, _LANES), x.dtype),
        in_specs=[pl.BlockSpec((rows, _LANES), lambda: (0, 0))],
        out_specs=pl.BlockSpec((rows, _LANES), lambda: (0, 0)),
        compiler_params=pltpu.CompilerParams(vmem_limit_bytes=vmem_limit),
    )(x2)

    flat = out.reshape(pad_n)
    return flat[:n] if pad_n != n else flat


if __name__ == "__main__":
    key = jax.random.PRNGKey(0)

    # --- unaligned size (pads 300 -> 384, 3 rows), default K_ACTIVE ---------
    N, K = 300, 50
    x = jax.random.normal(key, (N,), dtype=jnp.float32)
    y = jax.block_until_ready(kwinners_take_all(x, k_active=K))
    assert y.shape == (N,)
    assert int(jnp.sum(y)) == K, f"expected {K} winners, got {int(jnp.sum(y))}"
    topk_vals, _ = jax.lax.top_k(x, K)
    kth_val = topk_vals[-1]
    assert bool(jnp.all(y[x > kth_val] == 1.0))   # above k-th value -> winner
    assert bool(jnp.all(y[x < kth_val] == 0.0))   # below k-th value -> loser

    # --- aligned size (no pad / no slice fast path) --------------------------
    x2 = jax.random.normal(jax.random.PRNGKey(1), (256,), dtype=jnp.float32)
    y2 = jax.block_until_ready(kwinners_take_all(x2, k_active=17))
    assert int(jnp.sum(y2)) == 17

    # --- tie robustness across rows: constant input, winners span 2 rows ----
    xt = jnp.zeros((300,), dtype=jnp.float32)
    yt = jax.block_until_ready(kwinners_take_all(xt, k_active=200))
    assert int(jnp.sum(yt)) == 200
    assert bool(jnp.all(yt[:200] == 1.0)) and bool(jnp.all(yt[200:] == 0.0))

    # --- bf16 fast path (16-bit keys, 4 radix steps) -------------------------
    xb = jax.random.normal(jax.random.PRNGKey(2), (256,), dtype=jnp.bfloat16)
    yb = jax.block_until_ready(kwinners_take_all(xb, k_active=50))
    ybf, xbf = yb.astype(jnp.float32), xb.astype(jnp.float32)
    assert int(jnp.sum(ybf)) == 50
    kth_b = jax.lax.top_k(xbf, 50)[0][-1]
    assert bool(jnp.all(ybf[xbf > kth_b] == 1.0))
    assert bool(jnp.all(ybf[xbf < kth_b] == 0.0))

    print("KERNEL_OK")
</pallas_src>

<mosaic_0001>
module attributes {stable_mosaic.version = 11 : i64} {
  func.func @_kwta_kernel(%arg0: memref<3x128xf32, #tpu.memory_space<vmem>>, %arg1: memref<3x128xf32, #tpu.memory_space<vmem>>) attributes {dimension_semantics = [], scalar_prefetch = 0 : i64, scratch_operands = 0 : i64, tpu.core_type = #tpu.core_type<tc>} {
    %c0 = arith.constant 0 : index
    %c0_0 = arith.constant 0 : index
    %0 = vector.load %arg0[%c0, %c0_0] : memref<3x128xf32, #tpu.memory_space<vmem>>, vector<3x128xf32>
    %1 = tpu.bitcast %0 : vector<3x128xf32> -> vector<3x128xi32>
    %c0_i32 = arith.constant 0 : i32
    %2 = vector.broadcast %c0_i32 : i32 to vector<3x128xi32>
    %3 = arith.cmpi slt, %1, %2 : vector<3x128xi32>
    %cst = arith.constant dense<-1> : vector<3x128xi32>
    %4 = arith.xori %1, %cst : vector<3x128xi32>
    %c-2147483648_i32 = arith.constant -2147483648 : i32
    %5 = vector.broadcast %c-2147483648_i32 : i32 to vector<3x128xi32>
    %6 = arith.ori %1, %5 : vector<3x128xi32>
    %7 = arith.select %3, %4, %6 : vector<3x128xi1>, vector<3x128xi32>
    %8 = tpu.iota {dimensions = array<i32: 0>} : vector<3x128xi32>
    %9 = tpu.iota {dimensions = array<i32: 1>} : vector<3x128xi32>
    %c128_i32 = arith.constant 128 : i32
    %10 = vector.broadcast %c128_i32 : i32 to vector<3x128xi32>
    %11 = arith.muli %8, %10 : vector<3x128xi32>
    %12 = arith.addi %11, %9 : vector<3x128xi32>
    %c300_i32 = arith.constant 300 : i32
    %13 = vector.broadcast %c300_i32 : i32 to vector<3x128xi32>
    %14 = arith.cmpi slt, %12, %13 : vector<3x128xi32>
    %c0_i32_1 = arith.constant 0 : i32
    %15 = vector.broadcast %c0_i32_1 : i32 to vector<3x128xi32>
    %16 = arith.select %14, %7, %15 : vector<3x128xi1>, vector<3x128xi32>
    %c-268435456_i32 = arith.constant -268435456 : i32
    %17 = vector.broadcast %c-268435456_i32 : i32 to vector<3x128xi32>
    %18 = arith.andi %16, %17 : vector<3x128xi32>
    %c0_i32_2 = arith.constant 0 : i32
    %c-268435456_i32_3 = arith.constant -268435456 : i32
    %19 = arith.ori %c0_i32_2, %c-268435456_i32_3 : i32
    %20 = vector.broadcast %19 : i32 to vector<3x128xi32>
    %21 = arith.cmpi eq, %18, %20 : vector<3x128xi32>
    %22 = arith.extui %21 : vector<3x128xi1> to vector<3x128xi32>
    %23 = vector.shape_cast %22 : vector<3x128xi32> to vector<1x3x128xi32>
    %cst_4 = arith.constant dense<0> : vector<1xi32>
    %24 = vector.multi_reduction <add>, %23, %cst_4 [1, 2] : vector<1x3x128xi32> to vector<1xi32>
    %25 = vector.shape_cast %24 : vector<1xi32> to vector<1x1x1xi32>
    %26 = vector.extract %25[0, 0, 0] : i32 from vector<1x1x1xi32>
    %c0_i32_5 = arith.constant 0 : i32
    %c-536870912_i32 = arith.constant -536870912 : i32
    %27 = arith.ori %c0_i32_5, %c-536870912_i32 : i32
    %28 = vector.broadcast %27 : i32 to vector<3x128xi32>
    %29 = arith.cmpi eq, %18, %28 : vector<3x128xi32>
    %30 = arith.extui %29 : vector<3x128xi1> to vector<3x128xi32>
    %31 = vector.shape_cast %30 : vector<3x128xi32> to vector<1x3x128xi32>
    %cst_6 = arith.constant dense<0> : vector<1xi32>
    %32 = vector.multi_reduction <add>, %31, %cst_6 [1, 2] : vector<1x3x128xi32> to vector<1xi32>
    %33 = vector.shape_cast %32 : vector<1xi32> to vector<1x1x1xi32>
    %34 = vector.extract %33[0, 0, 0] : i32 from vector<1x1x1xi32>
    %c0_i32_7 = arith.constant 0 : i32
    %c-805306368_i32 = arith.constant -805306368 : i32
    %35 = arith.ori %c0_i32_7, %c-805306368_i32 : i32
    %36 = vector.broadcast %35 : i32 to vector<3x128xi32>
    %37 = arith.cmpi eq, %18, %36 : vector<3x128xi32>
    %38 = arith.extui %37 : vector<3x128xi1> to vector<3x128xi32>
    %39 = vector.shape_cast %38 : vector<3x128xi32> to vector<1x3x128xi32>
    %cst_8 = arith.constant dense<0> : vector<1xi32>
    %40 = vector.multi_reduction <add>, %39, %cst_8 [1, 2] : vector<1x3x128xi32> to vector<1xi32>
    %41 = vector.shape_cast %40 : vector<1xi32> to vector<1x1x1xi32>
    %42 = vector.extract %41[0, 0, 0] : i32 from vector<1x1x1xi32>
    %c0_i32_9 = arith.constant 0 : i32
    %c-1073741824_i32 = arith.constant -1073741824 : i32
    %43 = arith.ori %c0_i32_9, %c-1073741824_i32 : i32
    %44 = vector.broadcast %43 : i32 to vector<3x128xi32>
    %45 = arith.cmpi eq, %18, %44 : vector<3x128xi32>
    %46 = arith.extui %45 : vector<3x128xi1> to vector<3x128xi32>
    %47 = vector.shape_cast %46 : vector<3x128xi32> to vector<1x3x128xi32>
    %cst_10 = arith.constant dense<0> : vector<1xi32>
    %48 = vector.multi_reduction <add>, %47, %cst_10 [1, 2] : vector<1x3x128xi32> to vector<1xi32>
    %49 = vector.shape_cast %48 : vector<1xi32> to vector<1x1x1xi32>
    %50 = vector.extract %49[0, 0, 0] : i32 from vector<1x1x1xi32>
    %c0_i32_11 = arith.constant 0 : i32
    %c-1342177280_i32 = arith.constant -1342177280 : i32
    %51 = arith.ori %c0_i32_11, %c-1342177280_i32 : i32
    %52 = vector.broadcast %51 : i32 to vector<3x128xi32>
    %53 = arith.cmpi eq, %18, %52 : vector<3x128xi32>
    %54 = arith.extui %53 : vector<3x128xi1> to vector<3x128xi32>
    %55 = vector.shape_cast %54 : vector<3x128xi32> to vector<1x3x128xi32>
    %cst_12 = arith.constant dense<0> : vector<1xi32>
    %56 = vector.multi_reduction <add>, %55, %cst_12 [1, 2] : vector<1x3x128xi32> to vector<1xi32>
    %57 = vector.shape_cast %56 : vector<1xi32> to vector<1x1x1xi32>
    %58 = vector.extract %57[0, 0, 0] : i32 from vector<1x1x1xi32>
    %c0_i32_13 = arith.constant 0 : i32
    %c-1610612736_i32 = arith.constant -1610612736 : i32
    %59 = arith.ori %c0_i32_13, %c-1610612736_i32 : i32
    %60 = vector.broadcast %59 : i32 to vector<3x128xi32>
    %61 = arith.cmpi eq, %18, %60 : vector<3x128xi32>
    %62 = arith.extui %61 : vector<3x128xi1> to vector<3x128xi32>
    %63 = vector.shape_cast %62 : vector<3x128xi32> to vector<1x3x128xi32>
    %cst_14 = arith.constant dense<0> : vector<1xi32>
    %64 = vector.multi_reduction <add>, %63, %cst_14 [1, 2] : vector<1x3x128xi32> to vector<1xi32>
    %65 = vector.shape_cast %64 : vector<1xi32> to vector<1x1x1xi32>
    %66 = vector.extract %65[0, 0, 0] : i32 from vector<1x1x1xi32>
    %c0_i32_15 = arith.constant 0 : i32
    %c-1879048192_i32 = arith.constant -1879048192 : i32
    %67 = arith.ori %c0_i32_15, %c-1879048192_i32 : i32
    %68 = vector.broadcast %67 : i32 to vector<3x128xi32>
    %69 = arith.cmpi eq, %18, %68 : vector<3x128xi32>
    %70 = arith.extui %69 : vector<3x128xi1> to vector<3x128xi32>
    %71 = vector.shape_cast %70 : vector<3x128xi32> to vector<1x3x128xi32>
    %cst_16 = arith.constant dense<0> : vector<1xi32>
    %72 = vector.multi_reduction <add>, %71, %cst_16 [1, 2] : vector<1x3x128xi32> to vector<1xi32>
    %73 = vector.shape_cast %72 : vector<1xi32> to vector<1x1x1xi32>
    %74 = vector.extract %73[0, 0, 0] : i32 from vector<1x1x1xi32>
    %c0_i32_17 = arith.constant 0 : i32
    %c-2147483648_i32_18 = arith.constant -2147483648 : i32
    %75 = arith.ori %c0_i32_17, %c-2147483648_i32_18 : i32
    %76 = vector.broadcast %75 : i32 to vector<3x128xi32>
    %77 = arith.cmpi eq, %18, %76 : vector<3x128xi32>
    %78 = arith.extui %77 : vector<3x128xi1> to vector<3x128xi32>
    %79 = vector.shape_cast %78 : vector<3x128xi32> to vector<1x3x128xi32>
    %cst_19 = arith.constant dense<0> : vector<1xi32>
    %80 = vector.multi_reduction <add>, %79, %cst_19 [1, 2] : vector<1x3x128xi32> to vector<1xi32>
    %81 = vector.shape_cast %80 : vector<1xi32> to vector<1x1x1xi32>
    %82 = vector.extract %81[0, 0, 0] : i32 from vector<1x1x1xi32>
    %c0_i32_20 = arith.constant 0 : i32
    %c1879048192_i32 = arith.constant 1879048192 : i32
    %83 = arith.ori %c0_i32_20, %c1879048192_i32 : i32
    %84 = vector.broadcast %83 : i32 to vector<3x128xi32>
    %85 = arith.cmpi eq, %18, %84 : vector<3x128xi32>
    %86 = arith.extui %85 : vector<3x128xi1> to vector<3x128xi32>
    %87 = vector.shape_cast %86 : vector<3x128xi32> to vector<1x3x128xi32>
    %cst_21 = arith.constant dense<0> : vector<1xi32>
    %88 = vector.multi_reduction <add>, %87, %cst_21 [1, 2] : vector<1x3x128xi32> to vector<1xi32>
    %89 = vector.shape_cast %88 : vector<1xi32> to vector<1x1x1xi32>
    %90 = vector.extract %89[0, 0, 0] : i32 from vector<1x1x1xi32>
    %c0_i32_22 = arith.constant 0 : i32
    %c1610612736_i32 = arith.constant 1610612736 : i32
    %91 = arith.ori %c0_i32_22, %c1610612736_i32 : i32
    %92 = vector.broadcast %91 : i32 to vector<3x128xi32>
    %93 = arith.cmpi eq, %18, %92 : vector<3x128xi32>
    %94 = arith.extui %93 : vector<3x128xi1> to vector<3x128xi32>
    %95 = vector.shape_cast %94 : vector<3x128xi32> to vector<1x3x128xi32>
    %cst_23 = arith.constant dense<0> : vector<1xi32>
    %96 = vector.multi_reduction <add>, %95, %cst_23 [1, 2] : vector<1x3x128xi32> to vector<1xi32>
    %97 = vector.shape_cast %96 : vector<1xi32> to vector<1x1x1xi32>
    %98 = vector.extract %97[0, 0, 0] : i32 from vector<1x1x1xi32>
    %c0_i32_24 = arith.constant 0 : i32
    %c1342177280_i32 = arith.constant 1342177280 : i32
    %99 = arith.ori %c0_i32_24, %c1342177280_i32 : i32
    %100 = vector.broadcast %99 : i32 to vector<3x128xi32>
    %101 = arith.cmpi eq, %18, %100 : vector<3x128xi32>
    %102 = arith.extui %101 : vector<3x128xi1> to vector<3x128xi32>
    %103 = vector.shape_cast %102 : vector<3x128xi32> to vector<1x3x128xi32>
    %cst_25 = arith.constant dense<0> : vector<1xi32>
    %104 = vector.multi_reduction <add>, %103, %cst_25 [1, 2] : vector<1x3x128xi32> to vector<1xi32>
    %105 = vector.shape_cast %104 : vector<1xi32> to vector<1x1x1xi32>
    %106 = vector.extract %105[0, 0, 0] : i32 from vector<1x1x1xi32>
    %c0_i32_26 = arith.constant 0 : i32
    %c1073741824_i32 = arith.constant 1073741824 : i32
    %107 = arith.ori %c0_i32_26, %c1073741824_i32 : i32
    %108 = vector.broadcast %107 : i32 to vector<3x128xi32>
    %109 = arith.cmpi eq, %18, %108 : vector<3x128xi32>
    %110 = arith.extui %109 : vector<3x128xi1> to vector<3x128xi32>
    %111 = vector.shape_cast %110 : vector<3x128xi32> to vector<1x3x128xi32>
    %cst_27 = arith.constant dense<0> : vector<1xi32>
    %112 = vector.multi_reduction <add>, %111, %cst_27 [1, 2] : vector<1x3x128xi32> to vector<1xi32>
    %113 = vector.shape_cast %112 : vector<1xi32> to vector<1x1x1xi32>
    %114 = vector.extract %113[0, 0, 0] : i32 from vector<1x1x1xi32>
    %c0_i32_28 = arith.constant 0 : i32
    %c805306368_i32 = arith.constant 805306368 : i32
    %115 = arith.ori %c0_i32_28, %c805306368_i32 : i32
    %116 = vector.broadcast %115 : i32 to vector<3x128xi32>
    %117 = arith.cmpi eq, %18, %116 : vector<3x128xi32>
    %118 = arith.extui %117 : vector<3x128xi1> to vector<3x128xi32>
    %119 = vector.shape_cast %118 : vector<3x128xi32> to vector<1x3x128xi32>
    %cst_29 = arith.constant dense<0> : vector<1xi32>
    %120 = vector.multi_reduction <add>, %119, %cst_29 [1, 2] : vector<1x3x128xi32> to vector<1xi32>
    %121 = vector.shape_cast %120 : vector<1xi32> to vector<1x1x1xi32>
    %122 = vector.extract %121[0, 0, 0] : i32 from vector<1x1x1xi32>
    %c0_i32_30 = arith.constant 0 : i32
    %c536870912_i32 = arith.constant 536870912 : i32
    %123 = arith.ori %c0_i32_30, %c536870912_i32 : i32
    %124 = vector.broadcast %123 : i32 to vector<3x128xi32>
    %125 = arith.cmpi eq, %18, %124 : vector<3x128xi32>
    %126 = arith.extui %125 : vector<3x128xi1> to vector<3x128xi32>
    %127 = vector.shape_cast %126 : vector<3x128xi32> to vector<1x3x128xi32>
    %cst_31 = arith.constant dense<0> : vector<1xi32>
    %128 = vector.multi_reduction <add>, %127, %cst_31 [1, 2] : vector<1x3x128xi32> to vector<1xi32>
    %129 = vector.shape_cast %128 : vector<1xi32> to vector<1x1x1xi32>
    %130 = vector.extract %129[0, 0, 0] : i32 from vector<1x1x1xi32>
    %c0_i32_32 = arith.constant 0 : i32
    %c268435456_i32 = arith.constant 268435456 : i32
    %131 = arith.ori %c0_i32_32, %c268435456_i32 : i32
    %132 = vector.broadcast %131 : i32 to vector<3x128xi32>
    %133 = arith.cmpi eq, %18, %132 : vector<3x128xi32>
    %134 = arith.extui %133 : vector<3x128xi1> to vector<3x128xi32>
    %135 = vector.shape_cast %134 : vector<3x128xi32> to vector<1x3x128xi32>
    %cst_33 = arith.constant dense<0> : vector<1xi32>
    %136 = vector.multi_reduction <add>, %135, %cst_33 [1, 2] : vector<1x3x128xi32> to vector<1xi32>
    %137 = vector.shape_cast %136 : vector<1xi32> to vector<1x1x1xi32>
    %138 = vector.extract %137[0, 0, 0] : i32 from vector<1x1x1xi32>
    %c0_i32_34 = arith.constant 0 : i32
    %139 = arith.addi %c0_i32_34, %26 : i32
    %c50_i32 = arith.constant 50 : i32
    %140 = arith.cmpi sge, %139, %c50_i32 : i32
    %c0_i32_35 = arith.constant 0 : i32
    %c0_i32_36 = arith.constant 0 : i32
    %141 = arith.cmpi eq, %c0_i32_35, %c0_i32_36 : i32
    %142 = arith.andi %140, %141 : i1
    %c15_i32 = arith.constant 15 : i32
    %c0_i32_37 = arith.constant 0 : i32
    %143 = arith.select %142, %c15_i32, %c0_i32_37 : i32
    %c0_i32_38 = arith.constant 0 : i32
    %c0_i32_39 = arith.constant 0 : i32
    %144 = arith.select %142, %c0_i32_38, %c0_i32_39 : i32
    %145 = arith.addi %139, %34 : i32
    %c50_i32_40 = arith.constant 50 : i32
    %146 = arith.cmpi sge, %145, %c50_i32_40 : i32
    %c0_i32_41 = arith.constant 0 : i32
    %147 = arith.cmpi eq, %143, %c0_i32_41 : i32
    %148 = arith.andi %146, %147 : i1
    %c14_i32 = arith.constant 14 : i32
    %149 = arith.select %148, %c14_i32, %143 : i32
    %150 = arith.select %148, %139, %144 : i32
    %151 = arith.addi %145, %42 : i32
    %c50_i32_42 = arith.constant 50 : i32
    %152 = arith.cmpi sge, %151, %c50_i32_42 : i32
    %c0_i32_43 = arith.constant 0 : i32
    %153 = arith.cmpi eq, %149, %c0_i32_43 : i32
    %154 = arith.andi %152, %153 : i1
    %c13_i32 = arith.constant 13 : i32
    %155 = arith.select %154, %c13_i32, %149 : i32
    %156 = arith.select %154, %145, %150 : i32
    %157 = arith.addi %151, %50 : i32
    %c50_i32_44 = arith.constant 50 : i32
    %158 = arith.cmpi sge, %157, %c50_i32_44 : i32
    %c0_i32_45 = arith.constant 0 : i32
    %159 = arith.cmpi eq, %155, %c0_i32_45 : i32
    %160 = arith.andi %158, %159 : i1
    %c12_i32 = arith.constant 12 : i32
    %161 = arith.select %160, %c12_i32, %155 : i32
    %162 = arith.select %160, %151, %156 : i32
    %163 = arith.addi %157, %58 : i32
    %c50_i32_46 = arith.constant 50 : i32
    %164 = arith.cmpi sge, %163, %c50_i32_46 : i32
    %c0_i32_47 = arith.constant 0 : i32
    %165 = arith.cmpi eq, %161, %c0_i32_47 : i32
    %166 = arith.andi %164, %165 : i1
    %c11_i32 = arith.constant 11 : i32
    %167 = arith.select %166, %c11_i32, %161 : i32
    %168 = arith.select %166, %157, %162 : i32
    %169 = arith.addi %163, %66 : i32
    %c50_i32_48 = arith.constant 50 : i32
    %170 = arith.cmpi sge, %169, %c50_i32_48 : i32
    %c0_i32_49 = arith.constant 0 : i32
    %171 = arith.cmpi eq, %167, %c0_i32_49 : i32
    %172 = arith.andi %170, %171 : i1
    %c10_i32 = arith.constant 10 : i32
    %173 = arith.select %172, %c10_i32, %167 : i32
    %174 = arith.select %172, %163, %168 : i32
    %175 = arith.addi %169, %74 : i32
    %c50_i32_50 = arith.constant 50 : i32
    %176 = arith.cmpi sge, %175, %c50_i32_50 : i32
    %c0_i32_51 = arith.constant 0 : i32
    %177 = arith.cmpi eq, %173, %c0_i32_51 : i32
    %178 = arith.andi %176, %177 : i1
    %c9_i32 = arith.constant 9 : i32
    %179 = arith.select %178, %c9_i32, %173 : i32
    %180 = arith.select %178, %169, %174 : i32
    %181 = arith.addi %175, %82 : i32
    %c50_i32_52 = arith.constant 50 : i32
    %182 = arith.cmpi sge, %181, %c50_i32_52 : i32
    %c0_i32_53 = arith.constant 0 : i32
    %183 = arith.cmpi eq, %179, %c0_i32_53 : i32
    %184 = arith.andi %182, %183 : i1
    %c8_i32 = arith.constant 8 : i32
    %185 = arith.select %184, %c8_i32, %179 : i32
    %186 = arith.select %184, %175, %180 : i32
    %187 = arith.addi %181, %90 : i32
    %c50_i32_54 = arith.constant 50 : i32
    %188 = arith.cmpi sge, %187, %c50_i32_54 : i32
    %c0_i32_55 = arith.constant 0 : i32
    %189 = arith.cmpi eq, %185, %c0_i32_55 : i32
    %190 = arith.andi %188, %189 : i1
    %c7_i32 = arith.constant 7 : i32
    %191 = arith.select %190, %c7_i32, %185 : i32
    %192 = arith.select %190, %181, %186 : i32
    %193 = arith.addi %187, %98 : i32
    %c50_i32_56 = arith.constant 50 : i32
    %194 = arith.cmpi sge, %193, %c50_i32_56 : i32
    %c0_i32_57 = arith.constant 0 : i32
    %195 = arith.cmpi eq, %191, %c0_i32_57 : i32
    %196 = arith.andi %194, %195 : i1
    %c6_i32 = arith.constant 6 : i32
    %197 = arith.select %196, %c6_i32, %191 : i32
    %198 = arith.select %196, %187, %192 : i32
    %199 = arith.addi %193, %106 : i32
    %c50_i32_58 = arith.constant 50 : i32
    %200 = arith.cmpi sge, %199, %c50_i32_58 : i32
    %c0_i32_59 = arith.constant 0 : i32
    %201 = arith.cmpi eq, %197, %c0_i32_59 : i32
    %202 = arith.andi %200, %201 : i1
    %c5_i32 = arith.constant 5 : i32
    %203 = arith.select %202, %c5_i32, %197 : i32
    %204 = arith.select %202, %193, %198 : i32
    %205 = arith.addi %199, %114 : i32
    %c50_i32_60 = arith.constant 50 : i32
    %206 = arith.cmpi sge, %205, %c50_i32_60 : i32
    %c0_i32_61 = arith.constant 0 : i32
    %207 = arith.cmpi eq, %203, %c0_i32_61 : i32
    %208 = arith.andi %206, %207 : i1
    %c4_i32 = arith.constant 4 : i32
    %209 = arith.select %208, %c4_i32, %203 : i32
    %210 = arith.select %208, %199, %204 : i32
    %211 = arith.addi %205, %122 : i32
    %c50_i32_62 = arith.constant 50 : i32
    %212 = arith.cmpi sge, %211, %c50_i32_62 : i32
    %c0_i32_63 = arith.constant 0 : i32
    %213 = arith.cmpi eq, %209, %c0_i32_63 : i32
    %214 = arith.andi %212, %213 : i1
    %c3_i32 = arith.constant 3 : i32
    %215 = arith.select %214, %c3_i32, %209 : i32
    %216 = arith.select %214, %205, %210 : i32
    %217 = arith.addi %211, %130 : i32
    %c50_i32_64 = arith.constant 50 : i32
    %218 = arith.cmpi sge, %217, %c50_i32_64 : i32
    %c0_i32_65 = arith.constant 0 : i32
    %219 = arith.cmpi eq, %215, %c0_i32_65 : i32
    %220 = arith.andi %218, %219 : i1
    %c2_i32 = arith.constant 2 : i32
    %221 = arith.select %220, %c2_i32, %215 : i32
    %222 = arith.select %220, %211, %216 : i32
    %223 = arith.addi %217, %138 : i32
    %c50_i32_66 = arith.constant 50 : i32
    %224 = arith.cmpi sge, %223, %c50_i32_66 : i32
    %c0_i32_67 = arith.constant 0 : i32
    %225 = arith.cmpi eq, %221, %c0_i32_67 : i32
    %226 = arith.andi %224, %225 : i1
    %c1_i32 = arith.constant 1 : i32
    %227 = arith.select %226, %c1_i32, %221 : i32
    %228 = arith.select %226, %217, %222 : i32
    %c0_i32_68 = arith.constant 0 : i32
    %229 = arith.cmpi eq, %227, %c0_i32_68 : i32
    %230 = arith.select %229, %223, %228 : i32
    %c50_i32_69 = arith.constant 50 : i32
    %231 = arith.subi %c50_i32_69, %230 : i32
    %c28_i32 = arith.constant 28 : i32
    %232 = arith.shli %227, %c28_i32 : i32
    %c0_i32_70 = arith.constant 0 : i32
    %233 = arith.ori %c0_i32_70, %232 : i32
    %c-16777216_i32 = arith.constant -16777216 : i32
    %234 = vector.broadcast %c-16777216_i32 : i32 to vector<3x128xi32>
    %235 = arith.andi %16, %234 : vector<3x128xi32>
    %c251658240_i32 = arith.constant 251658240 : i32
    %236 = arith.ori %233, %c251658240_i32 : i32
    %237 = vector.broadcast %236 : i32 to vector<3x128xi32>
    %238 = arith.cmpi eq, %235, %237 : vector<3x128xi32>
    %239 = arith.extui %238 : vector<3x128xi1> to vector<3x128xi32>
    %240 = vector.shape_cast %239 : vector<3x128xi32> to vector<1x3x128xi32>
    %cst_71 = arith.constant dense<0> : vector<1xi32>
    %241 = vector.multi_reduction <add>, %240, %cst_71 [1, 2] : vector<1x3x128xi32> to vector<1xi32>
    %242 = vector.shape_cast %241 : vector<1xi32> to vector<1x1x1xi32>
    %243 = vector.extract %242[0, 0, 0] : i32 from vector<1x1x1xi32>
    %c234881024_i32 = arith.constant 234881024 : i32
    %244 = arith.ori %233, %c234881024_i32 : i32
    %245 = vector.broadcast %244 : i32 to vector<3x128xi32>
    %246 = arith.cmpi eq, %235, %245 : vector<3x128xi32>
    %247 = arith.extui %246 : vector<3x128xi1> to vector<3x128xi32>
    %248 = vector.shape_cast %247 : vector<3x128xi32> to vector<1x3x128xi32>
    %cst_72 = arith.constant dense<0> : vector<1xi32>
    %249 = vector.multi_reduction <add>, %248, %cst_72 [1, 2] : vector<1x3x128xi32> to vector<1xi32>
    %250 = vector.shape_cast %249 : vector<1xi32> to vector<1x1x1xi32>
    %251 = vector.extract %250[0, 0, 0] : i32 from vector<1x1x1xi32>
    %c218103808_i32 = arith.constant 218103808 : i32
    %252 = arith.ori %233, %c218103808_i32 : i32
    %253 = vector.broadcast %252 : i32 to vector<3x128xi32>
    %254 = arith.cmpi eq, %235, %253 : vector<3x128xi32>
    %255 = arith.extui %254 : vector<3x128xi1> to vector<3x128xi32>
    %256 = vector.shape_cast %255 : vector<3x128xi32> to vector<1x3x128xi32>
    %cst_73 = arith.constant dense<0> : vector<1xi32>
    %257 = vector.multi_reduction <add>, %256, %cst_73 [1, 2] : vector<1x3x128xi32> to vector<1xi32>
    %258 = vector.shape_cast %257 : vector<1xi32> to vector<1x1x1xi32>
    %259 = vector.extract %258[0, 0, 0] : i32 from vector<1x1x1xi32>
    %c201326592_i32 = arith.constant 201326592 : i32
    %260 = arith.ori %233, %c201326592_i32 : i32
    %261 = vector.broadcast %260 : i32 to vector<3x128xi32>
    %262 = arith.cmpi eq, %235, %261 : vector<3x128xi32>
    %263 = arith.extui %262 : vector<3x128xi1> to vector<3x128xi32>
    %264 = vector.shape_cast %263 : vector<3x128xi32> to vector<1x3x128xi32>
    %cst_74 = arith.constant dense<0> : vector<1xi32>
    %265 = vector.multi_reduction <add>, %264, %cst_74 [1, 2] : vector<1x3x128xi32> to vector<1xi32>
    %266 = vector.shape_cast %265 : vector<1xi32> to vector<1x1x1xi32>
    %267 = vector.extract %266[0, 0, 0] : i32 from vector<1x1x1xi32>
    %c184549376_i32 = arith.constant 184549376 : i32
    %268 = arith.ori %233, %c184549376_i32 : i32
    %269 = vector.broadcast %268 : i32 to vector<3x128xi32>
    %270 = arith.cmpi eq, %235, %269 : vector<3x128xi32>
    %271 = arith.extui %270 : vector<3x128xi1> to vector<3x128xi32>
    %272 = vector.shape_cast %271 : vector<3x128xi32> to vector<1x3x128xi32>
    %cst_75 = arith.constant dense<0> : vector<1xi32>
    %273 = vector.multi_reduction <add>, %272, %cst_75 [1, 2] : vector<1x3x128xi32> to vector<1xi32>
    %274 = vector.shape_cast %273 : vector<1xi32> to vector<1x1x1xi32>
    %275 = vector.extract %274[0, 0, 0] : i32 from vector<1x1x1xi32>
    %c167772160_i32 = arith.constant 167772160 : i32
    %276 = arith.ori %233, %c167772160_i32 : i32
    %277 = vector.broadcast %276 : i32 to vector<3x128xi32>
    %278 = arith.cmpi eq, %235, %277 : vector<3x128xi32>
    %279 = arith.extui %278 : vector<3x128xi1> to vector<3x128xi32>
    %280 = vector.shape_cast %279 : vector<3x128xi32> to vector<1x3x128xi32>
    %cst_76 = arith.constant dense<0> : vector<1xi32>
    %281 = vector.multi_reduction <add>, %280, %cst_76 [1, 2] : vector<1x3x128xi32> to vector<1xi32>
    %282 = vector.shape_cast %281 : vector<1xi32> to vector<1x1x1xi32>
    %283 = vector.extract %282[0, 0, 0] : i32 from vector<1x1x1xi32>
    %c150994944_i32 = arith.constant 150994944 : i32
    %284 = arith.ori %233, %c150994944_i32 : i32
    %285 = vector.broadcast %284 : i32 to vector<3x128xi32>
    %286 = arith.cmpi eq, %235, %285 : vector<3x128xi32>
    %287 = arith.extui %286 : vector<3x128xi1> to vector<3x128xi32>
    %288 = vector.shape_cast %287 : vector<3x128xi32> to vector<1x3x128xi32>
    %cst_77 = arith.constant dense<0> : vector<1xi32>
    %289 = vector.multi_reduction <add>, %288, %cst_77 [1, 2] : vector<1x3x128xi32> to vector<1xi32>
    %290 = vector.shape_cast %289 : vector<1xi32> to vector<1x1x1xi32>
    %291 = vector.extract %290[0, 0, 0] : i32 from vector<1x1x1xi32>
    %c134217728_i32 = arith.constant 134217728 : i32
    %292 = arith.ori %233, %c134217728_i32 : i32
    %293 = vector.broadcast %292 : i32 to vector<3x128xi32>
    %294 = arith.cmpi eq, %235, %293 : vector<3x128xi32>
    %295 = arith.extui %294 : vector<3x128xi1> to vector<3x128xi32>
    %296 = vector.shape_cast %295 : vector<3x128xi32> to vector<1x3x128xi32>
    %cst_78 = arith.constant dense<0> : vector<1xi32>
    %297 = vector.multi_reduction <add>, %296, %cst_78 [1, 2] : vector<1x3x128xi32> to vector<1xi32>
    %298 = vector.shape_cast %297 : vector<1xi32> to vector<1x1x1xi32>
    %299 = vector.extract %298[0, 0, 0] : i32 from vector<1x1x1xi32>
    %c117440512_i32 = arith.constant 117440512 : i32
    %300 = arith.ori %233, %c117440512_i32 : i32
    %301 = vector.broadcast %300 : i32 to vector<3x128xi32>
    %302 = arith.cmpi eq, %235, %301 : vector<3x128xi32>
    %303 = arith.extui %302 : vector<3x128xi1> to vector<3x128xi32>
    %304 = vector.shape_cast %303 : vector<3x128xi32> to vector<1x3x128xi32>
    %cst_79 = arith.constant dense<0> : vector<1xi32>
    %305 = vector.multi_reduction <add>, %304, %cst_79 [1, 2] : vector<1x3x128xi32> to vector<1xi32>
    %306 = vector.shape_cast %305 : vector<1xi32> to vector<1x1x1xi32>
    %307 = vector.extract %306[0, 0, 0] : i32 from vector<1x1x1xi32>
    %c100663296_i32 = arith.constant 100663296 : i32
    %308 = arith.ori %233, %c100663296_i32 : i32
    %309 = vector.broadcast %308 : i32 to vector<3x128xi32>
    %310 = arith.cmpi eq, %235, %309 : vector<3x128xi32>
    %311 = arith.extui %310 : vector<3x128xi1> to vector<3x128xi32>
    %312 = vector.shape_cast %311 : vector<3x128xi32> to vector<1x3x128xi32>
    %cst_80 = arith.constant dense<0> : vector<1xi32>
    %313 = vector.multi_reduction <add>, %312, %cst_80 [1, 2] : vector<1x3x128xi32> to vector<1xi32>
    %314 = vector.shape_cast %313 : vector<1xi32> to vector<1x1x1xi32>
    %315 = vector.extract %314[0, 0, 0] : i32 from vector<1x1x1xi32>
    %c83886080_i32 = arith.constant 83886080 : i32
    %316 = arith.ori %233, %c83886080_i32 : i32
    %317 = vector.broadcast %316 : i32 to vector<3x128xi32>
    %318 = arith.cmpi eq, %235, %317 : vector<3x128xi32>
    %319 = arith.extui %318 : vector<3x128xi1> to vector<3x128xi32>
    %320 = vector.shape_cast %319 : vector<3x128xi32> to vector<1x3x128xi32>
    %cst_81 = arith.constant dense<0> : vector<1xi32>
    %321 = vector.multi_reduction <add>, %320, %cst_81 [1, 2] : vector<1x3x128xi32> to vector<1xi32>
    %322 = vector.shape_cast %321 : vector<1xi32> to vector<1x1x1xi32>
    %323 = vector.extract %322[0, 0, 0] : i32 from vector<1x1x1xi32>
    %c67108864_i32 = arith.constant 67108864 : i32
    %324 = arith.ori %233, %c67108864_i32 : i32
    %325 = vector.broadcast %324 : i32 to vector<3x128xi32>
    %326 = arith.cmpi eq, %235, %325 : vector<3x128xi32>
    %327 = arith.extui %326 : vector<3x128xi1> to vector<3x128xi32>
    %328 = vector.shape_cast %327 : vector<3x128xi32> to vector<1x3x128xi32>
    %cst_82 = arith.constant dense<0> : vector<1xi32>
    %329 = vector.multi_reduction <add>, %328, %cst_82 [1, 2] : vector<1x3x128xi32> to vector<1xi32>
    %330 = vector.shape_cast %329 : vector<1xi32> to vector<1x1x1xi32>
    %331 = vector.extract %330[0, 0, 0] : i32 from vector<1x1x1xi32>
    %c50331648_i32 = arith.constant 50331648 : i32
    %332 = arith.ori %233, %c50331648_i32 : i32
    %333 = vector.broadcast %332 : i32 to vector<3x128xi32>
    %334 = arith.cmpi eq, %235, %333 : vector<3x128xi32>
    %335 = arith.extui %334 : vector<3x128xi1> to vector<3x128xi32>
    %336 = vector.shape_cast %335 : vector<3x128xi32> to vector<1x3x128xi32>
    %cst_83 = arith.constant dense<0> : vector<1xi32>
    %337 = vector.multi_reduction <add>, %336, %cst_83 [1, 2] : vector<1x3x128xi32> to vector<1xi32>
    %338 = vector.shape_cast %337 : vector<1xi32> to vector<1x1x1xi32>
    %339 = vector.extract %338[0, 0, 0] : i32 from vector<1x1x1xi32>
    %c33554432_i32 = arith.constant 33554432 : i32
    %340 = arith.ori %233, %c33554432_i32 : i32
    %341 = vector.broadcast %340 : i32 to vector<3x128xi32>
    %342 = arith.cmpi eq, %235, %341 : vector<3x128xi32>
    %343 = arith.extui %342 : vector<3x128xi1> to vector<3x128xi32>
    %344 = vector.shape_cast %343 : vector<3x128xi32> to vector<1x3x128xi32>
    %cst_84 = arith.constant dense<0> : vector<1xi32>
    %345 = vector.multi_reduction <add>, %344, %cst_84 [1, 2] : vector<1x3x128xi32> to vector<1xi32>
    %346 = vector.shape_cast %345 : vector<1xi32> to vector<1x1x1xi32>
    %347 = vector.extract %346[0, 0, 0] : i32 from vector<1x1x1xi32>
    %c16777216_i32 = arith.constant 16777216 : i32
    %348 = arith.ori %233, %c16777216_i32 : i32
    %349 = vector.broadcast %348 : i32 to vector<3x128xi32>
    %350 = arith.cmpi eq, %235, %349 : vector<3x128xi32>
    %351 = arith.extui %350 : vector<3x128xi1> to vector<3x128xi32>
    %352 = vector.shape_cast %351 : vector<3x128xi32> to vector<1x3x128xi32>
    %cst_85 = arith.constant dense<0> : vector<1xi32>
    %353 = vector.multi_reduction <add>, %352, %cst_85 [1, 2] : vector<1x3x128xi32> to vector<1xi32>
    %354 = vector.shape_cast %353 : vector<1xi32> to vector<1x1x1xi32>
    %355 = vector.extract %354[0, 0, 0] : i32 from vector<1x1x1xi32>
    %c0_i32_86 = arith.constant 0 : i32
    %356 = arith.addi %c0_i32_86, %243 : i32
    %357 = arith.cmpi sge, %356, %231 : i32
    %c0_i32_87 = arith.constant 0 : i32
    %c0_i32_88 = arith.constant 0 : i32
    %358 = arith.cmpi eq, %c0_i32_87, %c0_i32_88 : i32
    %359 = arith.andi %357, %358 : i1
    %c15_i32_89 = arith.constant 15 : i32
    %c0_i32_90 = arith.constant 0 : i32
    %360 = arith.select %359, %c15_i32_89, %c0_i32_90 : i32
    %c0_i32_91 = arith.constant 0 : i32
    %c0_i32_92 = arith.constant 0 : i32
    %361 = arith.select %359, %c0_i32_91, %c0_i32_92 : i32
    %362 = arith.addi %356, %251 : i32
    %363 = arith.cmpi sge, %362, %231 : i32
    %c0_i32_93 = arith.constant 0 : i32
    %364 = arith.cmpi eq, %360, %c0_i32_93 : i32
    %365 = arith.andi %363, %364 : i1
    %c14_i32_94 = arith.constant 14 : i32
    %366 = arith.select %365, %c14_i32_94, %360 : i32
    %367 = arith.select %365, %356, %361 : i32
    %368 = arith.addi %362, %259 : i32
    %369 = arith.cmpi sge, %368, %231 : i32
    %c0_i32_95 = arith.constant 0 : i32
    %370 = arith.cmpi eq, %366, %c0_i32_95 : i32
    %371 = arith.andi %369, %370 : i1
    %c13_i32_96 = arith.constant 13 : i32
    %372 = arith.select %371, %c13_i32_96, %366 : i32
    %373 = arith.select %371, %362, %367 : i32
    %374 = arith.addi %368, %267 : i32
    %375 = arith.cmpi sge, %374, %231 : i32
    %c0_i32_97 = arith.constant 0 : i32
    %376 = arith.cmpi eq, %372, %c0_i32_97 : i32
    %377 = arith.andi %375, %376 : i1
    %c12_i32_98 = arith.constant 12 : i32
    %378 = arith.select %377, %c12_i32_98, %372 : i32
    %379 = arith.select %377, %368, %373 : i32
    %380 = arith.addi %374, %275 : i32
    %381 = arith.cmpi sge, %380, %231 : i32
    %c0_i32_99 = arith.constant 0 : i32
    %382 = arith.cmpi eq, %378, %c0_i32_99 : i32
    %383 = arith.andi %381, %382 : i1
    %c11_i32_100 = arith.constant 11 : i32
    %384 = arith.select %383, %c11_i32_100, %378 : i32
    %385 = arith.select %383, %374, %379 : i32
    %386 = arith.addi %380, %283 : i32
    %387 = arith.cmpi sge, %386, %231 : i32
    %c0_i32_101 = arith.constant 0 : i32
    %388 = arith.cmpi eq, %384, %c0_i32_101 : i32
    %389 = arith.andi %387, %388 : i1
    %c10_i32_102 = arith.constant 10 : i32
    %390 = arith.select %389, %c10_i32_102, %384 : i32
    %391 = arith.select %389, %380, %385 : i32
    %392 = arith.addi %386, %291 : i32
    %393 = arith.cmpi sge, %392, %231 : i32
    %c0_i32_103 = arith.constant 0 : i32
    %394 = arith.cmpi eq, %390, %c0_i32_103 : i32
    %395 = arith.andi %393, %394 : i1
    %c9_i32_104 = arith.constant 9 : i32
    %396 = arith.select %395, %c9_i32_104, %390 : i32
    %397 = arith.select %395, %386, %391 : i32
    %398 = arith.addi %392, %299 : i32
    %399 = arith.cmpi sge, %398, %231 : i32
    %c0_i32_105 = arith.constant 0 : i32
    %400 = arith.cmpi eq, %396, %c0_i32_105 : i32
    %401 = arith.andi %399, %400 : i1
    %c8_i32_106 = arith.constant 8 : i32
    %402 = arith.select %401, %c8_i32_106, %396 : i32
    %403 = arith.select %401, %392, %397 : i32
    %404 = arith.addi %398, %307 : i32
    %405 = arith.cmpi sge, %404, %231 : i32
    %c0_i32_107 = arith.constant 0 : i32
    %406 = arith.cmpi eq, %402, %c0_i32_107 : i32
    %407 = arith.andi %405, %406 : i1
    %c7_i32_108 = arith.constant 7 : i32
    %408 = arith.select %407, %c7_i32_108, %402 : i32
    %409 = arith.select %407, %398, %403 : i32
    %410 = arith.addi %404, %315 : i32
    %411 = arith.cmpi sge, %410, %231 : i32
    %c0_i32_109 = arith.constant 0 : i32
    %412 = arith.cmpi eq, %408, %c0_i32_109 : i32
    %413 = arith.andi %411, %412 : i1
    %c6_i32_110 = arith.constant 6 : i32
    %414 = arith.select %413, %c6_i32_110, %408 : i32
    %415 = arith.select %413, %404, %409 : i32
    %416 = arith.addi %410, %323 : i32
    %417 = arith.cmpi sge, %416, %231 : i32
    %c0_i32_111 = arith.constant 0 : i32
    %418 = arith.cmpi eq, %414, %c0_i32_111 : i32
    %419 = arith.andi %417, %418 : i1
    %c5_i32_112 = arith.constant 5 : i32
    %420 = arith.select %419, %c5_i32_112, %414 : i32
    %421 = arith.select %419, %410, %415 : i32
    %422 = arith.addi %416, %331 : i32
    %423 = arith.cmpi sge, %422, %231 : i32
    %c0_i32_113 = arith.constant 0 : i32
    %424 = arith.cmpi eq, %420, %c0_i32_113 : i32
    %425 = arith.andi %423, %424 : i1
    %c4_i32_114 = arith.constant 4 : i32
    %426 = arith.select %425, %c4_i32_114, %420 : i32
    %427 = arith.select %425, %416, %421 : i32
    %428 = arith.addi %422, %339 : i32
    %429 = arith.cmpi sge, %428, %231 : i32
    %c0_i32_115 = arith.constant 0 : i32
    %430 = arith.cmpi eq, %426, %c0_i32_115 : i32
    %431 = arith.andi %429, %430 : i1
    %c3_i32_116 = arith.constant 3 : i32
    %432 = arith.select %431, %c3_i32_116, %426 : i32
    %433 = arith.select %431, %422, %427 : i32
    %434 = arith.addi %428, %347 : i32
    %435 = arith.cmpi sge, %434, %231 : i32
    %c0_i32_117 = arith.constant 0 : i32
    %436 = arith.cmpi eq, %432, %c0_i32_117 : i32
    %437 = arith.andi %435, %436 : i1
    %c2_i32_118 = arith.constant 2 : i32
    %438 = arith.select %437, %c2_i32_118, %432 : i32
    %439 = arith.select %437, %428, %433 : i32
    %440 = arith.addi %434, %355 : i32
    %441 = arith.cmpi sge, %440, %231 : i32
    %c0_i32_119 = arith.constant 0 : i32
    %442 = arith.cmpi eq, %438, %c0_i32_119 : i32
    %443 = arith.andi %441, %442 : i1
    %c1_i32_120 = arith.constant 1 : i32
    %444 = arith.select %443, %c1_i32_120, %438 : i32
    %445 = arith.select %443, %434, %439 : i32
    %c0_i32_121 = arith.constant 0 : i32
    %446 = arith.cmpi eq, %444, %c0_i32_121 : i32
    %447 = arith.select %446, %440, %445 : i32
    %448 = arith.subi %231, %447 : i32
    %c24_i32 = arith.constant 24 : i32
    %449 = arith.shli %444, %c24_i32 : i32
    %450 = arith.ori %233, %449 : i32
    %c-1048576_i32 = arith.constant -1048576 : i32
    %451 = vector.broadcast %c-1048576_i32 : i32 to vector<3x128xi32>
    %452 = arith.andi %16, %451 : vector<3x128xi32>
    %c15728640_i32 = arith.constant 15728640 : i32
    %453 = arith.ori %450, %c15728640_i32 : i32
    %454 = vector.broadcast %453 : i32 to vector<3x128xi32>
    %455 = arith.cmpi eq, %452, %454 : vector<3x128xi32>
    %456 = arith.extui %455 : vector<3x128xi1> to vector<3x128xi32>
    %457 = vector.shape_cast %456 : vector<3x128xi32> to vector<1x3x128xi32>
    %cst_122 = arith.constant dense<0> : vector<1xi32>
    %458 = vector.multi_reduction <add>, %457, %cst_122 [1, 2] : vector<1x3x128xi32> to vector<1xi32>
    %459 = vector.shape_cast %458 : vector<1xi32> to vector<1x1x1xi32>
    %460 = vector.extract %459[0, 0, 0] : i32 from vector<1x1x1xi32>
    %c14680064_i32 = arith.constant 14680064 : i32
    %461 = arith.ori %450, %c14680064_i32 : i32
    %462 = vector.broadcast %461 : i32 to vector<3x128xi32>
    %463 = arith.cmpi eq, %452, %462 : vector<3x128xi32>
    %464 = arith.extui %463 : vector<3x128xi1> to vector<3x128xi32>
    %465 = vector.shape_cast %464 : vector<3x128xi32> to vector<1x3x128xi32>
    %cst_123 = arith.constant dense<0> : vector<1xi32>
    %466 = vector.multi_reduction <add>, %465, %cst_123 [1, 2] : vector<1x3x128xi32> to vector<1xi32>
    %467 = vector.shape_cast %466 : vector<1xi32> to vector<1x1x1xi32>
    %468 = vector.extract %467[0, 0, 0] : i32 from vector<1x1x1xi32>
    %c13631488_i32 = arith.constant 13631488 : i32
    %469 = arith.ori %450, %c13631488_i32 : i32
    %470 = vector.broadcast %469 : i32 to vector<3x128xi32>
    %471 = arith.cmpi eq, %452, %470 : vector<3x128xi32>
    %472 = arith.extui %471 : vector<3x128xi1> to vector<3x128xi32>
    %473 = vector.shape_cast %472 : vector<3x128xi32> to vector<1x3x128xi32>
    %cst_124 = arith.constant dense<0> : vector<1xi32>
    %474 = vector.multi_reduction <add>, %473, %cst_124 [1, 2] : vector<1x3x128xi32> to vector<1xi32>
    %475 = vector.shape_cast %474 : vector<1xi32> to vector<1x1x1xi32>
    %476 = vector.extract %475[0, 0, 0] : i32 from vector<1x1x1xi32>
    %c12582912_i32 = arith.constant 12582912 : i32
    %477 = arith.ori %450, %c12582912_i32 : i32
    %478 = vector.broadcast %477 : i32 to vector<3x128xi32>
    %479 = arith.cmpi eq, %452, %478 : vector<3x128xi32>
    %480 = arith.extui %479 : vector<3x128xi1> to vector<3x128xi32>
    %481 = vector.shape_cast %480 : vector<3x128xi32> to vector<1x3x128xi32>
    %cst_125 = arith.constant dense<0> : vector<1xi32>
    %482 = vector.multi_reduction <add>, %481, %cst_125 [1, 2] : vector<1x3x128xi32> to vector<1xi32>
    %483 = vector.shape_cast %482 : vector<1xi32> to vector<1x1x1xi32>
    %484 = vector.extract %483[0, 0, 0] : i32 from vector<1x1x1xi32>
    %c11534336_i32 = arith.constant 11534336 : i32
    %485 = arith.ori %450, %c11534336_i32 : i32
    %486 = vector.broadcast %485 : i32 to vector<3x128xi32>
    %487 = arith.cmpi eq, %452, %486 : vector<3x128xi32>
    %488 = arith.extui %487 : vector<3x128xi1> to vector<3x128xi32>
    %489 = vector.shape_cast %488 : vector<3x128xi32> to vector<1x3x128xi32>
    %cst_126 = arith.constant dense<0> : vector<1xi32>
    %490 = vector.multi_reduction <add>, %489, %cst_126 [1, 2] : vector<1x3x128xi32> to vector<1xi32>
    %491 = vector.shape_cast %490 : vector<1xi32> to vector<1x1x1xi32>
    %492 = vector.extract %491[0, 0, 0] : i32 from vector<1x1x1xi32>
    %c10485760_i32 = arith.constant 10485760 : i32
    %493 = arith.ori %450, %c10485760_i32 : i32
    %494 = vector.broadcast %493 : i32 to vector<3x128xi32>
    %495 = arith.cmpi eq, %452, %494 : vector<3x128xi32>
    %496 = arith.extui %495 : vector<3x128xi1> to vector<3x128xi32>
    %497 = vector.shape_cast %496 : vector<3x128xi32> to vector<1x3x128xi32>
    %cst_127 = arith.constant dense<0> : vector<1xi32>
    %498 = vector.multi_reduction <add>, %497, %cst_127 [1, 2] : vector<1x3x128xi32> to vector<1xi32>
    %499 = vector.shape_cast %498 : vector<1xi32> to vector<1x1x1xi32>
    %500 = vector.extract %499[0, 0, 0] : i32 from vector<1x1x1xi32>
    %c9437184_i32 = arith.constant 9437184 : i32
    %501 = arith.ori %450, %c9437184_i32 : i32
    %502 = vector.broadcast %501 : i32 to vector<3x128xi32>
    %503 = arith.cmpi eq, %452, %502 : vector<3x128xi32>
    %504 = arith.extui %503 : vector<3x128xi1> to vector<3x128xi32>
    %505 = vector.shape_cast %504 : vector<3x128xi32> to vector<1x3x128xi32>
    %cst_128 = arith.constant dense<0> : vector<1xi32>
    %506 = vector.multi_reduction <add>, %505, %cst_128 [1, 2] : vector<1x3x128xi32> to vector<1xi32>
    %507 = vector.shape_cast %506 : vector<1xi32> to vector<1x1x1xi32>
    %508 = vector.extract %507[0, 0, 0] : i32 from vector<1x1x1xi32>
    %c8388608_i32 = arith.constant 8388608 : i32
    %509 = arith.ori %450, %c8388608_i32 : i32
    %510 = vector.broadcast %509 : i32 to vector<3x128xi32>
    %511 = arith.cmpi eq, %452, %510 : vector<3x128xi32>
    %512 = arith.extui %511 : vector<3x128xi1> to vector<3x128xi32>
    %513 = vector.shape_cast %512 : vector<3x128xi32> to vector<1x3x128xi32>
    %cst_129 = arith.constant dense<0> : vector<1xi32>
    %514 = vector.multi_reduction <add>, %513, %cst_129 [1, 2] : vector<1x3x128xi32> to vector<1xi32>
    %515 = vector.shape_cast %514 : vector<1xi32> to vector<1x1x1xi32>
    %516 = vector.extract %515[0, 0, 0] : i32 from vector<1x1x1xi32>
    %c7340032_i32 = arith.constant 7340032 : i32
    %517 = arith.ori %450, %c7340032_i32 : i32
    %518 = vector.broadcast %517 : i32 to vector<3x128xi32>
    %519 = arith.cmpi eq, %452, %518 : vector<3x128xi32>
    %520 = arith.extui %519 : vector<3x128xi1> to vector<3x128xi32>
    %521 = vector.shape_cast %520 : vector<3x128xi32> to vector<1x3x128xi32>
    %cst_130 = arith.constant dense<0> : vector<1xi32>
    %522 = vector.multi_reduction <add>, %521, %cst_130 [1, 2] : vector<1x3x128xi32> to vector<1xi32>
    %523 = vector.shape_cast %522 : vector<1xi32> to vector<1x1x1xi32>
    %524 = vector.extract %523[0, 0, 0] : i32 from vector<1x1x1xi32>
    %c6291456_i32 = arith.constant 6291456 : i32
    %525 = arith.ori %450, %c6291456_i32 : i32
    %526 = vector.broadcast %525 : i32 to vector<3x128xi32>
    %527 = arith.cmpi eq, %452, %526 : vector<3x128xi32>
    %528 = arith.extui %527 : vector<3x128xi1> to vector<3x128xi32>
    %529 = vector.shape_cast %528 : vector<3x128xi32> to vector<1x3x128xi32>
    %cst_131 = arith.constant dense<0> : vector<1xi32>
    %530 = vector.multi_reduction <add>, %529, %cst_131 [1, 2] : vector<1x3x128xi32> to vector<1xi32>
    %531 = vector.shape_cast %530 : vector<1xi32> to vector<1x1x1xi32>
    %532 = vector.extract %531[0, 0, 0] : i32 from vector<1x1x1xi32>
    %c5242880_i32 = arith.constant 5242880 : i32
    %533 = arith.ori %450, %c5242880_i32 : i32
    %534 = vector.broadcast %533 : i32 to vector<3x128xi32>
    %535 = arith.cmpi eq, %452, %534 : vector<3x128xi32>
    %536 = arith.extui %535 : vector<3x128xi1> to vector<3x128xi32>
    %537 = vector.shape_cast %536 : vector<3x128xi32> to vector<1x3x128xi32>
    %cst_132 = arith.constant dense<0> : vector<1xi32>
    %538 = vector.multi_reduction <add>, %537, %cst_132 [1, 2] : vector<1x3x128xi32> to vector<1xi32>
    %539 = vector.shape_cast %538 : vector<1xi32> to vector<1x1x1xi32>
    %540 = vector.extract %539[0, 0, 0] : i32 from vector<1x1x1xi32>
    %c4194304_i32 = arith.constant 4194304 : i32
    %541 = arith.ori %450, %c4194304_i32 : i32
    %542 = vector.broadcast %541 : i32 to vector<3x128xi32>
    %543 = arith.cmpi eq, %452, %542 : vector<3x128xi32>
    %544 = arith.extui %543 : vector<3x128xi1> to vector<3x128xi32>
    %545 = vector.shape_cast %544 : vector<3x128xi32> to vector<1x3x128xi32>
    %cst_133 = arith.constant dense<0> : vector<1xi32>
    %546 = vector.multi_reduction <add>, %545, %cst_133 [1, 2] : vector<1x3x128xi32> to vector<1xi32>
    %547 = vector.shape_cast %546 : vector<1xi32> to vector<1x1x1xi32>
    %548 = vector.extract %547[0, 0, 0] : i32 from vector<1x1x1xi32>
    %c3145728_i32 = arith.constant 3145728 : i32
    %549 = arith.ori %450, %c3145728_i32 : i32
    %550 = vector.broadcast %549 : i32 to vector<3x128xi32>
    %551 = arith.cmpi eq, %452, %550 : vector<3x128xi32>
    %552 = arith.extui %551 : vector<3x128xi1> to vector<3x128xi32>
    %553 = vector.shape_cast %552 : vector<3x128xi32> to vector<1x3x128xi32>
    %cst_134 = arith.constant dense<0> : vector<1xi32>
    %554 = vector.multi_reduction <add>, %553, %cst_134 [1, 2] : vector<1x3x128xi32> to vector<1xi32>
    %555 = vector.shape_cast %554 : vector<1xi32> to vector<1x1x1xi32>
    %556 = vector.extract %555[0, 0, 0] : i32 from vector<1x1x1xi32>
    %c2097152_i32 = arith.constant 2097152 : i32
    %557 = arith.ori %450, %c2097152_i32 : i32
    %558 = vector.broadcast %557 : i32 to vector<3x128xi32>
    %559 = arith.cmpi eq, %452, %558 : vector<3x128xi32>
    %560 = arith.extui %559 : vector<3x128xi1> to vector<3x128xi32>
    %561 = vector.shape_cast %560 : vector<3x128xi32> to vector<1x3x128xi32>
    %cst_135 = arith.constant dense<0> : vector<1xi32>
    %562 = vector.multi_reduction <add>, %561, %cst_135 [1, 2] : vector<1x3x128xi32> to vector<1xi32>
    %563 = vector.shape_cast %562 : vector<1xi32> to vector<1x1x1xi32>
    %564 = vector.extract %563[0, 0, 0] : i32 from vector<1x1x1xi32>
    %c1048576_i32 = arith.constant 1048576 : i32
    %565 = arith.ori %450, %c1048576_i32 : i32
    %566 = vector.broadcast %565 : i32 to vector<3x128xi32>
    %567 = arith.cmpi eq, %452, %566 : vector<3x128xi32>
    %568 = arith.extui %567 : vector<3x128xi1> to vector<3x128xi32>
    %569 = vector.shape_cast %568 : vector<3x128xi32> to vector<1x3x128xi32>
    %cst_136 = arith.constant dense<0> : vector<1xi32>
    %570 = vector.multi_reduction <add>, %569, %cst_136 [1, 2] : vector<1x3x128xi32> to vector<1xi32>
    %571 = vector.shape_cast %570 : vector<1xi32> to vector<1x1x1xi32>
    %572 = vector.extract %571[0, 0, 0] : i32 from vector<1x1x1xi32>
    %c0_i32_137 = arith.constant 0 : i32
    %573 = arith.addi %c0_i32_137, %460 : i32
    %574 = arith.cmpi sge, %573, %448 : i32
    %c0_i32_138 = arith.constant 0 : i32
    %c0_i32_139 = arith.constant 0 : i32
    %575 = arith.cmpi eq, %c0_i32_138, %c0_i32_139 : i32
    %576 = arith.andi %574, %575 : i1
    %c15_i32_140 = arith.constant 15 : i32
    %c0_i32_141 = arith.constant 0 : i32
    %577 = arith.select %576, %c15_i32_140, %c0_i32_141 : i32
    %c0_i32_142 = arith.constant 0 : i32
    %c0_i32_143 = arith.constant 0 : i32
    %578 = arith.select %576, %c0_i32_142, %c0_i32_143 : i32
    %579 = arith.addi %573, %468 : i32
    %580 = arith.cmpi sge, %579, %448 : i32
    %c0_i32_144 = arith.constant 0 : i32
    %581 = arith.cmpi eq, %577, %c0_i32_144 : i32
    %582 = arith.andi %580, %581 : i1
    %c14_i32_145 = arith.constant 14 : i32
    %583 = arith.select %582, %c14_i32_145, %577 : i32
    %584 = arith.select %582, %573, %578 : i32
    %585 = arith.addi %579, %476 : i32
    %586 = arith.cmpi sge, %585, %448 : i32
    %c0_i32_146 = arith.constant 0 : i32
    %587 = arith.cmpi eq, %583, %c0_i32_146 : i32
    %588 = arith.andi %586, %587 : i1
    %c13_i32_147 = arith.constant 13 : i32
    %589 = arith.select %588, %c13_i32_147, %583 : i32
    %590 = arith.select %588, %579, %584 : i32
    %591 = arith.addi %585, %484 : i32
    %592 = arith.cmpi sge, %591, %448 : i32
    %c0_i32_148 = arith.constant 0 : i32
    %593 = arith.cmpi eq, %589, %c0_i32_148 : i32
    %594 = arith.andi %592, %593 : i1
    %c12_i32_149 = arith.constant 12 : i32
    %595 = arith.select %594, %c12_i32_149, %589 : i32
    %596 = arith.select %594, %585, %590 : i32
    %597 = arith.addi %591, %492 : i32
    %598 = arith.cmpi sge, %597, %448 : i32
    %c0_i32_150 = arith.constant 0 : i32
    %599 = arith.cmpi eq, %595, %c0_i32_150 : i32
    %600 = arith.andi %598, %599 : i1
    %c11_i32_151 = arith.constant 11 : i32
    %601 = arith.select %600, %c11_i32_151, %595 : i32
    %602 = arith.select %600, %591, %596 : i32
    %603 = arith.addi %597, %500 : i32
    %604 = arith.cmpi sge, %603, %448 : i32
    %c0_i32_152 = arith.constant 0 : i32
    %605 = arith.cmpi eq, %601, %c0_i32_152 : i32
    %606 = arith.andi %604, %605 : i1
    %c10_i32_153 = arith.constant 10 : i32
    %607 = arith.select %606, %c10_i32_153, %601 : i32
    %608 = arith.select %606, %597, %602 : i32
    %609 = arith.addi %603, %508 : i32
    %610 = arith.cmpi sge, %609, %448 : i32
    %c0_i32_154 = arith.constant 0 : i32
    %611 = arith.cmpi eq, %607, %c0_i32_154 : i32
    %612 = arith.andi %610, %611 : i1
    %c9_i32_155 = arith.constant 9 : i32
    %613 = arith.select %612, %c9_i32_155, %607 : i32
    %614 = arith.select %612, %603, %608 : i32
    %615 = arith.addi %609, %516 : i32
    %616 = arith.cmpi sge, %615, %448 : i32
    %c0_i32_156 = arith.constant 0 : i32
    %617 = arith.cmpi eq, %613, %c0_i32_156 : i32
    %618 = arith.andi %616, %617 : i1
    %c8_i32_157 = arith.constant 8 : i32
    %619 = arith.select %618, %c8_i32_157, %613 : i32
    %620 = arith.select %618, %609, %614 : i32
    %621 = arith.addi %615, %524 : i32
    %622 = arith.cmpi sge, %621, %448 : i32
    %c0_i32_158 = arith.constant 0 : i32
    %623 = arith.cmpi eq, %619, %c0_i32_158 : i32
    %624 = arith.andi %622, %623 : i1
    %c7_i32_159 = arith.constant 7 : i32
    %625 = arith.select %624, %c7_i32_159, %619 : i32
    %626 = arith.select %624, %615, %620 : i32
    %627 = arith.addi %621, %532 : i32
    %628 = arith.cmpi sge, %627, %448 : i32
    %c0_i32_160 = arith.constant 0 : i32
    %629 = arith.cmpi eq, %625, %c0_i32_160 : i32
    %630 = arith.andi %628, %629 : i1
    %c6_i32_161 = arith.constant 6 : i32
    %631 = arith.select %630, %c6_i32_161, %625 : i32
    %632 = arith.select %630, %621, %626 : i32
    %633 = arith.addi %627, %540 : i32
    %634 = arith.cmpi sge, %633, %448 : i32
    %c0_i32_162 = arith.constant 0 : i32
    %635 = arith.cmpi eq, %631, %c0_i32_162 : i32
    %636 = arith.andi %634, %635 : i1
    %c5_i32_163 = arith.constant 5 : i32
    %637 = arith.select %636, %c5_i32_163, %631 : i32
    %638 = arith.select %636, %627, %632 : i32
    %639 = arith.addi %633, %548 : i32
    %640 = arith.cmpi sge, %639, %448 : i32
    %c0_i32_164 = arith.constant 0 : i32
    %641 = arith.cmpi eq, %637, %c0_i32_164 : i32
    %642 = arith.andi %640, %641 : i1
    %c4_i32_165 = arith.constant 4 : i32
    %643 = arith.select %642, %c4_i32_165, %637 : i32
    %644 = arith.select %642, %633, %638 : i32
    %645 = arith.addi %639, %556 : i32
    %646 = arith.cmpi sge, %645, %448 : i32
    %c0_i32_166 = arith.constant 0 : i32
    %647 = arith.cmpi eq, %643, %c0_i32_166 : i32
    %648 = arith.andi %646, %647 : i1
    %c3_i32_167 = arith.constant 3 : i32
    %649 = arith.select %648, %c3_i32_167, %643 : i32
    %650 = arith.select %648, %639, %644 : i32
    %651 = arith.addi %645, %564 : i32
    %652 = arith.cmpi sge, %651, %448 : i32
    %c0_i32_168 = arith.constant 0 : i32
    %653 = arith.cmpi eq, %649, %c0_i32_168 : i32
    %654 = arith.andi %652, %653 : i1
    %c2_i32_169 = arith.constant 2 : i32
    %655 = arith.select %654, %c2_i32_169, %649 : i32
    %656 = arith.select %654, %645, %650 : i32
    %657 = arith.addi %651, %572 : i32
    %658 = arith.cmpi sge, %657, %448 : i32
    %c0_i32_170 = arith.constant 0 : i32
    %659 = arith.cmpi eq, %655, %c0_i32_170 : i32
    %660 = arith.andi %658, %659 : i1
    %c1_i32_171 = arith.constant 1 : i32
    %661 = arith.select %660, %c1_i32_171, %655 : i32
    %662 = arith.select %660, %651, %656 : i32
    %c0_i32_172 = arith.constant 0 : i32
    %663 = arith.cmpi eq, %661, %c0_i32_172 : i32
    %664 = arith.select %663, %657, %662 : i32
    %665 = arith.subi %448, %664 : i32
    %c20_i32 = arith.constant 20 : i32
    %666 = arith.shli %661, %c20_i32 : i32
    %667 = arith.ori %450, %666 : i32
    %c-65536_i32 = arith.constant -65536 : i32
    %668 = vector.broadcast %c-65536_i32 : i32 to vector<3x128xi32>
    %669 = arith.andi %16, %668 : vector<3x128xi32>
    %c983040_i32 = arith.constant 983040 : i32
    %670 = arith.ori %667, %c983040_i32 : i32
    %671 = vector.broadcast %670 : i32 to vector<3x128xi32>
    %672 = arith.cmpi eq, %669, %671 : vector<3x128xi32>
    %673 = arith.extui %672 : vector<3x128xi1> to vector<3x128xi32>
    %674 = vector.shape_cast %673 : vector<3x128xi32> to vector<1x3x128xi32>
    %cst_173 = arith.constant dense<0> : vector<1xi32>
    %675 = vector.multi_reduction <add>, %674, %cst_173 [1, 2] : vector<1x3x128xi32> to vector<1xi32>
    %676 = vector.shape_cast %675 : vector<1xi32> to vector<1x1x1xi32>
    %677 = vector.extract %676[0, 0, 0] : i32 from vector<1x1x1xi32>
    %c917504_i32 = arith.constant 917504 : i32
    %678 = arith.ori %667, %c917504_i32 : i32
    %679 = vector.broadcast %678 : i32 to vector<3x128xi32>
    %680 = arith.cmpi eq, %669, %679 : vector<3x128xi32>
    %681 = arith.extui %680 : vector<3x128xi1> to vector<3x128xi32>
    %682 = vector.shape_cast %681 : vector<3x128xi32> to vector<1x3x128xi32>
    %cst_174 = arith.constant dense<0> : vector<1xi32>
    %683 = vector.multi_reduction <add>, %682, %cst_174 [1, 2] : vector<1x3x128xi32> to vector<1xi32>
    %684 = vector.shape_cast %683 : vector<1xi32> to vector<1x1x1xi32>
    %685 = vector.extract %684[0, 0, 0] : i32 from vector<1x1x1xi32>
    %c851968_i32 = arith.constant 851968 : i32
    %686 = arith.ori %667, %c851968_i32 : i32
    %687 = vector.broadcast %686 : i32 to vector<3x128xi32>
    %688 = arith.cmpi eq, %669, %687 : vector<3x128xi32>
    %689 = arith.extui %688 : vector<3x128xi1> to vector<3x128xi32>
    %690 = vector.shape_cast %689 : vector<3x128xi32> to vector<1x3x128xi32>
    %cst_175 = arith.constant dense<0> : vector<1xi32>
    %691 = vector.multi_reduction <add>, %690, %cst_175 [1, 2] : vector<1x3x128xi32> to vector<1xi32>
    %692 = vector.shape_cast %691 : vector<1xi32> to vector<1x1x1xi32>
    %693 = vector.extract %692[0, 0, 0] : i32 from vector<1x1x1xi32>
    %c786432_i32 = arith.constant 786432 : i32
    %694 = arith.ori %667, %c786432_i32 : i32
    %695 = vector.broadcast %694 : i32 to vector<3x128xi32>
    %696 = arith.cmpi eq, %669, %695 : vector<3x128xi32>
    %697 = arith.extui %696 : vector<3x128xi1> to vector<3x128xi32>
    %698 = vector.shape_cast %697 : vector<3x128xi32> to vector<1x3x128xi32>
    %cst_176 = arith.constant dense<0> : vector<1xi32>
    %699 = vector.multi_reduction <add>, %698, %cst_176 [1, 2] : vector<1x3x128xi32> to vector<1xi32>
    %700 = vector.shape_cast %699 : vector<1xi32> to vector<1x1x1xi32>
    %701 = vector.extract %700[0, 0, 0] : i32 from vector<1x1x1xi32>
    %c720896_i32 = arith.constant 720896 : i32
    %702 = arith.ori %667, %c720896_i32 : i32
    %703 = vector.broadcast %702 : i32 to vector<3x128xi32>
    %704 = arith.cmpi eq, %669, %703 : vector<3x128xi32>
    %705 = arith.extui %704 : vector<3x128xi1> to vector<3x128xi32>
    %706 = vector.shape_cast %705 : vector<3x128xi32> to vector<1x3x128xi32>
    %cst_177 = arith.constant dense<0> : vector<1xi32>
    %707 = vector.multi_reduction <add>, %706, %cst_177 [1, 2] : vector<1x3x128xi32> to vector<1xi32>
    %708 = vector.shape_cast %707 : vector<1xi32> to vector<1x1x1xi32>
    %709 = vector.extract %708[0, 0, 0] : i32 from vector<1x1x1xi32>
    %c655360_i32 = arith.constant 655360 : i32
    %710 = arith.ori %667, %c655360_i32 : i32
    %711 = vector.broadcast %710 : i32 to vector<3x128xi32>
    %712 = arith.cmpi eq, %669, %711 : vector<3x128xi32>
    %713 = arith.extui %712 : vector<3x128xi1> to vector<3x128xi32>
    %714 = vector.shape_cast %713 : vector<3x128xi32> to vector<1x3x128xi32>
    %cst_178 = arith.constant dense<0> : vector<1xi32>
    %715 = vector.multi_reduction <add>, %714, %cst_178 [1, 2] : vector<1x3x128xi32> to vector<1xi32>
    %716 = vector.shape_cast %715 : vector<1xi32> to vector<1x1x1xi32>
    %717 = vector.extract %716[0, 0, 0] : i32 from vector<1x1x1xi32>
    %c589824_i32 = arith.constant 589824 : i32
    %718 = arith.ori %667, %c589824_i32 : i32
    %719 = vector.broadcast %718 : i32 to vector<3x128xi32>
    %720 = arith.cmpi eq, %669, %719 : vector<3x128xi32>
    %721 = arith.extui %720 : vector<3x128xi1> to vector<3x128xi32>
    %722 = vector.shape_cast %721 : vector<3x128xi32> to vector<1x3x128xi32>
    %cst_179 = arith.constant dense<0> : vector<1xi32>
    %723 = vector.multi_reduction <add>, %722, %cst_179 [1, 2] : vector<1x3x128xi32> to vector<1xi32>
    %724 = vector.shape_cast %723 : vector<1xi32> to vector<1x1x1xi32>
    %725 = vector.extract %724[0, 0, 0] : i32 from vector<1x1x1xi32>
    %c524288_i32 = arith.constant 524288 : i32
    %726 = arith.ori %667, %c524288_i32 : i32
    %727 = vector.broadcast %726 : i32 to vector<3x128xi32>
    %728 = arith.cmpi eq, %669, %727 : vector<3x128xi32>
    %729 = arith.extui %728 : vector<3x128xi1> to vector<3x128xi32>
    %730 = vector.shape_cast %729 : vector<3x128xi32> to vector<1x3x128xi32>
    %cst_180 = arith.constant dense<0> : vector<1xi32>
    %731 = vector.multi_reduction <add>, %730, %cst_180 [1, 2] : vector<1x3x128xi32> to vector<1xi32>
    %732 = vector.shape_cast %731 : vector<1xi32> to vector<1x1x1xi32>
    %733 = vector.extract %732[0, 0, 0] : i32 from vector<1x1x1xi32>
    %c458752_i32 = arith.constant 458752 : i32
    %734 = arith.ori %667, %c458752_i32 : i32
    %735 = vector.broadcast %734 : i32 to vector<3x128xi32>
    %736 = arith.cmpi eq, %669, %735 : vector<3x128xi32>
    %737 = arith.extui %736 : vector<3x128xi1> to vector<3x128xi32>
    %738 = vector.shape_cast %737 : vector<3x128xi32> to vector<1x3x128xi32>
    %cst_181 = arith.constant dense<0> : vector<1xi32>
    %739 = vector.multi_reduction <add>, %738, %cst_181 [1, 2] : vector<1x3x128xi32> to vector<1xi32>
    %740 = vector.shape_cast %739 : vector<1xi32> to vector<1x1x1xi32>
    %741 = vector.extract %740[0, 0, 0] : i32 from vector<1x1x1xi32>
    %c393216_i32 = arith.constant 393216 : i32
    %742 = arith.ori %667, %c393216_i32 : i32
    %743 = vector.broadcast %742 : i32 to vector<3x128xi32>
    %744 = arith.cmpi eq, %669, %743 : vector<3x128xi32>
    %745 = arith.extui %744 : vector<3x128xi1> to vector<3x128xi32>
    %746 = vector.shape_cast %745 : vector<3x128xi32> to vector<1x3x128xi32>
    %cst_182 = arith.constant dense<0> : vector<1xi32>
    %747 = vector.multi_reduction <add>, %746, %cst_182 [1, 2] : vector<1x3x128xi32> to vector<1xi32>
    %748 = vector.shape_cast %747 : vector<1xi32> to vector<1x1x1xi32>
    %749 = vector.extract %748[0, 0, 0] : i32 from vector<1x1x1xi32>
    %c327680_i32 = arith.constant 327680 : i32
    %750 = arith.ori %667, %c327680_i32 : i32
    %751 = vector.broadcast %750 : i32 to vector<3x128xi32>
    %752 = arith.cmpi eq, %669, %751 : vector<3x128xi32>
    %753 = arith.extui %752 : vector<3x128xi1> to vector<3x128xi32>
    %754 = vector.shape_cast %753 : vector<3x128xi32> to vector<1x3x128xi32>
    %cst_183 = arith.constant dense<0> : vector<1xi32>
    %755 = vector.multi_reduction <add>, %754, %cst_183 [1, 2] : vector<1x3x128xi32> to vector<1xi32>
    %756 = vector.shape_cast %755 : vector<1xi32> to vector<1x1x1xi32>
    %757 = vector.extract %756[0, 0, 0] : i32 from vector<1x1x1xi32>
    %c262144_i32 = arith.constant 262144 : i32
    %758 = arith.ori %667, %c262144_i32 : i32
    %759 = vector.broadcast %758 : i32 to vector<3x128xi32>
    %760 = arith.cmpi eq, %669, %759 : vector<3x128xi32>
    %761 = arith.extui %760 : vector<3x128xi1> to vector<3x128xi32>
    %762 = vector.shape_cast %761 : vector<3x128xi32> to vector<1x3x128xi32>
    %cst_184 = arith.constant dense<0> : vector<1xi32>
    %763 = vector.multi_reduction <add>, %762, %cst_184 [1, 2] : vector<1x3x128xi32> to vector<1xi32>
    %764 = vector.shape_cast %763 : vector<1xi32> to vector<1x1x1xi32>
    %765 = vector.extract %764[0, 0, 0] : i32 from vector<1x1x1xi32>
    %c196608_i32 = arith.constant 196608 : i32
    %766 = arith.ori %667, %c196608_i32 : i32
    %767 = vector.broadcast %766 : i32 to vector<3x128xi32>
    %768 = arith.cmpi eq, %669, %767 : vector<3x128xi32>
    %769 = arith.extui %768 : vector<3x128xi1> to vector<3x128xi32>
    %770 = vector.shape_cast %769 : vector<3x128xi32> to vector<1x3x128xi32>
    %cst_185 = arith.constant dense<0> : vector<1xi32>
    %771 = vector.multi_reduction <add>, %770, %cst_185 [1, 2] : vector<1x3x128xi32> to vector<1xi32>
    %772 = vector.shape_cast %771 : vector<1xi32> to vector<1x1x1xi32>
    %773 = vector.extract %772[0, 0, 0] : i32 from vector<1x1x1xi32>
    %c131072_i32 = arith.constant 131072 : i32
    %774 = arith.ori %667, %c131072_i32 : i32
    %775 = vector.broadcast %774 : i32 to vector<3x128xi32>
    %776 = arith.cmpi eq, %669, %775 : vector<3x128xi32>
    %777 = arith.extui %776 : vector<3x128xi1> to vector<3x128xi32>
    %778 = vector.shape_cast %777 : vector<3x128xi32> to vector<1x3x128xi32>
    %cst_186 = arith.constant dense<0> : vector<1xi32>
    %779 = vector.multi_reduction <add>, %778, %cst_186 [1, 2] : vector<1x3x128xi32> to vector<1xi32>
    %780 = vector.shape_cast %779 : vector<1xi32> to vector<1x1x1xi32>
    %781 = vector.extract %780[0, 0, 0] : i32 from vector<1x1x1xi32>
    %c65536_i32 = arith.constant 65536 : i32
    %782 = arith.ori %667, %c65536_i32 : i32
    %783 = vector.broadcast %782 : i32 to vector<3x128xi32>
    %784 = arith.cmpi eq, %669, %783 : vector<3x128xi32>
    %785 = arith.extui %784 : vector<3x128xi1> to vector<3x128xi32>
    %786 = vector.shape_cast %785 : vector<3x128xi32> to vector<1x3x128xi32>
    %cst_187 = arith.constant dense<0> : vector<1xi32>
    %787 = vector.multi_reduction <add>, %786, %cst_187 [1, 2] : vector<1x3x128xi32> to vector<1xi32>
    %788 = vector.shape_cast %787 : vector<1xi32> to vector<1x1x1xi32>
    %789 = vector.extract %788[0, 0, 0] : i32 from vector<1x1x1xi32>
    %c0_i32_188 = arith.constant 0 : i32
    %790 = arith.addi %c0_i32_188, %677 : i32
    %791 = arith.cmpi sge, %790, %665 : i32
    %c0_i32_189 = arith.constant 0 : i32
    %c0_i32_190 = arith.constant 0 : i32
    %792 = arith.cmpi eq, %c0_i32_189, %c0_i32_190 : i32
    %793 = arith.andi %791, %792 : i1
    %c15_i32_191 = arith.constant 15 : i32
    %c0_i32_192 = arith.constant 0 : i32
    %794 = arith.select %793, %c15_i32_191, %c0_i32_192 : i32
    %c0_i32_193 = arith.constant 0 : i32
    %c0_i32_194 = arith.constant 0 : i32
    %795 = arith.select %793, %c0_i32_193, %c0_i32_194 : i32
    %796 = arith.addi %790, %685 : i32
    %797 = arith.cmpi sge, %796, %665 : i32
    %c0_i32_195 = arith.constant 0 : i32
    %798 = arith.cmpi eq, %794, %c0_i32_195 : i32
    %799 = arith.andi %797, %798 : i1
    %c14_i32_196 = arith.constant 14 : i32
    %800 = arith.select %799, %c14_i32_196, %794 : i32
    %801 = arith.select %799, %790, %795 : i32
    %802 = arith.addi %796, %693 : i32
    %803 = arith.cmpi sge, %802, %665 : i32
    %c0_i32_197 = arith.constant 0 : i32
    %804 = arith.cmpi eq, %800, %c0_i32_197 : i32
    %805 = arith.andi %803, %804 : i1
    %c13_i32_198 = arith.constant 13 : i32
    %806 = arith.select %805, %c13_i32_198, %800 : i32
    %807 = arith.select %805, %796, %801 : i32
    %808 = arith.addi %802, %701 : i32
    %809 = arith.cmpi sge, %808, %665 : i32
    %c0_i32_199 = arith.constant 0 : i32
    %810 = arith.cmpi eq, %806, %c0_i32_199 : i32
    %811 = arith.andi %809, %810 : i1
    %c12_i32_200 = arith.constant 12 : i32
    %812 = arith.select %811, %c12_i32_200, %806 : i32
    %813 = arith.select %811, %802, %807 : i32
    %814 = arith.addi %808, %709 : i32
    %815 = arith.cmpi sge, %814, %665 : i32
    %c0_i32_201 = arith.constant 0 : i32
    %816 = arith.cmpi eq, %812, %c0_i32_201 : i32
    %817 = arith.andi %815, %816 : i1
    %c11_i32_202 = arith.constant 11 : i32
    %818 = arith.select %817, %c11_i32_202, %812 : i32
    %819 = arith.select %817, %808, %813 : i32
    %820 = arith.addi %814, %717 : i32
    %821 = arith.cmpi sge, %820, %665 : i32
    %c0_i32_203 = arith.constant 0 : i32
    %822 = arith.cmpi eq, %818, %c0_i32_203 : i32
    %823 = arith.andi %821, %822 : i1
    %c10_i32_204 = arith.constant 10 : i32
    %824 = arith.select %823, %c10_i32_204, %818 : i32
    %825 = arith.select %823, %814, %819 : i32
    %826 = arith.addi %820, %725 : i32
    %827 = arith.cmpi sge, %826, %665 : i32
    %c0_i32_205 = arith.constant 0 : i32
    %828 = arith.cmpi eq, %824, %c0_i32_205 : i32
    %829 = arith.andi %827, %828 : i1
    %c9_i32_206 = arith.constant 9 : i32
    %830 = arith.select %829, %c9_i32_206, %824 : i32
    %831 = arith.select %829, %820, %825 : i32
    %832 = arith.addi %826, %733 : i32
    %833 = arith.cmpi sge, %832, %665 : i32
    %c0_i32_207 = arith.constant 0 : i32
    %834 = arith.cmpi eq, %830, %c0_i32_207 : i32
    %835 = arith.andi %833, %834 : i1
    %c8_i32_208 = arith.constant 8 : i32
    %836 = arith.select %835, %c8_i32_208, %830 : i32
    %837 = arith.select %835, %826, %831 : i32
    %838 = arith.addi %832, %741 : i32
    %839 = arith.cmpi sge, %838, %665 : i32
    %c0_i32_209 = arith.constant 0 : i32
    %840 = arith.cmpi eq, %836, %c0_i32_209 : i32
    %841 = arith.andi %839, %840 : i1
    %c7_i32_210 = arith.constant 7 : i32
    %842 = arith.select %841, %c7_i32_210, %836 : i32
    %843 = arith.select %841, %832, %837 : i32
    %844 = arith.addi %838, %749 : i32
    %845 = arith.cmpi sge, %844, %665 : i32
    %c0_i32_211 = arith.constant 0 : i32
    %846 = arith.cmpi eq, %842, %c0_i32_211 : i32
    %847 = arith.andi %845, %846 : i1
    %c6_i32_212 = arith.constant 6 : i32
    %848 = arith.select %847, %c6_i32_212, %842 : i32
    %849 = arith.select %847, %838, %843 : i32
    %850 = arith.addi %844, %757 : i32
    %851 = arith.cmpi sge, %850, %665 : i32
    %c0_i32_213 = arith.constant 0 : i32
    %852 = arith.cmpi eq, %848, %c0_i32_213 : i32
    %853 = arith.andi %851, %852 : i1
    %c5_i32_214 = arith.constant 5 : i32
    %854 = arith.select %853, %c5_i32_214, %848 : i32
    %855 = arith.select %853, %844, %849 : i32
    %856 = arith.addi %850, %765 : i32
    %857 = arith.cmpi sge, %856, %665 : i32
    %c0_i32_215 = arith.constant 0 : i32
    %858 = arith.cmpi eq, %854, %c0_i32_215 : i32
    %859 = arith.andi %857, %858 : i1
    %c4_i32_216 = arith.constant 4 : i32
    %860 = arith.select %859, %c4_i32_216, %854 : i32
    %861 = arith.select %859, %850, %855 : i32
    %862 = arith.addi %856, %773 : i32
    %863 = arith.cmpi sge, %862, %665 : i32
    %c0_i32_217 = arith.constant 0 : i32
    %864 = arith.cmpi eq, %860, %c0_i32_217 : i32
    %865 = arith.andi %863, %864 : i1
    %c3_i32_218 = arith.constant 3 : i32
    %866 = arith.select %865, %c3_i32_218, %860 : i32
    %867 = arith.select %865, %856, %861 : i32
    %868 = arith.addi %862, %781 : i32
    %869 = arith.cmpi sge, %868, %665 : i32
    %c0_i32_219 = arith.constant 0 : i32
    %870 = arith.cmpi eq, %866, %c0_i32_219 : i32
    %871 = arith.andi %869, %870 : i1
    %c2_i32_220 = arith.constant 2 : i32
    %872 = arith.select %871, %c2_i32_220, %866 : i32
    %873 = arith.select %871, %862, %867 : i32
    %874 = arith.addi %868, %789 : i32
    %875 = arith.cmpi sge, %874, %665 : i32
    %c0_i32_221 = arith.constant 0 : i32
    %876 = arith.cmpi eq, %872, %c0_i32_221 : i32
    %877 = arith.andi %875, %876 : i1
    %c1_i32_222 = arith.constant 1 : i32
    %878 = arith.select %877, %c1_i32_222, %872 : i32
    %879 = arith.select %877, %868, %873 : i32
    %c0_i32_223 = arith.constant 0 : i32
    %880 = arith.cmpi eq, %878, %c0_i32_223 : i32
    %881 = arith.select %880, %874, %879 : i32
    %882 = arith.subi %665, %881 : i32
    %c16_i32 = arith.constant 16 : i32
    %883 = arith.shli %878, %c16_i32 : i32
    %884 = arith.ori %667, %883 : i32
    %c-4096_i32 = arith.constant -4096 : i32
    %885 = vector.broadcast %c-4096_i32 : i32 to vector<3x128xi32>
    %886 = arith.andi %16, %885 : vector<3x128xi32>
    %c61440_i32 = arith.constant 61440 : i32
    %887 = arith.ori %884, %c61440_i32 : i32
    %888 = vector.broadcast %887 : i32 to vector<3x128xi32>
    %889 = arith.cmpi eq, %886, %888 : vector<3x128xi32>
    %890 = arith.extui %889 : vector<3x128xi1> to vector<3x128xi32>
    %891 = vector.shape_cast %890 : vector<3x128xi32> to vector<1x3x128xi32>
    %cst_224 = arith.constant dense<0> : vector<1xi32>
    %892 = vector.multi_reduction <add>, %891, %cst_224 [1, 2] : vector<1x3x128xi32> to vector<1xi32>
    %893 = vector.shape_cast %892 : vector<1xi32> to vector<1x1x1xi32>
    %894 = vector.extract %893[0, 0, 0] : i32 from vector<1x1x1xi32>
    %c57344_i32 = arith.constant 57344 : i32
    %895 = arith.ori %884, %c57344_i32 : i32
    %896 = vector.broadcast %895 : i32 to vector<3x128xi32>
    %897 = arith.cmpi eq, %886, %896 : vector<3x128xi32>
    %898 = arith.extui %897 : vector<3x128xi1> to vector<3x128xi32>
    %899 = vector.shape_cast %898 : vector<3x128xi32> to vector<1x3x128xi32>
    %cst_225 = arith.constant dense<0> : vector<1xi32>
    %900 = vector.multi_reduction <add>, %899, %cst_225 [1, 2] : vector<1x3x128xi32> to vector<1xi32>
    %901 = vector.shape_cast %900 : vector<1xi32> to vector<1x1x1xi32>
    %902 = vector.extract %901[0, 0, 0] : i32 from vector<1x1x1xi32>
    %c53248_i32 = arith.constant 53248 : i32
    %903 = arith.ori %884, %c53248_i32 : i32
    %904 = vector.broadcast %903 : i32 to vector<3x128xi32>
    %905 = arith.cmpi eq, %886, %904 : vector<3x128xi32>
    %906 = arith.extui %905 : vector<3x128xi1> to vector<3x128xi32>
    %907 = vector.shape_cast %906 : vector<3x128xi32> to vector<1x3x128xi32>
    %cst_226 = arith.constant dense<0> : vector<1xi32>
    %908 = vector.multi_reduction <add>, %907, %cst_226 [1, 2] : vector<1x3x128xi32> to vector<1xi32>
    %909 = vector.shape_cast %908 : vector<1xi32> to vector<1x1x1xi32>
    %910 = vector.extract %909[0, 0, 0] : i32 from vector<1x1x1xi32>
    %c49152_i32 = arith.constant 49152 : i32
    %911 = arith.ori %884, %c49152_i32 : i32
    %912 = vector.broadcast %911 : i32 to vector<3x128xi32>
    %913 = arith.cmpi eq, %886, %912 : vector<3x128xi32>
    %914 = arith.extui %913 : vector<3x128xi1> to vector<3x128xi32>
    %915 = vector.shape_cast %914 : vector<3x128xi32> to vector<1x3x128xi32>
    %cst_227 = arith.constant dense<0> : vector<1xi32>
    %916 = vector.multi_reduction <add>, %915, %cst_227 [1, 2] : vector<1x3x128xi32> to vector<1xi32>
    %917 = vector.shape_cast %916 : vector<1xi32> to vector<1x1x1xi32>
    %918 = vector.extract %917[0, 0, 0] : i32 from vector<1x1x1xi32>
    %c45056_i32 = arith.constant 45056 : i32
    %919 = arith.ori %884, %c45056_i32 : i32
    %920 = vector.broadcast %919 : i32 to vector<3x128xi32>
    %921 = arith.cmpi eq, %886, %920 : vector<3x128xi32>
    %922 = arith.extui %921 : vector<3x128xi1> to vector<3x128xi32>
    %923 = vector.shape_cast %922 : vector<3x128xi32> to vector<1x3x128xi32>
    %cst_228 = arith.constant dense<0> : vector<1xi32>
    %924 = vector.multi_reduction <add>, %923, %cst_228 [1, 2] : vector<1x3x128xi32> to vector<1xi32>
    %925 = vector.shape_cast %924 : vector<1xi32> to vector<1x1x1xi32>
    %926 = vector.extract %925[0, 0, 0] : i32 from vector<1x1x1xi32>
    %c40960_i32 = arith.constant 40960 : i32
    %927 = arith.ori %884, %c40960_i32 : i32
    %928 = vector.broadcast %927 : i32 to vector<3x128xi32>
    %929 = arith.cmpi eq, %886, %928 : vector<3x128xi32>
    %930 = arith.extui %929 : vector<3x128xi1> to vector<3x128xi32>
    %931 = vector.shape_cast %930 : vector<3x128xi32> to vector<1x3x128xi32>
    %cst_229 = arith.constant dense<0> : vector<1xi32>
    %932 = vector.multi_reduction <add>, %931, %cst_229 [1, 2] : vector<1x3x128xi32> to vector<1xi32>
    %933 = vector.shape_cast %932 : vector<1xi32> to vector<1x1x1xi32>
    %934 = vector.extract %933[0, 0, 0] : i32 from vector<1x1x1xi32>
    %c36864_i32 = arith.constant 36864 : i32
    %935 = arith.ori %884, %c36864_i32 : i32
    %936 = vector.broadcast %935 : i32 to vector<3x128xi32>
    %937 = arith.cmpi eq, %886, %936 : vector<3x128xi32>
    %938 = arith.extui %937 : vector<3x128xi1> to vector<3x128xi32>
    %939 = vector.shape_cast %938 : vector<3x128xi32> to vector<1x3x128xi32>
    %cst_230 = arith.constant dense<0> : vector<1xi32>
    %940 = vector.multi_reduction <add>, %939, %cst_230 [1, 2] : vector<1x3x128xi32> to vector<1xi32>
    %941 = vector.shape_cast %940 : vector<1xi32> to vector<1x1x1xi32>
    %942 = vector.extract %941[0, 0, 0] : i32 from vector<1x1x1xi32>
    %c32768_i32 = arith.constant 32768 : i32
    %943 = arith.ori %884, %c32768_i32 : i32
    %944 = vector.broadcast %943 : i32 to vector<3x128xi32>
    %945 = arith.cmpi eq, %886, %944 : vector<3x128xi32>
    %946 = arith.extui %945 : vector<3x128xi1> to vector<3x128xi32>
    %947 = vector.shape_cast %946 : vector<3x128xi32> to vector<1x3x128xi32>
    %cst_231 = arith.constant dense<0> : vector<1xi32>
    %948 = vector.multi_reduction <add>, %947, %cst_231 [1, 2] : vector<1x3x128xi32> to vector<1xi32>
    %949 = vector.shape_cast %948 : vector<1xi32> to vector<1x1x1xi32>
    %950 = vector.extract %949[0, 0, 0] : i32 from vector<1x1x1xi32>
    %c28672_i32 = arith.constant 28672 : i32
    %951 = arith.ori %884, %c28672_i32 : i32
    %952 = vector.broadcast %951 : i32 to vector<3x128xi32>
    %953 = arith.cmpi eq, %886, %952 : vector<3x128xi32>
    %954 = arith.extui %953 : vector<3x128xi1> to vector<3x128xi32>
    %955 = vector.shape_cast %954 : vector<3x128xi32> to vector<1x3x128xi32>
    %cst_232 = arith.constant dense<0> : vector<1xi32>
    %956 = vector.multi_reduction <add>, %955, %cst_232 [1, 2] : vector<1x3x128xi32> to vector<1xi32>
    %957 = vector.shape_cast %956 : vector<1xi32> to vector<1x1x1xi32>
    %958 = vector.extract %957[0, 0, 0] : i32 from vector<1x1x1xi32>
    %c24576_i32 = arith.constant 24576 : i32
    %959 = arith.ori %884, %c24576_i32 : i32
    %960 = vector.broadcast %959 : i32 to vector<3x128xi32>
    %961 = arith.cmpi eq, %886, %960 : vector<3x128xi32>
    %962 = arith.extui %961 : vector<3x128xi1> to vector<3x128xi32>
    %963 = vector.shape_cast %962 : vector<3x128xi32> to vector<1x3x128xi32>
    %cst_233 = arith.constant dense<0> : vector<1xi32>
    %964 = vector.multi_reduction <add>, %963, %cst_233 [1, 2] : vector<1x3x128xi32> to vector<1xi32>
    %965 = vector.shape_cast %964 : vector<1xi32> to vector<1x1x1xi32>
    %966 = vector.extract %965[0, 0, 0] : i32 from vector<1x1x1xi32>
    %c20480_i32 = arith.constant 20480 : i32
    %967 = arith.ori %884, %c20480_i32 : i32
    %968 = vector.broadcast %967 : i32 to vector<3x128xi32>
    %969 = arith.cmpi eq, %886, %968 : vector<3x128xi32>
    %970 = arith.extui %969 : vector<3x128xi1> to vector<3x128xi32>
    %971 = vector.shape_cast %970 : vector<3x128xi32> to vector<1x3x128xi32>
    %cst_234 = arith.constant dense<0> : vector<1xi32>
    %972 = vector.multi_reduction <add>, %971, %cst_234 [1, 2] : vector<1x3x128xi32> to vector<1xi32>
    %973 = vector.shape_cast %972 : vector<1xi32> to vector<1x1x1xi32>
    %974 = vector.extract %973[0, 0, 0] : i32 from vector<1x1x1xi32>
    %c16384_i32 = arith.constant 16384 : i32
    %975 = arith.ori %884, %c16384_i32 : i32
    %976 = vector.broadcast %975 : i32 to vector<3x128xi32>
    %977 = arith.cmpi eq, %886, %976 : vector<3x128xi32>
    %978 = arith.extui %977 : vector<3x128xi1> to vector<3x128xi32>
    %979 = vector.shape_cast %978 : vector<3x128xi32> to vector<1x3x128xi32>
    %cst_235 = arith.constant dense<0> : vector<1xi32>
    %980 = vector.multi_reduction <add>, %979, %cst_235 [1, 2] : vector<1x3x128xi32> to vector<1xi32>
    %981 = vector.shape_cast %980 : vector<1xi32> to vector<1x1x1xi32>
    %982 = vector.extract %981[0, 0, 0] : i32 from vector<1x1x1xi32>
    %c12288_i32 = arith.constant 12288 : i32
    %983 = arith.ori %884, %c12288_i32 : i32
    %984 = vector.broadcast %983 : i32 to vector<3x128xi32>
    %985 = arith.cmpi eq, %886, %984 : vector<3x128xi32>
    %986 = arith.extui %985 : vector<3x128xi1> to vector<3x128xi32>
    %987 = vector.shape_cast %986 : vector<3x128xi32> to vector<1x3x128xi32>
    %cst_236 = arith.constant dense<0> : vector<1xi32>
    %988 = vector.multi_reduction <add>, %987, %cst_236 [1, 2] : vector<1x3x128xi32> to vector<1xi32>
    %989 = vector.shape_cast %988 : vector<1xi32> to vector<1x1x1xi32>
    %990 = vector.extract %989[0, 0, 0] : i32 from vector<1x1x1xi32>
    %c8192_i32 = arith.constant 8192 : i32
    %991 = arith.ori %884, %c8192_i32 : i32
    %992 = vector.broadcast %991 : i32 to vector<3x128xi32>
    %993 = arith.cmpi eq, %886, %992 : vector<3x128xi32>
    %994 = arith.extui %993 : vector<3x128xi1> to vector<3x128xi32>
    %995 = vector.shape_cast %994 : vector<3x128xi32> to vector<1x3x128xi32>
    %cst_237 = arith.constant dense<0> : vector<1xi32>
    %996 = vector.multi_reduction <add>, %995, %cst_237 [1, 2] : vector<1x3x128xi32> to vector<1xi32>
    %997 = vector.shape_cast %996 : vector<1xi32> to vector<1x1x1xi32>
    %998 = vector.extract %997[0, 0, 0] : i32 from vector<1x1x1xi32>
    %c4096_i32 = arith.constant 4096 : i32
    %999 = arith.ori %884, %c4096_i32 : i32
    %1000 = vector.broadcast %999 : i32 to vector<3x128xi32>
    %1001 = arith.cmpi eq, %886, %1000 : vector<3x128xi32>
    %1002 = arith.extui %1001 : vector<3x128xi1> to vector<3x128xi32>
    %1003 = vector.shape_cast %1002 : vector<3x128xi32> to vector<1x3x128xi32>
    %cst_238 = arith.constant dense<0> : vector<1xi32>
    %1004 = vector.multi_reduction <add>, %1003, %cst_238 [1, 2] : vector<1x3x128xi32> to vector<1xi32>
    %1005 = vector.shape_cast %1004 : vector<1xi32> to vector<1x1x1xi32>
    %1006 = vector.extract %1005[0, 0, 0] : i32 from vector<1x1x1xi32>
    %c0_i32_239 = arith.constant 0 : i32
    %1007 = arith.addi %c0_i32_239, %894 : i32
    %1008 = arith.cmpi sge, %1007, %882 : i32
    %c0_i32_240 = arith.constant 0 : i32
    %c0_i32_241 = arith.constant 0 : i32
    %1009 = arith.cmpi eq, %c0_i32_240, %c0_i32_241 : i32
    %1010 = arith.andi %1008, %1009 : i1
    %c15_i32_242 = arith.constant 15 : i32
    %c0_i32_243 = arith.constant 0 : i32
    %1011 = arith.select %1010, %c15_i32_242, %c0_i32_243 : i32
    %c0_i32_244 = arith.constant 0 : i32
    %c0_i32_245 = arith.constant 0 : i32
    %1012 = arith.select %1010, %c0_i32_244, %c0_i32_245 : i32
    %1013 = arith.addi %1007, %902 : i32
    %1014 = arith.cmpi sge, %1013, %882 : i32
    %c0_i32_246 = arith.constant 0 : i32
    %1015 = arith.cmpi eq, %1011, %c0_i32_246 : i32
    %1016 = arith.andi %1014, %1015 : i1
    %c14_i32_247 = arith.constant 14 : i32
    %1017 = arith.select %1016, %c14_i32_247, %1011 : i32
    %1018 = arith.select %1016, %1007, %1012 : i32
    %1019 = arith.addi %1013, %910 : i32
    %1020 = arith.cmpi sge, %1019, %882 : i32
    %c0_i32_248 = arith.constant 0 : i32
    %1021 = arith.cmpi eq, %1017, %c0_i32_248 : i32
    %1022 = arith.andi %1020, %1021 : i1
    %c13_i32_249 = arith.constant 13 : i32
    %1023 = arith.select %1022, %c13_i32_249, %1017 : i32
    %1024 = arith.select %1022, %1013, %1018 : i32
    %1025 = arith.addi %1019, %918 : i32
    %1026 = arith.cmpi sge, %1025, %882 : i32
    %c0_i32_250 = arith.constant 0 : i32
    %1027 = arith.cmpi eq, %1023, %c0_i32_250 : i32
    %1028 = arith.andi %1026, %1027 : i1
    %c12_i32_251 = arith.constant 12 : i32
    %1029 = arith.select %1028, %c12_i32_251, %1023 : i32
    %1030 = arith.select %1028, %1019, %1024 : i32
    %1031 = arith.addi %1025, %926 : i32
    %1032 = arith.cmpi sge, %1031, %882 : i32
    %c0_i32_252 = arith.constant 0 : i32
    %1033 = arith.cmpi eq, %1029, %c0_i32_252 : i32
    %1034 = arith.andi %1032, %1033 : i1
    %c11_i32_253 = arith.constant 11 : i32
    %1035 = arith.select %1034, %c11_i32_253, %1029 : i32
    %1036 = arith.select %1034, %1025, %1030 : i32
    %1037 = arith.addi %1031, %934 : i32
    %1038 = arith.cmpi sge, %1037, %882 : i32
    %c0_i32_254 = arith.constant 0 : i32
    %1039 = arith.cmpi eq, %1035, %c0_i32_254 : i32
    %1040 = arith.andi %1038, %1039 : i1
    %c10_i32_255 = arith.constant 10 : i32
    %1041 = arith.select %1040, %c10_i32_255, %1035 : i32
    %1042 = arith.select %1040, %1031, %1036 : i32
    %1043 = arith.addi %1037, %942 : i32
    %1044 = arith.cmpi sge, %1043, %882 : i32
    %c0_i32_256 = arith.constant 0 : i32
    %1045 = arith.cmpi eq, %1041, %c0_i32_256 : i32
    %1046 = arith.andi %1044, %1045 : i1
    %c9_i32_257 = arith.constant 9 : i32
    %1047 = arith.select %1046, %c9_i32_257, %1041 : i32
    %1048 = arith.select %1046, %1037, %1042 : i32
    %1049 = arith.addi %1043, %950 : i32
    %1050 = arith.cmpi sge, %1049, %882 : i32
    %c0_i32_258 = arith.constant 0 : i32
    %1051 = arith.cmpi eq, %1047, %c0_i32_258 : i32
    %1052 = arith.andi %1050, %1051 : i1
    %c8_i32_259 = arith.constant 8 : i32
    %1053 = arith.select %1052, %c8_i32_259, %1047 : i32
    %1054 = arith.select %1052, %1043, %1048 : i32
    %1055 = arith.addi %1049, %958 : i32
    %1056 = arith.cmpi sge, %1055, %882 : i32
    %c0_i32_260 = arith.constant 0 : i32
    %1057 = arith.cmpi eq, %1053, %c0_i32_260 : i32
    %1058 = arith.andi %1056, %1057 : i1
    %c7_i32_261 = arith.constant 7 : i32
    %1059 = arith.select %1058, %c7_i32_261, %1053 : i32
    %1060 = arith.select %1058, %1049, %1054 : i32
    %1061 = arith.addi %1055, %966 : i32
    %1062 = arith.cmpi sge, %1061, %882 : i32
    %c0_i32_262 = arith.constant 0 : i32
    %1063 = arith.cmpi eq, %1059, %c0_i32_262 : i32
    %1064 = arith.andi %1062, %1063 : i1
    %c6_i32_263 = arith.constant 6 : i32
    %1065 = arith.select %1064, %c6_i32_263, %1059 : i32
    %1066 = arith.select %1064, %1055, %1060 : i32
    %1067 = arith.addi %1061, %974 : i32
    %1068 = arith.cmpi sge, %1067, %882 : i32
    %c0_i32_264 = arith.constant 0 : i32
    %1069 = arith.cmpi eq, %1065, %c0_i32_264 : i32
    %1070 = arith.andi %1068, %1069 : i1
    %c5_i32_265 = arith.constant 5 : i32
    %1071 = arith.select %1070, %c5_i32_265, %1065 : i32
    %1072 = arith.select %1070, %1061, %1066 : i32
    %1073 = arith.addi %1067, %982 : i32
    %1074 = arith.cmpi sge, %1073, %882 : i32
    %c0_i32_266 = arith.constant 0 : i32
    %1075 = arith.cmpi eq, %1071, %c0_i32_266 : i32
    %1076 = arith.andi %1074, %1075 : i1
    %c4_i32_267 = arith.constant 4 : i32
    %1077 = arith.select %1076, %c4_i32_267, %1071 : i32
    %1078 = arith.select %1076, %1067, %1072 : i32
    %1079 = arith.addi %1073, %990 : i32
    %1080 = arith.cmpi sge, %1079, %882 : i32
    %c0_i32_268 = arith.constant 0 : i32
    %1081 = arith.cmpi eq, %1077, %c0_i32_268 : i32
    %1082 = arith.andi %1080, %1081 : i1
    %c3_i32_269 = arith.constant 3 : i32
    %1083 = arith.select %1082, %c3_i32_269, %1077 : i32
    %1084 = arith.select %1082, %1073, %1078 : i32
    %1085 = arith.addi %1079, %998 : i32
    %1086 = arith.cmpi sge, %1085, %882 : i32
    %c0_i32_270 = arith.constant 0 : i32
    %1087 = arith.cmpi eq, %1083, %c0_i32_270 : i32
    %1088 = arith.andi %1086, %1087 : i1
    %c2_i32_271 = arith.constant 2 : i32
    %1089 = arith.select %1088, %c2_i32_271, %1083 : i32
    %1090 = arith.select %1088, %1079, %1084 : i32
    %1091 = arith.addi %1085, %1006 : i32
    %1092 = arith.cmpi sge, %1091, %882 : i32
    %c0_i32_272 = arith.constant 0 : i32
    %1093 = arith.cmpi eq, %1089, %c0_i32_272 : i32
    %1094 = arith.andi %1092, %1093 : i1
    %c1_i32_273 = arith.constant 1 : i32
    %1095 = arith.select %1094, %c1_i32_273, %1089 : i32
    %1096 = arith.select %1094, %1085, %1090 : i32
    %c0_i32_274 = arith.constant 0 : i32
    %1097 = arith.cmpi eq, %1095, %c0_i32_274 : i32
    %1098 = arith.select %1097, %1091, %1096 : i32
    %1099 = arith.subi %882, %1098 : i32
    %c12_i32_275 = arith.constant 12 : i32
    %1100 = arith.shli %1095, %c12_i32_275 : i32
    %1101 = arith.ori %884, %1100 : i32
    %c-256_i32 = arith.constant -256 : i32
    %1102 = vector.broadcast %c-256_i32 : i32 to vector<3x128xi32>
    %1103 = arith.andi %16, %1102 : vector<3x128xi32>
    %c3840_i32 = arith.constant 3840 : i32
    %1104 = arith.ori %1101, %c3840_i32 : i32
    %1105 = vector.broadcast %1104 : i32 to vector<3x128xi32>
    %1106 = arith.cmpi eq, %1103, %1105 : vector<3x128xi32>
    %1107 = arith.extui %1106 : vector<3x128xi1> to vector<3x128xi32>
    %1108 = vector.shape_cast %1107 : vector<3x128xi32> to vector<1x3x128xi32>
    %cst_276 = arith.constant dense<0> : vector<1xi32>
    %1109 = vector.multi_reduction <add>, %1108, %cst_276 [1, 2] : vector<1x3x128xi32> to vector<1xi32>
    %1110 = vector.shape_cast %1109 : vector<1xi32> to vector<1x1x1xi32>
    %1111 = vector.extract %1110[0, 0, 0] : i32 from vector<1x1x1xi32>
    %c3584_i32 = arith.constant 3584 : i32
    %1112 = arith.ori %1101, %c3584_i32 : i32
    %1113 = vector.broadcast %1112 : i32 to vector<3x128xi32>
    %1114 = arith.cmpi eq, %1103, %1113 : vector<3x128xi32>
    %1115 = arith.extui %1114 : vector<3x128xi1> to vector<3x128xi32>
    %1116 = vector.shape_cast %1115 : vector<3x128xi32> to vector<1x3x128xi32>
    %cst_277 = arith.constant dense<0> : vector<1xi32>
    %1117 = vector.multi_reduction <add>, %1116, %cst_277 [1, 2] : vector<1x3x128xi32> to vector<1xi32>
    %1118 = vector.shape_cast %1117 : vector<1xi32> to vector<1x1x1xi32>
    %1119 = vector.extract %1118[0, 0, 0] : i32 from vector<1x1x1xi32>
    %c3328_i32 = arith.constant 3328 : i32
    %1120 = arith.ori %1101, %c3328_i32 : i32
    %1121 = vector.broadcast %1120 : i32 to vector<3x128xi32>
    %1122 = arith.cmpi eq, %1103, %1121 : vector<3x128xi32>
    %1123 = arith.extui %1122 : vector<3x128xi1> to vector<3x128xi32>
    %1124 = vector.shape_cast %1123 : vector<3x128xi32> to vector<1x3x128xi32>
    %cst_278 = arith.constant dense<0> : vector<1xi32>
    %1125 = vector.multi_reduction <add>, %1124, %cst_278 [1, 2] : vector<1x3x128xi32> to vector<1xi32>
    %1126 = vector.shape_cast %1125 : vector<1xi32> to vector<1x1x1xi32>
    %1127 = vector.extract %1126[0, 0, 0] : i32 from vector<1x1x1xi32>
    %c3072_i32 = arith.constant 3072 : i32
    %1128 = arith.ori %1101, %c3072_i32 : i32
    %1129 = vector.broadcast %1128 : i32 to vector<3x128xi32>
    %1130 = arith.cmpi eq, %1103, %1129 : vector<3x128xi32>
    %1131 = arith.extui %1130 : vector<3x128xi1> to vector<3x128xi32>
    %1132 = vector.shape_cast %1131 : vector<3x128xi32> to vector<1x3x128xi32>
    %cst_279 = arith.constant dense<0> : vector<1xi32>
    %1133 = vector.multi_reduction <add>, %1132, %cst_279 [1, 2] : vector<1x3x128xi32> to vector<1xi32>
    %1134 = vector.shape_cast %1133 : vector<1xi32> to vector<1x1x1xi32>
    %1135 = vector.extract %1134[0, 0, 0] : i32 from vector<1x1x1xi32>
    %c2816_i32 = arith.constant 2816 : i32
    %1136 = arith.ori %1101, %c2816_i32 : i32
    %1137 = vector.broadcast %1136 : i32 to vector<3x128xi32>
    %1138 = arith.cmpi eq, %1103, %1137 : vector<3x128xi32>
    %1139 = arith.extui %1138 : vector<3x128xi1> to vector<3x128xi32>
    %1140 = vector.shape_cast %1139 : vector<3x128xi32> to vector<1x3x128xi32>
    %cst_280 = arith.constant dense<0> : vector<1xi32>
    %1141 = vector.multi_reduction <add>, %1140, %cst_280 [1, 2] : vector<1x3x128xi32> to vector<1xi32>
    %1142 = vector.shape_cast %1141 : vector<1xi32> to vector<1x1x1xi32>
    %1143 = vector.extract %1142[0, 0, 0] : i32 from vector<1x1x1xi32>
    %c2560_i32 = arith.constant 2560 : i32
    %1144 = arith.ori %1101, %c2560_i32 : i32
    %1145 = vector.broadcast %1144 : i32 to vector<3x128xi32>
    %1146 = arith.cmpi eq, %1103, %1145 : vector<3x128xi32>
    %1147 = arith.extui %1146 : vector<3x128xi1> to vector<3x128xi32>
    %1148 = vector.shape_cast %1147 : vector<3x128xi32> to vector<1x3x128xi32>
    %cst_281 = arith.constant dense<0> : vector<1xi32>
    %1149 = vector.multi_reduction <add>, %1148, %cst_281 [1, 2] : vector<1x3x128xi32> to vector<1xi32>
    %1150 = vector.shape_cast %1149 : vector<1xi32> to vector<1x1x1xi32>
    %1151 = vector.extract %1150[0, 0, 0] : i32 from vector<1x1x1xi32>
    %c2304_i32 = arith.constant 2304 : i32
    %1152 = arith.ori %1101, %c2304_i32 : i32
    %1153 = vector.broadcast %1152 : i32 to vector<3x128xi32>
    %1154 = arith.cmpi eq, %1103, %1153 : vector<3x128xi32>
    %1155 = arith.extui %1154 : vector<3x128xi1> to vector<3x128xi32>
    %1156 = vector.shape_cast %1155 : vector<3x128xi32> to vector<1x3x128xi32>
    %cst_282 = arith.constant dense<0> : vector<1xi32>
    %1157 = vector.multi_reduction <add>, %1156, %cst_282 [1, 2] : vector<1x3x128xi32> to vector<1xi32>
    %1158 = vector.shape_cast %1157 : vector<1xi32> to vector<1x1x1xi32>
    %1159 = vector.extract %1158[0, 0, 0] : i32 from vector<1x1x1xi32>
    %c2048_i32 = arith.constant 2048 : i32
    %1160 = arith.ori %1101, %c2048_i32 : i32
    %1161 = vector.broadcast %1160 : i32 to vector<3x128xi32>
    %1162 = arith.cmpi eq, %1103, %1161 : vector<3x128xi32>
    %1163 = arith.extui %1162 : vector<3x128xi1> to vector<3x128xi32>
    %1164 = vector.shape_cast %1163 : vector<3x128xi32> to vector<1x3x128xi32>
    %cst_283 = arith.constant dense<0> : vector<1xi32>
    %1165 = vector.multi_reduction <add>, %1164, %cst_283 [1, 2] : vector<1x3x128xi32> to vector<1xi32>
    %1166 = vector.shape_cast %1165 : vector<1xi32> to vector<1x1x1xi32>
    %1167 = vector.extract %1166[0, 0, 0] : i32 from vector<1x1x1xi32>
    %c1792_i32 = arith.constant 1792 : i32
    %1168 = arith.ori %1101, %c1792_i32 : i32
    %1169 = vector.broadcast %1168 : i32 to vector<3x128xi32>
    %1170 = arith.cmpi eq, %1103, %1169 : vector<3x128xi32>
    %1171 = arith.extui %1170 : vector<3x128xi1> to vector<3x128xi32>
    %1172 = vector.shape_cast %1171 : vector<3x128xi32> to vector<1x3x128xi32>
    %cst_284 = arith.constant dense<0> : vector<1xi32>
    %1173 = vector.multi_reduction <add>, %1172, %cst_284 [1, 2] : vector<1x3x128xi32> to vector<1xi32>
    %1174 = vector.shape_cast %1173 : vector<1xi32> to vector<1x1x1xi32>
    %1175 = vector.extract %1174[0, 0, 0] : i32 from vector<1x1x1xi32>
    %c1536_i32 = arith.constant 1536 : i32
    %1176 = arith.ori %1101, %c1536_i32 : i32
    %1177 = vector.broadcast %1176 : i32 to vector<3x128xi32>
    %1178 = arith.cmpi eq, %1103, %1177 : vector<3x128xi32>
    %1179 = arith.extui %1178 : vector<3x128xi1> to vector<3x128xi32>
    %1180 = vector.shape_cast %1179 : vector<3x128xi32> to vector<1x3x128xi32>
    %cst_285 = arith.constant dense<0> : vector<1xi32>
    %1181 = vector.multi_reduction <add>, %1180, %cst_285 [1, 2] : vector<1x3x128xi32> to vector<1xi32>
    %1182 = vector.shape_cast %1181 : vector<1xi32> to vector<1x1x1xi32>
    %1183 = vector.extract %1182[0, 0, 0] : i32 from vector<1x1x1xi32>
    %c1280_i32 = arith.constant 1280 : i32
    %1184 = arith.ori %1101, %c1280_i32 : i32
    %1185 = vector.broadcast %1184 : i32 to vector<3x128xi32>
    %1186 = arith.cmpi eq, %1103, %1185 : vector<3x128xi32>
    %1187 = arith.extui %1186 : vector<3x128xi1> to vector<3x128xi32>
    %1188 = vector.shape_cast %1187 : vector<3x128xi32> to vector<1x3x128xi32>
    %cst_286 = arith.constant dense<0> : vector<1xi32>
    %1189 = vector.multi_reduction <add>, %1188, %cst_286 [1, 2] : vector<1x3x128xi32> to vector<1xi32>
    %1190 = vector.shape_cast %1189 : vector<1xi32> to vector<1x1x1xi32>
    %1191 = vector.extract %1190[0, 0, 0] : i32 from vector<1x1x1xi32>
    %c1024_i32 = arith.constant 1024 : i32
    %1192 = arith.ori %1101, %c1024_i32 : i32
    %1193 = vector.broadcast %1192 : i32 to vector<3x128xi32>
    %1194 = arith.cmpi eq, %1103, %1193 : vector<3x128xi32>
    %1195 = arith.extui %1194 : vector<3x128xi1> to vector<3x128xi32>
    %1196 = vector.shape_cast %1195 : vector<3x128xi32> to vector<1x3x128xi32>
    %cst_287 = arith.constant dense<0> : vector<1xi32>
    %1197 = vector.multi_reduction <add>, %1196, %cst_287 [1, 2] : vector<1x3x128xi32> to vector<1xi32>
    %1198 = vector.shape_cast %1197 : vector<1xi32> to vector<1x1x1xi32>
    %1199 = vector.extract %1198[0, 0, 0] : i32 from vector<1x1x1xi32>
    %c768_i32 = arith.constant 768 : i32
    %1200 = arith.ori %1101, %c768_i32 : i32
    %1201 = vector.broadcast %1200 : i32 to vector<3x128xi32>
    %1202 = arith.cmpi eq, %1103, %1201 : vector<3x128xi32>
    %1203 = arith.extui %1202 : vector<3x128xi1> to vector<3x128xi32>
    %1204 = vector.shape_cast %1203 : vector<3x128xi32> to vector<1x3x128xi32>
    %cst_288 = arith.constant dense<0> : vector<1xi32>
    %1205 = vector.multi_reduction <add>, %1204, %cst_288 [1, 2] : vector<1x3x128xi32> to vector<1xi32>
    %1206 = vector.shape_cast %1205 : vector<1xi32> to vector<1x1x1xi32>
    %1207 = vector.extract %1206[0, 0, 0] : i32 from vector<1x1x1xi32>
    %c512_i32 = arith.constant 512 : i32
    %1208 = arith.ori %1101, %c512_i32 : i32
    %1209 = vector.broadcast %1208 : i32 to vector<3x128xi32>
    %1210 = arith.cmpi eq, %1103, %1209 : vector<3x128xi32>
    %1211 = arith.extui %1210 : vector<3x128xi1> to vector<3x128xi32>
    %1212 = vector.shape_cast %1211 : vector<3x128xi32> to vector<1x3x128xi32>
    %cst_289 = arith.constant dense<0> : vector<1xi32>
    %1213 = vector.multi_reduction <add>, %1212, %cst_289 [1, 2] : vector<1x3x128xi32> to vector<1xi32>
    %1214 = vector.shape_cast %1213 : vector<1xi32> to vector<1x1x1xi32>
    %1215 = vector.extract %1214[0, 0, 0] : i32 from vector<1x1x1xi32>
    %c256_i32 = arith.constant 256 : i32
    %1216 = arith.ori %1101, %c256_i32 : i32
    %1217 = vector.broadcast %1216 : i32 to vector<3x128xi32>
    %1218 = arith.cmpi eq, %1103, %1217 : vector<3x128xi32>
    %1219 = arith.extui %1218 : vector<3x128xi1> to vector<3x128xi32>
    %1220 = vector.shape_cast %1219 : vector<3x128xi32> to vector<1x3x128xi32>
    %cst_290 = arith.constant dense<0> : vector<1xi32>
    %1221 = vector.multi_reduction <add>, %1220, %cst_290 [1, 2] : vector<1x3x128xi32> to vector<1xi32>
    %1222 = vector.shape_cast %1221 : vector<1xi32> to vector<1x1x1xi32>
    %1223 = vector.extract %1222[0, 0, 0] : i32 from vector<1x1x1xi32>
    %c0_i32_291 = arith.constant 0 : i32
    %1224 = arith.addi %c0_i32_291, %1111 : i32
    %1225 = arith.cmpi sge, %1224, %1099 : i32
    %c0_i32_292 = arith.constant 0 : i32
    %c0_i32_293 = arith.constant 0 : i32
    %1226 = arith.cmpi eq, %c0_i32_292, %c0_i32_293 : i32
    %1227 = arith.andi %1225, %1226 : i1
    %c15_i32_294 = arith.constant 15 : i32
    %c0_i32_295 = arith.constant 0 : i32
    %1228 = arith.select %1227, %c15_i32_294, %c0_i32_295 : i32
    %c0_i32_296 = arith.constant 0 : i32
    %c0_i32_297 = arith.constant 0 : i32
    %1229 = arith.select %1227, %c0_i32_296, %c0_i32_297 : i32
    %1230 = arith.addi %1224, %1119 : i32
    %1231 = arith.cmpi sge, %1230, %1099 : i32
    %c0_i32_298 = arith.constant 0 : i32
    %1232 = arith.cmpi eq, %1228, %c0_i32_298 : i32
    %1233 = arith.andi %1231, %1232 : i1
    %c14_i32_299 = arith.constant 14 : i32
    %1234 = arith.select %1233, %c14_i32_299, %1228 : i32
    %1235 = arith.select %1233, %1224, %1229 : i32
    %1236 = arith.addi %1230, %1127 : i32
    %1237 = arith.cmpi sge, %1236, %1099 : i32
    %c0_i32_300 = arith.constant 0 : i32
    %1238 = arith.cmpi eq, %1234, %c0_i32_300 : i32
    %1239 = arith.andi %1237, %1238 : i1
    %c13_i32_301 = arith.constant 13 : i32
    %1240 = arith.select %1239, %c13_i32_301, %1234 : i32
    %1241 = arith.select %1239, %1230, %1235 : i32
    %1242 = arith.addi %1236, %1135 : i32
    %1243 = arith.cmpi sge, %1242, %1099 : i32
    %c0_i32_302 = arith.constant 0 : i32
    %1244 = arith.cmpi eq, %1240, %c0_i32_302 : i32
    %1245 = arith.andi %1243, %1244 : i1
    %c12_i32_303 = arith.constant 12 : i32
    %1246 = arith.select %1245, %c12_i32_303, %1240 : i32
    %1247 = arith.select %1245, %1236, %1241 : i32
    %1248 = arith.addi %1242, %1143 : i32
    %1249 = arith.cmpi sge, %1248, %1099 : i32
    %c0_i32_304 = arith.constant 0 : i32
    %1250 = arith.cmpi eq, %1246, %c0_i32_304 : i32
    %1251 = arith.andi %1249, %1250 : i1
    %c11_i32_305 = arith.constant 11 : i32
    %1252 = arith.select %1251, %c11_i32_305, %1246 : i32
    %1253 = arith.select %1251, %1242, %1247 : i32
    %1254 = arith.addi %1248, %1151 : i32
    %1255 = arith.cmpi sge, %1254, %1099 : i32
    %c0_i32_306 = arith.constant 0 : i32
    %1256 = arith.cmpi eq, %1252, %c0_i32_306 : i32
    %1257 = arith.andi %1255, %1256 : i1
    %c10_i32_307 = arith.constant 10 : i32
    %1258 = arith.select %1257, %c10_i32_307, %1252 : i32
    %1259 = arith.select %1257, %1248, %1253 : i32
    %1260 = arith.addi %1254, %1159 : i32
    %1261 = arith.cmpi sge, %1260, %1099 : i32
    %c0_i32_308 = arith.constant 0 : i32
    %1262 = arith.cmpi eq, %1258, %c0_i32_308 : i32
    %1263 = arith.andi %1261, %1262 : i1
    %c9_i32_309 = arith.constant 9 : i32
    %1264 = arith.select %1263, %c9_i32_309, %1258 : i32
    %1265 = arith.select %1263, %1254, %1259 : i32
    %1266 = arith.addi %1260, %1167 : i32
    %1267 = arith.cmpi sge, %1266, %1099 : i32
    %c0_i32_310 = arith.constant 0 : i32
    %1268 = arith.cmpi eq, %1264, %c0_i32_310 : i32
    %1269 = arith.andi %1267, %1268 : i1
    %c8_i32_311 = arith.constant 8 : i32
    %1270 = arith.select %1269, %c8_i32_311, %1264 : i32
    %1271 = arith.select %1269, %1260, %1265 : i32
    %1272 = arith.addi %1266, %1175 : i32
    %1273 = arith.cmpi sge, %1272, %1099 : i32
    %c0_i32_312 = arith.constant 0 : i32
    %1274 = arith.cmpi eq, %1270, %c0_i32_312 : i32
    %1275 = arith.andi %1273, %1274 : i1
    %c7_i32_313 = arith.constant 7 : i32
    %1276 = arith.select %1275, %c7_i32_313, %1270 : i32
    %1277 = arith.select %1275, %1266, %1271 : i32
    %1278 = arith.addi %1272, %1183 : i32
    %1279 = arith.cmpi sge, %1278, %1099 : i32
    %c0_i32_314 = arith.constant 0 : i32
    %1280 = arith.cmpi eq, %1276, %c0_i32_314 : i32
    %1281 = arith.andi %1279, %1280 : i1
    %c6_i32_315 = arith.constant 6 : i32
    %1282 = arith.select %1281, %c6_i32_315, %1276 : i32
    %1283 = arith.select %1281, %1272, %1277 : i32
    %1284 = arith.addi %1278, %1191 : i32
    %1285 = arith.cmpi sge, %1284, %1099 : i32
    %c0_i32_316 = arith.constant 0 : i32
    %1286 = arith.cmpi eq, %1282, %c0_i32_316 : i32
    %1287 = arith.andi %1285, %1286 : i1
    %c5_i32_317 = arith.constant 5 : i32
    %1288 = arith.select %1287, %c5_i32_317, %1282 : i32
    %1289 = arith.select %1287, %1278, %1283 : i32
    %1290 = arith.addi %1284, %1199 : i32
    %1291 = arith.cmpi sge, %1290, %1099 : i32
    %c0_i32_318 = arith.constant 0 : i32
    %1292 = arith.cmpi eq, %1288, %c0_i32_318 : i32
    %1293 = arith.andi %1291, %1292 : i1
    %c4_i32_319 = arith.constant 4 : i32
    %1294 = arith.select %1293, %c4_i32_319, %1288 : i32
    %1295 = arith.select %1293, %1284, %1289 : i32
    %1296 = arith.addi %1290, %1207 : i32
    %1297 = arith.cmpi sge, %1296, %1099 : i32
    %c0_i32_320 = arith.constant 0 : i32
    %1298 = arith.cmpi eq, %1294, %c0_i32_320 : i32
    %1299 = arith.andi %1297, %1298 : i1
    %c3_i32_321 = arith.constant 3 : i32
    %1300 = arith.select %1299, %c3_i32_321, %1294 : i32
    %1301 = arith.select %1299, %1290, %1295 : i32
    %1302 = arith.addi %1296, %1215 : i32
    %1303 = arith.cmpi sge, %1302, %1099 : i32
    %c0_i32_322 = arith.constant 0 : i32
    %1304 = arith.cmpi eq, %1300, %c0_i32_322 : i32
    %1305 = arith.andi %1303, %1304 : i1
    %c2_i32_323 = arith.constant 2 : i32
    %1306 = arith.select %1305, %c2_i32_323, %1300 : i32
    %1307 = arith.select %1305, %1296, %1301 : i32
    %1308 = arith.addi %1302, %1223 : i32
    %1309 = arith.cmpi sge, %1308, %1099 : i32
    %c0_i32_324 = arith.constant 0 : i32
    %1310 = arith.cmpi eq, %1306, %c0_i32_324 : i32
    %1311 = arith.andi %1309, %1310 : i1
    %c1_i32_325 = arith.constant 1 : i32
    %1312 = arith.select %1311, %c1_i32_325, %1306 : i32
    %1313 = arith.select %1311, %1302, %1307 : i32
    %c0_i32_326 = arith.constant 0 : i32
    %1314 = arith.cmpi eq, %1312, %c0_i32_326 : i32
    %1315 = arith.select %1314, %1308, %1313 : i32
    %1316 = arith.subi %1099, %1315 : i32
    %c8_i32_327 = arith.constant 8 : i32
    %1317 = arith.shli %1312, %c8_i32_327 : i32
    %1318 = arith.ori %1101, %1317 : i32
    %c-16_i32 = arith.constant -16 : i32
    %1319 = vector.broadcast %c-16_i32 : i32 to vector<3x128xi32>
    %1320 = arith.andi %16, %1319 : vector<3x128xi32>
    %c240_i32 = arith.constant 240 : i32
    %1321 = arith.ori %1318, %c240_i32 : i32
    %1322 = vector.broadcast %1321 : i32 to vector<3x128xi32>
    %1323 = arith.cmpi eq, %1320, %1322 : vector<3x128xi32>
    %1324 = arith.extui %1323 : vector<3x128xi1> to vector<3x128xi32>
    %1325 = vector.shape_cast %1324 : vector<3x128xi32> to vector<1x3x128xi32>
    %cst_328 = arith.constant dense<0> : vector<1xi32>
    %1326 = vector.multi_reduction <add>, %1325, %cst_328 [1, 2] : vector<1x3x128xi32> to vector<1xi32>
    %1327 = vector.shape_cast %1326 : vector<1xi32> to vector<1x1x1xi32>
    %1328 = vector.extract %1327[0, 0, 0] : i32 from vector<1x1x1xi32>
    %c224_i32 = arith.constant 224 : i32
    %1329 = arith.ori %1318, %c224_i32 : i32
    %1330 = vector.broadcast %1329 : i32 to vector<3x128xi32>
    %1331 = arith.cmpi eq, %1320, %1330 : vector<3x128xi32>
    %1332 = arith.extui %1331 : vector<3x128xi1> to vector<3x128xi32>
    %1333 = vector.shape_cast %1332 : vector<3x128xi32> to vector<1x3x128xi32>
    %cst_329 = arith.constant dense<0> : vector<1xi32>
    %1334 = vector.multi_reduction <add>, %1333, %cst_329 [1, 2] : vector<1x3x128xi32> to vector<1xi32>
    %1335 = vector.shape_cast %1334 : vector<1xi32> to vector<1x1x1xi32>
    %1336 = vector.extract %1335[0, 0, 0] : i32 from vector<1x1x1xi32>
    %c208_i32 = arith.constant 208 : i32
    %1337 = arith.ori %1318, %c208_i32 : i32
    %1338 = vector.broadcast %1337 : i32 to vector<3x128xi32>
    %1339 = arith.cmpi eq, %1320, %1338 : vector<3x128xi32>
    %1340 = arith.extui %1339 : vector<3x128xi1> to vector<3x128xi32>
    %1341 = vector.shape_cast %1340 : vector<3x128xi32> to vector<1x3x128xi32>
    %cst_330 = arith.constant dense<0> : vector<1xi32>
    %1342 = vector.multi_reduction <add>, %1341, %cst_330 [1, 2] : vector<1x3x128xi32> to vector<1xi32>
    %1343 = vector.shape_cast %1342 : vector<1xi32> to vector<1x1x1xi32>
    %1344 = vector.extract %1343[0, 0, 0] : i32 from vector<1x1x1xi32>
    %c192_i32 = arith.constant 192 : i32
    %1345 = arith.ori %1318, %c192_i32 : i32
    %1346 = vector.broadcast %1345 : i32 to vector<3x128xi32>
    %1347 = arith.cmpi eq, %1320, %1346 : vector<3x128xi32>
    %1348 = arith.extui %1347 : vector<3x128xi1> to vector<3x128xi32>
    %1349 = vector.shape_cast %1348 : vector<3x128xi32> to vector<1x3x128xi32>
    %cst_331 = arith.constant dense<0> : vector<1xi32>
    %1350 = vector.multi_reduction <add>, %1349, %cst_331 [1, 2] : vector<1x3x128xi32> to vector<1xi32>
    %1351 = vector.shape_cast %1350 : vector<1xi32> to vector<1x1x1xi32>
    %1352 = vector.extract %1351[0, 0, 0] : i32 from vector<1x1x1xi32>
    %c176_i32 = arith.constant 176 : i32
    %1353 = arith.ori %1318, %c176_i32 : i32
    %1354 = vector.broadcast %1353 : i32 to vector<3x128xi32>
    %1355 = arith.cmpi eq, %1320, %1354 : vector<3x128xi32>
    %1356 = arith.extui %1355 : vector<3x128xi1> to vector<3x128xi32>
    %1357 = vector.shape_cast %1356 : vector<3x128xi32> to vector<1x3x128xi32>
    %cst_332 = arith.constant dense<0> : vector<1xi32>
    %1358 = vector.multi_reduction <add>, %1357, %cst_332 [1, 2] : vector<1x3x128xi32> to vector<1xi32>
    %1359 = vector.shape_cast %1358 : vector<1xi32> to vector<1x1x1xi32>
    %1360 = vector.extract %1359[0, 0, 0] : i32 from vector<1x1x1xi32>
    %c160_i32 = arith.constant 160 : i32
    %1361 = arith.ori %1318, %c160_i32 : i32
    %1362 = vector.broadcast %1361 : i32 to vector<3x128xi32>
    %1363 = arith.cmpi eq, %1320, %1362 : vector<3x128xi32>
    %1364 = arith.extui %1363 : vector<3x128xi1> to vector<3x128xi32>
    %1365 = vector.shape_cast %1364 : vector<3x128xi32> to vector<1x3x128xi32>
    %cst_333 = arith.constant dense<0> : vector<1xi32>
    %1366 = vector.multi_reduction <add>, %1365, %cst_333 [1, 2] : vector<1x3x128xi32> to vector<1xi32>
    %1367 = vector.shape_cast %1366 : vector<1xi32> to vector<1x1x1xi32>
    %1368 = vector.extract %1367[0, 0, 0] : i32 from vector<1x1x1xi32>
    %c144_i32 = arith.constant 144 : i32
    %1369 = arith.ori %1318, %c144_i32 : i32
    %1370 = vector.broadcast %1369 : i32 to vector<3x128xi32>
    %1371 = arith.cmpi eq, %1320, %1370 : vector<3x128xi32>
    %1372 = arith.extui %1371 : vector<3x128xi1> to vector<3x128xi32>
    %1373 = vector.shape_cast %1372 : vector<3x128xi32> to vector<1x3x128xi32>
    %cst_334 = arith.constant dense<0> : vector<1xi32>
    %1374 = vector.multi_reduction <add>, %1373, %cst_334 [1, 2] : vector<1x3x128xi32> to vector<1xi32>
    %1375 = vector.shape_cast %1374 : vector<1xi32> to vector<1x1x1xi32>
    %1376 = vector.extract %1375[0, 0, 0] : i32 from vector<1x1x1xi32>
    %c128_i32_335 = arith.constant 128 : i32
    %1377 = arith.ori %1318, %c128_i32_335 : i32
    %1378 = vector.broadcast %1377 : i32 to vector<3x128xi32>
    %1379 = arith.cmpi eq, %1320, %1378 : vector<3x128xi32>
    %1380 = arith.extui %1379 : vector<3x128xi1> to vector<3x128xi32>
    %1381 = vector.shape_cast %1380 : vector<3x128xi32> to vector<1x3x128xi32>
    %cst_336 = arith.constant dense<0> : vector<1xi32>
    %1382 = vector.multi_reduction <add>, %1381, %cst_336 [1, 2] : vector<1x3x128xi32> to vector<1xi32>
    %1383 = vector.shape_cast %1382 : vector<1xi32> to vector<1x1x1xi32>
    %1384 = vector.extract %1383[0, 0, 0] : i32 from vector<1x1x1xi32>
    %c112_i32 = arith.constant 112 : i32
    %1385 = arith.ori %1318, %c112_i32 : i32
    %1386 = vector.broadcast %1385 : i32 to vector<3x128xi32>
    %1387 = arith.cmpi eq, %1320, %1386 : vector<3x128xi32>
    %1388 = arith.extui %1387 : vector<3x128xi1> to vector<3x128xi32>
    %1389 = vector.shape_cast %1388 : vector<3x128xi32> to vector<1x3x128xi32>
    %cst_337 = arith.constant dense<0> : vector<1xi32>
    %1390 = vector.multi_reduction <add>, %1389, %cst_337 [1, 2] : vector<1x3x128xi32> to vector<1xi32>
    %1391 = vector.shape_cast %1390 : vector<1xi32> to vector<1x1x1xi32>
    %1392 = vector.extract %1391[0, 0, 0] : i32 from vector<1x1x1xi32>
    %c96_i32 = arith.constant 96 : i32
    %1393 = arith.ori %1318, %c96_i32 : i32
    %1394 = vector.broadcast %1393 : i32 to vector<3x128xi32>
    %1395 = arith.cmpi eq, %1320, %1394 : vector<3x128xi32>
    %1396 = arith.extui %1395 : vector<3x128xi1> to vector<3x128xi32>
    %1397 = vector.shape_cast %1396 : vector<3x128xi32> to vector<1x3x128xi32>
    %cst_338 = arith.constant dense<0> : vector<1xi32>
    %1398 = vector.multi_reduction <add>, %1397, %cst_338 [1, 2] : vector<1x3x128xi32> to vector<1xi32>
    %1399 = vector.shape_cast %1398 : vector<1xi32> to vector<1x1x1xi32>
    %1400 = vector.extract %1399[0, 0, 0] : i32 from vector<1x1x1xi32>
    %c80_i32 = arith.constant 80 : i32
    %1401 = arith.ori %1318, %c80_i32 : i32
    %1402 = vector.broadcast %1401 : i32 to vector<3x128xi32>
    %1403 = arith.cmpi eq, %1320, %1402 : vector<3x128xi32>
    %1404 = arith.extui %1403 : vector<3x128xi1> to vector<3x128xi32>
    %1405 = vector.shape_cast %1404 : vector<3x128xi32> to vector<1x3x128xi32>
    %cst_339 = arith.constant dense<0> : vector<1xi32>
    %1406 = vector.multi_reduction <add>, %1405, %cst_339 [1, 2] : vector<1x3x128xi32> to vector<1xi32>
    %1407 = vector.shape_cast %1406 : vector<1xi32> to vector<1x1x1xi32>
    %1408 = vector.extract %1407[0, 0, 0] : i32 from vector<1x1x1xi32>
    %c64_i32 = arith.constant 64 : i32
    %1409 = arith.ori %1318, %c64_i32 : i32
    %1410 = vector.broadcast %1409 : i32 to vector<3x128xi32>
    %1411 = arith.cmpi eq, %1320, %1410 : vector<3x128xi32>
    %1412 = arith.extui %1411 : vector<3x128xi1> to vector<3x128xi32>
    %1413 = vector.shape_cast %1412 : vector<3x128xi32> to vector<1x3x128xi32>
    %cst_340 = arith.constant dense<0> : vector<1xi32>
    %1414 = vector.multi_reduction <add>, %1413, %cst_340 [1, 2] : vector<1x3x128xi32> to vector<1xi32>
    %1415 = vector.shape_cast %1414 : vector<1xi32> to vector<1x1x1xi32>
    %1416 = vector.extract %1415[0, 0, 0] : i32 from vector<1x1x1xi32>
    %c48_i32 = arith.constant 48 : i32
    %1417 = arith.ori %1318, %c48_i32 : i32
    %1418 = vector.broadcast %1417 : i32 to vector<3x128xi32>
    %1419 = arith.cmpi eq, %1320, %1418 : vector<3x128xi32>
    %1420 = arith.extui %1419 : vector<3x128xi1> to vector<3x128xi32>
    %1421 = vector.shape_cast %1420 : vector<3x128xi32> to vector<1x3x128xi32>
    %cst_341 = arith.constant dense<0> : vector<1xi32>
    %1422 = vector.multi_reduction <add>, %1421, %cst_341 [1, 2] : vector<1x3x128xi32> to vector<1xi32>
    %1423 = vector.shape_cast %1422 : vector<1xi32> to vector<1x1x1xi32>
    %1424 = vector.extract %1423[0, 0, 0] : i32 from vector<1x1x1xi32>
    %c32_i32 = arith.constant 32 : i32
    %1425 = arith.ori %1318, %c32_i32 : i32
    %1426 = vector.broadcast %1425 : i32 to vector<3x128xi32>
    %1427 = arith.cmpi eq, %1320, %1426 : vector<3x128xi32>
    %1428 = arith.extui %1427 : vector<3x128xi1> to vector<3x128xi32>
    %1429 = vector.shape_cast %1428 : vector<3x128xi32> to vector<1x3x128xi32>
    %cst_342 = arith.constant dense<0> : vector<1xi32>
    %1430 = vector.multi_reduction <add>, %1429, %cst_342 [1, 2] : vector<1x3x128xi32> to vector<1xi32>
    %1431 = vector.shape_cast %1430 : vector<1xi32> to vector<1x1x1xi32>
    %1432 = vector.extract %1431[0, 0, 0] : i32 from vector<1x1x1xi32>
    %c16_i32_343 = arith.constant 16 : i32
    %1433 = arith.ori %1318, %c16_i32_343 : i32
    %1434 = vector.broadcast %1433 : i32 to vector<3x128xi32>
    %1435 = arith.cmpi eq, %1320, %1434 : vector<3x128xi32>
    %1436 = arith.extui %1435 : vector<3x128xi1> to vector<3x128xi32>
    %1437 = vector.shape_cast %1436 : vector<3x128xi32> to vector<1x3x128xi32>
    %cst_344 = arith.constant dense<0> : vector<1xi32>
    %1438 = vector.multi_reduction <add>, %1437, %cst_344 [1, 2] : vector<1x3x128xi32> to vector<1xi32>
    %1439 = vector.shape_cast %1438 : vector<1xi32> to vector<1x1x1xi32>
    %1440 = vector.extract %1439[0, 0, 0] : i32 from vector<1x1x1xi32>
    %c0_i32_345 = arith.constant 0 : i32
    %1441 = arith.addi %c0_i32_345, %1328 : i32
    %1442 = arith.cmpi sge, %1441, %1316 : i32
    %c0_i32_346 = arith.constant 0 : i32
    %c0_i32_347 = arith.constant 0 : i32
    %1443 = arith.cmpi eq, %c0_i32_346, %c0_i32_347 : i32
    %1444 = arith.andi %1442, %1443 : i1
    %c15_i32_348 = arith.constant 15 : i32
    %c0_i32_349 = arith.constant 0 : i32
    %1445 = arith.select %1444, %c15_i32_348, %c0_i32_349 : i32
    %c0_i32_350 = arith.constant 0 : i32
    %c0_i32_351 = arith.constant 0 : i32
    %1446 = arith.select %1444, %c0_i32_350, %c0_i32_351 : i32
    %1447 = arith.addi %1441, %1336 : i32
    %1448 = arith.cmpi sge, %1447, %1316 : i32
    %c0_i32_352 = arith.constant 0 : i32
    %1449 = arith.cmpi eq, %1445, %c0_i32_352 : i32
    %1450 = arith.andi %1448, %1449 : i1
    %c14_i32_353 = arith.constant 14 : i32
    %1451 = arith.select %1450, %c14_i32_353, %1445 : i32
    %1452 = arith.select %1450, %1441, %1446 : i32
    %1453 = arith.addi %1447, %1344 : i32
    %1454 = arith.cmpi sge, %1453, %1316 : i32
    %c0_i32_354 = arith.constant 0 : i32
    %1455 = arith.cmpi eq, %1451, %c0_i32_354 : i32
    %1456 = arith.andi %1454, %1455 : i1
    %c13_i32_355 = arith.constant 13 : i32
    %1457 = arith.select %1456, %c13_i32_355, %1451 : i32
    %1458 = arith.select %1456, %1447, %1452 : i32
    %1459 = arith.addi %1453, %1352 : i32
    %1460 = arith.cmpi sge, %1459, %1316 : i32
    %c0_i32_356 = arith.constant 0 : i32
    %1461 = arith.cmpi eq, %1457, %c0_i32_356 : i32
    %1462 = arith.andi %1460, %1461 : i1
    %c12_i32_357 = arith.constant 12 : i32
    %1463 = arith.select %1462, %c12_i32_357, %1457 : i32
    %1464 = arith.select %1462, %1453, %1458 : i32
    %1465 = arith.addi %1459, %1360 : i32
    %1466 = arith.cmpi sge, %1465, %1316 : i32
    %c0_i32_358 = arith.constant 0 : i32
    %1467 = arith.cmpi eq, %1463, %c0_i32_358 : i32
    %1468 = arith.andi %1466, %1467 : i1
    %c11_i32_359 = arith.constant 11 : i32
    %1469 = arith.select %1468, %c11_i32_359, %1463 : i32
    %1470 = arith.select %1468, %1459, %1464 : i32
    %1471 = arith.addi %1465, %1368 : i32
    %1472 = arith.cmpi sge, %1471, %1316 : i32
    %c0_i32_360 = arith.constant 0 : i32
    %1473 = arith.cmpi eq, %1469, %c0_i32_360 : i32
    %1474 = arith.andi %1472, %1473 : i1
    %c10_i32_361 = arith.constant 10 : i32
    %1475 = arith.select %1474, %c10_i32_361, %1469 : i32
    %1476 = arith.select %1474, %1465, %1470 : i32
    %1477 = arith.addi %1471, %1376 : i32
    %1478 = arith.cmpi sge, %1477, %1316 : i32
    %c0_i32_362 = arith.constant 0 : i32
    %1479 = arith.cmpi eq, %1475, %c0_i32_362 : i32
    %1480 = arith.andi %1478, %1479 : i1
    %c9_i32_363 = arith.constant 9 : i32
    %1481 = arith.select %1480, %c9_i32_363, %1475 : i32
    %1482 = arith.select %1480, %1471, %1476 : i32
    %1483 = arith.addi %1477, %1384 : i32
    %1484 = arith.cmpi sge, %1483, %1316 : i32
    %c0_i32_364 = arith.constant 0 : i32
    %1485 = arith.cmpi eq, %1481, %c0_i32_364 : i32
    %1486 = arith.andi %1484, %1485 : i1
    %c8_i32_365 = arith.constant 8 : i32
    %1487 = arith.select %1486, %c8_i32_365, %1481 : i32
    %1488 = arith.select %1486, %1477, %1482 : i32
    %1489 = arith.addi %1483, %1392 : i32
    %1490 = arith.cmpi sge, %1489, %1316 : i32
    %c0_i32_366 = arith.constant 0 : i32
    %1491 = arith.cmpi eq, %1487, %c0_i32_366 : i32
    %1492 = arith.andi %1490, %1491 : i1
    %c7_i32_367 = arith.constant 7 : i32
    %1493 = arith.select %1492, %c7_i32_367, %1487 : i32
    %1494 = arith.select %1492, %1483, %1488 : i32
    %1495 = arith.addi %1489, %1400 : i32
    %1496 = arith.cmpi sge, %1495, %1316 : i32
    %c0_i32_368 = arith.constant 0 : i32
    %1497 = arith.cmpi eq, %1493, %c0_i32_368 : i32
    %1498 = arith.andi %1496, %1497 : i1
    %c6_i32_369 = arith.constant 6 : i32
    %1499 = arith.select %1498, %c6_i32_369, %1493 : i32
    %1500 = arith.select %1498, %1489, %1494 : i32
    %1501 = arith.addi %1495, %1408 : i32
    %1502 = arith.cmpi sge, %1501, %1316 : i32
    %c0_i32_370 = arith.constant 0 : i32
    %1503 = arith.cmpi eq, %1499, %c0_i32_370 : i32
    %1504 = arith.andi %1502, %1503 : i1
    %c5_i32_371 = arith.constant 5 : i32
    %1505 = arith.select %1504, %c5_i32_371, %1499 : i32
    %1506 = arith.select %1504, %1495, %1500 : i32
    %1507 = arith.addi %1501, %1416 : i32
    %1508 = arith.cmpi sge, %1507, %1316 : i32
    %c0_i32_372 = arith.constant 0 : i32
    %1509 = arith.cmpi eq, %1505, %c0_i32_372 : i32
    %1510 = arith.andi %1508, %1509 : i1
    %c4_i32_373 = arith.constant 4 : i32
    %1511 = arith.select %1510, %c4_i32_373, %1505 : i32
    %1512 = arith.select %1510, %1501, %1506 : i32
    %1513 = arith.addi %1507, %1424 : i32
    %1514 = arith.cmpi sge, %1513, %1316 : i32
    %c0_i32_374 = arith.constant 0 : i32
    %1515 = arith.cmpi eq, %1511, %c0_i32_374 : i32
    %1516 = arith.andi %1514, %1515 : i1
    %c3_i32_375 = arith.constant 3 : i32
    %1517 = arith.select %1516, %c3_i32_375, %1511 : i32
    %1518 = arith.select %1516, %1507, %1512 : i32
    %1519 = arith.addi %1513, %1432 : i32
    %1520 = arith.cmpi sge, %1519, %1316 : i32
    %c0_i32_376 = arith.constant 0 : i32
    %1521 = arith.cmpi eq, %1517, %c0_i32_376 : i32
    %1522 = arith.andi %1520, %1521 : i1
    %c2_i32_377 = arith.constant 2 : i32
    %1523 = arith.select %1522, %c2_i32_377, %1517 : i32
    %1524 = arith.select %1522, %1513, %1518 : i32
    %1525 = arith.addi %1519, %1440 : i32
    %1526 = arith.cmpi sge, %1525, %1316 : i32
    %c0_i32_378 = arith.constant 0 : i32
    %1527 = arith.cmpi eq, %1523, %c0_i32_378 : i32
    %1528 = arith.andi %1526, %1527 : i1
    %c1_i32_379 = arith.constant 1 : i32
    %1529 = arith.select %1528, %c1_i32_379, %1523 : i32
    %1530 = arith.select %1528, %1519, %1524 : i32
    %c0_i32_380 = arith.constant 0 : i32
    %1531 = arith.cmpi eq, %1529, %c0_i32_380 : i32
    %1532 = arith.select %1531, %1525, %1530 : i32
    %1533 = arith.subi %1316, %1532 : i32
    %c4_i32_381 = arith.constant 4 : i32
    %1534 = arith.shli %1529, %c4_i32_381 : i32
    %1535 = arith.ori %1318, %1534 : i32
    %c-1_i32 = arith.constant -1 : i32
    %1536 = vector.broadcast %c-1_i32 : i32 to vector<3x128xi32>
    %1537 = arith.andi %16, %1536 : vector<3x128xi32>
    %c15_i32_382 = arith.constant 15 : i32
    %1538 = arith.ori %1535, %c15_i32_382 : i32
    %1539 = vector.broadcast %1538 : i32 to vector<3x128xi32>
    %1540 = arith.cmpi eq, %1537, %1539 : vector<3x128xi32>
    %1541 = arith.extui %1540 : vector<3x128xi1> to vector<3x128xi32>
    %1542 = vector.shape_cast %1541 : vector<3x128xi32> to vector<1x3x128xi32>
    %cst_383 = arith.constant dense<0> : vector<1xi32>
    %1543 = vector.multi_reduction <add>, %1542, %cst_383 [1, 2] : vector<1x3x128xi32> to vector<1xi32>
    %1544 = vector.shape_cast %1543 : vector<1xi32> to vector<1x1x1xi32>
    %1545 = vector.extract %1544[0, 0, 0] : i32 from vector<1x1x1xi32>
    %c14_i32_384 = arith.constant 14 : i32
    %1546 = arith.ori %1535, %c14_i32_384 : i32
    %1547 = vector.broadcast %1546 : i32 to vector<3x128xi32>
    %1548 = arith.cmpi eq, %1537, %1547 : vector<3x128xi32>
    %1549 = arith.extui %1548 : vector<3x128xi1> to vector<3x128xi32>
    %1550 = vector.shape_cast %1549 : vector<3x128xi32> to vector<1x3x128xi32>
    %cst_385 = arith.constant dense<0> : vector<1xi32>
    %1551 = vector.multi_reduction <add>, %1550, %cst_385 [1, 2] : vector<1x3x128xi32> to vector<1xi32>
    %1552 = vector.shape_cast %1551 : vector<1xi32> to vector<1x1x1xi32>
    %1553 = vector.extract %1552[0, 0, 0] : i32 from vector<1x1x1xi32>
    %c13_i32_386 = arith.constant 13 : i32
    %1554 = arith.ori %1535, %c13_i32_386 : i32
    %1555 = vector.broadcast %1554 : i32 to vector<3x128xi32>
    %1556 = arith.cmpi eq, %1537, %1555 : vector<3x128xi32>
    %1557 = arith.extui %1556 : vector<3x128xi1> to vector<3x128xi32>
    %1558 = vector.shape_cast %1557 : vector<3x128xi32> to vector<1x3x128xi32>
    %cst_387 = arith.constant dense<0> : vector<1xi32>
    %1559 = vector.multi_reduction <add>, %1558, %cst_387 [1, 2] : vector<1x3x128xi32> to vector<1xi32>
    %1560 = vector.shape_cast %1559 : vector<1xi32> to vector<1x1x1xi32>
    %1561 = vector.extract %1560[0, 0, 0] : i32 from vector<1x1x1xi32>
    %c12_i32_388 = arith.constant 12 : i32
    %1562 = arith.ori %1535, %c12_i32_388 : i32
    %1563 = vector.broadcast %1562 : i32 to vector<3x128xi32>
    %1564 = arith.cmpi eq, %1537, %1563 : vector<3x128xi32>
    %1565 = arith.extui %1564 : vector<3x128xi1> to vector<3x128xi32>
    %1566 = vector.shape_cast %1565 : vector<3x128xi32> to vector<1x3x128xi32>
    %cst_389 = arith.constant dense<0> : vector<1xi32>
    %1567 = vector.multi_reduction <add>, %1566, %cst_389 [1, 2] : vector<1x3x128xi32> to vector<1xi32>
    %1568 = vector.shape_cast %1567 : vector<1xi32> to vector<1x1x1xi32>
    %1569 = vector.extract %1568[0, 0, 0] : i32 from vector<1x1x1xi32>
    %c11_i32_390 = arith.constant 11 : i32
    %1570 = arith.ori %1535, %c11_i32_390 : i32
    %1571 = vector.broadcast %1570 : i32 to vector<3x128xi32>
    %1572 = arith.cmpi eq, %1537, %1571 : vector<3x128xi32>
    %1573 = arith.extui %1572 : vector<3x128xi1> to vector<3x128xi32>
    %1574 = vector.shape_cast %1573 : vector<3x128xi32> to vector<1x3x128xi32>
    %cst_391 = arith.constant dense<0> : vector<1xi32>
    %1575 = vector.multi_reduction <add>, %1574, %cst_391 [1, 2] : vector<1x3x128xi32> to vector<1xi32>
    %1576 = vector.shape_cast %1575 : vector<1xi32> to vector<1x1x1xi32>
    %1577 = vector.extract %1576[0, 0, 0] : i32 from vector<1x1x1xi32>
    %c10_i32_392 = arith.constant 10 : i32
    %1578 = arith.ori %1535, %c10_i32_392 : i32
    %1579 = vector.broadcast %1578 : i32 to vector<3x128xi32>
    %1580 = arith.cmpi eq, %1537, %1579 : vector<3x128xi32>
    %1581 = arith.extui %1580 : vector<3x128xi1> to vector<3x128xi32>
    %1582 = vector.shape_cast %1581 : vector<3x128xi32> to vector<1x3x128xi32>
    %cst_393 = arith.constant dense<0> : vector<1xi32>
    %1583 = vector.multi_reduction <add>, %1582, %cst_393 [1, 2] : vector<1x3x128xi32> to vector<1xi32>
    %1584 = vector.shape_cast %1583 : vector<1xi32> to vector<1x1x1xi32>
    %1585 = vector.extract %1584[0, 0, 0] : i32 from vector<1x1x1xi32>
    %c9_i32_394 = arith.constant 9 : i32
    %1586 = arith.ori %1535, %c9_i32_394 : i32
    %1587 = vector.broadcast %1586 : i32 to vector<3x128xi32>
    %1588 = arith.cmpi eq, %1537, %1587 : vector<3x128xi32>
    %1589 = arith.extui %1588 : vector<3x128xi1> to vector<3x128xi32>
    %1590 = vector.shape_cast %1589 : vector<3x128xi32> to vector<1x3x128xi32>
    %cst_395 = arith.constant dense<0> : vector<1xi32>
    %1591 = vector.multi_reduction <add>, %1590, %cst_395 [1, 2] : vector<1x3x128xi32> to vector<1xi32>
    %1592 = vector.shape_cast %1591 : vector<1xi32> to vector<1x1x1xi32>
    %1593 = vector.extract %1592[0, 0, 0] : i32 from vector<1x1x1xi32>
    %c8_i32_396 = arith.constant 8 : i32
    %1594 = arith.ori %1535, %c8_i32_396 : i32
    %1595 = vector.broadcast %1594 : i32 to vector<3x128xi32>
    %1596 = arith.cmpi eq, %1537, %1595 : vector<3x128xi32>
    %1597 = arith.extui %1596 : vector<3x128xi1> to vector<3x128xi32>
    %1598 = vector.shape_cast %1597 : vector<3x128xi32> to vector<1x3x128xi32>
    %cst_397 = arith.constant dense<0> : vector<1xi32>
    %1599 = vector.multi_reduction <add>, %1598, %cst_397 [1, 2] : vector<1x3x128xi32> to vector<1xi32>
    %1600 = vector.shape_cast %1599 : vector<1xi32> to vector<1x1x1xi32>
    %1601 = vector.extract %1600[0, 0, 0] : i32 from vector<1x1x1xi32>
    %c7_i32_398 = arith.constant 7 : i32
    %1602 = arith.ori %1535, %c7_i32_398 : i32
    %1603 = vector.broadcast %1602 : i32 to vector<3x128xi32>
    %1604 = arith.cmpi eq, %1537, %1603 : vector<3x128xi32>
    %1605 = arith.extui %1604 : vector<3x128xi1> to vector<3x128xi32>
    %1606 = vector.shape_cast %1605 : vector<3x128xi32> to vector<1x3x128xi32>
    %cst_399 = arith.constant dense<0> : vector<1xi32>
    %1607 = vector.multi_reduction <add>, %1606, %cst_399 [1, 2] : vector<1x3x128xi32> to vector<1xi32>
    %1608 = vector.shape_cast %1607 : vector<1xi32> to vector<1x1x1xi32>
    %1609 = vector.extract %1608[0, 0, 0] : i32 from vector<1x1x1xi32>
    %c6_i32_400 = arith.constant 6 : i32
    %1610 = arith.ori %1535, %c6_i32_400 : i32
    %1611 = vector.broadcast %1610 : i32 to vector<3x128xi32>
    %1612 = arith.cmpi eq, %1537, %1611 : vector<3x128xi32>
    %1613 = arith.extui %1612 : vector<3x128xi1> to vector<3x128xi32>
    %1614 = vector.shape_cast %1613 : vector<3x128xi32> to vector<1x3x128xi32>
    %cst_401 = arith.constant dense<0> : vector<1xi32>
    %1615 = vector.multi_reduction <add>, %1614, %cst_401 [1, 2] : vector<1x3x128xi32> to vector<1xi32>
    %1616 = vector.shape_cast %1615 : vector<1xi32> to vector<1x1x1xi32>
    %1617 = vector.extract %1616[0, 0, 0] : i32 from vector<1x1x1xi32>
    %c5_i32_402 = arith.constant 5 : i32
    %1618 = arith.ori %1535, %c5_i32_402 : i32
    %1619 = vector.broadcast %1618 : i32 to vector<3x128xi32>
    %1620 = arith.cmpi eq, %1537, %1619 : vector<3x128xi32>
    %1621 = arith.extui %1620 : vector<3x128xi1> to vector<3x128xi32>
    %1622 = vector.shape_cast %1621 : vector<3x128xi32> to vector<1x3x128xi32>
    %cst_403 = arith.constant dense<0> : vector<1xi32>
    %1623 = vector.multi_reduction <add>, %1622, %cst_403 [1, 2] : vector<1x3x128xi32> to vector<1xi32>
    %1624 = vector.shape_cast %1623 : vector<1xi32> to vector<1x1x1xi32>
    %1625 = vector.extract %1624[0, 0, 0] : i32 from vector<1x1x1xi32>
    %c4_i32_404 = arith.constant 4 : i32
    %1626 = arith.ori %1535, %c4_i32_404 : i32
    %1627 = vector.broadcast %1626 : i32 to vector<3x128xi32>
    %1628 = arith.cmpi eq, %1537, %1627 : vector<3x128xi32>
    %1629 = arith.extui %1628 : vector<3x128xi1> to vector<3x128xi32>
    %1630 = vector.shape_cast %1629 : vector<3x128xi32> to vector<1x3x128xi32>
    %cst_405 = arith.constant dense<0> : vector<1xi32>
    %1631 = vector.multi_reduction <add>, %1630, %cst_405 [1, 2] : vector<1x3x128xi32> to vector<1xi32>
    %1632 = vector.shape_cast %1631 : vector<1xi32> to vector<1x1x1xi32>
    %1633 = vector.extract %1632[0, 0, 0] : i32 from vector<1x1x1xi32>
    %c3_i32_406 = arith.constant 3 : i32
    %1634 = arith.ori %1535, %c3_i32_406 : i32
    %1635 = vector.broadcast %1634 : i32 to vector<3x128xi32>
    %1636 = arith.cmpi eq, %1537, %1635 : vector<3x128xi32>
    %1637 = arith.extui %1636 : vector<3x128xi1> to vector<3x128xi32>
    %1638 = vector.shape_cast %1637 : vector<3x128xi32> to vector<1x3x128xi32>
    %cst_407 = arith.constant dense<0> : vector<1xi32>
    %1639 = vector.multi_reduction <add>, %1638, %cst_407 [1, 2] : vector<1x3x128xi32> to vector<1xi32>
    %1640 = vector.shape_cast %1639 : vector<1xi32> to vector<1x1x1xi32>
    %1641 = vector.extract %1640[0, 0, 0] : i32 from vector<1x1x1xi32>
    %c2_i32_408 = arith.constant 2 : i32
    %1642 = arith.ori %1535, %c2_i32_408 : i32
    %1643 = vector.broadcast %1642 : i32 to vector<3x128xi32>
    %1644 = arith.cmpi eq, %1537, %1643 : vector<3x128xi32>
    %1645 = arith.extui %1644 : vector<3x128xi1> to vector<3x128xi32>
    %1646 = vector.shape_cast %1645 : vector<3x128xi32> to vector<1x3x128xi32>
    %cst_409 = arith.constant dense<0> : vector<1xi32>
    %1647 = vector.multi_reduction <add>, %1646, %cst_409 [1, 2] : vector<1x3x128xi32> to vector<1xi32>
    %1648 = vector.shape_cast %1647 : vector<1xi32> to vector<1x1x1xi32>
    %1649 = vector.extract %1648[0, 0, 0] : i32 from vector<1x1x1xi32>
    %c1_i32_410 = arith.constant 1 : i32
    %1650 = arith.ori %1535, %c1_i32_410 : i32
    %1651 = vector.broadcast %1650 : i32 to vector<3x128xi32>
    %1652 = arith.cmpi eq, %1537, %1651 : vector<3x128xi32>
    %1653 = arith.extui %1652 : vector<3x128xi1> to vector<3x128xi32>
    %1654 = vector.shape_cast %1653 : vector<3x128xi32> to vector<1x3x128xi32>
    %cst_411 = arith.constant dense<0> : vector<1xi32>
    %1655 = vector.multi_reduction <add>, %1654, %cst_411 [1, 2] : vector<1x3x128xi32> to vector<1xi32>
    %1656 = vector.shape_cast %1655 : vector<1xi32> to vector<1x1x1xi32>
    %1657 = vector.extract %1656[0, 0, 0] : i32 from vector<1x1x1xi32>
    %c0_i32_412 = arith.constant 0 : i32
    %1658 = arith.addi %c0_i32_412, %1545 : i32
    %1659 = arith.cmpi sge, %1658, %1533 : i32
    %c0_i32_413 = arith.constant 0 : i32
    %c0_i32_414 = arith.constant 0 : i32
    %1660 = arith.cmpi eq, %c0_i32_413, %c0_i32_414 : i32
    %1661 = arith.andi %1659, %1660 : i1
    %c15_i32_415 = arith.constant 15 : i32
    %c0_i32_416 = arith.constant 0 : i32
    %1662 = arith.select %1661, %c15_i32_415, %c0_i32_416 : i32
    %c0_i32_417 = arith.constant 0 : i32
    %c0_i32_418 = arith.constant 0 : i32
    %1663 = arith.select %1661, %c0_i32_417, %c0_i32_418 : i32
    %1664 = arith.addi %1658, %1553 : i32
    %1665 = arith.cmpi sge, %1664, %1533 : i32
    %c0_i32_419 = arith.constant 0 : i32
    %1666 = arith.cmpi eq, %1662, %c0_i32_419 : i32
    %1667 = arith.andi %1665, %1666 : i1
    %c14_i32_420 = arith.constant 14 : i32
    %1668 = arith.select %1667, %c14_i32_420, %1662 : i32
    %1669 = arith.select %1667, %1658, %1663 : i32
    %1670 = arith.addi %1664, %1561 : i32
    %1671 = arith.cmpi sge, %1670, %1533 : i32
    %c0_i32_421 = arith.constant 0 : i32
    %1672 = arith.cmpi eq, %1668, %c0_i32_421 : i32
    %1673 = arith.andi %1671, %1672 : i1
    %c13_i32_422 = arith.constant 13 : i32
    %1674 = arith.select %1673, %c13_i32_422, %1668 : i32
    %1675 = arith.select %1673, %1664, %1669 : i32
    %1676 = arith.addi %1670, %1569 : i32
    %1677 = arith.cmpi sge, %1676, %1533 : i32
    %c0_i32_423 = arith.constant 0 : i32
    %1678 = arith.cmpi eq, %1674, %c0_i32_423 : i32
    %1679 = arith.andi %1677, %1678 : i1
    %c12_i32_424 = arith.constant 12 : i32
    %1680 = arith.select %1679, %c12_i32_424, %1674 : i32
    %1681 = arith.select %1679, %1670, %1675 : i32
    %1682 = arith.addi %1676, %1577 : i32
    %1683 = arith.cmpi sge, %1682, %1533 : i32
    %c0_i32_425 = arith.constant 0 : i32
    %1684 = arith.cmpi eq, %1680, %c0_i32_425 : i32
    %1685 = arith.andi %1683, %1684 : i1
    %c11_i32_426 = arith.constant 11 : i32
    %1686 = arith.select %1685, %c11_i32_426, %1680 : i32
    %1687 = arith.select %1685, %1676, %1681 : i32
    %1688 = arith.addi %1682, %1585 : i32
    %1689 = arith.cmpi sge, %1688, %1533 : i32
    %c0_i32_427 = arith.constant 0 : i32
    %1690 = arith.cmpi eq, %1686, %c0_i32_427 : i32
    %1691 = arith.andi %1689, %1690 : i1
    %c10_i32_428 = arith.constant 10 : i32
    %1692 = arith.select %1691, %c10_i32_428, %1686 : i32
    %1693 = arith.select %1691, %1682, %1687 : i32
    %1694 = arith.addi %1688, %1593 : i32
    %1695 = arith.cmpi sge, %1694, %1533 : i32
    %c0_i32_429 = arith.constant 0 : i32
    %1696 = arith.cmpi eq, %1692, %c0_i32_429 : i32
    %1697 = arith.andi %1695, %1696 : i1
    %c9_i32_430 = arith.constant 9 : i32
    %1698 = arith.select %1697, %c9_i32_430, %1692 : i32
    %1699 = arith.select %1697, %1688, %1693 : i32
    %1700 = arith.addi %1694, %1601 : i32
    %1701 = arith.cmpi sge, %1700, %1533 : i32
    %c0_i32_431 = arith.constant 0 : i32
    %1702 = arith.cmpi eq, %1698, %c0_i32_431 : i32
    %1703 = arith.andi %1701, %1702 : i1
    %c8_i32_432 = arith.constant 8 : i32
    %1704 = arith.select %1703, %c8_i32_432, %1698 : i32
    %1705 = arith.select %1703, %1694, %1699 : i32
    %1706 = arith.addi %1700, %1609 : i32
    %1707 = arith.cmpi sge, %1706, %1533 : i32
    %c0_i32_433 = arith.constant 0 : i32
    %1708 = arith.cmpi eq, %1704, %c0_i32_433 : i32
    %1709 = arith.andi %1707, %1708 : i1
    %c7_i32_434 = arith.constant 7 : i32
    %1710 = arith.select %1709, %c7_i32_434, %1704 : i32
    %1711 = arith.select %1709, %1700, %1705 : i32
    %1712 = arith.addi %1706, %1617 : i32
    %1713 = arith.cmpi sge, %1712, %1533 : i32
    %c0_i32_435 = arith.constant 0 : i32
    %1714 = arith.cmpi eq, %1710, %c0_i32_435 : i32
    %1715 = arith.andi %1713, %1714 : i1
    %c6_i32_436 = arith.constant 6 : i32
    %1716 = arith.select %1715, %c6_i32_436, %1710 : i32
    %1717 = arith.select %1715, %1706, %1711 : i32
    %1718 = arith.addi %1712, %1625 : i32
    %1719 = arith.cmpi sge, %1718, %1533 : i32
    %c0_i32_437 = arith.constant 0 : i32
    %1720 = arith.cmpi eq, %1716, %c0_i32_437 : i32
    %1721 = arith.andi %1719, %1720 : i1
    %c5_i32_438 = arith.constant 5 : i32
    %1722 = arith.select %1721, %c5_i32_438, %1716 : i32
    %1723 = arith.select %1721, %1712, %1717 : i32
    %1724 = arith.addi %1718, %1633 : i32
    %1725 = arith.cmpi sge, %1724, %1533 : i32
    %c0_i32_439 = arith.constant 0 : i32
    %1726 = arith.cmpi eq, %1722, %c0_i32_439 : i32
    %1727 = arith.andi %1725, %1726 : i1
    %c4_i32_440 = arith.constant 4 : i32
    %1728 = arith.select %1727, %c4_i32_440, %1722 : i32
    %1729 = arith.select %1727, %1718, %1723 : i32
    %1730 = arith.addi %1724, %1641 : i32
    %1731 = arith.cmpi sge, %1730, %1533 : i32
    %c0_i32_441 = arith.constant 0 : i32
    %1732 = arith.cmpi eq, %1728, %c0_i32_441 : i32
    %1733 = arith.andi %1731, %1732 : i1
    %c3_i32_442 = arith.constant 3 : i32
    %1734 = arith.select %1733, %c3_i32_442, %1728 : i32
    %1735 = arith.select %1733, %1724, %1729 : i32
    %1736 = arith.addi %1730, %1649 : i32
    %1737 = arith.cmpi sge, %1736, %1533 : i32
    %c0_i32_443 = arith.constant 0 : i32
    %1738 = arith.cmpi eq, %1734, %c0_i32_443 : i32
    %1739 = arith.andi %1737, %1738 : i1
    %c2_i32_444 = arith.constant 2 : i32
    %1740 = arith.select %1739, %c2_i32_444, %1734 : i32
    %1741 = arith.select %1739, %1730, %1735 : i32
    %1742 = arith.addi %1736, %1657 : i32
    %1743 = arith.cmpi sge, %1742, %1533 : i32
    %c0_i32_445 = arith.constant 0 : i32
    %1744 = arith.cmpi eq, %1740, %c0_i32_445 : i32
    %1745 = arith.andi %1743, %1744 : i1
    %c1_i32_446 = arith.constant 1 : i32
    %1746 = arith.select %1745, %c1_i32_446, %1740 : i32
    %1747 = arith.select %1745, %1736, %1741 : i32
    %c0_i32_447 = arith.constant 0 : i32
    %1748 = arith.cmpi eq, %1746, %c0_i32_447 : i32
    %1749 = arith.select %1748, %1742, %1747 : i32
    %1750 = arith.subi %1533, %1749 : i32
    %c0_i32_448 = arith.constant 0 : i32
    %1751 = arith.shli %1746, %c0_i32_448 : i32
    %1752 = arith.ori %1535, %1751 : i32
    %1753 = vector.broadcast %1752 : i32 to vector<3x128xi32>
    %1754 = arith.cmpi eq, %16, %1753 : vector<3x128xi32>
    %c-2147483648_i32_449 = arith.constant -2147483648 : i32
    %1755 = vector.broadcast %c-2147483648_i32_449 : i32 to vector<3x128xi32>
    %1756 = arith.xori %16, %1755 : vector<3x128xi32>
    %c-2147483648_i32_450 = arith.constant -2147483648 : i32
    %1757 = arith.xori %1752, %c-2147483648_i32_450 : i32
    %1758 = vector.broadcast %1757 : i32 to vector<3x128xi32>
    %1759 = arith.cmpi sgt, %1756, %1758 : vector<3x128xi32>
    %1760 = tpu.iota {dimensions = array<i32: 0>} : vector<3x128xi32>
    %1761 = tpu.iota {dimensions = array<i32: 1>} : vector<3x128xi32>
    %c128_i32_451 = arith.constant 128 : i32
    %1762 = vector.broadcast %c128_i32_451 : i32 to vector<3x128xi32>
    %1763 = arith.muli %1760, %1762 : vector<3x128xi32>
    %1764 = arith.addi %1763, %1761 : vector<3x128xi32>
    %c384_i32 = arith.constant 384 : i32
    %1765 = vector.broadcast %c384_i32 : i32 to vector<3x128xi32>
    %1766 = arith.subi %1765, %1764 : vector<3x128xi32>
    %c0_i32_452 = arith.constant 0 : i32
    %1767 = vector.broadcast %c0_i32_452 : i32 to vector<3x128xi32>
    %1768 = arith.select %1754, %1766, %1767 : vector<3x128xi1>, vector<3x128xi32>
    %c-256_i32_453 = arith.constant -256 : i32
    %1769 = vector.broadcast %c-256_i32_453 : i32 to vector<3x128xi32>
    %1770 = arith.andi %1768, %1769 : vector<3x128xi32>
    %c0_i32_454 = arith.constant 0 : i32
    %c3840_i32_455 = arith.constant 3840 : i32
    %1771 = arith.ori %c0_i32_454, %c3840_i32_455 : i32
    %1772 = vector.broadcast %1771 : i32 to vector<3x128xi32>
    %1773 = arith.cmpi eq, %1770, %1772 : vector<3x128xi32>
    %1774 = arith.extui %1773 : vector<3x128xi1> to vector<3x128xi32>
    %1775 = vector.shape_cast %1774 : vector<3x128xi32> to vector<1x3x128xi32>
    %cst_456 = arith.constant dense<0> : vector<1xi32>
    %1776 = vector.multi_reduction <add>, %1775, %cst_456 [1, 2] : vector<1x3x128xi32> to vector<1xi32>
    %1777 = vector.shape_cast %1776 : vector<1xi32> to vector<1x1x1xi32>
    %1778 = vector.extract %1777[0, 0, 0] : i32 from vector<1x1x1xi32>
    %c0_i32_457 = arith.constant 0 : i32
    %c3584_i32_458 = arith.constant 3584 : i32
    %1779 = arith.ori %c0_i32_457, %c3584_i32_458 : i32
    %1780 = vector.broadcast %1779 : i32 to vector<3x128xi32>
    %1781 = arith.cmpi eq, %1770, %1780 : vector<3x128xi32>
    %1782 = arith.extui %1781 : vector<3x128xi1> to vector<3x128xi32>
    %1783 = vector.shape_cast %1782 : vector<3x128xi32> to vector<1x3x128xi32>
    %cst_459 = arith.constant dense<0> : vector<1xi32>
    %1784 = vector.multi_reduction <add>, %1783, %cst_459 [1, 2] : vector<1x3x128xi32> to vector<1xi32>
    %1785 = vector.shape_cast %1784 : vector<1xi32> to vector<1x1x1xi32>
    %1786 = vector.extract %1785[0, 0, 0] : i32 from vector<1x1x1xi32>
    %c0_i32_460 = arith.constant 0 : i32
    %c3328_i32_461 = arith.constant 3328 : i32
    %1787 = arith.ori %c0_i32_460, %c3328_i32_461 : i32
    %1788 = vector.broadcast %1787 : i32 to vector<3x128xi32>
    %1789 = arith.cmpi eq, %1770, %1788 : vector<3x128xi32>
    %1790 = arith.extui %1789 : vector<3x128xi1> to vector<3x128xi32>
    %1791 = vector.shape_cast %1790 : vector<3x128xi32> to vector<1x3x128xi32>
    %cst_462 = arith.constant dense<0> : vector<1xi32>
    %1792 = vector.multi_reduction <add>, %1791, %cst_462 [1, 2] : vector<1x3x128xi32> to vector<1xi32>
    %1793 = vector.shape_cast %1792 : vector<1xi32> to vector<1x1x1xi32>
    %1794 = vector.extract %1793[0, 0, 0] : i32 from vector<1x1x1xi32>
    %c0_i32_463 = arith.constant 0 : i32
    %c3072_i32_464 = arith.constant 3072 : i32
    %1795 = arith.ori %c0_i32_463, %c3072_i32_464 : i32
    %1796 = vector.broadcast %1795 : i32 to vector<3x128xi32>
    %1797 = arith.cmpi eq, %1770, %1796 : vector<3x128xi32>
    %1798 = arith.extui %1797 : vector<3x128xi1> to vector<3x128xi32>
    %1799 = vector.shape_cast %1798 : vector<3x128xi32> to vector<1x3x128xi32>
    %cst_465 = arith.constant dense<0> : vector<1xi32>
    %1800 = vector.multi_reduction <add>, %1799, %cst_465 [1, 2] : vector<1x3x128xi32> to vector<1xi32>
    %1801 = vector.shape_cast %1800 : vector<1xi32> to vector<1x1x1xi32>
    %1802 = vector.extract %1801[0, 0, 0] : i32 from vector<1x1x1xi32>
    %c0_i32_466 = arith.constant 0 : i32
    %c2816_i32_467 = arith.constant 2816 : i32
    %1803 = arith.ori %c0_i32_466, %c2816_i32_467 : i32
    %1804 = vector.broadcast %1803 : i32 to vector<3x128xi32>
    %1805 = arith.cmpi eq, %1770, %1804 : vector<3x128xi32>
    %1806 = arith.extui %1805 : vector<3x128xi1> to vector<3x128xi32>
    %1807 = vector.shape_cast %1806 : vector<3x128xi32> to vector<1x3x128xi32>
    %cst_468 = arith.constant dense<0> : vector<1xi32>
    %1808 = vector.multi_reduction <add>, %1807, %cst_468 [1, 2] : vector<1x3x128xi32> to vector<1xi32>
    %1809 = vector.shape_cast %1808 : vector<1xi32> to vector<1x1x1xi32>
    %1810 = vector.extract %1809[0, 0, 0] : i32 from vector<1x1x1xi32>
    %c0_i32_469 = arith.constant 0 : i32
    %c2560_i32_470 = arith.constant 2560 : i32
    %1811 = arith.ori %c0_i32_469, %c2560_i32_470 : i32
    %1812 = vector.broadcast %1811 : i32 to vector<3x128xi32>
    %1813 = arith.cmpi eq, %1770, %1812 : vector<3x128xi32>
    %1814 = arith.extui %1813 : vector<3x128xi1> to vector<3x128xi32>
    %1815 = vector.shape_cast %1814 : vector<3x128xi32> to vector<1x3x128xi32>
    %cst_471 = arith.constant dense<0> : vector<1xi32>
    %1816 = vector.multi_reduction <add>, %1815, %cst_471 [1, 2] : vector<1x3x128xi32> to vector<1xi32>
    %1817 = vector.shape_cast %1816 : vector<1xi32> to vector<1x1x1xi32>
    %1818 = vector.extract %1817[0, 0, 0] : i32 from vector<1x1x1xi32>
    %c0_i32_472 = arith.constant 0 : i32
    %c2304_i32_473 = arith.constant 2304 : i32
    %1819 = arith.ori %c0_i32_472, %c2304_i32_473 : i32
    %1820 = vector.broadcast %1819 : i32 to vector<3x128xi32>
    %1821 = arith.cmpi eq, %1770, %1820 : vector<3x128xi32>
    %1822 = arith.extui %1821 : vector<3x128xi1> to vector<3x128xi32>
    %1823 = vector.shape_cast %1822 : vector<3x128xi32> to vector<1x3x128xi32>
    %cst_474 = arith.constant dense<0> : vector<1xi32>
    %1824 = vector.multi_reduction <add>, %1823, %cst_474 [1, 2] : vector<1x3x128xi32> to vector<1xi32>
    %1825 = vector.shape_cast %1824 : vector<1xi32> to vector<1x1x1xi32>
    %1826 = vector.extract %1825[0, 0, 0] : i32 from vector<1x1x1xi32>
    %c0_i32_475 = arith.constant 0 : i32
    %c2048_i32_476 = arith.constant 2048 : i32
    %1827 = arith.ori %c0_i32_475, %c2048_i32_476 : i32
    %1828 = vector.broadcast %1827 : i32 to vector<3x128xi32>
    %1829 = arith.cmpi eq, %1770, %1828 : vector<3x128xi32>
    %1830 = arith.extui %1829 : vector<3x128xi1> to vector<3x128xi32>
    %1831 = vector.shape_cast %1830 : vector<3x128xi32> to vector<1x3x128xi32>
    %cst_477 = arith.constant dense<0> : vector<1xi32>
    %1832 = vector.multi_reduction <add>, %1831, %cst_477 [1, 2] : vector<1x3x128xi32> to vector<1xi32>
    %1833 = vector.shape_cast %1832 : vector<1xi32> to vector<1x1x1xi32>
    %1834 = vector.extract %1833[0, 0, 0] : i32 from vector<1x1x1xi32>
    %c0_i32_478 = arith.constant 0 : i32
    %c1792_i32_479 = arith.constant 1792 : i32
    %1835 = arith.ori %c0_i32_478, %c1792_i32_479 : i32
    %1836 = vector.broadcast %1835 : i32 to vector<3x128xi32>
    %1837 = arith.cmpi eq, %1770, %1836 : vector<3x128xi32>
    %1838 = arith.extui %1837 : vector<3x128xi1> to vector<3x128xi32>
    %1839 = vector.shape_cast %1838 : vector<3x128xi32> to vector<1x3x128xi32>
    %cst_480 = arith.constant dense<0> : vector<1xi32>
    %1840 = vector.multi_reduction <add>, %1839, %cst_480 [1, 2] : vector<1x3x128xi32> to vector<1xi32>
    %1841 = vector.shape_cast %1840 : vector<1xi32> to vector<1x1x1xi32>
    %1842 = vector.extract %1841[0, 0, 0] : i32 from vector<1x1x1xi32>
    %c0_i32_481 = arith.constant 0 : i32
    %c1536_i32_482 = arith.constant 1536 : i32
    %1843 = arith.ori %c0_i32_481, %c1536_i32_482 : i32
    %1844 = vector.broadcast %1843 : i32 to vector<3x128xi32>
    %1845 = arith.cmpi eq, %1770, %1844 : vector<3x128xi32>
    %1846 = arith.extui %1845 : vector<3x128xi1> to vector<3x128xi32>
    %1847 = vector.shape_cast %1846 : vector<3x128xi32> to vector<1x3x128xi32>
    %cst_483 = arith.constant dense<0> : vector<1xi32>
    %1848 = vector.multi_reduction <add>, %1847, %cst_483 [1, 2] : vector<1x3x128xi32> to vector<1xi32>
    %1849 = vector.shape_cast %1848 : vector<1xi32> to vector<1x1x1xi32>
    %1850 = vector.extract %1849[0, 0, 0] : i32 from vector<1x1x1xi32>
    %c0_i32_484 = arith.constant 0 : i32
    %c1280_i32_485 = arith.constant 1280 : i32
    %1851 = arith.ori %c0_i32_484, %c1280_i32_485 : i32
    %1852 = vector.broadcast %1851 : i32 to vector<3x128xi32>
    %1853 = arith.cmpi eq, %1770, %1852 : vector<3x128xi32>
    %1854 = arith.extui %1853 : vector<3x128xi1> to vector<3x128xi32>
    %1855 = vector.shape_cast %1854 : vector<3x128xi32> to vector<1x3x128xi32>
    %cst_486 = arith.constant dense<0> : vector<1xi32>
    %1856 = vector.multi_reduction <add>, %1855, %cst_486 [1, 2] : vector<1x3x128xi32> to vector<1xi32>
    %1857 = vector.shape_cast %1856 : vector<1xi32> to vector<1x1x1xi32>
    %1858 = vector.extract %1857[0, 0, 0] : i32 from vector<1x1x1xi32>
    %c0_i32_487 = arith.constant 0 : i32
    %c1024_i32_488 = arith.constant 1024 : i32
    %1859 = arith.ori %c0_i32_487, %c1024_i32_488 : i32
    %1860 = vector.broadcast %1859 : i32 to vector<3x128xi32>
    %1861 = arith.cmpi eq, %1770, %1860 : vector<3x128xi32>
    %1862 = arith.extui %1861 : vector<3x128xi1> to vector<3x128xi32>
    %1863 = vector.shape_cast %1862 : vector<3x128xi32> to vector<1x3x128xi32>
    %cst_489 = arith.constant dense<0> : vector<1xi32>
    %1864 = vector.multi_reduction <add>, %1863, %cst_489 [1, 2] : vector<1x3x128xi32> to vector<1xi32>
    %1865 = vector.shape_cast %1864 : vector<1xi32> to vector<1x1x1xi32>
    %1866 = vector.extract %1865[0, 0, 0] : i32 from vector<1x1x1xi32>
    %c0_i32_490 = arith.constant 0 : i32
    %c768_i32_491 = arith.constant 768 : i32
    %1867 = arith.ori %c0_i32_490, %c768_i32_491 : i32
    %1868 = vector.broadcast %1867 : i32 to vector<3x128xi32>
    %1869 = arith.cmpi eq, %1770, %1868 : vector<3x128xi32>
    %1870 = arith.extui %1869 : vector<3x128xi1> to vector<3x128xi32>
    %1871 = vector.shape_cast %1870 : vector<3x128xi32> to vector<1x3x128xi32>
    %cst_492 = arith.constant dense<0> : vector<1xi32>
    %1872 = vector.multi_reduction <add>, %1871, %cst_492 [1, 2] : vector<1x3x128xi32> to vector<1xi32>
    %1873 = vector.shape_cast %1872 : vector<1xi32> to vector<1x1x1xi32>
    %1874 = vector.extract %1873[0, 0, 0] : i32 from vector<1x1x1xi32>
    %c0_i32_493 = arith.constant 0 : i32
    %c512_i32_494 = arith.constant 512 : i32
    %1875 = arith.ori %c0_i32_493, %c512_i32_494 : i32
    %1876 = vector.broadcast %1875 : i32 to vector<3x128xi32>
    %1877 = arith.cmpi eq, %1770, %1876 : vector<3x128xi32>
    %1878 = arith.extui %1877 : vector<3x128xi1> to vector<3x128xi32>
    %1879 = vector.shape_cast %1878 : vector<3x128xi32> to vector<1x3x128xi32>
    %cst_495 = arith.constant dense<0> : vector<1xi32>
    %1880 = vector.multi_reduction <add>, %1879, %cst_495 [1, 2] : vector<1x3x128xi32> to vector<1xi32>
    %1881 = vector.shape_cast %1880 : vector<1xi32> to vector<1x1x1xi32>
    %1882 = vector.extract %1881[0, 0, 0] : i32 from vector<1x1x1xi32>
    %c0_i32_496 = arith.constant 0 : i32
    %c256_i32_497 = arith.constant 256 : i32
    %1883 = arith.ori %c0_i32_496, %c256_i32_497 : i32
    %1884 = vector.broadcast %1883 : i32 to vector<3x128xi32>
    %1885 = arith.cmpi eq, %1770, %1884 : vector<3x128xi32>
    %1886 = arith.extui %1885 : vector<3x128xi1> to vector<3x128xi32>
    %1887 = vector.shape_cast %1886 : vector<3x128xi32> to vector<1x3x128xi32>
    %cst_498 = arith.constant dense<0> : vector<1xi32>
    %1888 = vector.multi_reduction <add>, %1887, %cst_498 [1, 2] : vector<1x3x128xi32> to vector<1xi32>
    %1889 = vector.shape_cast %1888 : vector<1xi32> to vector<1x1x1xi32>
    %1890 = vector.extract %1889[0, 0, 0] : i32 from vector<1x1x1xi32>
    %c0_i32_499 = arith.constant 0 : i32
    %1891 = arith.addi %c0_i32_499, %1778 : i32
    %1892 = arith.cmpi sge, %1891, %1750 : i32
    %c0_i32_500 = arith.constant 0 : i32
    %c0_i32_501 = arith.constant 0 : i32
    %1893 = arith.cmpi eq, %c0_i32_500, %c0_i32_501 : i32
    %1894 = arith.andi %1892, %1893 : i1
    %c15_i32_502 = arith.constant 15 : i32
    %c0_i32_503 = arith.constant 0 : i32
    %1895 = arith.select %1894, %c15_i32_502, %c0_i32_503 : i32
    %c0_i32_504 = arith.constant 0 : i32
    %c0_i32_505 = arith.constant 0 : i32
    %1896 = arith.select %1894, %c0_i32_504, %c0_i32_505 : i32
    %1897 = arith.addi %1891, %1786 : i32
    %1898 = arith.cmpi sge, %1897, %1750 : i32
    %c0_i32_506 = arith.constant 0 : i32
    %1899 = arith.cmpi eq, %1895, %c0_i32_506 : i32
    %1900 = arith.andi %1898, %1899 : i1
    %c14_i32_507 = arith.constant 14 : i32
    %1901 = arith.select %1900, %c14_i32_507, %1895 : i32
    %1902 = arith.select %1900, %1891, %1896 : i32
    %1903 = arith.addi %1897, %1794 : i32
    %1904 = arith.cmpi sge, %1903, %1750 : i32
    %c0_i32_508 = arith.constant 0 : i32
    %1905 = arith.cmpi eq, %1901, %c0_i32_508 : i32
    %1906 = arith.andi %1904, %1905 : i1
    %c13_i32_509 = arith.constant 13 : i32
    %1907 = arith.select %1906, %c13_i32_509, %1901 : i32
    %1908 = arith.select %1906, %1897, %1902 : i32
    %1909 = arith.addi %1903, %1802 : i32
    %1910 = arith.cmpi sge, %1909, %1750 : i32
    %c0_i32_510 = arith.constant 0 : i32
    %1911 = arith.cmpi eq, %1907, %c0_i32_510 : i32
    %1912 = arith.andi %1910, %1911 : i1
    %c12_i32_511 = arith.constant 12 : i32
    %1913 = arith.select %1912, %c12_i32_511, %1907 : i32
    %1914 = arith.select %1912, %1903, %1908 : i32
    %1915 = arith.addi %1909, %1810 : i32
    %1916 = arith.cmpi sge, %1915, %1750 : i32
    %c0_i32_512 = arith.constant 0 : i32
    %1917 = arith.cmpi eq, %1913, %c0_i32_512 : i32
    %1918 = arith.andi %1916, %1917 : i1
    %c11_i32_513 = arith.constant 11 : i32
    %1919 = arith.select %1918, %c11_i32_513, %1913 : i32
    %1920 = arith.select %1918, %1909, %1914 : i32
    %1921 = arith.addi %1915, %1818 : i32
    %1922 = arith.cmpi sge, %1921, %1750 : i32
    %c0_i32_514 = arith.constant 0 : i32
    %1923 = arith.cmpi eq, %1919, %c0_i32_514 : i32
    %1924 = arith.andi %1922, %1923 : i1
    %c10_i32_515 = arith.constant 10 : i32
    %1925 = arith.select %1924, %c10_i32_515, %1919 : i32
    %1926 = arith.select %1924, %1915, %1920 : i32
    %1927 = arith.addi %1921, %1826 : i32
    %1928 = arith.cmpi sge, %1927, %1750 : i32
    %c0_i32_516 = arith.constant 0 : i32
    %1929 = arith.cmpi eq, %1925, %c0_i32_516 : i32
    %1930 = arith.andi %1928, %1929 : i1
    %c9_i32_517 = arith.constant 9 : i32
    %1931 = arith.select %1930, %c9_i32_517, %1925 : i32
    %1932 = arith.select %1930, %1921, %1926 : i32
    %1933 = arith.addi %1927, %1834 : i32
    %1934 = arith.cmpi sge, %1933, %1750 : i32
    %c0_i32_518 = arith.constant 0 : i32
    %1935 = arith.cmpi eq, %1931, %c0_i32_518 : i32
    %1936 = arith.andi %1934, %1935 : i1
    %c8_i32_519 = arith.constant 8 : i32
    %1937 = arith.select %1936, %c8_i32_519, %1931 : i32
    %1938 = arith.select %1936, %1927, %1932 : i32
    %1939 = arith.addi %1933, %1842 : i32
    %1940 = arith.cmpi sge, %1939, %1750 : i32
    %c0_i32_520 = arith.constant 0 : i32
    %1941 = arith.cmpi eq, %1937, %c0_i32_520 : i32
    %1942 = arith.andi %1940, %1941 : i1
    %c7_i32_521 = arith.constant 7 : i32
    %1943 = arith.select %1942, %c7_i32_521, %1937 : i32
    %1944 = arith.select %1942, %1933, %1938 : i32
    %1945 = arith.addi %1939, %1850 : i32
    %1946 = arith.cmpi sge, %1945, %1750 : i32
    %c0_i32_522 = arith.constant 0 : i32
    %1947 = arith.cmpi eq, %1943, %c0_i32_522 : i32
    %1948 = arith.andi %1946, %1947 : i1
    %c6_i32_523 = arith.constant 6 : i32
    %1949 = arith.select %1948, %c6_i32_523, %1943 : i32
    %1950 = arith.select %1948, %1939, %1944 : i32
    %1951 = arith.addi %1945, %1858 : i32
    %1952 = arith.cmpi sge, %1951, %1750 : i32
    %c0_i32_524 = arith.constant 0 : i32
    %1953 = arith.cmpi eq, %1949, %c0_i32_524 : i32
    %1954 = arith.andi %1952, %1953 : i1
    %c5_i32_525 = arith.constant 5 : i32
    %1955 = arith.select %1954, %c5_i32_525, %1949 : i32
    %1956 = arith.select %1954, %1945, %1950 : i32
    %1957 = arith.addi %1951, %1866 : i32
    %1958 = arith.cmpi sge, %1957, %1750 : i32
    %c0_i32_526 = arith.constant 0 : i32
    %1959 = arith.cmpi eq, %1955, %c0_i32_526 : i32
    %1960 = arith.andi %1958, %1959 : i1
    %c4_i32_527 = arith.constant 4 : i32
    %1961 = arith.select %1960, %c4_i32_527, %1955 : i32
    %1962 = arith.select %1960, %1951, %1956 : i32
    %1963 = arith.addi %1957, %1874 : i32
    %1964 = arith.cmpi sge, %1963, %1750 : i32
    %c0_i32_528 = arith.constant 0 : i32
    %1965 = arith.cmpi eq, %1961, %c0_i32_528 : i32
    %1966 = arith.andi %1964, %1965 : i1
    %c3_i32_529 = arith.constant 3 : i32
    %1967 = arith.select %1966, %c3_i32_529, %1961 : i32
    %1968 = arith.select %1966, %1957, %1962 : i32
    %1969 = arith.addi %1963, %1882 : i32
    %1970 = arith.cmpi sge, %1969, %1750 : i32
    %c0_i32_530 = arith.constant 0 : i32
    %1971 = arith.cmpi eq, %1967, %c0_i32_530 : i32
    %1972 = arith.andi %1970, %1971 : i1
    %c2_i32_531 = arith.constant 2 : i32
    %1973 = arith.select %1972, %c2_i32_531, %1967 : i32
    %1974 = arith.select %1972, %1963, %1968 : i32
    %1975 = arith.addi %1969, %1890 : i32
    %1976 = arith.cmpi sge, %1975, %1750 : i32
    %c0_i32_532 = arith.constant 0 : i32
    %1977 = arith.cmpi eq, %1973, %c0_i32_532 : i32
    %1978 = arith.andi %1976, %1977 : i1
    %c1_i32_533 = arith.constant 1 : i32
    %1979 = arith.select %1978, %c1_i32_533, %1973 : i32
    %1980 = arith.select %1978, %1969, %1974 : i32
    %c0_i32_534 = arith.constant 0 : i32
    %1981 = arith.cmpi eq, %1979, %c0_i32_534 : i32
    %1982 = arith.select %1981, %1975, %1980 : i32
    %1983 = arith.subi %1750, %1982 : i32
    %c8_i32_535 = arith.constant 8 : i32
    %1984 = arith.shli %1979, %c8_i32_535 : i32
    %c0_i32_536 = arith.constant 0 : i32
    %1985 = arith.ori %c0_i32_536, %1984 : i32
    %c-16_i32_537 = arith.constant -16 : i32
    %1986 = vector.broadcast %c-16_i32_537 : i32 to vector<3x128xi32>
    %1987 = arith.andi %1768, %1986 : vector<3x128xi32>
    %c240_i32_538 = arith.constant 240 : i32
    %1988 = arith.ori %1985, %c240_i32_538 : i32
    %1989 = vector.broadcast %1988 : i32 to vector<3x128xi32>
    %1990 = arith.cmpi eq, %1987, %1989 : vector<3x128xi32>
    %1991 = arith.extui %1990 : vector<3x128xi1> to vector<3x128xi32>
    %1992 = vector.shape_cast %1991 : vector<3x128xi32> to vector<1x3x128xi32>
    %cst_539 = arith.constant dense<0> : vector<1xi32>
    %1993 = vector.multi_reduction <add>, %1992, %cst_539 [1, 2] : vector<1x3x128xi32> to vector<1xi32>
    %1994 = vector.shape_cast %1993 : vector<1xi32> to vector<1x1x1xi32>
    %1995 = vector.extract %1994[0, 0, 0] : i32 from vector<1x1x1xi32>
    %c224_i32_540 = arith.constant 224 : i32
    %1996 = arith.ori %1985, %c224_i32_540 : i32
    %1997 = vector.broadcast %1996 : i32 to vector<3x128xi32>
    %1998 = arith.cmpi eq, %1987, %1997 : vector<3x128xi32>
    %1999 = arith.extui %1998 : vector<3x128xi1> to vector<3x128xi32>
    %2000 = vector.shape_cast %1999 : vector<3x128xi32> to vector<1x3x128xi32>
    %cst_541 = arith.constant dense<0> : vector<1xi32>
    %2001 = vector.multi_reduction <add>, %2000, %cst_541 [1, 2] : vector<1x3x128xi32> to vector<1xi32>
    %2002 = vector.shape_cast %2001 : vector<1xi32> to vector<1x1x1xi32>
    %2003 = vector.extract %2002[0, 0, 0] : i32 from vector<1x1x1xi32>
    %c208_i32_542 = arith.constant 208 : i32
    %2004 = arith.ori %1985, %c208_i32_542 : i32
    %2005 = vector.broadcast %2004 : i32 to vector<3x128xi32>
    %2006 = arith.cmpi eq, %1987, %2005 : vector<3x128xi32>
    %2007 = arith.extui %2006 : vector<3x128xi1> to vector<3x128xi32>
    %2008 = vector.shape_cast %2007 : vector<3x128xi32> to vector<1x3x128xi32>
    %cst_543 = arith.constant dense<0> : vector<1xi32>
    %2009 = vector.multi_reduction <add>, %2008, %cst_543 [1, 2] : vector<1x3x128xi32> to vector<1xi32>
    %2010 = vector.shape_cast %2009 : vector<1xi32> to vector<1x1x1xi32>
    %2011 = vector.extract %2010[0, 0, 0] : i32 from vector<1x1x1xi32>
    %c192_i32_544 = arith.constant 192 : i32
    %2012 = arith.ori %1985, %c192_i32_544 : i32
    %2013 = vector.broadcast %2012 : i32 to vector<3x128xi32>
    %2014 = arith.cmpi eq, %1987, %2013 : vector<3x128xi32>
    %2015 = arith.extui %2014 : vector<3x128xi1> to vector<3x128xi32>
    %2016 = vector.shape_cast %2015 : vector<3x128xi32> to vector<1x3x128xi32>
    %cst_545 = arith.constant dense<0> : vector<1xi32>
    %2017 = vector.multi_reduction <add>, %2016, %cst_545 [1, 2] : vector<1x3x128xi32> to vector<1xi32>
    %2018 = vector.shape_cast %2017 : vector<1xi32> to vector<1x1x1xi32>
    %2019 = vector.extract %2018[0, 0, 0] : i32 from vector<1x1x1xi32>
    %c176_i32_546 = arith.constant 176 : i32
    %2020 = arith.ori %1985, %c176_i32_546 : i32
    %2021 = vector.broadcast %2020 : i32 to vector<3x128xi32>
    %2022 = arith.cmpi eq, %1987, %2021 : vector<3x128xi32>
    %2023 = arith.extui %2022 : vector<3x128xi1> to vector<3x128xi32>
    %2024 = vector.shape_cast %2023 : vector<3x128xi32> to vector<1x3x128xi32>
    %cst_547 = arith.constant dense<0> : vector<1xi32>
    %2025 = vector.multi_reduction <add>, %2024, %cst_547 [1, 2] : vector<1x3x128xi32> to vector<1xi32>
    %2026 = vector.shape_cast %2025 : vector<1xi32> to vector<1x1x1xi32>
    %2027 = vector.extract %2026[0, 0, 0] : i32 from vector<1x1x1xi32>
    %c160_i32_548 = arith.constant 160 : i32
    %2028 = arith.ori %1985, %c160_i32_548 : i32
    %2029 = vector.broadcast %2028 : i32 to vector<3x128xi32>
    %2030 = arith.cmpi eq, %1987, %2029 : vector<3x128xi32>
    %2031 = arith.extui %2030 : vector<3x128xi1> to vector<3x128xi32>
    %2032 = vector.shape_cast %2031 : vector<3x128xi32> to vector<1x3x128xi32>
    %cst_549 = arith.constant dense<0> : vector<1xi32>
    %2033 = vector.multi_reduction <add>, %2032, %cst_549 [1, 2] : vector<1x3x128xi32> to vector<1xi32>
    %2034 = vector.shape_cast %2033 : vector<1xi32> to vector<1x1x1xi32>
    %2035 = vector.extract %2034[0, 0, 0] : i32 from vector<1x1x1xi32>
    %c144_i32_550 = arith.constant 144 : i32
    %2036 = arith.ori %1985, %c144_i32_550 : i32
    %2037 = vector.broadcast %2036 : i32 to vector<3x128xi32>
    %2038 = arith.cmpi eq, %1987, %2037 : vector<3x128xi32>
    %2039 = arith.extui %2038 : vector<3x128xi1> to vector<3x128xi32>
    %2040 = vector.shape_cast %2039 : vector<3x128xi32> to vector<1x3x128xi32>
    %cst_551 = arith.constant dense<0> : vector<1xi32>
    %2041 = vector.multi_reduction <add>, %2040, %cst_551 [1, 2] : vector<1x3x128xi32> to vector<1xi32>
    %2042 = vector.shape_cast %2041 : vector<1xi32> to vector<1x1x1xi32>
    %2043 = vector.extract %2042[0, 0, 0] : i32 from vector<1x1x1xi32>
    %c128_i32_552 = arith.constant 128 : i32
    %2044 = arith.ori %1985, %c128_i32_552 : i32
    %2045 = vector.broadcast %2044 : i32 to vector<3x128xi32>
    %2046 = arith.cmpi eq, %1987, %2045 : vector<3x128xi32>
    %2047 = arith.extui %2046 : vector<3x128xi1> to vector<3x128xi32>
    %2048 = vector.shape_cast %2047 : vector<3x128xi32> to vector<1x3x128xi32>
    %cst_553 = arith.constant dense<0> : vector<1xi32>
    %2049 = vector.multi_reduction <add>, %2048, %cst_553 [1, 2] : vector<1x3x128xi32> to vector<1xi32>
    %2050 = vector.shape_cast %2049 : vector<1xi32> to vector<1x1x1xi32>
    %2051 = vector.extract %2050[0, 0, 0] : i32 from vector<1x1x1xi32>
    %c112_i32_554 = arith.constant 112 : i32
    %2052 = arith.ori %1985, %c112_i32_554 : i32
    %2053 = vector.broadcast %2052 : i32 to vector<3x128xi32>
    %2054 = arith.cmpi eq, %1987, %2053 : vector<3x128xi32>
    %2055 = arith.extui %2054 : vector<3x128xi1> to vector<3x128xi32>
    %2056 = vector.shape_cast %2055 : vector<3x128xi32> to vector<1x3x128xi32>
    %cst_555 = arith.constant dense<0> : vector<1xi32>
    %2057 = vector.multi_reduction <add>, %2056, %cst_555 [1, 2] : vector<1x3x128xi32> to vector<1xi32>
    %2058 = vector.shape_cast %2057 : vector<1xi32> to vector<1x1x1xi32>
    %2059 = vector.extract %2058[0, 0, 0] : i32 from vector<1x1x1xi32>
    %c96_i32_556 = arith.constant 96 : i32
    %2060 = arith.ori %1985, %c96_i32_556 : i32
    %2061 = vector.broadcast %2060 : i32 to vector<3x128xi32>
    %2062 = arith.cmpi eq, %1987, %2061 : vector<3x128xi32>
    %2063 = arith.extui %2062 : vector<3x128xi1> to vector<3x128xi32>
    %2064 = vector.shape_cast %2063 : vector<3x128xi32> to vector<1x3x128xi32>
    %cst_557 = arith.constant dense<0> : vector<1xi32>
    %2065 = vector.multi_reduction <add>, %2064, %cst_557 [1, 2] : vector<1x3x128xi32> to vector<1xi32>
    %2066 = vector.shape_cast %2065 : vector<1xi32> to vector<1x1x1xi32>
    %2067 = vector.extract %2066[0, 0, 0] : i32 from vector<1x1x1xi32>
    %c80_i32_558 = arith.constant 80 : i32
    %2068 = arith.ori %1985, %c80_i32_558 : i32
    %2069 = vector.broadcast %2068 : i32 to vector<3x128xi32>
    %2070 = arith.cmpi eq, %1987, %2069 : vector<3x128xi32>
    %2071 = arith.extui %2070 : vector<3x128xi1> to vector<3x128xi32>
    %2072 = vector.shape_cast %2071 : vector<3x128xi32> to vector<1x3x128xi32>
    %cst_559 = arith.constant dense<0> : vector<1xi32>
    %2073 = vector.multi_reduction <add>, %2072, %cst_559 [1, 2] : vector<1x3x128xi32> to vector<1xi32>
    %2074 = vector.shape_cast %2073 : vector<1xi32> to vector<1x1x1xi32>
    %2075 = vector.extract %2074[0, 0, 0] : i32 from vector<1x1x1xi32>
    %c64_i32_560 = arith.constant 64 : i32
    %2076 = arith.ori %1985, %c64_i32_560 : i32
    %2077 = vector.broadcast %2076 : i32 to vector<3x128xi32>
    %2078 = arith.cmpi eq, %1987, %2077 : vector<3x128xi32>
    %2079 = arith.extui %2078 : vector<3x128xi1> to vector<3x128xi32>
    %2080 = vector.shape_cast %2079 : vector<3x128xi32> to vector<1x3x128xi32>
    %cst_561 = arith.constant dense<0> : vector<1xi32>
    %2081 = vector.multi_reduction <add>, %2080, %cst_561 [1, 2] : vector<1x3x128xi32> to vector<1xi32>
    %2082 = vector.shape_cast %2081 : vector<1xi32> to vector<1x1x1xi32>
    %2083 = vector.extract %2082[0, 0, 0] : i32 from vector<1x1x1xi32>
    %c48_i32_562 = arith.constant 48 : i32
    %2084 = arith.ori %1985, %c48_i32_562 : i32
    %2085 = vector.broadcast %2084 : i32 to vector<3x128xi32>
    %2086 = arith.cmpi eq, %1987, %2085 : vector<3x128xi32>
    %2087 = arith.extui %2086 : vector<3x128xi1> to vector<3x128xi32>
    %2088 = vector.shape_cast %2087 : vector<3x128xi32> to vector<1x3x128xi32>
    %cst_563 = arith.constant dense<0> : vector<1xi32>
    %2089 = vector.multi_reduction <add>, %2088, %cst_563 [1, 2] : vector<1x3x128xi32> to vector<1xi32>
    %2090 = vector.shape_cast %2089 : vector<1xi32> to vector<1x1x1xi32>
    %2091 = vector.extract %2090[0, 0, 0] : i32 from vector<1x1x1xi32>
    %c32_i32_564 = arith.constant 32 : i32
    %2092 = arith.ori %1985, %c32_i32_564 : i32
    %2093 = vector.broadcast %2092 : i32 to vector<3x128xi32>
    %2094 = arith.cmpi eq, %1987, %2093 : vector<3x128xi32>
    %2095 = arith.extui %2094 : vector<3x128xi1> to vector<3x128xi32>
    %2096 = vector.shape_cast %2095 : vector<3x128xi32> to vector<1x3x128xi32>
    %cst_565 = arith.constant dense<0> : vector<1xi32>
    %2097 = vector.multi_reduction <add>, %2096, %cst_565 [1, 2] : vector<1x3x128xi32> to vector<1xi32>
    %2098 = vector.shape_cast %2097 : vector<1xi32> to vector<1x1x1xi32>
    %2099 = vector.extract %2098[0, 0, 0] : i32 from vector<1x1x1xi32>
    %c16_i32_566 = arith.constant 16 : i32
    %2100 = arith.ori %1985, %c16_i32_566 : i32
    %2101 = vector.broadcast %2100 : i32 to vector<3x128xi32>
    %2102 = arith.cmpi eq, %1987, %2101 : vector<3x128xi32>
    %2103 = arith.extui %2102 : vector<3x128xi1> to vector<3x128xi32>
    %2104 = vector.shape_cast %2103 : vector<3x128xi32> to vector<1x3x128xi32>
    %cst_567 = arith.constant dense<0> : vector<1xi32>
    %2105 = vector.multi_reduction <add>, %2104, %cst_567 [1, 2] : vector<1x3x128xi32> to vector<1xi32>
    %2106 = vector.shape_cast %2105 : vector<1xi32> to vector<1x1x1xi32>
    %2107 = vector.extract %2106[0, 0, 0] : i32 from vector<1x1x1xi32>
    %c0_i32_568 = arith.constant 0 : i32
    %2108 = arith.addi %c0_i32_568, %1995 : i32
    %2109 = arith.cmpi sge, %2108, %1983 : i32
    %c0_i32_569 = arith.constant 0 : i32
    %c0_i32_570 = arith.constant 0 : i32
    %2110 = arith.cmpi eq, %c0_i32_569, %c0_i32_570 : i32
    %2111 = arith.andi %2109, %2110 : i1
    %c15_i32_571 = arith.constant 15 : i32
    %c0_i32_572 = arith.constant 0 : i32
    %2112 = arith.select %2111, %c15_i32_571, %c0_i32_572 : i32
    %c0_i32_573 = arith.constant 0 : i32
    %c0_i32_574 = arith.constant 0 : i32
    %2113 = arith.select %2111, %c0_i32_573, %c0_i32_574 : i32
    %2114 = arith.addi %2108, %2003 : i32
    %2115 = arith.cmpi sge, %2114, %1983 : i32
    %c0_i32_575 = arith.constant 0 : i32
    %2116 = arith.cmpi eq, %2112, %c0_i32_575 : i32
    %2117 = arith.andi %2115, %2116 : i1
    %c14_i32_576 = arith.constant 14 : i32
    %2118 = arith.select %2117, %c14_i32_576, %2112 : i32
    %2119 = arith.select %2117, %2108, %2113 : i32
    %2120 = arith.addi %2114, %2011 : i32
    %2121 = arith.cmpi sge, %2120, %1983 : i32
    %c0_i32_577 = arith.constant 0 : i32
    %2122 = arith.cmpi eq, %2118, %c0_i32_577 : i32
    %2123 = arith.andi %2121, %2122 : i1
    %c13_i32_578 = arith.constant 13 : i32
    %2124 = arith.select %2123, %c13_i32_578, %2118 : i32
    %2125 = arith.select %2123, %2114, %2119 : i32
    %2126 = arith.addi %2120, %2019 : i32
    %2127 = arith.cmpi sge, %2126, %1983 : i32
    %c0_i32_579 = arith.constant 0 : i32
    %2128 = arith.cmpi eq, %2124, %c0_i32_579 : i32
    %2129 = arith.andi %2127, %2128 : i1
    %c12_i32_580 = arith.constant 12 : i32
    %2130 = arith.select %2129, %c12_i32_580, %2124 : i32
    %2131 = arith.select %2129, %2120, %2125 : i32
    %2132 = arith.addi %2126, %2027 : i32
    %2133 = arith.cmpi sge, %2132, %1983 : i32
    %c0_i32_581 = arith.constant 0 : i32
    %2134 = arith.cmpi eq, %2130, %c0_i32_581 : i32
    %2135 = arith.andi %2133, %2134 : i1
    %c11_i32_582 = arith.constant 11 : i32
    %2136 = arith.select %2135, %c11_i32_582, %2130 : i32
    %2137 = arith.select %2135, %2126, %2131 : i32
    %2138 = arith.addi %2132, %2035 : i32
    %2139 = arith.cmpi sge, %2138, %1983 : i32
    %c0_i32_583 = arith.constant 0 : i32
    %2140 = arith.cmpi eq, %2136, %c0_i32_583 : i32
    %2141 = arith.andi %2139, %2140 : i1
    %c10_i32_584 = arith.constant 10 : i32
    %2142 = arith.select %2141, %c10_i32_584, %2136 : i32
    %2143 = arith.select %2141, %2132, %2137 : i32
    %2144 = arith.addi %2138, %2043 : i32
    %2145 = arith.cmpi sge, %2144, %1983 : i32
    %c0_i32_585 = arith.constant 0 : i32
    %2146 = arith.cmpi eq, %2142, %c0_i32_585 : i32
    %2147 = arith.andi %2145, %2146 : i1
    %c9_i32_586 = arith.constant 9 : i32
    %2148 = arith.select %2147, %c9_i32_586, %2142 : i32
    %2149 = arith.select %2147, %2138, %2143 : i32
    %2150 = arith.addi %2144, %2051 : i32
    %2151 = arith.cmpi sge, %2150, %1983 : i32
    %c0_i32_587 = arith.constant 0 : i32
    %2152 = arith.cmpi eq, %2148, %c0_i32_587 : i32
    %2153 = arith.andi %2151, %2152 : i1
    %c8_i32_588 = arith.constant 8 : i32
    %2154 = arith.select %2153, %c8_i32_588, %2148 : i32
    %2155 = arith.select %2153, %2144, %2149 : i32
    %2156 = arith.addi %2150, %2059 : i32
    %2157 = arith.cmpi sge, %2156, %1983 : i32
    %c0_i32_589 = arith.constant 0 : i32
    %2158 = arith.cmpi eq, %2154, %c0_i32_589 : i32
    %2159 = arith.andi %2157, %2158 : i1
    %c7_i32_590 = arith.constant 7 : i32
    %2160 = arith.select %2159, %c7_i32_590, %2154 : i32
    %2161 = arith.select %2159, %2150, %2155 : i32
    %2162 = arith.addi %2156, %2067 : i32
    %2163 = arith.cmpi sge, %2162, %1983 : i32
    %c0_i32_591 = arith.constant 0 : i32
    %2164 = arith.cmpi eq, %2160, %c0_i32_591 : i32
    %2165 = arith.andi %2163, %2164 : i1
    %c6_i32_592 = arith.constant 6 : i32
    %2166 = arith.select %2165, %c6_i32_592, %2160 : i32
    %2167 = arith.select %2165, %2156, %2161 : i32
    %2168 = arith.addi %2162, %2075 : i32
    %2169 = arith.cmpi sge, %2168, %1983 : i32
    %c0_i32_593 = arith.constant 0 : i32
    %2170 = arith.cmpi eq, %2166, %c0_i32_593 : i32
    %2171 = arith.andi %2169, %2170 : i1
    %c5_i32_594 = arith.constant 5 : i32
    %2172 = arith.select %2171, %c5_i32_594, %2166 : i32
    %2173 = arith.select %2171, %2162, %2167 : i32
    %2174 = arith.addi %2168, %2083 : i32
    %2175 = arith.cmpi sge, %2174, %1983 : i32
    %c0_i32_595 = arith.constant 0 : i32
    %2176 = arith.cmpi eq, %2172, %c0_i32_595 : i32
    %2177 = arith.andi %2175, %2176 : i1
    %c4_i32_596 = arith.constant 4 : i32
    %2178 = arith.select %2177, %c4_i32_596, %2172 : i32
    %2179 = arith.select %2177, %2168, %2173 : i32
    %2180 = arith.addi %2174, %2091 : i32
    %2181 = arith.cmpi sge, %2180, %1983 : i32
    %c0_i32_597 = arith.constant 0 : i32
    %2182 = arith.cmpi eq, %2178, %c0_i32_597 : i32
    %2183 = arith.andi %2181, %2182 : i1
    %c3_i32_598 = arith.constant 3 : i32
    %2184 = arith.select %2183, %c3_i32_598, %2178 : i32
    %2185 = arith.select %2183, %2174, %2179 : i32
    %2186 = arith.addi %2180, %2099 : i32
    %2187 = arith.cmpi sge, %2186, %1983 : i32
    %c0_i32_599 = arith.constant 0 : i32
    %2188 = arith.cmpi eq, %2184, %c0_i32_599 : i32
    %2189 = arith.andi %2187, %2188 : i1
    %c2_i32_600 = arith.constant 2 : i32
    %2190 = arith.select %2189, %c2_i32_600, %2184 : i32
    %2191 = arith.select %2189, %2180, %2185 : i32
    %2192 = arith.addi %2186, %2107 : i32
    %2193 = arith.cmpi sge, %2192, %1983 : i32
    %c0_i32_601 = arith.constant 0 : i32
    %2194 = arith.cmpi eq, %2190, %c0_i32_601 : i32
    %2195 = arith.andi %2193, %2194 : i1
    %c1_i32_602 = arith.constant 1 : i32
    %2196 = arith.select %2195, %c1_i32_602, %2190 : i32
    %2197 = arith.select %2195, %2186, %2191 : i32
    %c0_i32_603 = arith.constant 0 : i32
    %2198 = arith.cmpi eq, %2196, %c0_i32_603 : i32
    %2199 = arith.select %2198, %2192, %2197 : i32
    %2200 = arith.subi %1983, %2199 : i32
    %c4_i32_604 = arith.constant 4 : i32
    %2201 = arith.shli %2196, %c4_i32_604 : i32
    %2202 = arith.ori %1985, %2201 : i32
    %c-1_i32_605 = arith.constant -1 : i32
    %2203 = vector.broadcast %c-1_i32_605 : i32 to vector<3x128xi32>
    %2204 = arith.andi %1768, %2203 : vector<3x128xi32>
    %c15_i32_606 = arith.constant 15 : i32
    %2205 = arith.ori %2202, %c15_i32_606 : i32
    %2206 = vector.broadcast %2205 : i32 to vector<3x128xi32>
    %2207 = arith.cmpi eq, %2204, %2206 : vector<3x128xi32>
    %2208 = arith.extui %2207 : vector<3x128xi1> to vector<3x128xi32>
    %2209 = vector.shape_cast %2208 : vector<3x128xi32> to vector<1x3x128xi32>
    %cst_607 = arith.constant dense<0> : vector<1xi32>
    %2210 = vector.multi_reduction <add>, %2209, %cst_607 [1, 2] : vector<1x3x128xi32> to vector<1xi32>
    %2211 = vector.shape_cast %2210 : vector<1xi32> to vector<1x1x1xi32>
    %2212 = vector.extract %2211[0, 0, 0] : i32 from vector<1x1x1xi32>
    %c14_i32_608 = arith.constant 14 : i32
    %2213 = arith.ori %2202, %c14_i32_608 : i32
    %2214 = vector.broadcast %2213 : i32 to vector<3x128xi32>
    %2215 = arith.cmpi eq, %2204, %2214 : vector<3x128xi32>
    %2216 = arith.extui %2215 : vector<3x128xi1> to vector<3x128xi32>
    %2217 = vector.shape_cast %2216 : vector<3x128xi32> to vector<1x3x128xi32>
    %cst_609 = arith.constant dense<0> : vector<1xi32>
    %2218 = vector.multi_reduction <add>, %2217, %cst_609 [1, 2] : vector<1x3x128xi32> to vector<1xi32>
    %2219 = vector.shape_cast %2218 : vector<1xi32> to vector<1x1x1xi32>
    %2220 = vector.extract %2219[0, 0, 0] : i32 from vector<1x1x1xi32>
    %c13_i32_610 = arith.constant 13 : i32
    %2221 = arith.ori %2202, %c13_i32_610 : i32
    %2222 = vector.broadcast %2221 : i32 to vector<3x128xi32>
    %2223 = arith.cmpi eq, %2204, %2222 : vector<3x128xi32>
    %2224 = arith.extui %2223 : vector<3x128xi1> to vector<3x128xi32>
    %2225 = vector.shape_cast %2224 : vector<3x128xi32> to vector<1x3x128xi32>
    %cst_611 = arith.constant dense<0> : vector<1xi32>
    %2226 = vector.multi_reduction <add>, %2225, %cst_611 [1, 2] : vector<1x3x128xi32> to vector<1xi32>
    %2227 = vector.shape_cast %2226 : vector<1xi32> to vector<1x1x1xi32>
    %2228 = vector.extract %2227[0, 0, 0] : i32 from vector<1x1x1xi32>
    %c12_i32_612 = arith.constant 12 : i32
    %2229 = arith.ori %2202, %c12_i32_612 : i32
    %2230 = vector.broadcast %2229 : i32 to vector<3x128xi32>
    %2231 = arith.cmpi eq, %2204, %2230 : vector<3x128xi32>
    %2232 = arith.extui %2231 : vector<3x128xi1> to vector<3x128xi32>
    %2233 = vector.shape_cast %2232 : vector<3x128xi32> to vector<1x3x128xi32>
    %cst_613 = arith.constant dense<0> : vector<1xi32>
    %2234 = vector.multi_reduction <add>, %2233, %cst_613 [1, 2] : vector<1x3x128xi32> to vector<1xi32>
    %2235 = vector.shape_cast %2234 : vector<1xi32> to vector<1x1x1xi32>
    %2236 = vector.extract %2235[0, 0, 0] : i32 from vector<1x1x1xi32>
    %c11_i32_614 = arith.constant 11 : i32
    %2237 = arith.ori %2202, %c11_i32_614 : i32
    %2238 = vector.broadcast %2237 : i32 to vector<3x128xi32>
    %2239 = arith.cmpi eq, %2204, %2238 : vector<3x128xi32>
    %2240 = arith.extui %2239 : vector<3x128xi1> to vector<3x128xi32>
    %2241 = vector.shape_cast %2240 : vector<3x128xi32> to vector<1x3x128xi32>
    %cst_615 = arith.constant dense<0> : vector<1xi32>
    %2242 = vector.multi_reduction <add>, %2241, %cst_615 [1, 2] : vector<1x3x128xi32> to vector<1xi32>
    %2243 = vector.shape_cast %2242 : vector<1xi32> to vector<1x1x1xi32>
    %2244 = vector.extract %2243[0, 0, 0] : i32 from vector<1x1x1xi32>
    %c10_i32_616 = arith.constant 10 : i32
    %2245 = arith.ori %2202, %c10_i32_616 : i32
    %2246 = vector.broadcast %2245 : i32 to vector<3x128xi32>
    %2247 = arith.cmpi eq, %2204, %2246 : vector<3x128xi32>
    %2248 = arith.extui %2247 : vector<3x128xi1> to vector<3x128xi32>
    %2249 = vector.shape_cast %2248 : vector<3x128xi32> to vector<1x3x128xi32>
    %cst_617 = arith.constant dense<0> : vector<1xi32>
    %2250 = vector.multi_reduction <add>, %2249, %cst_617 [1, 2] : vector<1x3x128xi32> to vector<1xi32>
    %2251 = vector.shape_cast %2250 : vector<1xi32> to vector<1x1x1xi32>
    %2252 = vector.extract %2251[0, 0, 0] : i32 from vector<1x1x1xi32>
    %c9_i32_618 = arith.constant 9 : i32
    %2253 = arith.ori %2202, %c9_i32_618 : i32
    %2254 = vector.broadcast %2253 : i32 to vector<3x128xi32>
    %2255 = arith.cmpi eq, %2204, %2254 : vector<3x128xi32>
    %2256 = arith.extui %2255 : vector<3x128xi1> to vector<3x128xi32>
    %2257 = vector.shape_cast %2256 : vector<3x128xi32> to vector<1x3x128xi32>
    %cst_619 = arith.constant dense<0> : vector<1xi32>
    %2258 = vector.multi_reduction <add>, %2257, %cst_619 [1, 2] : vector<1x3x128xi32> to vector<1xi32>
    %2259 = vector.shape_cast %2258 : vector<1xi32> to vector<1x1x1xi32>
    %2260 = vector.extract %2259[0, 0, 0] : i32 from vector<1x1x1xi32>
    %c8_i32_620 = arith.constant 8 : i32
    %2261 = arith.ori %2202, %c8_i32_620 : i32
    %2262 = vector.broadcast %2261 : i32 to vector<3x128xi32>
    %2263 = arith.cmpi eq, %2204, %2262 : vector<3x128xi32>
    %2264 = arith.extui %2263 : vector<3x128xi1> to vector<3x128xi32>
    %2265 = vector.shape_cast %2264 : vector<3x128xi32> to vector<1x3x128xi32>
    %cst_621 = arith.constant dense<0> : vector<1xi32>
    %2266 = vector.multi_reduction <add>, %2265, %cst_621 [1, 2] : vector<1x3x128xi32> to vector<1xi32>
    %2267 = vector.shape_cast %2266 : vector<1xi32> to vector<1x1x1xi32>
    %2268 = vector.extract %2267[0, 0, 0] : i32 from vector<1x1x1xi32>
    %c7_i32_622 = arith.constant 7 : i32
    %2269 = arith.ori %2202, %c7_i32_622 : i32
    %2270 = vector.broadcast %2269 : i32 to vector<3x128xi32>
    %2271 = arith.cmpi eq, %2204, %2270 : vector<3x128xi32>
    %2272 = arith.extui %2271 : vector<3x128xi1> to vector<3x128xi32>
    %2273 = vector.shape_cast %2272 : vector<3x128xi32> to vector<1x3x128xi32>
    %cst_623 = arith.constant dense<0> : vector<1xi32>
    %2274 = vector.multi_reduction <add>, %2273, %cst_623 [1, 2] : vector<1x3x128xi32> to vector<1xi32>
    %2275 = vector.shape_cast %2274 : vector<1xi32> to vector<1x1x1xi32>
    %2276 = vector.extract %2275[0, 0, 0] : i32 from vector<1x1x1xi32>
    %c6_i32_624 = arith.constant 6 : i32
    %2277 = arith.ori %2202, %c6_i32_624 : i32
    %2278 = vector.broadcast %2277 : i32 to vector<3x128xi32>
    %2279 = arith.cmpi eq, %2204, %2278 : vector<3x128xi32>
    %2280 = arith.extui %2279 : vector<3x128xi1> to vector<3x128xi32>
    %2281 = vector.shape_cast %2280 : vector<3x128xi32> to vector<1x3x128xi32>
    %cst_625 = arith.constant dense<0> : vector<1xi32>
    %2282 = vector.multi_reduction <add>, %2281, %cst_625 [1, 2] : vector<1x3x128xi32> to vector<1xi32>
    %2283 = vector.shape_cast %2282 : vector<1xi32> to vector<1x1x1xi32>
    %2284 = vector.extract %2283[0, 0, 0] : i32 from vector<1x1x1xi32>
    %c5_i32_626 = arith.constant 5 : i32
    %2285 = arith.ori %2202, %c5_i32_626 : i32
    %2286 = vector.broadcast %2285 : i32 to vector<3x128xi32>
    %2287 = arith.cmpi eq, %2204, %2286 : vector<3x128xi32>
    %2288 = arith.extui %2287 : vector<3x128xi1> to vector<3x128xi32>
    %2289 = vector.shape_cast %2288 : vector<3x128xi32> to vector<1x3x128xi32>
    %cst_627 = arith.constant dense<0> : vector<1xi32>
    %2290 = vector.multi_reduction <add>, %2289, %cst_627 [1, 2] : vector<1x3x128xi32> to vector<1xi32>
    %2291 = vector.shape_cast %2290 : vector<1xi32> to vector<1x1x1xi32>
    %2292 = vector.extract %2291[0, 0, 0] : i32 from vector<1x1x1xi32>
    %c4_i32_628 = arith.constant 4 : i32
    %2293 = arith.ori %2202, %c4_i32_628 : i32
    %2294 = vector.broadcast %2293 : i32 to vector<3x128xi32>
    %2295 = arith.cmpi eq, %2204, %2294 : vector<3x128xi32>
    %2296 = arith.extui %2295 : vector<3x128xi1> to vector<3x128xi32>
    %2297 = vector.shape_cast %2296 : vector<3x128xi32> to vector<1x3x128xi32>
    %cst_629 = arith.constant dense<0> : vector<1xi32>
    %2298 = vector.multi_reduction <add>, %2297, %cst_629 [1, 2] : vector<1x3x128xi32> to vector<1xi32>
    %2299 = vector.shape_cast %2298 : vector<1xi32> to vector<1x1x1xi32>
    %2300 = vector.extract %2299[0, 0, 0] : i32 from vector<1x1x1xi32>
    %c3_i32_630 = arith.constant 3 : i32
    %2301 = arith.ori %2202, %c3_i32_630 : i32
    %2302 = vector.broadcast %2301 : i32 to vector<3x128xi32>
    %2303 = arith.cmpi eq, %2204, %2302 : vector<3x128xi32>
    %2304 = arith.extui %2303 : vector<3x128xi1> to vector<3x128xi32>
    %2305 = vector.shape_cast %2304 : vector<3x128xi32> to vector<1x3x128xi32>
    %cst_631 = arith.constant dense<0> : vector<1xi32>
    %2306 = vector.multi_reduction <add>, %2305, %cst_631 [1, 2] : vector<1x3x128xi32> to vector<1xi32>
    %2307 = vector.shape_cast %2306 : vector<1xi32> to vector<1x1x1xi32>
    %2308 = vector.extract %2307[0, 0, 0] : i32 from vector<1x1x1xi32>
    %c2_i32_632 = arith.constant 2 : i32
    %2309 = arith.ori %2202, %c2_i32_632 : i32
    %2310 = vector.broadcast %2309 : i32 to vector<3x128xi32>
    %2311 = arith.cmpi eq, %2204, %2310 : vector<3x128xi32>
    %2312 = arith.extui %2311 : vector<3x128xi1> to vector<3x128xi32>
    %2313 = vector.shape_cast %2312 : vector<3x128xi32> to vector<1x3x128xi32>
    %cst_633 = arith.constant dense<0> : vector<1xi32>
    %2314 = vector.multi_reduction <add>, %2313, %cst_633 [1, 2] : vector<1x3x128xi32> to vector<1xi32>
    %2315 = vector.shape_cast %2314 : vector<1xi32> to vector<1x1x1xi32>
    %2316 = vector.extract %2315[0, 0, 0] : i32 from vector<1x1x1xi32>
    %c1_i32_634 = arith.constant 1 : i32
    %2317 = arith.ori %2202, %c1_i32_634 : i32
    %2318 = vector.broadcast %2317 : i32 to vector<3x128xi32>
    %2319 = arith.cmpi eq, %2204, %2318 : vector<3x128xi32>
    %2320 = arith.extui %2319 : vector<3x128xi1> to vector<3x128xi32>
    %2321 = vector.shape_cast %2320 : vector<3x128xi32> to vector<1x3x128xi32>
    %cst_635 = arith.constant dense<0> : vector<1xi32>
    %2322 = vector.multi_reduction <add>, %2321, %cst_635 [1, 2] : vector<1x3x128xi32> to vector<1xi32>
    %2323 = vector.shape_cast %2322 : vector<1xi32> to vector<1x1x1xi32>
    %2324 = vector.extract %2323[0, 0, 0] : i32 from vector<1x1x1xi32>
    %c0_i32_636 = arith.constant 0 : i32
    %2325 = arith.addi %c0_i32_636, %2212 : i32
    %2326 = arith.cmpi sge, %2325, %2200 : i32
    %c0_i32_637 = arith.constant 0 : i32
    %c0_i32_638 = arith.constant 0 : i32
    %2327 = arith.cmpi eq, %c0_i32_637, %c0_i32_638 : i32
    %2328 = arith.andi %2326, %2327 : i1
    %c15_i32_639 = arith.constant 15 : i32
    %c0_i32_640 = arith.constant 0 : i32
    %2329 = arith.select %2328, %c15_i32_639, %c0_i32_640 : i32
    %2330 = arith.addi %2325, %2220 : i32
    %2331 = arith.cmpi sge, %2330, %2200 : i32
    %c0_i32_641 = arith.constant 0 : i32
    %2332 = arith.cmpi eq, %2329, %c0_i32_641 : i32
    %2333 = arith.andi %2331, %2332 : i1
    %c14_i32_642 = arith.constant 14 : i32
    %2334 = arith.select %2333, %c14_i32_642, %2329 : i32
    %2335 = arith.addi %2330, %2228 : i32
    %2336 = arith.cmpi sge, %2335, %2200 : i32
    %c0_i32_643 = arith.constant 0 : i32
    %2337 = arith.cmpi eq, %2334, %c0_i32_643 : i32
    %2338 = arith.andi %2336, %2337 : i1
    %c13_i32_644 = arith.constant 13 : i32
    %2339 = arith.select %2338, %c13_i32_644, %2334 : i32
    %2340 = arith.addi %2335, %2236 : i32
    %2341 = arith.cmpi sge, %2340, %2200 : i32
    %c0_i32_645 = arith.constant 0 : i32
    %2342 = arith.cmpi eq, %2339, %c0_i32_645 : i32
    %2343 = arith.andi %2341, %2342 : i1
    %c12_i32_646 = arith.constant 12 : i32
    %2344 = arith.select %2343, %c12_i32_646, %2339 : i32
    %2345 = arith.addi %2340, %2244 : i32
    %2346 = arith.cmpi sge, %2345, %2200 : i32
    %c0_i32_647 = arith.constant 0 : i32
    %2347 = arith.cmpi eq, %2344, %c0_i32_647 : i32
    %2348 = arith.andi %2346, %2347 : i1
    %c11_i32_648 = arith.constant 11 : i32
    %2349 = arith.select %2348, %c11_i32_648, %2344 : i32
    %2350 = arith.addi %2345, %2252 : i32
    %2351 = arith.cmpi sge, %2350, %2200 : i32
    %c0_i32_649 = arith.constant 0 : i32
    %2352 = arith.cmpi eq, %2349, %c0_i32_649 : i32
    %2353 = arith.andi %2351, %2352 : i1
    %c10_i32_650 = arith.constant 10 : i32
    %2354 = arith.select %2353, %c10_i32_650, %2349 : i32
    %2355 = arith.addi %2350, %2260 : i32
    %2356 = arith.cmpi sge, %2355, %2200 : i32
    %c0_i32_651 = arith.constant 0 : i32
    %2357 = arith.cmpi eq, %2354, %c0_i32_651 : i32
    %2358 = arith.andi %2356, %2357 : i1
    %c9_i32_652 = arith.constant 9 : i32
    %2359 = arith.select %2358, %c9_i32_652, %2354 : i32
    %2360 = arith.addi %2355, %2268 : i32
    %2361 = arith.cmpi sge, %2360, %2200 : i32
    %c0_i32_653 = arith.constant 0 : i32
    %2362 = arith.cmpi eq, %2359, %c0_i32_653 : i32
    %2363 = arith.andi %2361, %2362 : i1
    %c8_i32_654 = arith.constant 8 : i32
    %2364 = arith.select %2363, %c8_i32_654, %2359 : i32
    %2365 = arith.addi %2360, %2276 : i32
    %2366 = arith.cmpi sge, %2365, %2200 : i32
    %c0_i32_655 = arith.constant 0 : i32
    %2367 = arith.cmpi eq, %2364, %c0_i32_655 : i32
    %2368 = arith.andi %2366, %2367 : i1
    %c7_i32_656 = arith.constant 7 : i32
    %2369 = arith.select %2368, %c7_i32_656, %2364 : i32
    %2370 = arith.addi %2365, %2284 : i32
    %2371 = arith.cmpi sge, %2370, %2200 : i32
    %c0_i32_657 = arith.constant 0 : i32
    %2372 = arith.cmpi eq, %2369, %c0_i32_657 : i32
    %2373 = arith.andi %2371, %2372 : i1
    %c6_i32_658 = arith.constant 6 : i32
    %2374 = arith.select %2373, %c6_i32_658, %2369 : i32
    %2375 = arith.addi %2370, %2292 : i32
    %2376 = arith.cmpi sge, %2375, %2200 : i32
    %c0_i32_659 = arith.constant 0 : i32
    %2377 = arith.cmpi eq, %2374, %c0_i32_659 : i32
    %2378 = arith.andi %2376, %2377 : i1
    %c5_i32_660 = arith.constant 5 : i32
    %2379 = arith.select %2378, %c5_i32_660, %2374 : i32
    %2380 = arith.addi %2375, %2300 : i32
    %2381 = arith.cmpi sge, %2380, %2200 : i32
    %c0_i32_661 = arith.constant 0 : i32
    %2382 = arith.cmpi eq, %2379, %c0_i32_661 : i32
    %2383 = arith.andi %2381, %2382 : i1
    %c4_i32_662 = arith.constant 4 : i32
    %2384 = arith.select %2383, %c4_i32_662, %2379 : i32
    %2385 = arith.addi %2380, %2308 : i32
    %2386 = arith.cmpi sge, %2385, %2200 : i32
    %c0_i32_663 = arith.constant 0 : i32
    %2387 = arith.cmpi eq, %2384, %c0_i32_663 : i32
    %2388 = arith.andi %2386, %2387 : i1
    %c3_i32_664 = arith.constant 3 : i32
    %2389 = arith.select %2388, %c3_i32_664, %2384 : i32
    %2390 = arith.addi %2385, %2316 : i32
    %2391 = arith.cmpi sge, %2390, %2200 : i32
    %c0_i32_665 = arith.constant 0 : i32
    %2392 = arith.cmpi eq, %2389, %c0_i32_665 : i32
    %2393 = arith.andi %2391, %2392 : i1
    %c2_i32_666 = arith.constant 2 : i32
    %2394 = arith.select %2393, %c2_i32_666, %2389 : i32
    %2395 = arith.addi %2390, %2324 : i32
    %2396 = arith.cmpi sge, %2395, %2200 : i32
    %c0_i32_667 = arith.constant 0 : i32
    %2397 = arith.cmpi eq, %2394, %c0_i32_667 : i32
    %2398 = arith.andi %2396, %2397 : i1
    %c1_i32_668 = arith.constant 1 : i32
    %2399 = arith.select %2398, %c1_i32_668, %2394 : i32
    %c0_i32_669 = arith.constant 0 : i32
    %2400 = arith.shli %2399, %c0_i32_669 : i32
    %2401 = arith.ori %2202, %2400 : i32
    %2402 = vector.broadcast %2401 : i32 to vector<3x128xi32>
    %2403 = arith.cmpi sge, %1768, %2402 : vector<3x128xi32>
    %2404 = arith.ori %1759, %2403 : vector<3x128xi1>
    %2405 = arith.extui %2404 : vector<3x128xi1> to vector<3x128xi32>
    %2406 = arith.sitofp %2405 : vector<3x128xi32> to vector<3x128xf32>
    %c0_670 = arith.constant 0 : index
    %c0_671 = arith.constant 0 : index
    %2407 = vector.load %arg1[%c0_670, %c0_671] : memref<3x128xf32, #tpu.memory_space<vmem>>, vector<3x128xf32>
    tpu.vector_store %arg1[%c0_670, %c0_671], %2406 {strides = array<i32>} : memref<3x128xf32, #tpu.memory_space<vmem>>, vector<3x128xf32>,
    return
  }
}

</mosaic_0001>

<bundles_post_ra>
// kernel: tpu_custom_call.1
= control target key start
LH: loop header
LB: loop body
LE: loop exit
PB: predicated region body
PF: predicated region fallthrough
CT: control target
= control target key end

     0   :  { %6 = vsyncpa [#allocation3], 0  ;;  %s7023_s0 = inlined_call_operand.hbm [shape: f32[3,128], index: 0, kind: input, shape index: {}]   ;;  %s7024_s1 = inlined_call_operand.hbm [shape: f32[3,128], index: 1, kind: output, shape index: {}]  }
   0x1   :  { %7 = vsyncpa [#allocation4], 0  ;;  %s13_s8 = sshll.u32 %s7023_s0, 4  ;;  %s5793_s9 = smov [#allocation2]   ;;  %s14_s8 = int_to_ptr.hbm [resolvable:$true] %s13_s8 }
   0x2   :  { %s15_s10 = sshll.u32 %s5793_s9, 4  ;;  %s16_s10 = int_to_ptr.vmem [resolvable:$true] %s15_s10 }
   0x3   :  { %18 = dma.hbm_to_vmem [thread:$0]  %s14_s8, 64, %s16_s10, [#allocation3]  }
   0x4   :  { %5789 = dma.done.wait [#allocation3], 64  }
   0x5   :  { %5790 = vsyncadd [#allocation3], 4294967232  ;;  %v29_v0 = vlaneseq  ;;  %v23_v5 = vld [vmem:[#allocation2] sm:$0x7]  ;;  %vm40_vm2 = vcmask 1042432   ;;  %v5794_v11 = vmov 0  }
   0x6   :  { %vm25_vm0 = vcmp.lt.s32.totalorder %v23_v5, 0  ;;  %v26_v6 = vxor.u32 4294967295, %v23_v5  ;;  %v27_v7 = vor.u32 2147483648, %v23_v5 }
   0x7   :  { %v30_v1 = vshrl.u32 %v29_v0, 7  ;;  %v32_v2 = vand.u32 127, %v29_v0 }
   0x8   :  { %v28_v8 = vsel %vm25_vm0, %v26_v6, %v27_v7 }
   0x9   :  { %v33_v3 = vmul.u32 128, %v30_v1 }
   0xb   :  { %v5810_v4 = vadd.s32 %v33_v3, %v32_v2 }
   0xd   :  { %vm35_vm1 = vcmp.lt.s32.totalorder %v5810_v4, 300 }
   0xe   :  { %v5813_v9 = vsel %vm35_vm1, %v28_v8, 0 }
   0xf   :  { %v5816_v10 = vand.u32 4026531840, %v5813_v9 }
  0x11   :  { %vm83_vm3 = vcmp.eq.s32.totalorder %v5816_v10, 3489660928  ;;  %vm61_vm4 = vcmp.eq.s32.totalorder %v5816_v10, 3758096384  ;;  %vm38_vm5 = vcmp.eq.s32.totalorder %v5816_v10, 4026531840  ;;  %vm105_vm6 = vcmp.eq.s32.totalorder %v5816_v10, 3221225472 }
  0x12   :  { %v84_v12 = vsel %vm83_vm3, 1, %v5794_v11  ;;  %v62_v13 = vsel %vm61_vm4, 1, %v5794_v11  ;;  %v39_v14 = vsel %vm38_vm5, 1, %v5794_v11  ;;  %vm127_vm7 = vcmp.eq.s32.totalorder %v5816_v10, 2952790016 }
  0x13   :  { %v85_v15 = vsel %vm40_vm2, %v84_v12, 0  ;;  %v63_v16 = vsel %vm40_vm2, %v62_v13, 0  ;;  %v41_v17 = vsel %vm40_vm2, %v39_v14, 0  ;;  %v106_v27 = vsel %vm105_vm6, 1, %v5794_v11 }
  0x14   :  { %v87_v18 = vshrl.u32 %v85_v15, 16  ;;  %v65_v19 = vshrl.u32 %v63_v16, 16  ;;  %v43_v20 = vshrl.u32 %v41_v17, 16  ;;  %v86_v24 = vand.u32 65535, %v85_v15 }
  0x15   :  { %v64_v25 = vand.u32 65535, %v63_v16  ;;  %v42_v26 = vand.u32 65535, %v41_v17  ;;  %v128_v28 = vsel %vm127_vm7, 1, %v5794_v11  ;;  %v107_v32 = vsel %vm40_vm2, %v106_v27, 0 }
  0x16   :  { %v89_v21 = vcvt.s32.f32 %v87_v18  ;;  %v67_v22 = vcvt.s32.f32 %v65_v19  ;;  %v45_v23 = vcvt.s32.f32 %v43_v20  ;;  %v88_v29 = vcvt.s32.f32 %v86_v24 }
  0x17   :  { %v66_v30 = vcvt.s32.f32 %v64_v25  ;;  %v44_v31 = vcvt.s32.f32 %v42_v26  ;;  %v129_v33 = vsel %vm40_vm2, %v128_v28, 0  ;;  %vm149_vm8 = vcmp.eq.s32.totalorder %v5816_v10, 2684354560 }
  0x18   :  { %92 = vadd.xlane.f32.xlu2 %v89_v21  ;;  %70 = vadd.xlane.f32.xlu1 %v67_v22  ;;  %v108_v34 = vand.u32 65535, %v107_v32  ;;  %v131_v35 = vshrl.u32 %v129_v33, 16  ;;  %v109_v36 = vshrl.u32 %v107_v32, 16  ;;  %v150_v37 = vsel %vm149_vm8, 1, %v5794_v11 }
  0x19   :  { %48 = vadd.xlane.f32.xlu0 %v45_v23  ;;  %v151_v41 = vsel %vm40_vm2, %v150_v37, 0  ;;  %vm171_vm9 = vcmp.eq.s32.totalorder %v5816_v10, 2415919104  ;;  %vm193_vm10 = vcmp.eq.s32.totalorder %v5816_v10, 2147483648  ;;  %v130_v44 = vand.u32 65535, %v129_v33 }
  0x1a   :  { %v110_v38 = vcvt.s32.f32 %v108_v34  ;;  %v133_v39 = vcvt.s32.f32 %v131_v35  ;;  %v111_v40 = vcvt.s32.f32 %v109_v36  ;;  %v153_v42 = vshrl.u32 %v151_v41, 16 }
  0x1b   :  { %v152_v43 = vand.u32 65535, %v151_v41  ;;  %v172_v45 = vsel %vm171_vm9, 1, %v5794_v11  ;;  %v194_v46 = vsel %vm193_vm10, 1, %v5794_v11  ;;  %v132_v49 = vcvt.s32.f32 %v130_v44 }
  0x1c   :  { %v155_v47 = vcvt.s32.f32 %v153_v42  ;;  %v173_v50 = vsel %vm40_vm2, %v172_v45, 0  ;;  %v195_v51 = vsel %vm40_vm2, %v194_v46, 0  ;;  %vm215_vm11 = vcmp.eq.s32.totalorder %v5816_v10, 1879048192 }
  0x1d   :  { %v154_v48 = vcvt.s32.f32 %v152_v43  ;;  %v174_v52 = vand.u32 65535, %v173_v50  ;;  %v197_v53 = vshrl.u32 %v195_v51, 16  ;;  %v175_v54 = vshrl.u32 %v173_v50, 16 }
  0x1e   :  { %v216_v55 = vsel %vm215_vm11, 1, %v5794_v11  ;;  %vm237_vm12 = vcmp.eq.s32.totalorder %v5816_v10, 1610612736  ;;  %vm259_vm13 = vcmp.eq.s32.totalorder %v5816_v10, 1342177280  ;;  %v196_v62 = vand.u32 65535, %v195_v51 }
  0x1f   :  { %v176_v56 = vcvt.s32.f32 %v174_v52  ;;  %v199_v57 = vcvt.s32.f32 %v197_v53  ;;  %v177_v58 = vcvt.s32.f32 %v175_v54  ;;  %v217_v59 = vsel %vm40_vm2, %v216_v55, 0 }
  0x20   :  { %90 = vadd.xlane.f32.xlu2 %v88_v29  ;;  %68 = vadd.xlane.f32.xlu1 %v66_v30  ;;  %v219_v60 = vshrl.u32 %v217_v59, 16  ;;  %v218_v61 = vand.u32 65535, %v217_v59  ;;  %v238_v63 = vsel %vm237_vm12, 1, %v5794_v11  ;;  %v260_v0 = vsel %vm259_vm13, 1, %v5794_v11 }
  0x21   :  { %46 = vadd.xlane.f32.xlu0 %v44_v31  ;;  %v198_v3 = vcvt.s32.f32 %v196_v62  ;;  %v239_v5 = vsel %vm40_vm2, %v238_v63, 0  ;;  %v261_v6 = vsel %vm40_vm2, %v260_v0, 0  ;;  %vm281_vm14 = vcmp.eq.s32.totalorder %v5816_v10, 1073741824 }
  0x22   :  { %v221_v1 = vcvt.s32.f32 %v219_v60  ;;  %v220_v2 = vcvt.s32.f32 %v218_v61  ;;  %v240_v7 = vand.u32 65535, %v239_v5  ;;  %v263_v8 = vshrl.u32 %v261_v6, 16 }
  0x23   :  { %v241_v12 = vshrl.u32 %v239_v5, 16  ;;  %v282_v13 = vsel %vm281_vm14, 1, %v5794_v11  ;;  %vm303_vm15 = vcmp.eq.s32.totalorder %v5816_v10, 805306368  ;;  %vm325_vm0 = vcmp.eq.s32.totalorder %v5816_v10, 536870912 }
  0x24   :  { %v242_v14 = vcvt.s32.f32 %v240_v7  ;;  %v265_v15 = vcvt.s32.f32 %v263_v8  ;;  %v283_v17 = vsel %vm40_vm2, %v282_v13, 0  ;;  %v262_v20 = vand.u32 65535, %v261_v6 }
  0x25   :  { %v243_v16 = vcvt.s32.f32 %v241_v12  ;;  %v285_v18 = vshrl.u32 %v283_v17, 16  ;;  %v284_v19 = vand.u32 65535, %v283_v17  ;;  %v304_v21 = vsel %vm303_vm15, 1, %v5794_v11 }
  0x26   :  { %v326_v22 = vsel %vm325_vm0, 1, %v5794_v11  ;;  %v264_v25 = vcvt.s32.f32 %v262_v20  ;;  %v305_v26 = vsel %vm40_vm2, %v304_v21, 0  ;;  %vm347_vm1 = vcmp.eq.s32.totalorder %v5816_v10, 268435456 }
  0x27   :  { %v287_v23 = vcvt.s32.f32 %v285_v18  ;;  %v286_v24 = vcvt.s32.f32 %v284_v19  ;;  %v327_v27 = vsel %vm40_vm2, %v326_v22, 0  ;;  %v306_v28 = vand.u32 65535, %v305_v26 }
  0x28   :  { %112 = vadd.xlane.f32.xlu1 %v110_v38  ;;  %136 = vadd.xlane.f32.xlu2 %v133_v39  ;;  %v329_v29 = vshrl.u32 %v327_v27, 16  ;;  %v307_v30 = vshrl.u32 %v305_v26, 16  ;;  %v348_v31 = vsel %vm347_vm1, 1, %v5794_v11  ;;  %v328_v38 = vand.u32 65535, %v327_v27 }
  0x29   :  { %114 = vadd.xlane.f32.xlu0 %v111_v40  ;;  %v308_v32 = vcvt.s32.f32 %v306_v28  ;;  %v349_v35 = vsel %vm40_vm2, %v348_v31, 0 }
  0x2a   :  { %v331_v33 = vcvt.s32.f32 %v329_v29  ;;  %v309_v34 = vcvt.s32.f32 %v307_v30  ;;  %v351_v36 = vshrl.u32 %v349_v35, 16  ;;  %v350_v37 = vand.u32 65535, %v349_v35 }
  0x2b   :  { %v330_v40 = vcvt.s32.f32 %v328_v38 }
  0x2c   :  { %v353_v10 = vcvt.s32.f32 %v351_v36  ;;  %v352_v39 = vcvt.s32.f32 %v350_v37 }
  0x30   :  { %158 = vadd.xlane.f32.xlu1 %v155_v47  ;;  %156 = vadd.xlane.f32.xlu2 %v154_v48 }
  0x31   :  { %134 = vadd.xlane.f32.xlu0 %v132_v49 }
  0x38   :  { %178 = vadd.xlane.f32.xlu1 %v176_v56  ;;  %202 = vadd.xlane.f32.xlu2 %v199_v57 }
  0x39   :  { %180 = vadd.xlane.f32.xlu0 %v177_v58 }
  0x40   :  { %224 = vadd.xlane.f32.xlu1 %v221_v1  ;;  %222 = vadd.xlane.f32.xlu2 %v220_v2 }
  0x41   :  { %200 = vadd.xlane.f32.xlu0 %v198_v3 }
  0x48   :  { %244 = vadd.xlane.f32.xlu1 %v242_v14  ;;  %268 = vadd.xlane.f32.xlu2 %v265_v15 }
  0x49   :  { %246 = vadd.xlane.f32.xlu0 %v243_v16 }
  0x50   :  { %290 = vadd.xlane.f32.xlu1 %v287_v23  ;;  %288 = vadd.xlane.f32.xlu2 %v286_v24 }
  0x51   :  { %266 = vadd.xlane.f32.xlu0 %v264_v25 }
  0x58   :  { %310 = vadd.xlane.f32.xlu1 %v308_v32  ;;  %334 = vadd.xlane.f32.xlu2 %v331_v33 }
  0x59   :  { %312 = vadd.xlane.f32.xlu0 %v309_v34 }
  0x60   :  { %356 = vadd.xlane.f32.xlu1 %v353_v10  ;;  %354 = vadd.xlane.f32.xlu2 %v352_v39 }
  0x61   :  { %332 = vadd.xlane.f32.xlu0 %v330_v40 }
  0x8b   :  { %v93_v41 = vpop.xlane.xlu2 %92  ;;  %v71_v42 = vpop.xlane.xlu1 %70 }
  0x8c   :  { %v49_v43 = vpop.xlane.xlu0 %48  ;;  %v95_v44 = vcvt.f32.s32 %v93_v41  ;;  %v73_v45 = vcvt.f32.s32 %v71_v42 }
  0x8d   :  { %v51_v46 = vcvt.f32.s32 %v49_v43 }
  0x8e   :  { %v96_v47 = vshll.u32 %v95_v44, 16  ;;  %v74_v50 = vshll.u32 %v73_v45, 16 }
  0x8f   :  { %v52_v54 = vshll.u32 %v51_v46, 16 }
  0x93   :  { %v91_v48 = vpop.xlane.xlu2 %90  ;;  %v69_v49 = vpop.xlane.xlu1 %68 }
  0x94   :  { %v94_v51 = vcvt.f32.s32 %v91_v48  ;;  %v72_v52 = vcvt.f32.s32 %v69_v49  ;;  %v47_v53 = vpop.xlane.xlu0 %46 }
  0x95   :  { %v50_v55 = vcvt.f32.s32 %v47_v53 }
  0x96   :  { %v97_v56 = vadd.s32 %v96_v47, %v94_v51  ;;  %v75_v57 = vadd.s32 %v74_v50, %v72_v52 }
  0x97   :  { %v53_v58 = vadd.s32 %v52_v54, %v50_v55 }
  0x98   :  { %v98_v59 = vrot.slane %v97_v56, 4  ;;  %v76_v60 = vrot.slane %v75_v57, 4 }
  0x99   :  { %v54_v61 = vrot.slane %v53_v58, 4 }
  0x9a   :  { %v77_v62 = vadd.s32 %v76_v60, %v75_v57  ;;  %v99_v63 = vadd.s32 %v98_v59, %v97_v56 }
  0x9b   :  { %v113_v0 = vpop.xlane.xlu1 %112  ;;  %v137_v1 = vpop.xlane.xlu2 %136  ;;  %v55_v2 = vadd.s32 %v54_v61, %v53_v58 }
  0x9c   :  { %v115_v3 = vpop.xlane.xlu0 %114  ;;  %v78_v5 = vrot.slane %v77_v62, 2  ;;  %v100_v6 = vrot.slane %v99_v63, 2  ;;  %v116_v7 = vcvt.f32.s32 %v113_v0  ;;  %v139_v16 = vcvt.f32.s32 %v137_v1 }
  0x9d   :  { %v117_v8 = vcvt.f32.s32 %v115_v3  ;;  %v56_v12 = vrot.slane %v55_v2, 2 }
  0x9e   :  { %v79_v13 = vadd.s32 %v78_v5, %v77_v62  ;;  %v101_v14 = vadd.s32 %v100_v6, %v99_v63  ;;  %v140_v24 = vshll.u32 %v139_v16, 16 }
  0x9f   :  { %v118_v15 = vshll.u32 %v117_v8, 16  ;;  %v57_v17 = vadd.s32 %v56_v12, %v55_v2 }
  0xa0   :  { %v80_v18 = vrot.slane %v79_v13, 1  ;;  %v102_v19 = vrot.slane %v101_v14, 1 }
  0xa1   :  { %v119_v20 = vadd.s32 %v118_v15, %v116_v7  ;;  %v58_v21 = vrot.slane %v57_v17, 1 }
  0xa2   :  { %v81_v22 = vadd.s32 %v80_v18, %v79_v13  ;;  %v103_v27 = vadd.s32 %v102_v19, %v101_v14 }
  0xa3   :  { %v120_v23 = vrot.slane %v119_v20, 4  ;;  %v159_v25 = vpop.xlane.xlu1 %158  ;;  %v59_v26 = vadd.s32 %v58_v21, %v57_v17  ;;  %v157_v28 = vpop.xlane.xlu2 %156 }
  0xa4   :  { %v161_v29 = vcvt.f32.s32 %v159_v25  ;;  %v135_v30 = vpop.xlane.xlu0 %134  ;;  %v160_v31 = vcvt.f32.s32 %v157_v28 }
  0xa5   :  { %v138_v32 = vcvt.f32.s32 %v135_v30  ;;  %5407 = vpush %v59_v26  ;;  %v121_v33 = vadd.s32 %v120_v23, %v119_v20 }
  0xa6   :  { %v162_v34 = vshll.u32 %v161_v29, 16  ;;  %5409 = vpush %v81_v22 }
  0xa7   :  { %v141_v35 = vadd.s32 %v140_v24, %v138_v32  ;;  %5411 = vpush %v103_v27  ;;  %v122_v36 = vrot.slane %v121_v33, 2 }
  0xa8   :  { %v163_v37 = vadd.s32 %v162_v34, %v160_v31 }
  0xa9   :  { %v142_v38 = vrot.slane %v141_v35, 4  ;;  %v123_v10 = vadd.s32 %v122_v36, %v121_v33 }
  0xaa   :  { %v164_v39 = vrot.slane %v163_v37, 4 }
  0xab   :  { %v179_v40 = vpop.xlane.xlu1 %178  ;;  %v203_v41 = vpop.xlane.xlu2 %202  ;;  %v124_v42 = vrot.slane %v123_v10, 1  ;;  %v143_v43 = vadd.s32 %v142_v38, %v141_v35 }
  0xac   :  { %v181_v44 = vpop.xlane.xlu0 %180  ;;  %v165_v45 = vadd.s32 %v164_v39, %v163_v37  ;;  %v182_v46 = vcvt.f32.s32 %v179_v40  ;;  %v205_v52 = vcvt.f32.s32 %v203_v41 }
  0xad   :  { %v183_v47 = vcvt.f32.s32 %v181_v44  ;;  %v125_v48 = vadd.s32 %v124_v42, %v123_v10  ;;  %v144_v49 = vrot.slane %v143_v43, 2 }
  0xae   :  { %v166_v50 = vrot.slane %v165_v45, 2  ;;  %v206_v59 = vshll.u32 %v205_v52, 16 }
  0xaf   :  { %v184_v51 = vshll.u32 %v183_v47, 16  ;;  %5413 = vpush %v125_v48  ;;  %v145_v53 = vadd.s32 %v144_v49, %v143_v43 }
  0xb0   :  { %v167_v54 = vadd.s32 %v166_v50, %v165_v45 }
  0xb1   :  { %v185_v55 = vadd.s32 %v184_v51, %v182_v46  ;;  %v146_v56 = vrot.slane %v145_v53, 1 }
  0xb2   :  { %v168_v57 = vrot.slane %v167_v54, 1 }
  0xb3   :  { %v186_v58 = vrot.slane %v185_v55, 4  ;;  %v225_v60 = vpop.xlane.xlu1 %224  ;;  %v147_v61 = vadd.s32 %v146_v56, %v145_v53  ;;  %v223_v62 = vpop.xlane.xlu2 %222 }
  0xb4   :  { %v227_v63 = vcvt.f32.s32 %v225_v60  ;;  %v201_v0 = vpop.xlane.xlu0 %200  ;;  %v226_v1 = vcvt.f32.s32 %v223_v62  ;;  %v169_v2 = vadd.s32 %v168_v57, %v167_v54 }
  0xb5   :  { %v204_v3 = vcvt.f32.s32 %v201_v0  ;;  %5415 = vpush %v147_v61  ;;  %v187_v5 = vadd.s32 %v186_v58, %v185_v55 }
  0xb6   :  { %v228_v6 = vshll.u32 %v227_v63, 16  ;;  %5417 = vpush %v169_v2 }
  0xb7   :  { %v207_v7 = vadd.s32 %v206_v59, %v204_v3  ;;  %v188_v8 = vrot.slane %v187_v5, 2 }
  0xb8   :  { %v229_v12 = vadd.s32 %v228_v6, %v226_v1 }
  0xb9   :  { %v208_v13 = vrot.slane %v207_v7, 4  ;;  %v189_v14 = vadd.s32 %v188_v8, %v187_v5 }
  0xba   :  { %v230_v15 = vrot.slane %v229_v12, 4 }
  0xbb   :  { %v245_v16 = vpop.xlane.xlu1 %244  ;;  %v269_v17 = vpop.xlane.xlu2 %268  ;;  %v190_v18 = vrot.slane %v189_v14, 1  ;;  %v209_v19 = vadd.s32 %v208_v13, %v207_v7 }
  0xbc   :  { %v247_v20 = vpop.xlane.xlu0 %246  ;;  %v231_v21 = vadd.s32 %v230_v15, %v229_v12  ;;  %v248_v22 = vcvt.f32.s32 %v245_v16  ;;  %v271_v28 = vcvt.f32.s32 %v269_v17 }
  0xbd   :  { %v249_v23 = vcvt.f32.s32 %v247_v20  ;;  %v191_v24 = vadd.s32 %v190_v18, %v189_v14  ;;  %v210_v25 = vrot.slane %v209_v19, 2 }
  0xbe   :  { %v232_v26 = vrot.slane %v231_v21, 2  ;;  %v272_v35 = vshll.u32 %v271_v28, 16 }
  0xbf   :  { %v250_v27 = vshll.u32 %v249_v23, 16  ;;  %5419 = vpush %v191_v24  ;;  %v211_v29 = vadd.s32 %v210_v25, %v209_v19 }
  0xc0   :  { %v233_v30 = vadd.s32 %v232_v26, %v231_v21 }
  0xc1   :  { %v251_v31 = vadd.s32 %v250_v27, %v248_v22  ;;  %v212_v32 = vrot.slane %v211_v29, 1 }
  0xc2   :  { %v234_v33 = vrot.slane %v233_v30, 1 }
  0xc3   :  { %v252_v34 = vrot.slane %v251_v31, 4  ;;  %v291_v36 = vpop.xlane.xlu1 %290  ;;  %v213_v37 = vadd.s32 %v212_v32, %v211_v29  ;;  %v289_v38 = vpop.xlane.xlu2 %288 }
  0xc4   :  { %v293_v10 = vcvt.f32.s32 %v291_v36  ;;  %v267_v39 = vpop.xlane.xlu0 %266  ;;  %v292_v40 = vcvt.f32.s32 %v289_v38  ;;  %v235_v41 = vadd.s32 %v234_v33, %v233_v30 }
  0xc5   :  { %v270_v42 = vcvt.f32.s32 %v267_v39  ;;  %5421 = vpush %v213_v37  ;;  %v253_v43 = vadd.s32 %v252_v34, %v251_v31 }
  0xc6   :  { %v294_v44 = vshll.u32 %v293_v10, 16  ;;  %5423 = vpush %v235_v41  ;;  %v5887_v10 = vand.u32 4278190080, %v5813_v9 }
  0xc7   :  { %v273_v45 = vadd.s32 %v272_v35, %v270_v42  ;;  %v254_v46 = vrot.slane %v253_v43, 2 }
  0xc8   :  { %v295_v47 = vadd.s32 %v294_v44, %v292_v40 }
  0xc9   :  { %v274_v48 = vrot.slane %v273_v45, 4  ;;  %v255_v49 = vadd.s32 %v254_v46, %v253_v43 }
  0xca   :  { %v296_v50 = vrot.slane %v295_v47, 4 }
  0xcb   :  { %v311_v51 = vpop.xlane.xlu1 %310  ;;  %v335_v52 = vpop.xlane.xlu2 %334  ;;  %v256_v53 = vrot.slane %v255_v49, 1  ;;  %v275_v54 = vadd.s32 %v274_v48, %v273_v45 }
  0xcc   :  { %v313_v55 = vpop.xlane.xlu0 %312  ;;  %v297_v56 = vadd.s32 %v296_v50, %v295_v47  ;;  %v314_v57 = vcvt.f32.s32 %v311_v51  ;;  %v337_v63 = vcvt.f32.s32 %v335_v52 }
  0xcd   :  { %v315_v58 = vcvt.f32.s32 %v313_v55  ;;  %v257_v59 = vadd.s32 %v256_v53, %v255_v49  ;;  %v276_v60 = vrot.slane %v275_v54, 2 }
  0xce   :  { %v298_v61 = vrot.slane %v297_v56, 2  ;;  %v338_v7 = vshll.u32 %v337_v63, 16 }
  0xcf   :  { %v316_v62 = vshll.u32 %v315_v58, 16  ;;  %5425 = vpush %v257_v59  ;;  %v277_v0 = vadd.s32 %v276_v60, %v275_v54 }
  0xd0   :  { %v299_v1 = vadd.s32 %v298_v61, %v297_v56 }
  0xd1   :  { %v317_v2 = vadd.s32 %v316_v62, %v314_v57  ;;  %v278_v3 = vrot.slane %v277_v0, 1 }
  0xd2   :  { %v300_v5 = vrot.slane %v299_v1, 1 }
  0xd3   :  { %v318_v6 = vrot.slane %v317_v2, 4  ;;  %v357_v8 = vpop.xlane.xlu1 %356  ;;  %v279_v12 = vadd.s32 %v278_v3, %v277_v0  ;;  %v355_v13 = vpop.xlane.xlu2 %354 }
  0xd4   :  { %v359_v14 = vcvt.f32.s32 %v357_v8  ;;  %v333_v15 = vpop.xlane.xlu0 %332  ;;  %v358_v16 = vcvt.f32.s32 %v355_v13  ;;  %v301_v17 = vadd.s32 %v300_v5, %v299_v1 }
  0xd5   :  { %v336_v18 = vcvt.f32.s32 %v333_v15  ;;  %5427 = vpush %v279_v12  ;;  %v319_v19 = vadd.s32 %v318_v6, %v317_v2 }
  0xd6   :  { %v360_v20 = vshll.u32 %v359_v14, 16  ;;  %s5863_s0 = spop %5407  ;;  %5429 = vpush %v301_v17 }
  0xd7   :  { %v339_v21 = vadd.s32 %v338_v7, %v336_v18  ;;  %p369_p0 = scmp.ge.s32.totalorder %s5863_s0, 50  ;;  %s5410_s11 = spop %5409  ;;  %v320_v22 = vrot.slane %v319_v19, 2 }
  0xd8   :  { %v361_v23 = vadd.s32 %v360_v20, %v358_v16  ;;  %s5867_s12 = sadd.s32 %s5410_s11, %s5863_s0  ;;  %s5412_s13 = spop %5411 }
  0xd9   :  { %v340_v24 = vrot.slane %v339_v21, 4  ;;  %s370_s14 = scalar_select %p369_p0, 15, 0  ;;  %v321_v25 = vadd.s32 %v320_v22, %v319_v19 }
  0xda   :  { %v362_v26 = vrot.slane %v361_v23, 4  ;;  %p372_p1 = scmp.ge.s32.totalorder %s5867_s12, 50  ;;  %s5871_s15 = sadd.s32 %s5412_s13, %s5867_s12 }
  0xdb   :  { %p373_p2 = scmp.eq.s32.totalorder %s370_s14, 0  ;;  %v322_v27 = vrot.slane %v321_v25, 1  ;;  %v341_v28 = vadd.s32 %v340_v24, %v339_v21  ;;  %p379_p4 = scmp.ge.s32.totalorder %s5871_s15, 50 }
  0xdc   :  { %v363_v29 = vadd.s32 %v362_v26, %v361_v23 }
  0xdd   :  { %p5873_p3 = pnand %p373_p2, %p372_p1  ;;  %v323_v30 = vadd.s32 %v322_v27, %v321_v25  ;;  %v342_v31 = vrot.slane %v341_v28, 2 }
  0xde   :  { %v364_v32 = vrot.slane %v363_v29, 2 }
  0xdf   :  { %s7045_s14 = smov (!%p5873_p3, %s370_s14), 14  ;;  %5431 = vpush %v323_v30  ;;  %v343_v33 = vadd.s32 %v342_v31, %v341_v28  ;;  %s7047_s0 = smov (%p5873_p3, %s5863_s0), 0 }
  0xe0   :  { %v365_v34 = vadd.s32 %v364_v32, %v363_v29  ;;  %p380_p5 = scmp.eq.s32.totalorder %s7045_s14, 0  ;;  %s5414_s17 = spop %5413 }
  0xe1   :  { %v344_v35 = vrot.slane %v343_v33, 1  ;;  %s385_s18 = sadd.s32 %s5414_s17, %s5871_s15 }
  0xe2   :  { %v366_v36 = vrot.slane %v365_v34, 1  ;;  %p381_p6 = pnand %p380_p5, %p379_p4  ;;  %p386_p7 = scmp.ge.s32.totalorder %s385_s18, 50 }
  0xe3   :  { %v345_v37 = vadd.s32 %v344_v35, %v343_v33 }
  0xe4   :  { %v367_v38 = vadd.s32 %v366_v36, %v365_v34  ;;  %s7049_s14 = smov (!%p381_p6, %s7045_s14), 13  ;;  %s7051_s0 = smov (!%p381_p6, %s7047_s0), %s5867_s12 }
  0xe5   :  { %5433 = vpush %v345_v37  ;;  %p387_p8 = scmp.eq.s32.totalorder %s7049_s14, 0 }
  0xe6   :  { %5435 = vpush %v367_v38  ;;  %s5416_s19 = spop %5415 }
  0xe7   :  { %s392_s20 = sadd.s32 %s5416_s19, %s385_s18  ;;  %p388_p9 = pnand %p387_p8, %p386_p7 }
  0xe8   :  { %p393_p10 = scmp.ge.s32.totalorder %s392_s20, 50  ;;  %s5418_s21 = spop %5417 }
  0xe9   :  { %s7053_s14 = smov (!%p388_p9, %s7049_s14), 12  ;;  %s7055_s0 = smov (!%p388_p9, %s7051_s0), %s5871_s15 }
  0xea   :  { %p394_p11 = scmp.eq.s32.totalorder %s7053_s14, 0  ;;  %s399_s22 = sadd.s32 %s5418_s21, %s392_s20 }
  0xeb   :  { %p400_p13 = scmp.ge.s32.totalorder %s399_s22, 50 }
  0xec   :  { %p395_p12 = pnand %p394_p11, %p393_p10 }
  0xee   :  { %s7057_s14 = smov (!%p395_p12, %s7053_s14), 11  ;;  %s7059_s0 = smov (!%p395_p12, %s7055_s0), %s385_s18 }
  0xef   :  { %p401_p0 = scmp.eq.s32.totalorder %s7057_s14, 0 }
  0xf0   :  { %s5420_s23 = spop %5419 }
  0xf1   :  { %s406_s24 = sadd.s32 %s5420_s23, %s399_s22  ;;  %p402_p1 = pnand %p401_p0, %p400_p13 }
  0xf2   :  { %p407_p2 = scmp.ge.s32.totalorder %s406_s24, 50 }
  0xf3   :  { %s7061_s14 = smov (!%p402_p1, %s7057_s14), 10  ;;  %s7063_s0 = smov (!%p402_p1, %s7059_s0), %s392_s20 }
  0xf4   :  { %p408_p3 = scmp.eq.s32.totalorder %s7061_s14, 0 }
  0xf6   :  { %s5422_s25 = spop %5421  ;;  %p409_p4 = pnand %p408_p3, %p407_p2 }
  0xf7   :  { %s413_s26 = sadd.s32 %s5422_s25, %s406_s24  ;;  %s5424_s27 = spop %5423 }
  0xf8   :  { %p414_p5 = scmp.ge.s32.totalorder %s413_s26, 50  ;;  %s7065_s14 = smov (!%p409_p4, %s7061_s14), 9 }
  0xf9   :  { %s7067_s0 = smov (!%p409_p4, %s7063_s0), %s399_s22  ;;  %p415_p6 = scmp.eq.s32.totalorder %s7065_s14, 0 }
  0xfa   :  { %s420_s28 = sadd.s32 %s5424_s27, %s413_s26 }
  0xfb   :  { %p416_p7 = pnand %p415_p6, %p414_p5  ;;  %p421_p8 = scmp.ge.s32.totalorder %s420_s28, 50 }
  0xfd   :  { %s7069_s14 = smov (!%p416_p7, %s7065_s14), 8  ;;  %s7071_s0 = smov (!%p416_p7, %s7067_s0), %s406_s24 }
  0xfe   :  { %p422_p9 = scmp.eq.s32.totalorder %s7069_s14, 0 }
 0x100   :  { %s5426_s29 = spop %5425  ;;  %p423_p10 = pnand %p422_p9, %p421_p8 }
 0x101   :  { %s427_s30 = sadd.s32 %s5426_s29, %s420_s28 }
 0x102   :  { %p428_p11 = scmp.ge.s32.totalorder %s427_s30, 50  ;;  %s7073_s14 = smov (!%p423_p10, %s7069_s14), 7 }
 0x103   :  { %s7075_s0 = smov (!%p423_p10, %s7071_s0), %s413_s26  ;;  %p429_p12 = scmp.eq.s32.totalorder %s7073_s14, 0 }
 0x105   :  { %p430_p13 = pnand %p429_p12, %p428_p11 }
 0x106   :  { %s5428_s2 = spop %5427 }
 0x107   :  { %s434_s3 = sadd.s32 %s5428_s2, %s427_s30  ;;  %s5430_s4 = spop %5429 }
 0x108   :  { %p435_p0 = scmp.ge.s32.totalorder %s434_s3, 50  ;;  %s7077_s14 = smov (!%p430_p13, %s7073_s14), 6 }
 0x109   :  { %s7079_s0 = smov (!%p430_p13, %s7075_s0), %s420_s28  ;;  %p436_p1 = scmp.eq.s32.totalorder %s7077_s14, 0 }
 0x10a   :  { %s441_s5 = sadd.s32 %s5430_s4, %s434_s3 }
 0x10b   :  { %p437_p2 = pnand %p436_p1, %p435_p0  ;;  %p442_p3 = scmp.ge.s32.totalorder %s441_s5, 50 }
 0x10d   :  { %s7081_s14 = smov (!%p437_p2, %s7077_s14), 5  ;;  %s7083_s0 = smov (!%p437_p2, %s7079_s0), %s427_s30 }
 0x10e   :  { %p443_p4 = scmp.eq.s32.totalorder %s7081_s14, 0 }
 0x110   :  { %s5432_s6 = spop %5431  ;;  %p444_p5 = pnand %p443_p4, %p442_p3 }
 0x111   :  { %s448_s7 = sadd.s32 %s5432_s6, %s441_s5 }
 0x112   :  { %p449_p6 = scmp.ge.s32.totalorder %s448_s7, 50  ;;  %s7085_s14 = smov (!%p444_p5, %s7081_s14), 4 }
 0x113   :  { %s7087_s0 = smov (!%p444_p5, %s7083_s0), %s434_s3  ;;  %p450_p7 = scmp.eq.s32.totalorder %s7085_s14, 0 }
 0x115   :  { %p451_p8 = pnand %p450_p7, %p449_p6 }
 0x116   :  { %s5434_s8 = spop %5433 }
 0x117   :  { %s455_s9 = sadd.s32 %s5434_s8, %s448_s7  ;;  %s5436_s10 = spop %5435 }
 0x118   :  { %s7089_s14 = smov (!%p451_p8, %s7085_s14), 3  ;;  %s7091_s0 = smov (!%p451_p8, %s7087_s0), %s441_s5 }
 0x119   :  { %p456_p9 = scmp.ge.s32.totalorder %s455_s9, 50  ;;  %p457_p10 = scmp.eq.s32.totalorder %s7089_s14, 0 }
 0x11a   :  { %s462_s11 = sadd.s32 %s5436_s10, %s455_s9 }
 0x11b   :  { %p458_p11 = pnand %p457_p10, %p456_p9  ;;  %p463_p12 = scmp.ge.s32.totalorder %s462_s11, 50 }
 0x11d   :  { %s7093_s14 = smov (!%p458_p11, %s7089_s14), 2  ;;  %s7095_s0 = smov (!%p458_p11, %s7091_s0), %s448_s7 }
 0x11e   :  { %p464_p13 = scmp.eq.s32.totalorder %s7093_s14, 0 }
 0x120   :  { %p465_p0 = pnand %p464_p13, %p463_p12 }
 0x122   :  { %s7097_s14 = smov (!%p465_p0, %s7093_s14), 1  ;;  %s7099_s0 = smov (!%p465_p0, %s7095_s0), %s455_s9 }
 0x123   :  { %p469_p1 = scmp.eq.s32.totalorder %s7097_s14, 0  ;;  %s5889_s12 = sshll.u32 %s7097_s14, 28 }
 0x124   :  { %s498_s13 = sor.u32 234881024, %s5889_s12  ;;  %s474_s15 = sor.u32 251658240, %s5889_s12 }
 0x125   :  { %s7101_s11 = smov (!%p469_p1, %s462_s11), %s7099_s0  ;;  %v499_v39 = vstv %s498_s13  ;;  %v475_v40 = vstv %s474_s15  ;;  %s522_s16 = sor.u32 218103808, %s5889_s12 }
 0x126   :  { %vm500_vm3 = vcmp.eq.s32.totalorder %v5887_v10, %v499_v39  ;;  %vm476_vm4 = vcmp.eq.s32.totalorder %v5887_v10, %v475_v40  ;;  %v523_v43 = vstv %s522_s16  ;;  %s570_s14 = sor.u32 184549376, %s5889_s12  ;;  %s546_s0 = sor.u32 201326592, %s5889_s12 }
 0x127   :  { %v501_v41 = vsel %vm500_vm3, 1, %v5794_v11  ;;  %v477_v42 = vsel %vm476_vm4, 1, %v5794_v11  ;;  %vm524_vm5 = vcmp.eq.s32.totalorder %v5887_v10, %v523_v43  ;;  %v571_v50 = vstv %s570_s14  ;;  %s594_s17 = sor.u32 167772160, %s5889_s12  ;;  %s642_s18 = sor.u32 134217728, %s5889_s12 }
 0x128   :  { %v502_v44 = vsel %vm40_vm2, %v501_v41, 0  ;;  %v478_v45 = vsel %vm40_vm2, %v477_v42, 0  ;;  %v525_v49 = vsel %vm524_vm5, 1, %v5794_v11  ;;  %v547_v54 = vstv %s546_s0  ;;  %s618_s19 = sor.u32 150994944, %s5889_s12  ;;  %s666_s20 = sor.u32 117440512, %s5889_s12 }
 0x129   :  { %v504_v46 = vshrl.u32 %v502_v44, 16  ;;  %v480_v47 = vshrl.u32 %v478_v45, 16  ;;  %v479_v48 = vand.u32 65535, %v478_v45  ;;  %v526_v55 = vsel %vm40_vm2, %v525_v49, 0  ;;  %s714_s21 = sor.u32 83886080, %s5889_s12  ;;  %s690_s22 = sor.u32 100663296, %s5889_s12 }
 0x12a   :  { %vm572_vm6 = vcmp.eq.s32.totalorder %v5887_v10, %v571_v50  ;;  %vm548_vm7 = vcmp.eq.s32.totalorder %v5887_v10, %v547_v54  ;;  %v527_v56 = vand.u32 65535, %v526_v55  ;;  %v503_v57 = vand.u32 65535, %v502_v44  ;;  %s738_s23 = sor.u32 67108864, %s5889_s12  ;;  %s786_s24 = sor.u32 33554432, %s5889_s12 }
 0x12b   :  { %v506_v51 = vcvt.s32.f32 %v504_v46  ;;  %v482_v52 = vcvt.s32.f32 %v480_v47  ;;  %v481_v53 = vcvt.s32.f32 %v479_v48  ;;  %v528_v58 = vshrl.u32 %v526_v55, 16  ;;  %s762_s25 = sor.u32 50331648, %s5889_s12  ;;  %s810_s26 = sor.u32 16777216, %s5889_s12 }
 0x12c   :  { %v573_v59 = vsel %vm572_vm6, 1, %v5794_v11  ;;  %v549_v60 = vsel %vm548_vm7, 1, %v5794_v11  ;;  %v529_v61 = vcvt.s32.f32 %v527_v56  ;;  %v505_v62 = vcvt.s32.f32 %v503_v57  ;;  %s5954_s27 = ssub.s32 50, %s7101_s11 }
 0x12d   :  { %509 = vadd.xlane.f32.xlu2 %v506_v51  ;;  %485 = vadd.xlane.f32.xlu0 %v482_v52  ;;  %v595_v63 = vstv %s594_s17  ;;  %v530_v0 = vcvt.s32.f32 %v528_v58  ;;  %v574_v1 = vsel %vm40_vm2, %v573_v59, 0  ;;  %v550_v2 = vsel %vm40_vm2, %v549_v60, 0 }
 0x12e   :  { %483 = vadd.xlane.f32.xlu1 %v481_v53  ;;  %vm596_vm8 = vcmp.eq.s32.totalorder %v5887_v10, %v595_v63  ;;  %v576_v3 = vshrl.u32 %v574_v1, 16  ;;  %v552_v5 = vshrl.u32 %v550_v2, 16  ;;  %v551_v6 = vand.u32 65535, %v550_v2 }
 0x12f   :  { %v597_v7 = vsel %vm596_vm8, 1, %v5794_v11  ;;  %v643_v13 = vstv %s642_s18  ;;  %v619_v14 = vstv %s618_s19  ;;  %v575_v18 = vand.u32 65535, %v574_v1 }
 0x130   :  { %v578_v8 = vcvt.s32.f32 %v576_v3  ;;  %v554_v12 = vcvt.s32.f32 %v552_v5  ;;  %v553_v15 = vcvt.s32.f32 %v551_v6  ;;  %v598_v16 = vsel %vm40_vm2, %v597_v7, 0 }
 0x131   :  { %vm644_vm9 = vcmp.eq.s32.totalorder %v5887_v10, %v643_v13  ;;  %vm620_vm10 = vcmp.eq.s32.totalorder %v5887_v10, %v619_v14  ;;  %v599_v17 = vand.u32 65535, %v598_v16  ;;  %v600_v19 = vshrl.u32 %v598_v16, 16 }
 0x132   :  { %v645_v20 = vsel %vm644_vm9, 1, %v5794_v11  ;;  %v621_v21 = vsel %vm620_vm10, 1, %v5794_v11  ;;  %v577_v23 = vcvt.s32.f32 %v575_v18  ;;  %v667_v24 = vstv %s666_s20 }
 0x133   :  { %v601_v22 = vcvt.s32.f32 %v599_v17  ;;  %v602_v25 = vcvt.s32.f32 %v600_v19  ;;  %v646_v26 = vsel %vm40_vm2, %v645_v20, 0  ;;  %v622_v27 = vsel %vm40_vm2, %v621_v21, 0 }
 0x134   :  { %vm668_vm11 = vcmp.eq.s32.totalorder %v5887_v10, %v667_v24  ;;  %v648_v28 = vshrl.u32 %v646_v26, 16  ;;  %v624_v29 = vshrl.u32 %v622_v27, 16  ;;  %v623_v30 = vand.u32 65535, %v622_v27 }
 0x135   :  { %531 = vadd.xlane.f32.xlu2 %v529_v61  ;;  %507 = vadd.xlane.f32.xlu0 %v505_v62  ;;  %v669_v31 = vsel %vm668_vm11, 1, %v5794_v11  ;;  %v715_v34 = vstv %s714_s21  ;;  %v691_v35 = vstv %s690_s22  ;;  %v647_v39 = vand.u32 65535, %v646_v26 }
 0x136   :  { %533 = vadd.xlane.f32.xlu1 %v530_v0  ;;  %v650_v32 = vcvt.s32.f32 %v648_v28  ;;  %v626_v33 = vcvt.s32.f32 %v624_v29  ;;  %v625_v36 = vcvt.s32.f32 %v623_v30  ;;  %v670_v37 = vsel %vm40_vm2, %v669_v31, 0 }
 0x137   :  { %vm716_vm12 = vcmp.eq.s32.totalorder %v5887_v10, %v715_v34  ;;  %vm692_vm13 = vcmp.eq.s32.totalorder %v5887_v10, %v691_v35  ;;  %v671_v38 = vand.u32 65535, %v670_v37  ;;  %v672_v40 = vshrl.u32 %v670_v37, 16 }
 0x138   :  { %v717_v41 = vsel %vm716_vm12, 1, %v5794_v11  ;;  %v693_v42 = vsel %vm692_vm13, 1, %v5794_v11  ;;  %v649_v44 = vcvt.s32.f32 %v647_v39  ;;  %v739_v45 = vstv %s738_s23 }
 0x139   :  { %v673_v43 = vcvt.s32.f32 %v671_v38  ;;  %v674_v46 = vcvt.s32.f32 %v672_v40  ;;  %v718_v47 = vsel %vm40_vm2, %v717_v41, 0  ;;  %v694_v48 = vsel %vm40_vm2, %v693_v42, 0 }
 0x13a   :  { %vm740_vm14 = vcmp.eq.s32.totalorder %v5887_v10, %v739_v45  ;;  %v720_v49 = vshrl.u32 %v718_v47, 16  ;;  %v696_v50 = vshrl.u32 %v694_v48, 16  ;;  %v695_v51 = vand.u32 65535, %v694_v48 }
 0x13b   :  { %v741_v52 = vsel %vm740_vm14, 1, %v5794_v11  ;;  %v787_v55 = vstv %s786_s24  ;;  %v763_v56 = vstv %s762_s25  ;;  %v719_v60 = vand.u32 65535, %v718_v47 }
 0x13c   :  { %v722_v53 = vcvt.s32.f32 %v720_v49  ;;  %v698_v54 = vcvt.s32.f32 %v696_v50  ;;  %v697_v57 = vcvt.s32.f32 %v695_v51  ;;  %v742_v58 = vsel %vm40_vm2, %v741_v52, 0 }
 0x13d   :  { %581 = vadd.xlane.f32.xlu2 %v578_v8  ;;  %557 = vadd.xlane.f32.xlu0 %v554_v12  ;;  %vm788_vm15 = vcmp.eq.s32.totalorder %v5887_v10, %v787_v55  ;;  %vm764_vm0 = vcmp.eq.s32.totalorder %v5887_v10, %v763_v56  ;;  %v743_v59 = vand.u32 65535, %v742_v58  ;;  %v744_v61 = vshrl.u32 %v742_v58, 16 }
 0x13e   :  { %555 = vadd.xlane.f32.xlu1 %v553_v15  ;;  %v789_v62 = vsel %vm788_vm15, 1, %v5794_v11  ;;  %v765_v63 = vsel %vm764_vm0, 1, %v5794_v11  ;;  %v721_v1 = vcvt.s32.f32 %v719_v60  ;;  %v811_v2 = vstv %s810_s26 }
 0x13f   :  { %v745_v0 = vcvt.s32.f32 %v743_v59  ;;  %v746_v3 = vcvt.s32.f32 %v744_v61  ;;  %v790_v5 = vsel %vm40_vm2, %v789_v62, 0  ;;  %v766_v6 = vsel %vm40_vm2, %v765_v63, 0 }
 0x140   :  { %vm812_vm1 = vcmp.eq.s32.totalorder %v5887_v10, %v811_v2  ;;  %v792_v7 = vshrl.u32 %v790_v5, 16  ;;  %v768_v8 = vshrl.u32 %v766_v6, 16  ;;  %v767_v12 = vand.u32 65535, %v766_v6 }
 0x141   :  { %v813_v13 = vsel %vm812_vm1, 1, %v5794_v11  ;;  %v791_v19 = vand.u32 65535, %v790_v5 }
 0x142   :  { %v794_v14 = vcvt.s32.f32 %v792_v7  ;;  %v770_v15 = vcvt.s32.f32 %v768_v8  ;;  %v769_v16 = vcvt.s32.f32 %v767_v12  ;;  %v814_v17 = vsel %vm40_vm2, %v813_v13, 0 }
 0x143   :  { %v815_v18 = vand.u32 65535, %v814_v17  ;;  %v816_v20 = vshrl.u32 %v814_v17, 16 }
 0x145   :  { %603 = vadd.xlane.f32.xlu2 %v601_v22  ;;  %579 = vadd.xlane.f32.xlu0 %v577_v23  ;;  %v817_v21 = vcvt.s32.f32 %v815_v18  ;;  %v793_v22 = vcvt.s32.f32 %v791_v19  ;;  %v818_v23 = vcvt.s32.f32 %v816_v20 }
 0x146   :  { %605 = vadd.xlane.f32.xlu1 %v602_v25 }
 0x14d   :  { %653 = vadd.xlane.f32.xlu2 %v650_v32  ;;  %629 = vadd.xlane.f32.xlu0 %v626_v33 }
 0x14e   :  { %627 = vadd.xlane.f32.xlu1 %v625_v36 }
 0x155   :  { %675 = vadd.xlane.f32.xlu2 %v673_v43  ;;  %651 = vadd.xlane.f32.xlu0 %v649_v44 }
 0x156   :  { %677 = vadd.xlane.f32.xlu1 %v674_v46 }
 0x15d   :  { %725 = vadd.xlane.f32.xlu2 %v722_v53  ;;  %701 = vadd.xlane.f32.xlu0 %v698_v54 }
 0x15e   :  { %699 = vadd.xlane.f32.xlu1 %v697_v57 }
 0x165   :  { %747 = vadd.xlane.f32.xlu2 %v745_v0  ;;  %723 = vadd.xlane.f32.xlu0 %v721_v1 }
 0x166   :  { %749 = vadd.xlane.f32.xlu1 %v746_v3 }
 0x16d   :  { %797 = vadd.xlane.f32.xlu2 %v794_v14  ;;  %773 = vadd.xlane.f32.xlu0 %v770_v15 }
 0x16e   :  { %771 = vadd.xlane.f32.xlu1 %v769_v16 }
 0x175   :  { %819 = vadd.xlane.f32.xlu2 %v817_v21  ;;  %795 = vadd.xlane.f32.xlu0 %v793_v22 }
 0x176   :  { %821 = vadd.xlane.f32.xlu1 %v818_v23 }
 0x1a0   :  { %v510_v10 = vpop.xlane.xlu2 %509  ;;  %v486_v24 = vpop.xlane.xlu0 %485 }
 0x1a1   :  { %v488_v25 = vcvt.f32.s32 %v486_v24  ;;  %v484_v26 = vpop.xlane.xlu1 %483  ;;  %v512_v29 = vcvt.f32.s32 %v510_v10 }
 0x1a2   :  { %v487_v28 = vcvt.f32.s32 %v484_v26 }
 0x1a3   :  { %v489_v27 = vshll.u32 %v488_v25, 16  ;;  %v513_v34 = vshll.u32 %v512_v29, 16 }
 0x1a5   :  { %v490_v30 = vadd.s32 %v489_v27, %v487_v28 }
 0x1a7   :  { %v491_v31 = vrot.slane %v490_v30, 4 }
 0x1a8   :  { %v532_v32 = vpop.xlane.xlu2 %531  ;;  %v508_v33 = vpop.xlane.xlu0 %507 }
 0x1a9   :  { %v511_v35 = vcvt.f32.s32 %v508_v33  ;;  %v534_v36 = vpop.xlane.xlu1 %533  ;;  %v492_v37 = vadd.s32 %v491_v31, %v490_v30  ;;  %v535_v41 = vcvt.f32.s32 %v532_v32 }
 0x1aa   :  { %v536_v38 = vcvt.f32.s32 %v534_v36 }
 0x1ab   :  { %v514_v39 = vadd.s32 %v513_v34, %v511_v35  ;;  %v493_v40 = vrot.slane %v492_v37, 2 }
 0x1ac   :  { %v537_v42 = vshll.u32 %v536_v38, 16 }
 0x1ad   :  { %v515_v43 = vrot.slane %v514_v39, 4  ;;  %v494_v44 = vadd.s32 %v493_v40, %v492_v37 }
 0x1ae   :  { %v538_v45 = vadd.s32 %v537_v42, %v535_v41 }
 0x1af   :  { %v495_v46 = vrot.slane %v494_v44, 1  ;;  %v516_v47 = vadd.s32 %v515_v43, %v514_v39 }
 0x1b0   :  { %v539_v48 = vrot.slane %v538_v45, 4  ;;  %v582_v49 = vpop.xlane.xlu2 %581  ;;  %v558_v50 = vpop.xlane.xlu0 %557 }
 0x1b1   :  { %v560_v51 = vcvt.f32.s32 %v558_v50  ;;  %v556_v52 = vpop.xlane.xlu1 %555  ;;  %v496_v53 = vadd.s32 %v495_v46, %v494_v44  ;;  %v517_v54 = vrot.slane %v516_v47, 2  ;;  %v584_v60 = vcvt.f32.s32 %v582_v49 }
 0x1b2   :  { %v540_v55 = vadd.s32 %v539_v48, %v538_v45  ;;  %v559_v57 = vcvt.f32.s32 %v556_v52 }
 0x1b3   :  { %v561_v56 = vshll.u32 %v560_v51, 16  ;;  %5437 = vpush %v496_v53  ;;  %v518_v58 = vadd.s32 %v517_v54, %v516_v47  ;;  %v585_v6 = vshll.u32 %v584_v60, 16 }
 0x1b4   :  { %v541_v59 = vrot.slane %v540_v55, 2 }
 0x1b5   :  { %v562_v61 = vadd.s32 %v561_v56, %v559_v57  ;;  %v519_v62 = vrot.slane %v518_v58, 1 }
 0x1b6   :  { %v542_v63 = vadd.s32 %v541_v59, %v540_v55 }
 0x1b7   :  { %v563_v0 = vrot.slane %v562_v61, 4  ;;  %v520_v1 = vadd.s32 %v519_v62, %v518_v58 }
 0x1b8   :  { %v604_v2 = vpop.xlane.xlu2 %603  ;;  %v580_v3 = vpop.xlane.xlu0 %579  ;;  %v543_v5 = vrot.slane %v542_v63, 1 }
 0x1b9   :  { %v583_v7 = vcvt.f32.s32 %v580_v3  ;;  %v606_v8 = vpop.xlane.xlu1 %605  ;;  %5439 = vpush %v520_v1  ;;  %v564_v12 = vadd.s32 %v563_v0, %v562_v61  ;;  %v607_v17 = vcvt.f32.s32 %v604_v2 }
 0x1ba   :  { %v608_v13 = vcvt.f32.s32 %v606_v8  ;;  %v544_v14 = vadd.s32 %v543_v5, %v542_v63 }
 0x1bb   :  { %v586_v15 = vadd.s32 %v585_v6, %v583_v7  ;;  %v565_v16 = vrot.slane %v564_v12, 2 }
 0x1bc   :  { %v609_v18 = vshll.u32 %v608_v13, 16  ;;  %5441 = vpush %v544_v14 }
 0x1bd   :  { %v587_v19 = vrot.slane %v586_v15, 4  ;;  %v566_v20 = vadd.s32 %v565_v16, %v564_v12 }
 0x1be   :  { %v610_v21 = vadd.s32 %v609_v18, %v607_v17 }
 0x1bf   :  { %v567_v22 = vrot.slane %v566_v20, 1  ;;  %v588_v23 = vadd.s32 %v587_v19, %v586_v15 }
 0x1c0   :  { %v611_v10 = vrot.slane %v610_v21, 4  ;;  %v654_v24 = vpop.xlane.xlu2 %653  ;;  %v630_v25 = vpop.xlane.xlu0 %629 }
 0x1c1   :  { %v632_v26 = vcvt.f32.s32 %v630_v25  ;;  %v628_v27 = vpop.xlane.xlu1 %627  ;;  %v568_v28 = vadd.s32 %v567_v22, %v566_v20  ;;  %v589_v29 = vrot.slane %v588_v23, 2  ;;  %v656_v35 = vcvt.f32.s32 %v654_v24 }
 0x1c2   :  { %v612_v30 = vadd.s32 %v611_v10, %v610_v21  ;;  %v631_v32 = vcvt.f32.s32 %v628_v27 }
 0x1c3   :  { %v633_v31 = vshll.u32 %v632_v26, 16  ;;  %5443 = vpush %v568_v28  ;;  %v590_v33 = vadd.s32 %v589_v29, %v588_v23  ;;  %v657_v44 = vshll.u32 %v656_v35, 16 }
 0x1c4   :  { %v613_v34 = vrot.slane %v612_v30, 2 }
 0x1c5   :  { %v634_v36 = vadd.s32 %v633_v31, %v631_v32  ;;  %v591_v37 = vrot.slane %v590_v33, 1 }
 0x1c6   :  { %v614_v38 = vadd.s32 %v613_v34, %v612_v30 }
 0x1c7   :  { %v635_v39 = vrot.slane %v634_v36, 4  ;;  %v592_v40 = vadd.s32 %v591_v37, %v590_v33 }
 0x1c8   :  { %v676_v41 = vpop.xlane.xlu2 %675  ;;  %v652_v42 = vpop.xlane.xlu0 %651  ;;  %v615_v43 = vrot.slane %v614_v38, 1 }
 0x1c9   :  { %v655_v45 = vcvt.f32.s32 %v652_v42  ;;  %v678_v46 = vpop.xlane.xlu1 %677  ;;  %5445 = vpush %v592_v40  ;;  %v636_v47 = vadd.s32 %v635_v39, %v634_v36  ;;  %v679_v52 = vcvt.f32.s32 %v676_v41 }
 0x1ca   :  { %v680_v48 = vcvt.f32.s32 %v678_v46  ;;  %v616_v49 = vadd.s32 %v615_v43, %v614_v38 }
 0x1cb   :  { %v658_v50 = vadd.s32 %v657_v44, %v655_v45  ;;  %v637_v51 = vrot.slane %v636_v47, 2 }
 0x1cc   :  { %v681_v53 = vshll.u32 %v680_v48, 16  ;;  %5447 = vpush %v616_v49 }
 0x1cd   :  { %v659_v54 = vrot.slane %v658_v50, 4  ;;  %v638_v55 = vadd.s32 %v637_v51, %v636_v47 }
 0x1ce   :  { %v682_v56 = vadd.s32 %v681_v53, %v679_v52 }
 0x1cf   :  { %v639_v57 = vrot.slane %v638_v55, 1  ;;  %v660_v58 = vadd.s32 %v659_v54, %v658_v50 }
 0x1d0   :  { %v683_v59 = vrot.slane %v682_v56, 4  ;;  %v726_v60 = vpop.xlane.xlu2 %725  ;;  %v702_v61 = vpop.xlane.xlu0 %701 }
 0x1d1   :  { %v704_v62 = vcvt.f32.s32 %v702_v61  ;;  %v700_v63 = vpop.xlane.xlu1 %699  ;;  %v640_v0 = vadd.s32 %v639_v57, %v638_v55  ;;  %v661_v1 = vrot.slane %v660_v58, 2  ;;  %v728_v8 = vcvt.f32.s32 %v726_v60 }
 0x1d2   :  { %v684_v2 = vadd.s32 %v683_v59, %v682_v56  ;;  %v703_v5 = vcvt.f32.s32 %v700_v63 }
 0x1d3   :  { %v705_v3 = vshll.u32 %v704_v62, 16  ;;  %5449 = vpush %v640_v0  ;;  %v662_v6 = vadd.s32 %v661_v1, %v660_v58  ;;  %v729_v20 = vshll.u32 %v728_v8, 16 }
 0x1d4   :  { %v685_v7 = vrot.slane %v684_v2, 2 }
 0x1d5   :  { %v706_v12 = vadd.s32 %v705_v3, %v703_v5  ;;  %v663_v13 = vrot.slane %v662_v6, 1 }
 0x1d6   :  { %v686_v14 = vadd.s32 %v685_v7, %v684_v2 }
 0x1d7   :  { %v707_v15 = vrot.slane %v706_v12, 4  ;;  %v664_v16 = vadd.s32 %v663_v13, %v662_v6 }
 0x1d8   :  { %v748_v17 = vpop.xlane.xlu2 %747  ;;  %v724_v18 = vpop.xlane.xlu0 %723  ;;  %v687_v19 = vrot.slane %v686_v14, 1 }
 0x1d9   :  { %v727_v21 = vcvt.f32.s32 %v724_v18  ;;  %v750_v22 = vpop.xlane.xlu1 %749  ;;  %5451 = vpush %v664_v16  ;;  %v708_v23 = vadd.s32 %v707_v15, %v706_v12  ;;  %v751_v27 = vcvt.f32.s32 %v748_v17 }
 0x1da   :  { %v752_v10 = vcvt.f32.s32 %v750_v22  ;;  %v688_v24 = vadd.s32 %v687_v19, %v686_v14 }
 0x1db   :  { %v730_v25 = vadd.s32 %v729_v20, %v727_v21  ;;  %v709_v26 = vrot.slane %v708_v23, 2  ;;  %v6006_v21 = vand.u32 4293918720, %v5813_v9 }
 0x1dc   :  { %v753_v28 = vshll.u32 %v752_v10, 16  ;;  %5453 = vpush %v688_v24 }
 0x1dd   :  { %v731_v29 = vrot.slane %v730_v25, 4  ;;  %v710_v30 = vadd.s32 %v709_v26, %v708_v23 }
 0x1de   :  { %v754_v31 = vadd.s32 %v753_v28, %v751_v27 }
 0x1df   :  { %v711_v32 = vrot.slane %v710_v30, 1  ;;  %v732_v33 = vadd.s32 %v731_v29, %v730_v25 }
 0x1e0   :  { %v755_v34 = vrot.slane %v754_v31, 4  ;;  %v798_v35 = vpop.xlane.xlu2 %797  ;;  %v774_v36 = vpop.xlane.xlu0 %773 }
 0x1e1   :  { %v776_v37 = vcvt.f32.s32 %v774_v36  ;;  %v772_v38 = vpop.xlane.xlu1 %771  ;;  %v712_v39 = vadd.s32 %v711_v32, %v710_v30  ;;  %v733_v40 = vrot.slane %v732_v33, 2  ;;  %v800_v46 = vcvt.f32.s32 %v798_v35 }
 0x1e2   :  { %v756_v41 = vadd.s32 %v755_v34, %v754_v31  ;;  %v775_v43 = vcvt.f32.s32 %v772_v38 }
 0x1e3   :  { %v777_v42 = vshll.u32 %v776_v37, 16  ;;  %5455 = vpush %v712_v39  ;;  %v734_v44 = vadd.s32 %v733_v40, %v732_v33  ;;  %v801_v54 = vshll.u32 %v800_v46, 16 }
 0x1e4   :  { %s5956_s28 = spop %5437  ;;  %v757_v45 = vrot.slane %v756_v41, 2 }
 0x1e5   :  { %v778_v47 = vadd.s32 %v777_v42, %v775_v43  ;;  %p834_p2 = scmp.ge.s32.totalorder %s5956_s28, %s5954_s27  ;;  %v735_v48 = vrot.slane %v734_v44, 1 }
 0x1e6   :  { %v758_v49 = vadd.s32 %v757_v45, %v756_v41 }
 0x1e7   :  { %v779_v50 = vrot.slane %v778_v47, 4  ;;  %v736_v51 = vadd.s32 %v735_v48, %v734_v44  ;;  %s835_s29 = scalar_select %p834_p2, 15, 0 }
 0x1e8   :  { %v796_v52 = vpop.xlane.xlu0 %795  ;;  %v759_v53 = vrot.slane %v758_v49, 1  ;;  %v820_v55 = vpop.xlane.xlu2 %819 }
 0x1e9   :  { %v799_v56 = vcvt.f32.s32 %v796_v52  ;;  %v822_v57 = vpop.xlane.xlu1 %821  ;;  %5457 = vpush %v736_v51  ;;  %v780_v58 = vadd.s32 %v779_v50, %v778_v47  ;;  %v823_v63 = vcvt.f32.s32 %v820_v55  ;;  %p838_p4 = scmp.eq.s32.totalorder %s835_s29, 0 }
 0x1ea   :  { %v824_v59 = vcvt.f32.s32 %v822_v57  ;;  %s5440_s30 = spop %5439  ;;  %v760_v60 = vadd.s32 %v759_v53, %v758_v49 }
 0x1eb   :  { %v802_v61 = vadd.s32 %v801_v54, %v799_v56  ;;  %s5961_s2 = sadd.s32 %s5440_s30, %s5956_s28  ;;  %v781_v62 = vrot.slane %v780_v58, 2 }
 0x1ec   :  { %v825_v0 = vshll.u32 %v824_v59, 16  ;;  %p837_p3 = scmp.ge.s32.totalorder %s5961_s2, %s5954_s27  ;;  %5459 = vpush %v760_v60 }
 0x1ed   :  { %v803_v1 = vrot.slane %v802_v61, 4  ;;  %s5442_s3 = spop %5441  ;;  %v782_v2 = vadd.s32 %v781_v62, %v780_v58 }
 0x1ee   :  { %v826_v3 = vadd.s32 %v825_v0, %v823_v63  ;;  %p5965_p5 = pnand %p838_p4, %p837_p3  ;;  %s5970_s5 = sadd.s32 %s5442_s3, %s5961_s2 }
 0x1ef   :  { %v783_v5 = vrot.slane %v782_v2, 1  ;;  %v804_v6 = vadd.s32 %v803_v1, %v802_v61  ;;  %p844_p6 = scmp.ge.s32.totalorder %s5970_s5, %s5954_s27 }
 0x1f0   :  { %v827_v7 = vrot.slane %v826_v3, 4  ;;  %s7103_s29 = smov (!%p5965_p5, %s835_s29), 14  ;;  %s7105_s28 = smov (%p5965_p5, %s5956_s28), 0 }
 0x1f1   :  { %v784_v8 = vadd.s32 %v783_v5, %v782_v2  ;;  %v805_v12 = vrot.slane %v804_v6, 2  ;;  %p845_p7 = scmp.eq.s32.totalorder %s7103_s29, 0 }
 0x1f2   :  { %v828_v13 = vadd.s32 %v827_v7, %v826_v3 }
 0x1f3   :  { %5461 = vpush %v784_v8  ;;  %v806_v14 = vadd.s32 %v805_v12, %v804_v6  ;;  %p846_p8 = pnand %p845_p7, %p844_p6 }
 0x1f4   :  { %s5444_s6 = spop %5443  ;;  %v829_v15 = vrot.slane %v828_v13, 2 }
 0x1f5   :  { %s850_s7 = sadd.s32 %s5444_s6, %s5970_s5  ;;  %v807_v16 = vrot.slane %v806_v14, 1  ;;  %s7107_s29 = smov (!%p846_p8, %s7103_s29), 13 }
 0x1f6   :  { %v830_v17 = vadd.s32 %v829_v15, %v828_v13  ;;  %s7109_s28 = smov (!%p846_p8, %s7105_s28), %s5961_s2  ;;  %p851_p9 = scmp.ge.s32.totalorder %s850_s7, %s5954_s27 }
 0x1f7   :  { %v808_v18 = vadd.s32 %v807_v16, %v806_v14  ;;  %p852_p10 = scmp.eq.s32.totalorder %s7107_s29, 0 }
 0x1f8   :  { %v831_v19 = vrot.slane %v830_v17, 1 }
 0x1f9   :  { %5463 = vpush %v808_v18  ;;  %p5982_p11 = pnand %p852_p10, %p851_p9 }
 0x1fa   :  { %s5446_s9 = spop %5445  ;;  %v832_v20 = vadd.s32 %v831_v19, %v830_v17 }
 0x1fb   :  { %s857_s10 = sadd.s32 %s5446_s9, %s850_s7  ;;  %s7111_s29 = smov (!%p5982_p11, %s7107_s29), 12 }
 0x1fc   :  { %5465 = vpush %v832_v20  ;;  %s7113_s28 = smov (!%p5982_p11, %s7109_s28), %s5970_s5  ;;  %p858_p12 = scmp.ge.s32.totalorder %s857_s10, %s5954_s27 }
 0x1fd   :  { %p859_p13 = scmp.eq.s32.totalorder %s7111_s29, 0  ;;  %s5448_s11 = spop %5447 }
 0x1fe   :  { %s864_s13 = sadd.s32 %s5448_s11, %s857_s10 }
 0x1ff   :  { %p860_p0 = pnand %p859_p13, %p858_p12  ;;  %p865_p1 = scmp.ge.s32.totalorder %s864_s13, %s5954_s27 }
 0x201   :  { %s7115_s29 = smov (!%p860_p0, %s7111_s29), 11  ;;  %s7117_s28 = smov (!%p860_p0, %s7113_s28), %s850_s7 }
 0x202   :  { %p866_p2 = scmp.eq.s32.totalorder %s7115_s29, 0 }
 0x204   :  { %s5450_s15 = spop %5449  ;;  %p867_p3 = pnand %p866_p2, %p865_p1 }
 0x205   :  { %s871_s16 = sadd.s32 %s5450_s15, %s864_s13 }
 0x206   :  { %p872_p4 = scmp.ge.s32.totalorder %s871_s16, %s5954_s27  ;;  %s7119_s29 = smov (!%p867_p3, %s7115_s29), 10 }
 0x207   :  { %s7121_s28 = smov (!%p867_p3, %s7117_s28), %s857_s10  ;;  %p873_p5 = scmp.eq.s32.totalorder %s7119_s29, 0 }
 0x209   :  { %p874_p6 = pnand %p873_p5, %p872_p4 }
 0x20a   :  { %s5452_s14 = spop %5451 }
 0x20b   :  { %s878_s0 = sadd.s32 %s5452_s14, %s871_s16  ;;  %s7123_s29 = smov (!%p874_p6, %s7119_s29), 9 }
 0x20c   :  { %p879_p7 = scmp.ge.s32.totalorder %s878_s0, %s5954_s27  ;;  %s7125_s28 = smov (!%p874_p6, %s7121_s28), %s864_s13 }
 0x20d   :  { %s5454_s17 = spop %5453  ;;  %p880_p8 = scmp.eq.s32.totalorder %s7123_s29, 0 }
 0x20e   :  { %s885_s18 = sadd.s32 %s5454_s17, %s878_s0 }
 0x20f   :  { %p881_p9 = pnand %p880_p8, %p879_p7  ;;  %p886_p10 = scmp.ge.s32.totalorder %s885_s18, %s5954_s27 }
 0x211   :  { %s7127_s29 = smov (!%p881_p9, %s7123_s29), 8  ;;  %s7129_s28 = smov (!%p881_p9, %s7125_s28), %s871_s16 }
 0x212   :  { %p887_p11 = scmp.eq.s32.totalorder %s7127_s29, 0 }
 0x214   :  { %s5456_s19 = spop %5455  ;;  %p888_p12 = pnand %p887_p11, %p886_p10 }
 0x215   :  { %s892_s20 = sadd.s32 %s5456_s19, %s885_s18 }
 0x216   :  { %p893_p13 = scmp.ge.s32.totalorder %s892_s20, %s5954_s27  ;;  %s7131_s29 = smov (!%p888_p12, %s7127_s29), 7 }
 0x217   :  { %s7133_s28 = smov (!%p888_p12, %s7129_s28), %s878_s0  ;;  %p894_p0 = scmp.eq.s32.totalorder %s7131_s29, 0 }
 0x219   :  { %p895_p1 = pnand %p894_p0, %p893_p13 }
 0x21a   :  { %s5458_s21 = spop %5457 }
 0x21b   :  { %s899_s22 = sadd.s32 %s5458_s21, %s892_s20  ;;  %s7135_s29 = smov (!%p895_p1, %s7131_s29), 6 }
 0x21c   :  { %p900_p2 = scmp.ge.s32.totalorder %s899_s22, %s5954_s27  ;;  %s7137_s28 = smov (!%p895_p1, %s7133_s28), %s885_s18 }
 0x21d   :  { %s5460_s23 = spop %5459  ;;  %p901_p3 = scmp.eq.s32.totalorder %s7135_s29, 0 }
 0x21e   :  { %s906_s24 = sadd.s32 %s5460_s23, %s899_s22 }
 0x21f   :  { %p902_p4 = pnand %p901_p3, %p900_p2  ;;  %p907_p5 = scmp.ge.s32.totalorder %s906_s24, %s5954_s27 }
 0x221   :  { %s7139_s29 = smov (!%p902_p4, %s7135_s29), 5  ;;  %s7141_s28 = smov (!%p902_p4, %s7137_s28), %s892_s20 }
 0x222   :  { %p908_p6 = scmp.eq.s32.totalorder %s7139_s29, 0 }
 0x224   :  { %s5462_s25 = spop %5461  ;;  %p909_p7 = pnand %p908_p6, %p907_p5 }
 0x225   :  { %s913_s26 = sadd.s32 %s5462_s25, %s906_s24 }
 0x226   :  { %p914_p8 = scmp.ge.s32.totalorder %s913_s26, %s5954_s27  ;;  %s7143_s29 = smov (!%p909_p7, %s7139_s29), 4 }
 0x227   :  { %s7145_s28 = smov (!%p909_p7, %s7141_s28), %s899_s22  ;;  %p915_p9 = scmp.eq.s32.totalorder %s7143_s29, 0 }
 0x229   :  { %p916_p10 = pnand %p915_p9, %p914_p8 }
 0x22a   :  { %s5464_s30 = spop %5463 }
 0x22b   :  { %s920_s2 = sadd.s32 %s5464_s30, %s913_s26  ;;  %s7147_s29 = smov (!%p916_p10, %s7143_s29), 3 }
 0x22c   :  { %p921_p11 = scmp.ge.s32.totalorder %s920_s2, %s5954_s27  ;;  %s7149_s28 = smov (!%p916_p10, %s7145_s28), %s906_s24 }
 0x22d   :  { %p922_p12 = scmp.eq.s32.totalorder %s7147_s29, 0  ;;  %s5466_s3 = spop %5465 }
 0x22e   :  { %s927_s4 = sadd.s32 %s5466_s3, %s920_s2 }
 0x22f   :  { %p923_p13 = pnand %p922_p12, %p921_p11  ;;  %p928_p0 = scmp.ge.s32.totalorder %s927_s4, %s5954_s27 }
 0x231   :  { %s7151_s29 = smov (!%p923_p13, %s7147_s29), 2  ;;  %s7153_s28 = smov (!%p923_p13, %s7149_s28), %s913_s26 }
 0x232   :  { %p929_p1 = scmp.eq.s32.totalorder %s7151_s29, 0 }
 0x234   :  { %p930_p2 = pnand %p929_p1, %p928_p0 }
 0x236   :  { %s7155_s29 = smov (!%p930_p2, %s7151_s29), 1  ;;  %s7157_s28 = smov (!%p930_p2, %s7153_s28), %s920_s2 }
 0x237   :  { %p934_p3 = scmp.eq.s32.totalorder %s7155_s29, 0  ;;  %s937_s5 = sshll.u32 %s7155_s29, 24 }
 0x238   :  { %s6003_s6 = sor.u32 %s937_s5, %s5889_s12 }
 0x239   :  { %s7159_s4 = smov (!%p934_p3, %s927_s4), %s7157_s28  ;;  %s964_s7 = sor.u32 14680064, %s6003_s6 }
 0x23a   :  { %s940_s8 = sor.u32 15728640, %s6003_s6  ;;  %v965_v22 = vstv %s964_s7  ;;  %s988_s9 = sor.u32 13631488, %s6003_s6 }
 0x23b   :  { %v941_v23 = vstv %s940_s8  ;;  %vm966_vm3 = vcmp.eq.s32.totalorder %v6006_v21, %v965_v22  ;;  %v989_v10 = vstv %s988_s9  ;;  %s1036_s12 = sor.u32 11534336, %s6003_s6  ;;  %s1012_s28 = sor.u32 12582912, %s6003_s6 }
 0x23c   :  { %vm942_vm4 = vcmp.eq.s32.totalorder %v6006_v21, %v941_v23  ;;  %v967_v24 = vsel %vm966_vm3, 1, %v5794_v11  ;;  %vm990_vm5 = vcmp.eq.s32.totalorder %v6006_v21, %v989_v10  ;;  %v1037_v35 = vstv %s1036_s12  ;;  %s1060_s29 = sor.u32 10485760, %s6003_s6  ;;  %s1108_s10 = sor.u32 8388608, %s6003_s6 }
 0x23d   :  { %v943_v25 = vsel %vm942_vm4, 1, %v5794_v11  ;;  %v968_v26 = vsel %vm40_vm2, %v967_v24, 0  ;;  %v991_v31 = vsel %vm990_vm5, 1, %v5794_v11  ;;  %v1013_v37 = vstv %s1012_s28  ;;  %s1084_s11 = sor.u32 9437184, %s6003_s6  ;;  %s1132_s13 = sor.u32 7340032, %s6003_s6 }
 0x23e   :  { %v944_v27 = vsel %vm40_vm2, %v943_v25, 0  ;;  %v970_v28 = vshrl.u32 %v968_v26, 16  ;;  %v992_v36 = vsel %vm40_vm2, %v991_v31, 0  ;;  %vm1038_vm6 = vcmp.eq.s32.totalorder %v6006_v21, %v1037_v35  ;;  %s1180_s15 = sor.u32 5242880, %s6003_s6  ;;  %s1156_s16 = sor.u32 6291456, %s6003_s6 }
 0x23f   :  { %v946_v29 = vshrl.u32 %v944_v27, 16  ;;  %v945_v30 = vand.u32 65535, %v944_v27  ;;  %vm1014_vm7 = vcmp.eq.s32.totalorder %v6006_v21, %v1013_v37  ;;  %v993_v38 = vand.u32 65535, %v992_v36  ;;  %s1204_s14 = sor.u32 4194304, %s6003_s6  ;;  %s1252_s0 = sor.u32 2097152, %s6003_s6 }
 0x240   :  { %v972_v32 = vcvt.s32.f32 %v970_v28  ;;  %v969_v39 = vand.u32 65535, %v968_v26  ;;  %v994_v40 = vshrl.u32 %v992_v36, 16  ;;  %v1039_v41 = vsel %vm1038_vm6, 1, %v5794_v11  ;;  %s1228_s17 = sor.u32 3145728, %s6003_s6  ;;  %s1276_s18 = sor.u32 1048576, %s6003_s6 }
 0x241   :  { %v948_v33 = vcvt.s32.f32 %v946_v29  ;;  %v947_v34 = vcvt.s32.f32 %v945_v30  ;;  %v1015_v42 = vsel %vm1014_vm7, 1, %v5794_v11  ;;  %v995_v43 = vcvt.s32.f32 %v993_v38  ;;  %s6072_s19 = ssub.s32 %s5954_s27, %s7159_s4 }
 0x242   :  { %975 = vadd.xlane.f32.xlu2 %v972_v32  ;;  %v971_v44 = vcvt.s32.f32 %v969_v39  ;;  %v1061_v45 = vstv %s1060_s29  ;;  %v996_v46 = vcvt.s32.f32 %v994_v40  ;;  %v1040_v47 = vsel %vm40_vm2, %v1039_v41, 0 }
 0x243   :  { %951 = vadd.xlane.f32.xlu0 %v948_v33  ;;  %949 = vadd.xlane.f32.xlu1 %v947_v34  ;;  %v1016_v48 = vsel %vm40_vm2, %v1015_v42, 0  ;;  %vm1062_vm8 = vcmp.eq.s32.totalorder %v6006_v21, %v1061_v45  ;;  %v1042_v49 = vshrl.u32 %v1040_v47, 16  ;;  %v1109_v55 = vstv %s1108_s10 }
 0x244   :  { %v1018_v50 = vshrl.u32 %v1016_v48, 16  ;;  %v1017_v51 = vand.u32 65535, %v1016_v48  ;;  %v1063_v52 = vsel %vm1062_vm8, 1, %v5794_v11  ;;  %v1085_v56 = vstv %s1084_s11 }
 0x245   :  { %v1044_v53 = vcvt.s32.f32 %v1042_v49  ;;  %v1064_v58 = vsel %vm40_vm2, %v1063_v52, 0  ;;  %vm1110_vm9 = vcmp.eq.s32.totalorder %v6006_v21, %v1109_v55  ;;  %vm1086_vm10 = vcmp.eq.s32.totalorder %v6006_v21, %v1085_v56 }
 0x246   :  { %v1020_v54 = vcvt.s32.f32 %v1018_v50  ;;  %v1019_v57 = vcvt.s32.f32 %v1017_v51  ;;  %v1065_v59 = vand.u32 65535, %v1064_v58  ;;  %v1041_v60 = vand.u32 65535, %v1040_v47 }
 0x247   :  { %v1066_v61 = vshrl.u32 %v1064_v58, 16  ;;  %v1111_v62 = vsel %vm1110_vm9, 1, %v5794_v11  ;;  %v1087_v63 = vsel %vm1086_vm10, 1, %v5794_v11  ;;  %v1133_v2 = vstv %s1132_s13 }
 0x248   :  { %v1067_v0 = vcvt.s32.f32 %v1065_v59  ;;  %v1043_v1 = vcvt.s32.f32 %v1041_v60  ;;  %v1112_v5 = vsel %vm40_vm2, %v1111_v62, 0  ;;  %v1088_v6 = vsel %vm40_vm2, %v1087_v63, 0 }
 0x249   :  { %v1068_v3 = vcvt.s32.f32 %v1066_v61  ;;  %vm1134_vm11 = vcmp.eq.s32.totalorder %v6006_v21, %v1133_v2  ;;  %v1114_v7 = vshrl.u32 %v1112_v5, 16  ;;  %v1090_v8 = vshrl.u32 %v1088_v6, 16 }
 0x24a   :  { %997 = vadd.xlane.f32.xlu2 %v995_v43  ;;  %v1089_v12 = vand.u32 65535, %v1088_v6  ;;  %v1135_v13 = vsel %vm1134_vm11, 1, %v5794_v11  ;;  %v1181_v16 = vstv %s1180_s15  ;;  %v1157_v17 = vstv %s1156_s16 }
 0x24b   :  { %973 = vadd.xlane.f32.xlu0 %v971_v44  ;;  %999 = vadd.xlane.f32.xlu1 %v996_v46  ;;  %v1116_v14 = vcvt.s32.f32 %v1114_v7  ;;  %v1092_v15 = vcvt.s32.f32 %v1090_v8  ;;  %v1136_v19 = vsel %vm40_vm2, %v1135_v13, 0  ;;  %vm1182_vm12 = vcmp.eq.s32.totalorder %v6006_v21, %v1181_v16 }
 0x24c   :  { %v1091_v18 = vcvt.s32.f32 %v1089_v12  ;;  %vm1158_vm13 = vcmp.eq.s32.totalorder %v6006_v21, %v1157_v17  ;;  %v1137_v20 = vand.u32 65535, %v1136_v19  ;;  %v1113_v22 = vand.u32 65535, %v1112_v5 }
 0x24d   :  { %v1138_v23 = vshrl.u32 %v1136_v19, 16  ;;  %v1183_v10 = vsel %vm1182_vm12, 1, %v5794_v11  ;;  %v1159_v24 = vsel %vm1158_vm13, 1, %v5794_v11  ;;  %v1205_v27 = vstv %s1204_s14 }
 0x24e   :  { %v1139_v25 = vcvt.s32.f32 %v1137_v20  ;;  %v1115_v26 = vcvt.s32.f32 %v1113_v22  ;;  %v1184_v29 = vsel %vm40_vm2, %v1183_v10, 0  ;;  %v1160_v30 = vsel %vm40_vm2, %v1159_v24, 0 }
 0x24f   :  { %v1140_v28 = vcvt.s32.f32 %v1138_v23  ;;  %vm1206_vm14 = vcmp.eq.s32.totalorder %v6006_v21, %v1205_v27  ;;  %v1186_v31 = vshrl.u32 %v1184_v29, 16  ;;  %v1162_v32 = vshrl.u32 %v1160_v30, 16 }
 0x250   :  { %v1161_v33 = vand.u32 65535, %v1160_v30  ;;  %v1207_v34 = vsel %vm1206_vm14, 1, %v5794_v11  ;;  %v1253_v37 = vstv %s1252_s0  ;;  %v1229_v38 = vstv %s1228_s17 }
 0x251   :  { %v1188_v35 = vcvt.s32.f32 %v1186_v31  ;;  %v1164_v36 = vcvt.s32.f32 %v1162_v32  ;;  %v1208_v40 = vsel %vm40_vm2, %v1207_v34, 0  ;;  %vm1254_vm15 = vcmp.eq.s32.totalorder %v6006_v21, %v1253_v37 }
 0x252   :  { %1047 = vadd.xlane.f32.xlu2 %v1044_v53  ;;  %v1163_v39 = vcvt.s32.f32 %v1161_v33  ;;  %vm1230_vm0 = vcmp.eq.s32.totalorder %v6006_v21, %v1229_v38  ;;  %v1209_v41 = vand.u32 65535, %v1208_v40  ;;  %v1185_v42 = vand.u32 65535, %v1184_v29 }
 0x253   :  { %1023 = vadd.xlane.f32.xlu0 %v1020_v54  ;;  %1021 = vadd.xlane.f32.xlu1 %v1019_v57  ;;  %v1210_v43 = vshrl.u32 %v1208_v40, 16  ;;  %v1255_v44 = vsel %vm1254_vm15, 1, %v5794_v11  ;;  %v1231_v45 = vsel %vm1230_vm0, 1, %v5794_v11  ;;  %v1277_v48 = vstv %s1276_s18 }
 0x254   :  { %v1211_v46 = vcvt.s32.f32 %v1209_v41  ;;  %v1187_v47 = vcvt.s32.f32 %v1185_v42  ;;  %v1256_v50 = vsel %vm40_vm2, %v1255_v44, 0  ;;  %v1232_v51 = vsel %vm40_vm2, %v1231_v45, 0 }
 0x255   :  { %v1212_v49 = vcvt.s32.f32 %v1210_v43  ;;  %vm1278_vm1 = vcmp.eq.s32.totalorder %v6006_v21, %v1277_v48  ;;  %v1258_v52 = vshrl.u32 %v1256_v50, 16  ;;  %v1234_v53 = vshrl.u32 %v1232_v51, 16 }
 0x256   :  { %v1233_v54 = vand.u32 65535, %v1232_v51  ;;  %v1279_v55 = vsel %vm1278_vm1, 1, %v5794_v11  ;;  %v1257_v61 = vand.u32 65535, %v1256_v50 }
 0x257   :  { %v1260_v56 = vcvt.s32.f32 %v1258_v52  ;;  %v1236_v57 = vcvt.s32.f32 %v1234_v53  ;;  %v1280_v59 = vsel %vm40_vm2, %v1279_v55, 0 }
 0x258   :  { %v1235_v58 = vcvt.s32.f32 %v1233_v54  ;;  %v1281_v60 = vand.u32 65535, %v1280_v59  ;;  %v1282_v62 = vshrl.u32 %v1280_v59, 16 }
 0x25a   :  { %1069 = vadd.xlane.f32.xlu2 %v1067_v0  ;;  %v1283_v63 = vcvt.s32.f32 %v1281_v60  ;;  %v1259_v0 = vcvt.s32.f32 %v1257_v61 }
 0x25b   :  { %1045 = vadd.xlane.f32.xlu0 %v1043_v1  ;;  %1071 = vadd.xlane.f32.xlu1 %v1068_v3  ;;  %v1284_v1 = vcvt.s32.f32 %v1282_v62 }
 0x262   :  { %1119 = vadd.xlane.f32.xlu2 %v1116_v14 }
 0x263   :  { %1095 = vadd.xlane.f32.xlu0 %v1092_v15  ;;  %1093 = vadd.xlane.f32.xlu1 %v1091_v18 }
 0x26a   :  { %1141 = vadd.xlane.f32.xlu2 %v1139_v25 }
 0x26b   :  { %1117 = vadd.xlane.f32.xlu0 %v1115_v26  ;;  %1143 = vadd.xlane.f32.xlu1 %v1140_v28 }
 0x272   :  { %1191 = vadd.xlane.f32.xlu2 %v1188_v35 }
 0x273   :  { %1167 = vadd.xlane.f32.xlu0 %v1164_v36  ;;  %1165 = vadd.xlane.f32.xlu1 %v1163_v39 }
 0x27a   :  { %1213 = vadd.xlane.f32.xlu2 %v1211_v46 }
 0x27b   :  { %1189 = vadd.xlane.f32.xlu0 %v1187_v47  ;;  %1215 = vadd.xlane.f32.xlu1 %v1212_v49 }
 0x282   :  { %1263 = vadd.xlane.f32.xlu2 %v1260_v56 }
 0x283   :  { %1239 = vadd.xlane.f32.xlu0 %v1236_v57  ;;  %1237 = vadd.xlane.f32.xlu1 %v1235_v58 }
 0x28a   :  { %1285 = vadd.xlane.f32.xlu2 %v1283_v63 }
 0x28b   :  { %1261 = vadd.xlane.f32.xlu0 %v1259_v0  ;;  %1287 = vadd.xlane.f32.xlu1 %v1284_v1 }
 0x2b5   :  { %v976_v21 = vpop.xlane.xlu2 %975 }
 0x2b6   :  { %v952_v2 = vpop.xlane.xlu0 %951  ;;  %v950_v5 = vpop.xlane.xlu1 %949  ;;  %v978_v8 = vcvt.f32.s32 %v976_v21 }
 0x2b7   :  { %v954_v3 = vcvt.f32.s32 %v952_v2  ;;  %v953_v7 = vcvt.f32.s32 %v950_v5 }
 0x2b8   :  { %v979_v16 = vshll.u32 %v978_v8, 16 }
 0x2b9   :  { %v955_v6 = vshll.u32 %v954_v3, 16 }
 0x2bb   :  { %v956_v12 = vadd.s32 %v955_v6, %v953_v7 }
 0x2bd   :  { %v957_v13 = vrot.slane %v956_v12, 4  ;;  %v998_v14 = vpop.xlane.xlu2 %997 }
 0x2be   :  { %v974_v15 = vpop.xlane.xlu0 %973  ;;  %v1000_v18 = vpop.xlane.xlu1 %999  ;;  %v1001_v10 = vcvt.f32.s32 %v998_v14 }
 0x2bf   :  { %v977_v17 = vcvt.f32.s32 %v974_v15  ;;  %v958_v19 = vadd.s32 %v957_v13, %v956_v12  ;;  %v1002_v20 = vcvt.f32.s32 %v1000_v18 }
 0x2c1   :  { %v980_v22 = vadd.s32 %v979_v16, %v977_v17  ;;  %v959_v23 = vrot.slane %v958_v19, 2  ;;  %v1003_v24 = vshll.u32 %v1002_v20, 16 }
 0x2c3   :  { %v981_v25 = vrot.slane %v980_v22, 4  ;;  %v960_v26 = vadd.s32 %v959_v23, %v958_v19  ;;  %v1004_v27 = vadd.s32 %v1003_v24, %v1001_v10 }
 0x2c5   :  { %v961_v28 = vrot.slane %v960_v26, 1  ;;  %v982_v29 = vadd.s32 %v981_v25, %v980_v22  ;;  %v1005_v30 = vrot.slane %v1004_v27, 4  ;;  %v1048_v31 = vpop.xlane.xlu2 %1047 }
 0x2c6   :  { %v1024_v32 = vpop.xlane.xlu0 %1023  ;;  %v1022_v34 = vpop.xlane.xlu1 %1021  ;;  %v1050_v42 = vcvt.f32.s32 %v1048_v31 }
 0x2c7   :  { %v1026_v33 = vcvt.f32.s32 %v1024_v32  ;;  %v962_v35 = vadd.s32 %v961_v28, %v960_v26  ;;  %v983_v36 = vrot.slane %v982_v29, 2  ;;  %v1006_v37 = vadd.s32 %v1005_v30, %v1004_v27 }
 0x2c8   :  { %v1025_v39 = vcvt.f32.s32 %v1022_v34  ;;  %v1051_v51 = vshll.u32 %v1050_v42, 16 }
 0x2c9   :  { %v1027_v38 = vshll.u32 %v1026_v33, 16  ;;  %5467 = vpush %v962_v35  ;;  %v984_v40 = vadd.s32 %v983_v36, %v982_v29  ;;  %v1007_v41 = vrot.slane %v1006_v37, 2 }
 0x2cb   :  { %v1028_v43 = vadd.s32 %v1027_v38, %v1025_v39  ;;  %v985_v44 = vrot.slane %v984_v40, 1  ;;  %v1008_v45 = vadd.s32 %v1007_v41, %v1006_v37 }
 0x2cd   :  { %v1029_v46 = vrot.slane %v1028_v43, 4  ;;  %v986_v47 = vadd.s32 %v985_v44, %v984_v40  ;;  %v1070_v48 = vpop.xlane.xlu2 %1069  ;;  %v1009_v50 = vrot.slane %v1008_v45, 1 }
 0x2ce   :  { %v1046_v49 = vpop.xlane.xlu0 %1045  ;;  %v1072_v53 = vpop.xlane.xlu1 %1071  ;;  %v1073_v59 = vcvt.f32.s32 %v1070_v48 }
 0x2cf   :  { %v1049_v52 = vcvt.f32.s32 %v1046_v49  ;;  %5469 = vpush %v986_v47  ;;  %v1030_v54 = vadd.s32 %v1029_v46, %v1028_v43  ;;  %v1074_v55 = vcvt.f32.s32 %v1072_v53  ;;  %v1010_v56 = vadd.s32 %v1009_v50, %v1008_v45 }
 0x2d1   :  { %v1052_v57 = vadd.s32 %v1051_v51, %v1049_v52  ;;  %v1031_v58 = vrot.slane %v1030_v54, 2  ;;  %v1075_v60 = vshll.u32 %v1074_v55, 16  ;;  %5471 = vpush %v1010_v56 }
 0x2d3   :  { %v1053_v61 = vrot.slane %v1052_v57, 4  ;;  %v1032_v62 = vadd.s32 %v1031_v58, %v1030_v54  ;;  %v1076_v63 = vadd.s32 %v1075_v60, %v1073_v59 }
 0x2d5   :  { %v1033_v0 = vrot.slane %v1032_v62, 1  ;;  %v1054_v1 = vadd.s32 %v1053_v61, %v1052_v57  ;;  %v1077_v21 = vrot.slane %v1076_v63, 4  ;;  %v1120_v2 = vpop.xlane.xlu2 %1119 }
 0x2d6   :  { %v1096_v3 = vpop.xlane.xlu0 %1095  ;;  %v1094_v6 = vpop.xlane.xlu1 %1093  ;;  %v1122_v17 = vcvt.f32.s32 %v1120_v2 }
 0x2d7   :  { %v1098_v5 = vcvt.f32.s32 %v1096_v3  ;;  %v1034_v7 = vadd.s32 %v1033_v0, %v1032_v62  ;;  %v1055_v8 = vrot.slane %v1054_v1, 2  ;;  %v1078_v12 = vadd.s32 %v1077_v21, %v1076_v63 }
 0x2d8   :  { %v1097_v14 = vcvt.f32.s32 %v1094_v6  ;;  %v1123_v26 = vshll.u32 %v1122_v17, 16 }
 0x2d9   :  { %v1099_v13 = vshll.u32 %v1098_v5, 16  ;;  %5473 = vpush %v1034_v7  ;;  %v1056_v15 = vadd.s32 %v1055_v8, %v1054_v1  ;;  %v1079_v16 = vrot.slane %v1078_v12, 2 }
 0x2db   :  { %v1100_v18 = vadd.s32 %v1099_v13, %v1097_v14  ;;  %v1057_v19 = vrot.slane %v1056_v15, 1  ;;  %v1080_v20 = vadd.s32 %v1079_v16, %v1078_v12 }
 0x2dd   :  { %v1101_v22 = vrot.slane %v1100_v18, 4  ;;  %v1058_v23 = vadd.s32 %v1057_v19, %v1056_v15  ;;  %v1142_v10 = vpop.xlane.xlu2 %1141  ;;  %v1081_v25 = vrot.slane %v1080_v20, 1 }
 0x2de   :  { %v1118_v24 = vpop.xlane.xlu0 %1117  ;;  %v1144_v28 = vpop.xlane.xlu1 %1143  ;;  %v1145_v34 = vcvt.f32.s32 %v1142_v10 }
 0x2df   :  { %v1121_v27 = vcvt.f32.s32 %v1118_v24  ;;  %5475 = vpush %v1058_v23  ;;  %v1102_v29 = vadd.s32 %v1101_v22, %v1100_v18  ;;  %v1146_v30 = vcvt.f32.s32 %v1144_v28  ;;  %v1082_v31 = vadd.s32 %v1081_v25, %v1080_v20 }
 0x2e1   :  { %v1124_v32 = vadd.s32 %v1123_v26, %v1121_v27  ;;  %v1103_v33 = vrot.slane %v1102_v29, 2  ;;  %v1147_v35 = vshll.u32 %v1146_v30, 16  ;;  %5477 = vpush %v1082_v31 }
 0x2e3   :  { %v1125_v36 = vrot.slane %v1124_v32, 4  ;;  %v1104_v37 = vadd.s32 %v1103_v33, %v1102_v29  ;;  %v1148_v38 = vadd.s32 %v1147_v35, %v1145_v34 }
 0x2e5   :  { %v1105_v39 = vrot.slane %v1104_v37, 1  ;;  %v1126_v40 = vadd.s32 %v1125_v36, %v1124_v32  ;;  %v1149_v41 = vrot.slane %v1148_v38, 4  ;;  %v1192_v42 = vpop.xlane.xlu2 %1191 }
 0x2e6   :  { %v1168_v43 = vpop.xlane.xlu0 %1167  ;;  %v1166_v45 = vpop.xlane.xlu1 %1165  ;;  %v1194_v53 = vcvt.f32.s32 %v1192_v42 }
 0x2e7   :  { %v1170_v44 = vcvt.f32.s32 %v1168_v43  ;;  %v1106_v46 = vadd.s32 %v1105_v39, %v1104_v37  ;;  %v1127_v47 = vrot.slane %v1126_v40, 2  ;;  %v1150_v48 = vadd.s32 %v1149_v41, %v1148_v38 }
 0x2e8   :  { %v1169_v50 = vcvt.f32.s32 %v1166_v45  ;;  %v1195_v62 = vshll.u32 %v1194_v53, 16 }
 0x2e9   :  { %v1171_v49 = vshll.u32 %v1170_v44, 16  ;;  %5479 = vpush %v1106_v46  ;;  %v1128_v51 = vadd.s32 %v1127_v47, %v1126_v40  ;;  %v1151_v52 = vrot.slane %v1150_v48, 2 }
 0x2eb   :  { %v1172_v54 = vadd.s32 %v1171_v49, %v1169_v50  ;;  %v1129_v55 = vrot.slane %v1128_v51, 1  ;;  %v1152_v56 = vadd.s32 %v1151_v52, %v1150_v48 }
 0x2ed   :  { %v1173_v57 = vrot.slane %v1172_v54, 4  ;;  %v1130_v58 = vadd.s32 %v1129_v55, %v1128_v51  ;;  %v1214_v59 = vpop.xlane.xlu2 %1213  ;;  %v1153_v61 = vrot.slane %v1152_v56, 1 }
 0x2ee   :  { %v1190_v60 = vpop.xlane.xlu0 %1189  ;;  %v1216_v0 = vpop.xlane.xlu1 %1215  ;;  %v1217_v6 = vcvt.f32.s32 %v1214_v59 }
 0x2ef   :  { %v1193_v63 = vcvt.f32.s32 %v1190_v60  ;;  %5481 = vpush %v1130_v58  ;;  %v1174_v1 = vadd.s32 %v1173_v57, %v1172_v54  ;;  %v1218_v21 = vcvt.f32.s32 %v1216_v0  ;;  %v1154_v2 = vadd.s32 %v1153_v61, %v1152_v56 }
 0x2f1   :  { %v1196_v3 = vadd.s32 %v1195_v62, %v1193_v63  ;;  %v1175_v5 = vrot.slane %v1174_v1, 2  ;;  %v1219_v7 = vshll.u32 %v1218_v21, 16  ;;  %5483 = vpush %v1154_v2  ;;  %v6124_v63 = vand.u32 4294901760, %v5813_v9 }
 0x2f3   :  { %v1197_v8 = vrot.slane %v1196_v3, 4  ;;  %v1176_v12 = vadd.s32 %v1175_v5, %v1174_v1  ;;  %v1220_v13 = vadd.s32 %v1219_v7, %v1217_v6 }
 0x2f5   :  { %v1177_v14 = vrot.slane %v1176_v12, 1  ;;  %v1198_v15 = vadd.s32 %v1197_v8, %v1196_v3  ;;  %v1221_v16 = vrot.slane %v1220_v13, 4  ;;  %v1264_v17 = vpop.xlane.xlu2 %1263 }
 0x2f6   :  { %v1240_v18 = vpop.xlane.xlu0 %1239  ;;  %v1238_v20 = vpop.xlane.xlu1 %1237  ;;  %v1266_v28 = vcvt.f32.s32 %v1264_v17 }
 0x2f7   :  { %v1242_v19 = vcvt.f32.s32 %v1240_v18  ;;  %v1178_v22 = vadd.s32 %v1177_v14, %v1176_v12  ;;  %v1199_v23 = vrot.slane %v1198_v15, 2  ;;  %v1222_v10 = vadd.s32 %v1221_v16, %v1220_v13 }
 0x2f8   :  { %v1241_v25 = vcvt.f32.s32 %v1238_v20  ;;  %v1267_v36 = vshll.u32 %v1266_v28, 16 }
 0x2f9   :  { %v1243_v24 = vshll.u32 %v1242_v19, 16  ;;  %5485 = vpush %v1178_v22  ;;  %v1200_v26 = vadd.s32 %v1199_v23, %v1198_v15  ;;  %v1223_v27 = vrot.slane %v1222_v10, 2 }
 0x2fa   :  { %s6074_s20 = spop %5467 }
 0x2fb   :  { %v1244_v29 = vadd.s32 %v1243_v24, %v1241_v25  ;;  %p1300_p4 = scmp.ge.s32.totalorder %s6074_s20, %s6072_s19  ;;  %v1201_v30 = vrot.slane %v1200_v26, 1  ;;  %v1224_v31 = vadd.s32 %v1223_v27, %v1222_v10 }
 0x2fd   :  { %v1245_v32 = vrot.slane %v1244_v29, 4  ;;  %v1202_v33 = vadd.s32 %v1201_v30, %v1200_v26  ;;  %s1301_s21 = scalar_select %p1300_p4, 15, 0  ;;  %v1225_v35 = vrot.slane %v1224_v31, 1  ;;  %v1286_v37 = vpop.xlane.xlu2 %1285 }
 0x2fe   :  { %v1262_v34 = vpop.xlane.xlu0 %1261  ;;  %v1288_v39 = vpop.xlane.xlu1 %1287  ;;  %v1289_v45 = vcvt.f32.s32 %v1286_v37 }
 0x2ff   :  { %v1265_v38 = vcvt.f32.s32 %v1262_v34  ;;  %5487 = vpush %v1202_v33  ;;  %v1246_v40 = vadd.s32 %v1245_v32, %v1244_v29  ;;  %v1290_v41 = vcvt.f32.s32 %v1288_v39  ;;  %v1226_v42 = vadd.s32 %v1225_v35, %v1224_v31  ;;  %p1304_p6 = scmp.eq.s32.totalorder %s1301_s21, 0 }
 0x300   :  { %s5470_s27 = spop %5469 }
 0x301   :  { %v1268_v43 = vadd.s32 %v1267_v36, %v1265_v38  ;;  %s6079_s22 = sadd.s32 %s5470_s27, %s6074_s20  ;;  %v1247_v44 = vrot.slane %v1246_v40, 2  ;;  %v1291_v46 = vshll.u32 %v1290_v41, 16  ;;  %5489 = vpush %v1226_v42 }
 0x302   :  { %p1303_p5 = scmp.ge.s32.totalorder %s6079_s22, %s6072_s19  ;;  %s5472_s23 = spop %5471 }
 0x303   :  { %v1269_v47 = vrot.slane %v1268_v43, 4  ;;  %v1248_v48 = vadd.s32 %v1247_v44, %v1246_v40  ;;  %v1292_v49 = vadd.s32 %v1291_v46, %v1289_v45  ;;  %s6088_s25 = sadd.s32 %s5472_s23, %s6079_s22 }
 0x304   :  { %p6083_p7 = pnand %p1304_p6, %p1303_p5  ;;  %p1310_p8 = scmp.ge.s32.totalorder %s6088_s25, %s6072_s19 }
 0x305   :  { %v1249_v50 = vrot.slane %v1248_v48, 1  ;;  %v1270_v51 = vadd.s32 %v1269_v47, %v1268_v43  ;;  %v1293_v52 = vrot.slane %v1292_v49, 4 }
 0x306   :  { %s7161_s21 = smov (!%p6083_p7, %s1301_s21), 14  ;;  %s7163_s20 = smov (%p6083_p7, %s6074_s20), 0 }
 0x307   :  { %v1250_v53 = vadd.s32 %v1249_v50, %v1248_v48  ;;  %v1271_v54 = vrot.slane %v1270_v51, 2  ;;  %p1311_p9 = scmp.eq.s32.totalorder %s7161_s21, 0  ;;  %v1294_v55 = vadd.s32 %v1293_v52, %v1292_v49 }
 0x309   :  { %5491 = vpush %v1250_v53  ;;  %v1272_v56 = vadd.s32 %v1271_v54, %v1270_v51  ;;  %p1312_p10 = pnand %p1311_p9, %p1310_p8  ;;  %v1295_v57 = vrot.slane %v1294_v55, 2 }
 0x30a   :  { %s5474_s26 = spop %5473 }
 0x30b   :  { %s1316_s30 = sadd.s32 %s5474_s26, %s6088_s25  ;;  %v1273_v58 = vrot.slane %v1272_v56, 1  ;;  %s7165_s21 = smov (!%p1312_p10, %s7161_s21), 13  ;;  %v1296_v59 = vadd.s32 %v1295_v57, %v1294_v55 }
 0x30c   :  { %s7167_s20 = smov (!%p1312_p10, %s7163_s20), %s6079_s22  ;;  %p1317_p11 = scmp.ge.s32.totalorder %s1316_s30, %s6072_s19 }
 0x30d   :  { %v1274_v60 = vadd.s32 %v1273_v58, %v1272_v56  ;;  %p1318_p12 = scmp.eq.s32.totalorder %s7165_s21, 0  ;;  %v1297_v61 = vrot.slane %v1296_v59, 1 }
 0x30f   :  { %5493 = vpush %v1274_v60  ;;  %p6100_p13 = pnand %p1318_p12, %p1317_p11  ;;  %v1298_v62 = vadd.s32 %v1297_v61, %v1296_v59 }
 0x310   :  { %s5476_s3 = spop %5475 }
 0x311   :  { %s1323_s4 = sadd.s32 %s5476_s3, %s1316_s30  ;;  %s7169_s21 = smov (!%p6100_p13, %s7165_s21), 12  ;;  %5495 = vpush %v1298_v62 }
 0x312   :  { %s7171_s20 = smov (!%p6100_p13, %s7167_s20), %s6088_s25  ;;  %p1324_p0 = scmp.ge.s32.totalorder %s1323_s4, %s6072_s19 }
 0x313   :  { %p1325_p1 = scmp.eq.s32.totalorder %s7169_s21, 0  ;;  %s5478_s5 = spop %5477 }
 0x314   :  { %s1330_s7 = sadd.s32 %s5478_s5, %s1323_s4 }
 0x315   :  { %p1326_p2 = pnand %p1325_p1, %p1324_p0  ;;  %p1331_p3 = scmp.ge.s32.totalorder %s1330_s7, %s6072_s19 }
 0x317   :  { %s7173_s21 = smov (!%p1326_p2, %s7169_s21), 11  ;;  %s7175_s20 = smov (!%p1326_p2, %s7171_s20), %s1316_s30 }
 0x318   :  { %p1332_p4 = scmp.eq.s32.totalorder %s7173_s21, 0 }
 0x31a   :  { %s5480_s8 = spop %5479  ;;  %p1333_p5 = pnand %p1332_p4, %p1331_p3 }
 0x31b   :  { %s1337_s9 = sadd.s32 %s5480_s8, %s1330_s7 }
 0x31c   :  { %p1338_p6 = scmp.ge.s32.totalorder %s1337_s9, %s6072_s19  ;;  %s7177_s21 = smov (!%p1333_p5, %s7173_s21), 10 }
 0x31d   :  { %s7179_s20 = smov (!%p1333_p5, %s7175_s20), %s1323_s4  ;;  %p1339_p7 = scmp.eq.s32.totalorder %s7177_s21, 0 }
 0x31f   :  { %p1340_p8 = pnand %p1339_p7, %p1338_p6 }
 0x320   :  { %s5482_s12 = spop %5481 }
 0x321   :  { %s1344_s28 = sadd.s32 %s5482_s12, %s1337_s9  ;;  %s7181_s21 = smov (!%p1340_p8, %s7177_s21), 9 }
 0x322   :  { %p1345_p9 = scmp.ge.s32.totalorder %s1344_s28, %s6072_s19  ;;  %s5484_s29 = spop %5483 }
 0x323   :  { %s7183_s20 = smov (!%p1340_p8, %s7179_s20), %s1330_s7  ;;  %p1346_p10 = scmp.eq.s32.totalorder %s7181_s21, 0 }
 0x324   :  { %s1351_s10 = sadd.s32 %s5484_s29, %s1344_s28 }
 0x325   :  { %p1347_p11 = pnand %p1346_p10, %p1345_p9  ;;  %p1352_p12 = scmp.ge.s32.totalorder %s1351_s10, %s6072_s19 }
 0x327   :  { %s7185_s21 = smov (!%p1347_p11, %s7181_s21), 8  ;;  %s7187_s20 = smov (!%p1347_p11, %s7183_s20), %s1337_s9 }
 0x328   :  { %p1353_p13 = scmp.eq.s32.totalorder %s7185_s21, 0 }
 0x32a   :  { %s5486_s11 = spop %5485  ;;  %p1354_p0 = pnand %p1353_p13, %p1352_p12 }
 0x32b   :  { %s1358_s13 = sadd.s32 %s5486_s11, %s1351_s10 }
 0x32c   :  { %p1359_p1 = scmp.ge.s32.totalorder %s1358_s13, %s6072_s19  ;;  %s7189_s21 = smov (!%p1354_p0, %s7185_s21), 7 }
 0x32d   :  { %s7191_s20 = smov (!%p1354_p0, %s7187_s20), %s1344_s28  ;;  %p1360_p2 = scmp.eq.s32.totalorder %s7189_s21, 0 }
 0x32f   :  { %p1361_p3 = pnand %p1360_p2, %p1359_p1 }
 0x330   :  { %s5488_s15 = spop %5487 }
 0x331   :  { %s1365_s16 = sadd.s32 %s5488_s15, %s1358_s13  ;;  %s7193_s21 = smov (!%p1361_p3, %s7189_s21), 6 }
 0x332   :  { %p1366_p4 = scmp.ge.s32.totalorder %s1365_s16, %s6072_s19  ;;  %s5490_s14 = spop %5489 }
 0x333   :  { %s7195_s20 = smov (!%p1361_p3, %s7191_s20), %s1351_s10  ;;  %p1367_p5 = scmp.eq.s32.totalorder %s7193_s21, 0 }
 0x334   :  { %s1372_s0 = sadd.s32 %s5490_s14, %s1365_s16 }
 0x335   :  { %p1368_p6 = pnand %p1367_p5, %p1366_p4  ;;  %p1373_p7 = scmp.ge.s32.totalorder %s1372_s0, %s6072_s19 }
 0x337   :  { %s7197_s21 = smov (!%p1368_p6, %s7193_s21), 5  ;;  %s7199_s20 = smov (!%p1368_p6, %s7195_s20), %s1358_s13 }
 0x338   :  { %p1374_p8 = scmp.eq.s32.totalorder %s7197_s21, 0 }
 0x33a   :  { %s5492_s17 = spop %5491  ;;  %p1375_p9 = pnand %p1374_p8, %p1373_p7 }
 0x33b   :  { %s1379_s18 = sadd.s32 %s5492_s17, %s1372_s0 }
 0x33c   :  { %p1380_p10 = scmp.ge.s32.totalorder %s1379_s18, %s6072_s19  ;;  %s7201_s21 = smov (!%p1375_p9, %s7197_s21), 4 }
 0x33d   :  { %s7203_s20 = smov (!%p1375_p9, %s7199_s20), %s1365_s16  ;;  %p1381_p11 = scmp.eq.s32.totalorder %s7201_s21, 0 }
 0x33f   :  { %p1382_p12 = pnand %p1381_p11, %p1380_p10 }
 0x340   :  { %s5494_s27 = spop %5493 }
 0x341   :  { %s1386_s22 = sadd.s32 %s5494_s27, %s1379_s18  ;;  %s7205_s21 = smov (!%p1382_p12, %s7201_s21), 3 }
 0x342   :  { %p1387_p13 = scmp.ge.s32.totalorder %s1386_s22, %s6072_s19  ;;  %s7207_s20 = smov (!%p1382_p12, %s7203_s20), %s1372_s0 }
 0x343   :  { %p1388_p0 = scmp.eq.s32.totalorder %s7205_s21, 0  ;;  %s5496_s23 = spop %5495 }
 0x344   :  { %s1393_s24 = sadd.s32 %s5496_s23, %s1386_s22 }
 0x345   :  { %p1389_p1 = pnand %p1388_p0, %p1387_p13  ;;  %p1394_p2 = scmp.ge.s32.totalorder %s1393_s24, %s6072_s19 }
 0x347   :  { %s7209_s21 = smov (!%p1389_p1, %s7205_s21), 2  ;;  %s7211_s20 = smov (!%p1389_p1, %s7207_s20), %s1379_s18 }
 0x348   :  { %p1395_p3 = scmp.eq.s32.totalorder %s7209_s21, 0 }
 0x34a   :  { %p1396_p4 = pnand %p1395_p3, %p1394_p2 }
 0x34c   :  { %s7213_s21 = smov (!%p1396_p4, %s7209_s21), 1  ;;  %s7215_s20 = smov (!%p1396_p4, %s7211_s20), %s1386_s22 }
 0x34d   :  { %p1400_p5 = scmp.eq.s32.totalorder %s7213_s21, 0  ;;  %s1403_s25 = sshll.u32 %s7213_s21, 20 }
 0x34e   :  { %s6121_s26 = sor.u32 %s1403_s25, %s6003_s6 }
 0x34f   :  { %s7217_s24 = smov (!%p1400_p5, %s1393_s24), %s7215_s20  ;;  %s1430_s30 = sor.u32 917504, %s6121_s26 }
 0x350   :  { %s1406_s2 = sor.u32 983040, %s6121_s26  ;;  %v1431_v0 = vstv %s1430_s30  ;;  %s1454_s3 = sor.u32 851968, %s6121_s26 }
 0x351   :  { %v1407_v1 = vstv %s1406_s2  ;;  %vm1432_vm3 = vcmp.eq.s32.totalorder %v6124_v63, %v1431_v0  ;;  %v1455_v21 = vstv %s1454_s3  ;;  %s1502_s6 = sor.u32 720896, %s6121_s26  ;;  %s1478_s20 = sor.u32 786432, %s6121_s26 }
 0x352   :  { %vm1408_vm4 = vcmp.eq.s32.totalorder %v6124_v63, %v1407_v1  ;;  %v1433_v2 = vsel %vm1432_vm3, 1, %v5794_v11  ;;  %vm1456_vm5 = vcmp.eq.s32.totalorder %v6124_v63, %v1455_v21  ;;  %v1503_v17 = vstv %s1502_s6  ;;  %s1526_s21 = sor.u32 655360, %s6121_s26  ;;  %s1574_s4 = sor.u32 524288, %s6121_s26 }
 0x353   :  { %v1409_v3 = vsel %vm1408_vm4, 1, %v5794_v11  ;;  %v1434_v5 = vsel %vm40_vm2, %v1433_v2, 0  ;;  %v1457_v13 = vsel %vm1456_vm5, 1, %v5794_v11  ;;  %v1479_v19 = vstv %s1478_s20  ;;  %s1550_s5 = sor.u32 589824, %s6121_s26  ;;  %s1598_s7 = sor.u32 458752, %s6121_s26 }
 0x354   :  { %v1410_v6 = vsel %vm40_vm2, %v1409_v3, 0  ;;  %v1436_v7 = vshrl.u32 %v1434_v5, 16  ;;  %v1458_v18 = vsel %vm40_vm2, %v1457_v13, 0  ;;  %vm1504_vm6 = vcmp.eq.s32.totalorder %v6124_v63, %v1503_v17  ;;  %s1646_s8 = sor.u32 327680, %s6121_s26  ;;  %s1622_s9 = sor.u32 393216, %s6121_s26 }
 0x355   :  { %v1412_v8 = vshrl.u32 %v1410_v6, 16  ;;  %v1411_v12 = vand.u32 65535, %v1410_v6  ;;  %vm1480_vm7 = vcmp.eq.s32.totalorder %v6124_v63, %v1479_v19  ;;  %v1459_v20 = vand.u32 65535, %v1458_v18  ;;  %s1670_s12 = sor.u32 262144, %s6121_s26  ;;  %s1718_s28 = sor.u32 131072, %s6121_s26 }
 0x356   :  { %v1438_v14 = vcvt.s32.f32 %v1436_v7  ;;  %v1435_v22 = vand.u32 65535, %v1434_v5  ;;  %v1460_v23 = vshrl.u32 %v1458_v18, 16  ;;  %v1505_v10 = vsel %vm1504_vm6, 1, %v5794_v11  ;;  %s1694_s29 = sor.u32 196608, %s6121_s26  ;;  %s1742_s10 = sor.u32 65536, %s6121_s26 }
 0x357   :  { %v1414_v15 = vcvt.s32.f32 %v1412_v8  ;;  %v1413_v16 = vcvt.s32.f32 %v1411_v12  ;;  %v1481_v24 = vsel %vm1480_vm7, 1, %v5794_v11  ;;  %v1461_v25 = vcvt.s32.f32 %v1459_v20  ;;  %s6190_s11 = ssub.s32 %s6072_s19, %s7217_s24 }
 0x358   :  { %1441 = vadd.xlane.f32.xlu2 %v1438_v14  ;;  %v1437_v26 = vcvt.s32.f32 %v1435_v22  ;;  %v1527_v27 = vstv %s1526_s21  ;;  %v1462_v28 = vcvt.s32.f32 %v1460_v23  ;;  %v1506_v29 = vsel %vm40_vm2, %v1505_v10, 0 }
 0x359   :  { %1417 = vadd.xlane.f32.xlu0 %v1414_v15  ;;  %1415 = vadd.xlane.f32.xlu1 %v1413_v16  ;;  %v1482_v30 = vsel %vm40_vm2, %v1481_v24, 0  ;;  %vm1528_vm8 = vcmp.eq.s32.totalorder %v6124_v63, %v1527_v27  ;;  %v1508_v31 = vshrl.u32 %v1506_v29, 16  ;;  %v1575_v37 = vstv %s1574_s4 }
 0x35a   :  { %v1484_v32 = vshrl.u32 %v1482_v30, 16  ;;  %v1483_v33 = vand.u32 65535, %v1482_v30  ;;  %v1529_v34 = vsel %vm1528_vm8, 1, %v5794_v11  ;;  %v1551_v38 = vstv %s1550_s5 }
 0x35b   :  { %v1510_v35 = vcvt.s32.f32 %v1508_v31  ;;  %v1530_v40 = vsel %vm40_vm2, %v1529_v34, 0  ;;  %vm1576_vm9 = vcmp.eq.s32.totalorder %v6124_v63, %v1575_v37  ;;  %vm1552_vm10 = vcmp.eq.s32.totalorder %v6124_v63, %v1551_v38 }
 0x35c   :  { %v1486_v36 = vcvt.s32.f32 %v1484_v32  ;;  %v1485_v39 = vcvt.s32.f32 %v1483_v33  ;;  %v1531_v41 = vand.u32 65535, %v1530_v40  ;;  %v1507_v42 = vand.u32 65535, %v1506_v29 }
 0x35d   :  { %v1532_v43 = vshrl.u32 %v1530_v40, 16  ;;  %v1577_v44 = vsel %vm1576_vm9, 1, %v5794_v11  ;;  %v1553_v45 = vsel %vm1552_vm10, 1, %v5794_v11  ;;  %v1599_v48 = vstv %s1598_s7 }
 0x35e   :  { %v1533_v46 = vcvt.s32.f32 %v1531_v41  ;;  %v1509_v47 = vcvt.s32.f32 %v1507_v42  ;;  %v1578_v50 = vsel %vm40_vm2, %v1577_v44, 0  ;;  %v1554_v51 = vsel %vm40_vm2, %v1553_v45, 0 }
 0x35f   :  { %v1534_v49 = vcvt.s32.f32 %v1532_v43  ;;  %vm1600_vm11 = vcmp.eq.s32.totalorder %v6124_v63, %v1599_v48  ;;  %v1580_v52 = vshrl.u32 %v1578_v50, 16  ;;  %v1556_v53 = vshrl.u32 %v1554_v51, 16 }
 0x360   :  { %1463 = vadd.xlane.f32.xlu2 %v1461_v25  ;;  %v1555_v54 = vand.u32 65535, %v1554_v51  ;;  %v1601_v55 = vsel %vm1600_vm11, 1, %v5794_v11  ;;  %v1647_v58 = vstv %s1646_s8  ;;  %v1623_v59 = vstv %s1622_s9 }
 0x361   :  { %1439 = vadd.xlane.f32.xlu0 %v1437_v26  ;;  %1465 = vadd.xlane.f32.xlu1 %v1462_v28  ;;  %v1582_v56 = vcvt.s32.f32 %v1580_v52  ;;  %v1558_v57 = vcvt.s32.f32 %v1556_v53  ;;  %v1602_v61 = vsel %vm40_vm2, %v1601_v55, 0  ;;  %vm1648_vm12 = vcmp.eq.s32.totalorder %v6124_v63, %v1647_v58 }
 0x362   :  { %v1557_v60 = vcvt.s32.f32 %v1555_v54  ;;  %vm1624_vm13 = vcmp.eq.s32.totalorder %v6124_v63, %v1623_v59  ;;  %v1603_v62 = vand.u32 65535, %v1602_v61  ;;  %v1579_v0 = vand.u32 65535, %v1578_v50 }
 0x363   :  { %v1604_v1 = vshrl.u32 %v1602_v61, 16  ;;  %v1649_v21 = vsel %vm1648_vm12, 1, %v5794_v11  ;;  %v1625_v2 = vsel %vm1624_vm13, 1, %v5794_v11  ;;  %v1671_v6 = vstv %s1670_s12 }
 0x364   :  { %v1605_v3 = vcvt.s32.f32 %v1603_v62  ;;  %v1581_v5 = vcvt.s32.f32 %v1579_v0  ;;  %v1650_v8 = vsel %vm40_vm2, %v1649_v21, 0  ;;  %v1626_v12 = vsel %vm40_vm2, %v1625_v2, 0 }
 0x365   :  { %v1606_v7 = vcvt.s32.f32 %v1604_v1  ;;  %vm1672_vm14 = vcmp.eq.s32.totalorder %v6124_v63, %v1671_v6  ;;  %v1652_v13 = vshrl.u32 %v1650_v8, 16  ;;  %v1628_v14 = vshrl.u32 %v1626_v12, 16 }
 0x366   :  { %v1627_v15 = vand.u32 65535, %v1626_v12  ;;  %v1673_v16 = vsel %vm1672_vm14, 1, %v5794_v11  ;;  %v1719_v19 = vstv %s1718_s28  ;;  %v1695_v20 = vstv %s1694_s29 }
 0x367   :  { %v1654_v17 = vcvt.s32.f32 %v1652_v13  ;;  %v1630_v18 = vcvt.s32.f32 %v1628_v14  ;;  %v1674_v23 = vsel %vm40_vm2, %v1673_v16, 0  ;;  %vm1720_vm15 = vcmp.eq.s32.totalorder %v6124_v63, %v1719_v19 }
 0x368   :  { %1513 = vadd.xlane.f32.xlu2 %v1510_v35  ;;  %v1629_v22 = vcvt.s32.f32 %v1627_v15  ;;  %vm1696_vm0 = vcmp.eq.s32.totalorder %v6124_v63, %v1695_v20  ;;  %v1675_v10 = vand.u32 65535, %v1674_v23  ;;  %v1651_v24 = vand.u32 65535, %v1650_v8 }
 0x369   :  { %1489 = vadd.xlane.f32.xlu0 %v1486_v36  ;;  %1487 = vadd.xlane.f32.xlu1 %v1485_v39  ;;  %v1676_v25 = vshrl.u32 %v1674_v23, 16  ;;  %v1721_v26 = vsel %vm1720_vm15, 1, %v5794_v11  ;;  %v1697_v27 = vsel %vm1696_vm0, 1, %v5794_v11  ;;  %v1743_v30 = vstv %s1742_s10 }
 0x36a   :  { %v1677_v28 = vcvt.s32.f32 %v1675_v10  ;;  %v1653_v29 = vcvt.s32.f32 %v1651_v24  ;;  %v1722_v32 = vsel %vm40_vm2, %v1721_v26, 0  ;;  %v1698_v33 = vsel %vm40_vm2, %v1697_v27, 0 }
 0x36b   :  { %v1678_v31 = vcvt.s32.f32 %v1676_v25  ;;  %vm1744_vm1 = vcmp.eq.s32.totalorder %v6124_v63, %v1743_v30  ;;  %v1724_v34 = vshrl.u32 %v1722_v32, 16  ;;  %v1700_v35 = vshrl.u32 %v1698_v33, 16 }
 0x36c   :  { %v1699_v36 = vand.u32 65535, %v1698_v33  ;;  %v1745_v37 = vsel %vm1744_vm1, 1, %v5794_v11  ;;  %v1723_v43 = vand.u32 65535, %v1722_v32 }
 0x36d   :  { %v1726_v38 = vcvt.s32.f32 %v1724_v34  ;;  %v1702_v39 = vcvt.s32.f32 %v1700_v35  ;;  %v1746_v41 = vsel %vm40_vm2, %v1745_v37, 0 }
 0x36e   :  { %v1701_v40 = vcvt.s32.f32 %v1699_v36  ;;  %v1747_v42 = vand.u32 65535, %v1746_v41  ;;  %v1748_v44 = vshrl.u32 %v1746_v41, 16 }
 0x370   :  { %1535 = vadd.xlane.f32.xlu2 %v1533_v46  ;;  %v1749_v45 = vcvt.s32.f32 %v1747_v42  ;;  %v1725_v46 = vcvt.s32.f32 %v1723_v43 }
 0x371   :  { %1511 = vadd.xlane.f32.xlu0 %v1509_v47  ;;  %1537 = vadd.xlane.f32.xlu1 %v1534_v49  ;;  %v1750_v47 = vcvt.s32.f32 %v1748_v44 }
 0x378   :  { %1585 = vadd.xlane.f32.xlu2 %v1582_v56 }
 0x379   :  { %1561 = vadd.xlane.f32.xlu0 %v1558_v57  ;;  %1559 = vadd.xlane.f32.xlu1 %v1557_v60 }
 0x380   :  { %1607 = vadd.xlane.f32.xlu2 %v1605_v3 }
 0x381   :  { %1583 = vadd.xlane.f32.xlu0 %v1581_v5  ;;  %1609 = vadd.xlane.f32.xlu1 %v1606_v7 }
 0x388   :  { %1657 = vadd.xlane.f32.xlu2 %v1654_v17 }
 0x389   :  { %1633 = vadd.xlane.f32.xlu0 %v1630_v18  ;;  %1631 = vadd.xlane.f32.xlu1 %v1629_v22 }
 0x390   :  { %1679 = vadd.xlane.f32.xlu2 %v1677_v28 }
 0x391   :  { %1655 = vadd.xlane.f32.xlu0 %v1653_v29  ;;  %1681 = vadd.xlane.f32.xlu1 %v1678_v31 }
 0x398   :  { %1729 = vadd.xlane.f32.xlu2 %v1726_v38 }
 0x399   :  { %1705 = vadd.xlane.f32.xlu0 %v1702_v39  ;;  %1703 = vadd.xlane.f32.xlu1 %v1701_v40 }
 0x3a0   :  { %1751 = vadd.xlane.f32.xlu2 %v1749_v45 }
 0x3a1   :  { %1727 = vadd.xlane.f32.xlu0 %v1725_v46  ;;  %1753 = vadd.xlane.f32.xlu1 %v1750_v47 }
 0x3cb   :  { %v1442_v63 = vpop.xlane.xlu2 %1441 }
 0x3cc   :  { %v1418_v48 = vpop.xlane.xlu0 %1417  ;;  %v1416_v50 = vpop.xlane.xlu1 %1415  ;;  %v1444_v53 = vcvt.f32.s32 %v1442_v63 }
 0x3cd   :  { %v1420_v49 = vcvt.f32.s32 %v1418_v48  ;;  %v1419_v52 = vcvt.f32.s32 %v1416_v50 }
 0x3ce   :  { %v1445_v58 = vshll.u32 %v1444_v53, 16 }
 0x3cf   :  { %v1421_v51 = vshll.u32 %v1420_v49, 16 }
 0x3d1   :  { %v1422_v54 = vadd.s32 %v1421_v51, %v1419_v52 }
 0x3d3   :  { %v1423_v55 = vrot.slane %v1422_v54, 4  ;;  %v1464_v56 = vpop.xlane.xlu2 %1463 }
 0x3d4   :  { %v1440_v57 = vpop.xlane.xlu0 %1439  ;;  %v1466_v60 = vpop.xlane.xlu1 %1465  ;;  %v1467_v21 = vcvt.f32.s32 %v1464_v56 }
 0x3d5   :  { %v1443_v59 = vcvt.f32.s32 %v1440_v57  ;;  %v1424_v61 = vadd.s32 %v1423_v55, %v1422_v54  ;;  %v1468_v62 = vcvt.f32.s32 %v1466_v60 }
 0x3d7   :  { %v1446_v0 = vadd.s32 %v1445_v58, %v1443_v59  ;;  %v1425_v1 = vrot.slane %v1424_v61, 2  ;;  %v1469_v2 = vshll.u32 %v1468_v62, 16 }
 0x3d9   :  { %v1447_v3 = vrot.slane %v1446_v0, 4  ;;  %v1426_v5 = vadd.s32 %v1425_v1, %v1424_v61  ;;  %v1470_v6 = vadd.s32 %v1469_v2, %v1467_v21 }
 0x3db   :  { %v1427_v7 = vrot.slane %v1426_v5, 1  ;;  %v1448_v8 = vadd.s32 %v1447_v3, %v1446_v0  ;;  %v1471_v12 = vrot.slane %v1470_v6, 4  ;;  %v1514_v13 = vpop.xlane.xlu2 %1513 }
 0x3dc   :  { %v1490_v14 = vpop.xlane.xlu0 %1489  ;;  %v1488_v16 = vpop.xlane.xlu1 %1487  ;;  %v1516_v24 = vcvt.f32.s32 %v1514_v13 }
 0x3dd   :  { %v1492_v15 = vcvt.f32.s32 %v1490_v14  ;;  %v1428_v17 = vadd.s32 %v1427_v7, %v1426_v5  ;;  %v1449_v18 = vrot.slane %v1448_v8, 2  ;;  %v1472_v19 = vadd.s32 %v1471_v12, %v1470_v6 }
 0x3de   :  { %v1491_v22 = vcvt.f32.s32 %v1488_v16  ;;  %v1517_v33 = vshll.u32 %v1516_v24, 16 }
 0x3df   :  { %v1493_v20 = vshll.u32 %v1492_v15, 16  ;;  %5497 = vpush %v1428_v17  ;;  %v1450_v23 = vadd.s32 %v1449_v18, %v1448_v8  ;;  %v1473_v10 = vrot.slane %v1472_v19, 2 }
 0x3e1   :  { %v1494_v25 = vadd.s32 %v1493_v20, %v1491_v22  ;;  %v1451_v26 = vrot.slane %v1450_v23, 1  ;;  %v1474_v27 = vadd.s32 %v1473_v10, %v1472_v19 }
 0x3e3   :  { %v1495_v28 = vrot.slane %v1494_v25, 4  ;;  %v1452_v29 = vadd.s32 %v1451_v26, %v1450_v23  ;;  %v1536_v30 = vpop.xlane.xlu2 %1535  ;;  %v1475_v32 = vrot.slane %v1474_v27, 1 }
 0x3e4   :  { %v1512_v31 = vpop.xlane.xlu0 %1511  ;;  %v1538_v35 = vpop.xlane.xlu1 %1537  ;;  %v1539_v41 = vcvt.f32.s32 %v1536_v30 }
 0x3e5   :  { %v1515_v34 = vcvt.f32.s32 %v1512_v31  ;;  %5499 = vpush %v1452_v29  ;;  %v1496_v36 = vadd.s32 %v1495_v28, %v1494_v25  ;;  %v1540_v37 = vcvt.f32.s32 %v1538_v35  ;;  %v1476_v38 = vadd.s32 %v1475_v32, %v1474_v27 }
 0x3e7   :  { %v1518_v39 = vadd.s32 %v1517_v33, %v1515_v34  ;;  %v1497_v40 = vrot.slane %v1496_v36, 2  ;;  %v1541_v42 = vshll.u32 %v1540_v37, 16  ;;  %5501 = vpush %v1476_v38 }
 0x3e9   :  { %v1519_v43 = vrot.slane %v1518_v39, 4  ;;  %v1498_v44 = vadd.s32 %v1497_v40, %v1496_v36  ;;  %v1542_v45 = vadd.s32 %v1541_v42, %v1539_v41 }
 0x3eb   :  { %v1499_v46 = vrot.slane %v1498_v44, 1  ;;  %v1520_v47 = vadd.s32 %v1519_v43, %v1518_v39  ;;  %v1543_v63 = vrot.slane %v1542_v45, 4  ;;  %v1586_v48 = vpop.xlane.xlu2 %1585 }
 0x3ec   :  { %v1562_v49 = vpop.xlane.xlu0 %1561  ;;  %v1560_v51 = vpop.xlane.xlu1 %1559  ;;  %v1588_v59 = vcvt.f32.s32 %v1586_v48 }
 0x3ed   :  { %v1564_v50 = vcvt.f32.s32 %v1562_v49  ;;  %v1500_v52 = vadd.s32 %v1499_v46, %v1498_v44  ;;  %v1521_v53 = vrot.slane %v1520_v47, 2  ;;  %v1544_v54 = vadd.s32 %v1543_v63, %v1542_v45 }
 0x3ee   :  { %v1563_v56 = vcvt.f32.s32 %v1560_v51  ;;  %v1589_v5 = vshll.u32 %v1588_v59, 16 }
 0x3ef   :  { %v1565_v55 = vshll.u32 %v1564_v50, 16  ;;  %5503 = vpush %v1500_v52  ;;  %v1522_v57 = vadd.s32 %v1521_v53, %v1520_v47  ;;  %v1545_v58 = vrot.slane %v1544_v54, 2 }
 0x3f1   :  { %v1566_v60 = vadd.s32 %v1565_v55, %v1563_v56  ;;  %v1523_v61 = vrot.slane %v1522_v57, 1  ;;  %v1546_v62 = vadd.s32 %v1545_v58, %v1544_v54 }
 0x3f3   :  { %v1567_v0 = vrot.slane %v1566_v60, 4  ;;  %v1524_v1 = vadd.s32 %v1523_v61, %v1522_v57  ;;  %v1608_v21 = vpop.xlane.xlu2 %1607  ;;  %v1547_v3 = vrot.slane %v1546_v62, 1 }
 0x3f4   :  { %v1584_v2 = vpop.xlane.xlu0 %1583  ;;  %v1610_v7 = vpop.xlane.xlu1 %1609  ;;  %v1611_v16 = vcvt.f32.s32 %v1608_v21 }
 0x3f5   :  { %v1587_v6 = vcvt.f32.s32 %v1584_v2  ;;  %5505 = vpush %v1524_v1  ;;  %v1568_v8 = vadd.s32 %v1567_v0, %v1566_v60  ;;  %v1612_v12 = vcvt.f32.s32 %v1610_v7  ;;  %v1548_v13 = vadd.s32 %v1547_v3, %v1546_v62 }
 0x3f7   :  { %v1590_v14 = vadd.s32 %v1589_v5, %v1587_v6  ;;  %v1569_v15 = vrot.slane %v1568_v8, 2  ;;  %v1613_v17 = vshll.u32 %v1612_v12, 16  ;;  %5507 = vpush %v1548_v13 }
 0x3f9   :  { %v1591_v18 = vrot.slane %v1590_v14, 4  ;;  %v1570_v19 = vadd.s32 %v1569_v15, %v1568_v8  ;;  %v1614_v20 = vadd.s32 %v1613_v17, %v1611_v16 }
 0x3fb   :  { %v1571_v22 = vrot.slane %v1570_v19, 1  ;;  %v1592_v23 = vadd.s32 %v1591_v18, %v1590_v14  ;;  %v1615_v10 = vrot.slane %v1614_v20, 4  ;;  %v1658_v24 = vpop.xlane.xlu2 %1657 }
 0x3fc   :  { %v1634_v25 = vpop.xlane.xlu0 %1633  ;;  %v1632_v27 = vpop.xlane.xlu1 %1631  ;;  %v1660_v35 = vcvt.f32.s32 %v1658_v24 }
 0x3fd   :  { %v1636_v26 = vcvt.f32.s32 %v1634_v25  ;;  %v1572_v28 = vadd.s32 %v1571_v22, %v1570_v19  ;;  %v1593_v29 = vrot.slane %v1592_v23, 2  ;;  %v1616_v30 = vadd.s32 %v1615_v10, %v1614_v20 }
 0x3fe   :  { %v1635_v32 = vcvt.f32.s32 %v1632_v27  ;;  %v1661_v44 = vshll.u32 %v1660_v35, 16 }
 0x3ff   :  { %v1637_v31 = vshll.u32 %v1636_v26, 16  ;;  %5509 = vpush %v1572_v28  ;;  %v1594_v33 = vadd.s32 %v1593_v29, %v1592_v23  ;;  %v1617_v34 = vrot.slane %v1616_v30, 2 }
 0x401   :  { %v1638_v36 = vadd.s32 %v1637_v31, %v1635_v32  ;;  %v1595_v37 = vrot.slane %v1594_v33, 1  ;;  %v1618_v38 = vadd.s32 %v1617_v34, %v1616_v30 }
 0x403   :  { %v1639_v39 = vrot.slane %v1638_v36, 4  ;;  %v1596_v40 = vadd.s32 %v1595_v37, %v1594_v33  ;;  %v1680_v41 = vpop.xlane.xlu2 %1679  ;;  %v1619_v43 = vrot.slane %v1618_v38, 1 }
 0x404   :  { %v1656_v42 = vpop.xlane.xlu0 %1655  ;;  %v1682_v46 = vpop.xlane.xlu1 %1681  ;;  %v1683_v51 = vcvt.f32.s32 %v1680_v41 }
 0x405   :  { %v1659_v45 = vcvt.f32.s32 %v1656_v42  ;;  %5511 = vpush %v1596_v40  ;;  %v1640_v47 = vadd.s32 %v1639_v39, %v1638_v36  ;;  %v1684_v63 = vcvt.f32.s32 %v1682_v46  ;;  %v1620_v48 = vadd.s32 %v1619_v43, %v1618_v38 }
 0x407   :  { %v1662_v49 = vadd.s32 %v1661_v44, %v1659_v45  ;;  %v1641_v50 = vrot.slane %v1640_v47, 2  ;;  %v1685_v52 = vshll.u32 %v1684_v63, 16  ;;  %5513 = vpush %v1620_v48  ;;  %v6242_v45 = vand.u32 4294963200, %v5813_v9 }
 0x409   :  { %v1663_v53 = vrot.slane %v1662_v49, 4  ;;  %v1642_v54 = vadd.s32 %v1641_v50, %v1640_v47  ;;  %v1686_v55 = vadd.s32 %v1685_v52, %v1683_v51 }
 0x40b   :  { %v1643_v56 = vrot.slane %v1642_v54, 1  ;;  %v1664_v57 = vadd.s32 %v1663_v53, %v1662_v49  ;;  %v1687_v58 = vrot.slane %v1686_v55, 4  ;;  %v1730_v59 = vpop.xlane.xlu2 %1729 }
 0x40c   :  { %v1706_v60 = vpop.xlane.xlu0 %1705  ;;  %v1704_v62 = vpop.xlane.xlu1 %1703  ;;  %v1732_v7 = vcvt.f32.s32 %v1730_v59 }
 0x40d   :  { %v1708_v61 = vcvt.f32.s32 %v1706_v60  ;;  %v1644_v0 = vadd.s32 %v1643_v56, %v1642_v54  ;;  %v1665_v1 = vrot.slane %v1664_v57, 2  ;;  %v1688_v21 = vadd.s32 %v1687_v58, %v1686_v55 }
 0x40e   :  { %v1707_v3 = vcvt.f32.s32 %v1704_v62  ;;  %v1733_v18 = vshll.u32 %v1732_v7, 16 }
 0x40f   :  { %v1709_v2 = vshll.u32 %v1708_v61, 16  ;;  %5515 = vpush %v1644_v0  ;;  %v1666_v5 = vadd.s32 %v1665_v1, %v1664_v57  ;;  %v1689_v6 = vrot.slane %v1688_v21, 2 }
 0x410   :  { %s6192_s13 = spop %5497 }
 0x411   :  { %v1710_v8 = vadd.s32 %v1709_v2, %v1707_v3  ;;  %p1766_p6 = scmp.ge.s32.totalorder %s6192_s13, %s6190_s11  ;;  %v1667_v12 = vrot.slane %v1666_v5, 1  ;;  %v1690_v13 = vadd.s32 %v1689_v6, %v1688_v21 }
 0x413   :  { %v1711_v14 = vrot.slane %v1710_v8, 4  ;;  %v1668_v15 = vadd.s32 %v1667_v12, %v1666_v5  ;;  %s1767_s15 = scalar_select %p1766_p6, 15, 0  ;;  %v1691_v17 = vrot.slane %v1690_v13, 1  ;;  %v1752_v19 = vpop.xlane.xlu2 %1751 }
 0x414   :  { %v1728_v16 = vpop.xlane.xlu0 %1727  ;;  %v1754_v22 = vpop.xlane.xlu1 %1753  ;;  %v1755_v27 = vcvt.f32.s32 %v1752_v19 }
 0x415   :  { %v1731_v20 = vcvt.f32.s32 %v1728_v16  ;;  %5517 = vpush %v1668_v15  ;;  %v1712_v23 = vadd.s32 %v1711_v14, %v1710_v8  ;;  %v1756_v10 = vcvt.f32.s32 %v1754_v22  ;;  %v1692_v24 = vadd.s32 %v1691_v17, %v1690_v13  ;;  %p1770_p7 = scmp.eq.s32.totalorder %s1767_s15, 0 }
 0x416   :  { %s5500_s19 = spop %5499 }
 0x417   :  { %v1734_v25 = vadd.s32 %v1733_v18, %v1731_v20  ;;  %s6197_s16 = sadd.s32 %s5500_s19, %s6192_s13  ;;  %v1713_v26 = vrot.slane %v1712_v23, 2  ;;  %v1757_v28 = vshll.u32 %v1756_v10, 16  ;;  %5519 = vpush %v1692_v24 }
 0x418   :  { %p1769_p8 = scmp.ge.s32.totalorder %s6197_s16, %s6190_s11  ;;  %s5502_s14 = spop %5501 }
 0x419   :  { %v1735_v29 = vrot.slane %v1734_v25, 4  ;;  %v1714_v30 = vadd.s32 %v1713_v26, %v1712_v23  ;;  %v1758_v31 = vadd.s32 %v1757_v28, %v1755_v27  ;;  %s6206_s17 = sadd.s32 %s5502_s14, %s6197_s16 }
 0x41a   :  { %p6201_p9 = pnand %p1770_p7, %p1769_p8  ;;  %p1776_p10 = scmp.ge.s32.totalorder %s6206_s17, %s6190_s11 }
 0x41b   :  { %v1715_v32 = vrot.slane %v1714_v30, 1  ;;  %v1736_v33 = vadd.s32 %v1735_v29, %v1734_v25  ;;  %v1759_v34 = vrot.slane %v1758_v31, 4 }
 0x41c   :  { %s7219_s15 = smov (!%p6201_p9, %s1767_s15), 14  ;;  %s7221_s13 = smov (%p6201_p9, %s6192_s13), 0 }
 0x41d   :  { %v1716_v35 = vadd.s32 %v1715_v32, %v1714_v30  ;;  %v1737_v36 = vrot.slane %v1736_v33, 2  ;;  %p1777_p11 = scmp.eq.s32.totalorder %s7219_s15, 0  ;;  %v1760_v37 = vadd.s32 %v1759_v34, %v1758_v31 }
 0x41f   :  { %5521 = vpush %v1716_v35  ;;  %v1738_v38 = vadd.s32 %v1737_v36, %v1736_v33  ;;  %p1778_p12 = pnand %p1777_p11, %p1776_p10  ;;  %v1761_v39 = vrot.slane %v1760_v37, 2 }
 0x420   :  { %s5504_s18 = spop %5503 }
 0x421   :  { %s1782_s27 = sadd.s32 %s5504_s18, %s6206_s17  ;;  %v1739_v40 = vrot.slane %v1738_v38, 1  ;;  %s7223_s15 = smov (!%p1778_p12, %s7219_s15), 13  ;;  %v1762_v41 = vadd.s32 %v1761_v39, %v1760_v37 }
 0x422   :  { %s7225_s13 = smov (!%p1778_p12, %s7221_s13), %s6197_s16  ;;  %p1783_p13 = scmp.ge.s32.totalorder %s1782_s27, %s6190_s11 }
 0x423   :  { %v1740_v42 = vadd.s32 %v1739_v40, %v1738_v38  ;;  %p1784_p0 = scmp.eq.s32.totalorder %s7223_s15, 0  ;;  %v1763_v43 = vrot.slane %v1762_v41, 1 }
 0x425   :  { %5523 = vpush %v1740_v42  ;;  %p6218_p1 = pnand %p1784_p0, %p1783_p13  ;;  %v1764_v44 = vadd.s32 %v1763_v43, %v1762_v41 }
 0x426   :  { %s5506_s23 = spop %5505 }
 0x427   :  { %s1789_s24 = sadd.s32 %s5506_s23, %s1782_s27  ;;  %s7227_s15 = smov (!%p6218_p1, %s7223_s15), 12  ;;  %5525 = vpush %v1764_v44 }
 0x428   :  { %s7229_s13 = smov (!%p6218_p1, %s7225_s13), %s6206_s17  ;;  %p1790_p2 = scmp.ge.s32.totalorder %s1789_s24, %s6190_s11 }
 0x429   :  { %p1791_p3 = scmp.eq.s32.totalorder %s7227_s15, 0  ;;  %s5508_s25 = spop %5507 }
 0x42a   :  { %s1796_s30 = sadd.s32 %s5508_s25, %s1789_s24 }
 0x42b   :  { %p1792_p4 = pnand %p1791_p3, %p1790_p2  ;;  %p1797_p5 = scmp.ge.s32.totalorder %s1796_s30, %s6190_s11 }
 0x42d   :  { %s7231_s15 = smov (!%p1792_p4, %s7227_s15), 11  ;;  %s7233_s13 = smov (!%p1792_p4, %s7229_s13), %s1782_s27 }
 0x42e   :  { %p1798_p6 = scmp.eq.s32.totalorder %s7231_s15, 0 }
 0x430   :  { %s5510_s2 = spop %5509  ;;  %p1799_p7 = pnand %p1798_p6, %p1797_p5 }
 0x431   :  { %s1803_s3 = sadd.s32 %s5510_s2, %s1796_s30 }
 0x432   :  { %p1804_p8 = scmp.ge.s32.totalorder %s1803_s3, %s6190_s11  ;;  %s7235_s15 = smov (!%p1799_p7, %s7231_s15), 10 }
 0x433   :  { %s7237_s13 = smov (!%p1799_p7, %s7233_s13), %s1789_s24  ;;  %p1805_p9 = scmp.eq.s32.totalorder %s7235_s15, 0 }
 0x435   :  { %p1806_p10 = pnand %p1805_p9, %p1804_p8 }
 0x436   :  { %s5512_s6 = spop %5511 }
 0x437   :  { %s1810_s20 = sadd.s32 %s5512_s6, %s1803_s3  ;;  %s7239_s15 = smov (!%p1806_p10, %s7235_s15), 9 }
 0x438   :  { %p1811_p11 = scmp.ge.s32.totalorder %s1810_s20, %s6190_s11  ;;  %s5514_s21 = spop %5513 }
 0x439   :  { %s7241_s13 = smov (!%p1806_p10, %s7237_s13), %s1796_s30  ;;  %p1812_p12 = scmp.eq.s32.totalorder %s7239_s15, 0 }
 0x43a   :  { %s1817_s4 = sadd.s32 %s5514_s21, %s1810_s20 }
 0x43b   :  { %p1813_p13 = pnand %p1812_p12, %p1811_p11  ;;  %p1818_p0 = scmp.ge.s32.totalorder %s1817_s4, %s6190_s11 }
 0x43d   :  { %s7243_s15 = smov (!%p1813_p13, %s7239_s15), 8  ;;  %s7245_s13 = smov (!%p1813_p13, %s7241_s13), %s1803_s3 }
 0x43e   :  { %p1819_p1 = scmp.eq.s32.totalorder %s7243_s15, 0 }
 0x440   :  { %s5516_s5 = spop %5515  ;;  %p1820_p2 = pnand %p1819_p1, %p1818_p0 }
 0x441   :  { %s1824_s7 = sadd.s32 %s5516_s5, %s1817_s4 }
 0x442   :  { %p1825_p3 = scmp.ge.s32.totalorder %s1824_s7, %s6190_s11  ;;  %s7247_s15 = smov (!%p1820_p2, %s7243_s15), 7 }
 0x443   :  { %s7249_s13 = smov (!%p1820_p2, %s7245_s13), %s1810_s20  ;;  %p1826_p4 = scmp.eq.s32.totalorder %s7247_s15, 0 }
 0x445   :  { %p1827_p5 = pnand %p1826_p4, %p1825_p3 }
 0x446   :  { %s5518_s8 = spop %5517 }
 0x447   :  { %s1831_s9 = sadd.s32 %s5518_s8, %s1824_s7  ;;  %s7251_s15 = smov (!%p1827_p5, %s7247_s15), 6 }
 0x448   :  { %p1832_p6 = scmp.ge.s32.totalorder %s1831_s9, %s6190_s11  ;;  %s5520_s12 = spop %5519 }
 0x449   :  { %s7253_s13 = smov (!%p1827_p5, %s7249_s13), %s1817_s4  ;;  %p1833_p7 = scmp.eq.s32.totalorder %s7251_s15, 0 }
 0x44a   :  { %s1838_s28 = sadd.s32 %s5520_s12, %s1831_s9 }
 0x44b   :  { %p1834_p8 = pnand %p1833_p7, %p1832_p6  ;;  %p1839_p9 = scmp.ge.s32.totalorder %s1838_s28, %s6190_s11 }
 0x44d   :  { %s7255_s15 = smov (!%p1834_p8, %s7251_s15), 5  ;;  %s7257_s13 = smov (!%p1834_p8, %s7253_s13), %s1824_s7 }
 0x44e   :  { %p1840_p10 = scmp.eq.s32.totalorder %s7255_s15, 0 }
 0x450   :  { %s5522_s29 = spop %5521  ;;  %p1841_p11 = pnand %p1840_p10, %p1839_p9 }
 0x451   :  { %s1845_s10 = sadd.s32 %s5522_s29, %s1838_s28 }
 0x452   :  { %p1846_p12 = scmp.ge.s32.totalorder %s1845_s10, %s6190_s11  ;;  %s7259_s15 = smov (!%p1841_p11, %s7255_s15), 4 }
 0x453   :  { %s7261_s13 = smov (!%p1841_p11, %s7257_s13), %s1831_s9  ;;  %p1847_p13 = scmp.eq.s32.totalorder %s7259_s15, 0 }
 0x455   :  { %p1848_p0 = pnand %p1847_p13, %p1846_p12 }
 0x456   :  { %s5524_s19 = spop %5523 }
 0x457   :  { %s1852_s16 = sadd.s32 %s5524_s19, %s1845_s10  ;;  %s7263_s15 = smov (!%p1848_p0, %s7259_s15), 3 }
 0x458   :  { %p1853_p1 = scmp.ge.s32.totalorder %s1852_s16, %s6190_s11  ;;  %s7265_s13 = smov (!%p1848_p0, %s7261_s13), %s1838_s28 }
 0x459   :  { %p1854_p2 = scmp.eq.s32.totalorder %s7263_s15, 0  ;;  %s5526_s14 = spop %5525 }
 0x45a   :  { %s1859_s0 = sadd.s32 %s5526_s14, %s1852_s16 }
 0x45b   :  { %p1855_p3 = pnand %p1854_p2, %p1853_p1  ;;  %p1860_p4 = scmp.ge.s32.totalorder %s1859_s0, %s6190_s11 }
 0x45d   :  { %s7267_s15 = smov (!%p1855_p3, %s7263_s15), 2  ;;  %s7269_s13 = smov (!%p1855_p3, %s7265_s13), %s1845_s10 }
 0x45e   :  { %p1861_p5 = scmp.eq.s32.totalorder %s7267_s15, 0 }
 0x460   :  { %p1862_p6 = pnand %p1861_p5, %p1860_p4 }
 0x462   :  { %s7271_s15 = smov (!%p1862_p6, %s7267_s15), 1  ;;  %s7273_s13 = smov (!%p1862_p6, %s7269_s13), %s1852_s16 }
 0x463   :  { %p1866_p7 = scmp.eq.s32.totalorder %s7271_s15, 0  ;;  %s1869_s17 = sshll.u32 %s7271_s15, 16 }
 0x464   :  { %s6239_s18 = sor.u32 %s1869_s17, %s6121_s26 }
 0x465   :  { %s7275_s0 = smov (!%p1866_p7, %s1859_s0), %s7273_s13  ;;  %s1896_s27 = sor.u32 57344, %s6239_s18 }
 0x466   :  { %s1872_s22 = sor.u32 61440, %s6239_s18  ;;  %v1897_v46 = vstv %s1896_s27  ;;  %s1920_s23 = sor.u32 53248, %s6239_s18 }
 0x467   :  { %v1873_v47 = vstv %s1872_s22  ;;  %vm1898_vm3 = vcmp.eq.s32.totalorder %v6242_v45, %v1897_v46  ;;  %v1921_v63 = vstv %s1920_s23  ;;  %s1968_s26 = sor.u32 45056, %s6239_s18  ;;  %s1944_s13 = sor.u32 49152, %s6239_s18 }
 0x468   :  { %vm1874_vm4 = vcmp.eq.s32.totalorder %v6242_v45, %v1873_v47  ;;  %v1899_v48 = vsel %vm1898_vm3, 1, %v5794_v11  ;;  %vm1922_vm5 = vcmp.eq.s32.totalorder %v6242_v45, %v1921_v63  ;;  %v1969_v59 = vstv %s1968_s26  ;;  %s1992_s15 = sor.u32 40960, %s6239_s18  ;;  %s2040_s24 = sor.u32 32768, %s6239_s18 }
 0x469   :  { %v1875_v49 = vsel %vm1874_vm4, 1, %v5794_v11  ;;  %v1900_v50 = vsel %vm40_vm2, %v1899_v48, 0  ;;  %v1923_v55 = vsel %vm1922_vm5, 1, %v5794_v11  ;;  %v1945_v61 = vstv %s1944_s13  ;;  %s2016_s25 = sor.u32 36864, %s6239_s18  ;;  %s2064_s30 = sor.u32 28672, %s6239_s18 }
 0x46a   :  { %v1876_v51 = vsel %vm40_vm2, %v1875_v49, 0  ;;  %v1902_v52 = vshrl.u32 %v1900_v50, 16  ;;  %v1924_v60 = vsel %vm40_vm2, %v1923_v55, 0  ;;  %vm1970_vm6 = vcmp.eq.s32.totalorder %v6242_v45, %v1969_v59  ;;  %s2112_s2 = sor.u32 20480, %s6239_s18  ;;  %s2088_s3 = sor.u32 24576, %s6239_s18 }
 0x46b   :  { %v1878_v53 = vshrl.u32 %v1876_v51, 16  ;;  %v1877_v54 = vand.u32 65535, %v1876_v51  ;;  %vm1946_vm7 = vcmp.eq.s32.totalorder %v6242_v45, %v1945_v61  ;;  %v1925_v62 = vand.u32 65535, %v1924_v60  ;;  %s2136_s6 = sor.u32 16384, %s6239_s18  ;;  %s2184_s20 = sor.u32 8192, %s6239_s18 }
 0x46c   :  { %v1904_v56 = vcvt.s32.f32 %v1902_v52  ;;  %v1901_v0 = vand.u32 65535, %v1900_v50  ;;  %v1926_v1 = vshrl.u32 %v1924_v60, 16  ;;  %v1971_v21 = vsel %vm1970_vm6, 1, %v5794_v11  ;;  %s2160_s21 = sor.u32 12288, %s6239_s18  ;;  %s2208_s4 = sor.u32 4096, %s6239_s18 }
 0x46d   :  { %v1880_v57 = vcvt.s32.f32 %v1878_v53  ;;  %v1879_v58 = vcvt.s32.f32 %v1877_v54  ;;  %v1947_v2 = vsel %vm1946_vm7, 1, %v5794_v11  ;;  %v1927_v3 = vcvt.s32.f32 %v1925_v62  ;;  %s6308_s5 = ssub.s32 %s6190_s11, %s7275_s0 }
 0x46e   :  { %1907 = vadd.xlane.f32.xlu2 %v1904_v56  ;;  %v1903_v5 = vcvt.s32.f32 %v1901_v0  ;;  %v1993_v6 = vstv %s1992_s15  ;;  %v1928_v7 = vcvt.s32.f32 %v1926_v1  ;;  %v1972_v8 = vsel %vm40_vm2, %v1971_v21, 0 }
 0x46f   :  { %1883 = vadd.xlane.f32.xlu0 %v1880_v57  ;;  %1881 = vadd.xlane.f32.xlu1 %v1879_v58  ;;  %v1948_v12 = vsel %vm40_vm2, %v1947_v2, 0  ;;  %vm1994_vm8 = vcmp.eq.s32.totalorder %v6242_v45, %v1993_v6  ;;  %v1974_v13 = vshrl.u32 %v1972_v8, 16  ;;  %v2041_v19 = vstv %s2040_s24 }
 0x470   :  { %v1950_v14 = vshrl.u32 %v1948_v12, 16  ;;  %v1949_v15 = vand.u32 65535, %v1948_v12  ;;  %v1995_v16 = vsel %vm1994_vm8, 1, %v5794_v11  ;;  %v2017_v20 = vstv %s2016_s25 }
 0x471   :  { %v1976_v17 = vcvt.s32.f32 %v1974_v13  ;;  %v1996_v23 = vsel %vm40_vm2, %v1995_v16, 0  ;;  %vm2042_vm9 = vcmp.eq.s32.totalorder %v6242_v45, %v2041_v19  ;;  %vm2018_vm10 = vcmp.eq.s32.totalorder %v6242_v45, %v2017_v20 }
 0x472   :  { %v1952_v18 = vcvt.s32.f32 %v1950_v14  ;;  %v1951_v22 = vcvt.s32.f32 %v1949_v15  ;;  %v1997_v10 = vand.u32 65535, %v1996_v23  ;;  %v1973_v24 = vand.u32 65535, %v1972_v8 }
 0x473   :  { %v1998_v25 = vshrl.u32 %v1996_v23, 16  ;;  %v2043_v26 = vsel %vm2042_vm9, 1, %v5794_v11  ;;  %v2019_v27 = vsel %vm2018_vm10, 1, %v5794_v11  ;;  %v2065_v30 = vstv %s2064_s30 }
 0x474   :  { %v1999_v28 = vcvt.s32.f32 %v1997_v10  ;;  %v1975_v29 = vcvt.s32.f32 %v1973_v24  ;;  %v2044_v32 = vsel %vm40_vm2, %v2043_v26, 0  ;;  %v2020_v33 = vsel %vm40_vm2, %v2019_v27, 0 }
 0x475   :  { %v2000_v31 = vcvt.s32.f32 %v1998_v25  ;;  %vm2066_vm11 = vcmp.eq.s32.totalorder %v6242_v45, %v2065_v30  ;;  %v2046_v34 = vshrl.u32 %v2044_v32, 16  ;;  %v2022_v35 = vshrl.u32 %v2020_v33, 16 }
 0x476   :  { %1929 = vadd.xlane.f32.xlu2 %v1927_v3  ;;  %v2021_v36 = vand.u32 65535, %v2020_v33  ;;  %v2067_v37 = vsel %vm2066_vm11, 1, %v5794_v11  ;;  %v2113_v40 = vstv %s2112_s2  ;;  %v2089_v41 = vstv %s2088_s3 }
 0x477   :  { %1905 = vadd.xlane.f32.xlu0 %v1903_v5  ;;  %1931 = vadd.xlane.f32.xlu1 %v1928_v7  ;;  %v2048_v38 = vcvt.s32.f32 %v2046_v34  ;;  %v2024_v39 = vcvt.s32.f32 %v2022_v35  ;;  %v2068_v43 = vsel %vm40_vm2, %v2067_v37, 0  ;;  %vm2114_vm12 = vcmp.eq.s32.totalorder %v6242_v45, %v2113_v40 }
 0x478   :  { %v2023_v42 = vcvt.s32.f32 %v2021_v36  ;;  %vm2090_vm13 = vcmp.eq.s32.totalorder %v6242_v45, %v2089_v41  ;;  %v2069_v44 = vand.u32 65535, %v2068_v43  ;;  %v2045_v46 = vand.u32 65535, %v2044_v32 }
 0x479   :  { %v2070_v47 = vshrl.u32 %v2068_v43, 16  ;;  %v2115_v63 = vsel %vm2114_vm12, 1, %v5794_v11  ;;  %v2091_v48 = vsel %vm2090_vm13, 1, %v5794_v11  ;;  %v2137_v51 = vstv %s2136_s6 }
 0x47a   :  { %v2071_v49 = vcvt.s32.f32 %v2069_v44  ;;  %v2047_v50 = vcvt.s32.f32 %v2045_v46  ;;  %v2116_v53 = vsel %vm40_vm2, %v2115_v63, 0  ;;  %v2092_v54 = vsel %vm40_vm2, %v2091_v48, 0 }
 0x47b   :  { %v2072_v52 = vcvt.s32.f32 %v2070_v47  ;;  %vm2138_vm14 = vcmp.eq.s32.totalorder %v6242_v45, %v2137_v51  ;;  %v2118_v55 = vshrl.u32 %v2116_v53, 16  ;;  %v2094_v56 = vshrl.u32 %v2092_v54, 16 }
 0x47c   :  { %v2093_v57 = vand.u32 65535, %v2092_v54  ;;  %v2139_v58 = vsel %vm2138_vm14, 1, %v5794_v11  ;;  %v2185_v61 = vstv %s2184_s20  ;;  %v2161_v62 = vstv %s2160_s21 }
 0x47d   :  { %v2120_v59 = vcvt.s32.f32 %v2118_v55  ;;  %v2096_v60 = vcvt.s32.f32 %v2094_v56  ;;  %v2140_v1 = vsel %vm40_vm2, %v2139_v58, 0  ;;  %vm2186_vm15 = vcmp.eq.s32.totalorder %v6242_v45, %v2185_v61 }
 0x47e   :  { %1979 = vadd.xlane.f32.xlu2 %v1976_v17  ;;  %v2095_v0 = vcvt.s32.f32 %v2093_v57  ;;  %vm2162_vm0 = vcmp.eq.s32.totalorder %v6242_v45, %v2161_v62  ;;  %v2141_v21 = vand.u32 65535, %v2140_v1  ;;  %v2117_v2 = vand.u32 65535, %v2116_v53 }
 0x47f   :  { %1955 = vadd.xlane.f32.xlu0 %v1952_v18  ;;  %1953 = vadd.xlane.f32.xlu1 %v1951_v22  ;;  %v2142_v3 = vshrl.u32 %v2140_v1, 16  ;;  %v2187_v5 = vsel %vm2186_vm15, 1, %v5794_v11  ;;  %v2163_v6 = vsel %vm2162_vm0, 1, %v5794_v11  ;;  %v2209_v12 = vstv %s2208_s4 }
 0x480   :  { %v2143_v7 = vcvt.s32.f32 %v2141_v21  ;;  %v2119_v8 = vcvt.s32.f32 %v2117_v2  ;;  %v2188_v14 = vsel %vm40_vm2, %v2187_v5, 0  ;;  %v2164_v15 = vsel %vm40_vm2, %v2163_v6, 0 }
 0x481   :  { %v2144_v13 = vcvt.s32.f32 %v2142_v3  ;;  %vm2210_vm1 = vcmp.eq.s32.totalorder %v6242_v45, %v2209_v12  ;;  %v2190_v16 = vshrl.u32 %v2188_v14, 16  ;;  %v2166_v17 = vshrl.u32 %v2164_v15, 16 }
 0x482   :  { %v2165_v18 = vand.u32 65535, %v2164_v15  ;;  %v2211_v19 = vsel %vm2210_vm1, 1, %v5794_v11  ;;  %v2189_v24 = vand.u32 65535, %v2188_v14 }
 0x483   :  { %v2192_v20 = vcvt.s32.f32 %v2190_v16  ;;  %v2168_v22 = vcvt.s32.f32 %v2166_v17  ;;  %v2212_v10 = vsel %vm40_vm2, %v2211_v19, 0 }
 0x484   :  { %v2167_v23 = vcvt.s32.f32 %v2165_v18  ;;  %v2213_v25 = vand.u32 65535, %v2212_v10  ;;  %v2214_v26 = vshrl.u32 %v2212_v10, 16 }
 0x486   :  { %2001 = vadd.xlane.f32.xlu2 %v1999_v28  ;;  %v2215_v27 = vcvt.s32.f32 %v2213_v25  ;;  %v2191_v28 = vcvt.s32.f32 %v2189_v24 }
 0x487   :  { %1977 = vadd.xlane.f32.xlu0 %v1975_v29  ;;  %2003 = vadd.xlane.f32.xlu1 %v2000_v31  ;;  %v2216_v29 = vcvt.s32.f32 %v2214_v26 }
 0x48e   :  { %2051 = vadd.xlane.f32.xlu2 %v2048_v38 }
 0x48f   :  { %2027 = vadd.xlane.f32.xlu0 %v2024_v39  ;;  %2025 = vadd.xlane.f32.xlu1 %v2023_v42 }
 0x496   :  { %2073 = vadd.xlane.f32.xlu2 %v2071_v49 }
 0x497   :  { %2049 = vadd.xlane.f32.xlu0 %v2047_v50  ;;  %2075 = vadd.xlane.f32.xlu1 %v2072_v52 }
 0x49e   :  { %2123 = vadd.xlane.f32.xlu2 %v2120_v59 }
 0x49f   :  { %2099 = vadd.xlane.f32.xlu0 %v2096_v60  ;;  %2097 = vadd.xlane.f32.xlu1 %v2095_v0 }
 0x4a6   :  { %2145 = vadd.xlane.f32.xlu2 %v2143_v7 }
 0x4a7   :  { %2121 = vadd.xlane.f32.xlu0 %v2119_v8  ;;  %2147 = vadd.xlane.f32.xlu1 %v2144_v13 }
 0x4ae   :  { %2195 = vadd.xlane.f32.xlu2 %v2192_v20 }
 0x4af   :  { %2171 = vadd.xlane.f32.xlu0 %v2168_v22  ;;  %2169 = vadd.xlane.f32.xlu1 %v2167_v23 }
 0x4b6   :  { %2217 = vadd.xlane.f32.xlu2 %v2215_v27 }
 0x4b7   :  { %2193 = vadd.xlane.f32.xlu0 %v2191_v28  ;;  %2219 = vadd.xlane.f32.xlu1 %v2216_v29 }
 0x4e1   :  { %v1908_v45 = vpop.xlane.xlu2 %1907 }
 0x4e2   :  { %v1884_v30 = vpop.xlane.xlu0 %1883  ;;  %v1882_v32 = vpop.xlane.xlu1 %1881  ;;  %v1910_v35 = vcvt.f32.s32 %v1908_v45 }
 0x4e3   :  { %v1886_v31 = vcvt.f32.s32 %v1884_v30  ;;  %v1885_v34 = vcvt.f32.s32 %v1882_v32 }
 0x4e4   :  { %v1911_v40 = vshll.u32 %v1910_v35, 16 }
 0x4e5   :  { %v1887_v33 = vshll.u32 %v1886_v31, 16 }
 0x4e7   :  { %v1888_v36 = vadd.s32 %v1887_v33, %v1885_v34 }
 0x4e9   :  { %v1889_v37 = vrot.slane %v1888_v36, 4  ;;  %v1930_v38 = vpop.xlane.xlu2 %1929 }
 0x4ea   :  { %v1906_v39 = vpop.xlane.xlu0 %1905  ;;  %v1932_v42 = vpop.xlane.xlu1 %1931  ;;  %v1933_v63 = vcvt.f32.s32 %v1930_v38 }
 0x4eb   :  { %v1909_v41 = vcvt.f32.s32 %v1906_v39  ;;  %v1890_v43 = vadd.s32 %v1889_v37, %v1888_v36  ;;  %v1934_v44 = vcvt.f32.s32 %v1932_v42 }
 0x4ed   :  { %v1912_v46 = vadd.s32 %v1911_v40, %v1909_v41  ;;  %v1891_v47 = vrot.slane %v1890_v43, 2  ;;  %v1935_v48 = vshll.u32 %v1934_v44, 16 }
 0x4ef   :  { %v1913_v49 = vrot.slane %v1912_v46, 4  ;;  %v1892_v50 = vadd.s32 %v1891_v47, %v1890_v43  ;;  %v1936_v51 = vadd.s32 %v1935_v48, %v1933_v63 }
 0x4f1   :  { %v1893_v52 = vrot.slane %v1892_v50, 1  ;;  %v1914_v53 = vadd.s32 %v1913_v49, %v1912_v46  ;;  %v1937_v54 = vrot.slane %v1936_v51, 4  ;;  %v1980_v55 = vpop.xlane.xlu2 %1979 }
 0x4f2   :  { %v1956_v56 = vpop.xlane.xlu0 %1955  ;;  %v1954_v58 = vpop.xlane.xlu1 %1953  ;;  %v1982_v2 = vcvt.f32.s32 %v1980_v55 }
 0x4f3   :  { %v1958_v57 = vcvt.f32.s32 %v1956_v56  ;;  %v1894_v59 = vadd.s32 %v1893_v52, %v1892_v50  ;;  %v1915_v60 = vrot.slane %v1914_v53, 2  ;;  %v1938_v61 = vadd.s32 %v1937_v54, %v1936_v51 }
 0x4f4   :  { %v1957_v0 = vcvt.f32.s32 %v1954_v58  ;;  %v1983_v15 = vshll.u32 %v1982_v2, 16 }
 0x4f5   :  { %v1959_v62 = vshll.u32 %v1958_v57, 16  ;;  %5527 = vpush %v1894_v59  ;;  %v1916_v1 = vadd.s32 %v1915_v60, %v1914_v53  ;;  %v1939_v21 = vrot.slane %v1938_v61, 2 }
 0x4f7   :  { %v1960_v3 = vadd.s32 %v1959_v62, %v1957_v0  ;;  %v1917_v5 = vrot.slane %v1916_v1, 1  ;;  %v1940_v6 = vadd.s32 %v1939_v21, %v1938_v61 }
 0x4f9   :  { %v1961_v7 = vrot.slane %v1960_v3, 4  ;;  %v1918_v8 = vadd.s32 %v1917_v5, %v1916_v1  ;;  %v2002_v12 = vpop.xlane.xlu2 %2001  ;;  %v1941_v14 = vrot.slane %v1940_v6, 1 }
 0x4fa   :  { %v1978_v13 = vpop.xlane.xlu0 %1977  ;;  %v2004_v17 = vpop.xlane.xlu1 %2003  ;;  %v2005_v10 = vcvt.f32.s32 %v2002_v12 }
 0x4fb   :  { %v1981_v16 = vcvt.f32.s32 %v1978_v13  ;;  %5529 = vpush %v1918_v8  ;;  %v1962_v18 = vadd.s32 %v1961_v7, %v1960_v3  ;;  %v2006_v19 = vcvt.f32.s32 %v2004_v17  ;;  %v1942_v20 = vadd.s32 %v1941_v14, %v1940_v6 }
 0x4fd   :  { %v1984_v22 = vadd.s32 %v1983_v15, %v1981_v16  ;;  %v1963_v23 = vrot.slane %v1962_v18, 2  ;;  %v2007_v24 = vshll.u32 %v2006_v19, 16  ;;  %5531 = vpush %v1942_v20 }
 0x4ff   :  { %v1985_v25 = vrot.slane %v1984_v22, 4  ;;  %v1964_v26 = vadd.s32 %v1963_v23, %v1962_v18  ;;  %v2008_v27 = vadd.s32 %v2007_v24, %v2005_v10 }
 0x501   :  { %v1965_v28 = vrot.slane %v1964_v26, 1  ;;  %v1986_v29 = vadd.s32 %v1985_v25, %v1984_v22  ;;  %v2009_v45 = vrot.slane %v2008_v27, 4  ;;  %v2052_v30 = vpop.xlane.xlu2 %2051 }
 0x502   :  { %v2028_v31 = vpop.xlane.xlu0 %2027  ;;  %v2026_v33 = vpop.xlane.xlu1 %2025  ;;  %v2054_v41 = vcvt.f32.s32 %v2052_v30 }
 0x503   :  { %v2030_v32 = vcvt.f32.s32 %v2028_v31  ;;  %v1966_v34 = vadd.s32 %v1965_v28, %v1964_v26  ;;  %v1987_v35 = vrot.slane %v1986_v29, 2  ;;  %v2010_v36 = vadd.s32 %v2009_v45, %v2008_v27 }
 0x504   :  { %v2029_v38 = vcvt.f32.s32 %v2026_v33  ;;  %v2055_v50 = vshll.u32 %v2054_v41, 16 }
 0x505   :  { %v2031_v37 = vshll.u32 %v2030_v32, 16  ;;  %5533 = vpush %v1966_v34  ;;  %v1988_v39 = vadd.s32 %v1987_v35, %v1986_v29  ;;  %v2011_v40 = vrot.slane %v2010_v36, 2 }
 0x507   :  { %v2032_v42 = vadd.s32 %v2031_v37, %v2029_v38  ;;  %v1989_v43 = vrot.slane %v1988_v39, 1  ;;  %v2012_v44 = vadd.s32 %v2011_v40, %v2010_v36 }
 0x509   :  { %v2033_v46 = vrot.slane %v2032_v42, 4  ;;  %v1990_v47 = vadd.s32 %v1989_v43, %v1988_v39  ;;  %v2074_v63 = vpop.xlane.xlu2 %2073  ;;  %v2013_v49 = vrot.slane %v2012_v44, 1 }
 0x50a   :  { %v2050_v48 = vpop.xlane.xlu0 %2049  ;;  %v2076_v52 = vpop.xlane.xlu1 %2075  ;;  %v2077_v58 = vcvt.f32.s32 %v2074_v63 }
 0x50b   :  { %v2053_v51 = vcvt.f32.s32 %v2050_v48  ;;  %5535 = vpush %v1990_v47  ;;  %v2034_v53 = vadd.s32 %v2033_v46, %v2032_v42  ;;  %v2078_v54 = vcvt.f32.s32 %v2076_v52  ;;  %v2014_v55 = vadd.s32 %v2013_v49, %v2012_v44 }
 0x50d   :  { %v2056_v56 = vadd.s32 %v2055_v50, %v2053_v51  ;;  %v2035_v57 = vrot.slane %v2034_v53, 2  ;;  %v2079_v59 = vshll.u32 %v2078_v54, 16  ;;  %5537 = vpush %v2014_v55 }
 0x50f   :  { %v2057_v60 = vrot.slane %v2056_v56, 4  ;;  %v2036_v61 = vadd.s32 %v2035_v57, %v2034_v53  ;;  %v2080_v62 = vadd.s32 %v2079_v59, %v2077_v58 }
 0x511   :  { %v2037_v0 = vrot.slane %v2036_v61, 1  ;;  %v2058_v1 = vadd.s32 %v2057_v60, %v2056_v56  ;;  %v2081_v21 = vrot.slane %v2080_v62, 4  ;;  %v2124_v2 = vpop.xlane.xlu2 %2123 }
 0x512   :  { %v2100_v3 = vpop.xlane.xlu0 %2099  ;;  %v2098_v6 = vpop.xlane.xlu1 %2097  ;;  %v2126_v17 = vcvt.f32.s32 %v2124_v2 }
 0x513   :  { %v2102_v5 = vcvt.f32.s32 %v2100_v3  ;;  %v2038_v7 = vadd.s32 %v2037_v0, %v2036_v61  ;;  %v2059_v8 = vrot.slane %v2058_v1, 2  ;;  %v2082_v12 = vadd.s32 %v2081_v21, %v2080_v62 }
 0x514   :  { %v2101_v14 = vcvt.f32.s32 %v2098_v6  ;;  %v2127_v26 = vshll.u32 %v2126_v17, 16 }
 0x515   :  { %v2103_v13 = vshll.u32 %v2102_v5, 16  ;;  %5539 = vpush %v2038_v7  ;;  %v2060_v15 = vadd.s32 %v2059_v8, %v2058_v1  ;;  %v2083_v16 = vrot.slane %v2082_v12, 2 }
 0x517   :  { %v2104_v18 = vadd.s32 %v2103_v13, %v2101_v14  ;;  %v2061_v19 = vrot.slane %v2060_v15, 1  ;;  %v2084_v20 = vadd.s32 %v2083_v16, %v2082_v12 }
 0x519   :  { %v2105_v22 = vrot.slane %v2104_v18, 4  ;;  %v2062_v23 = vadd.s32 %v2061_v19, %v2060_v15  ;;  %v2146_v10 = vpop.xlane.xlu2 %2145  ;;  %v2085_v25 = vrot.slane %v2084_v20, 1 }
 0x51a   :  { %v2122_v24 = vpop.xlane.xlu0 %2121  ;;  %v2148_v28 = vpop.xlane.xlu1 %2147  ;;  %v2149_v33 = vcvt.f32.s32 %v2146_v10 }
 0x51b   :  { %v2125_v27 = vcvt.f32.s32 %v2122_v24  ;;  %5541 = vpush %v2062_v23  ;;  %v2106_v29 = vadd.s32 %v2105_v22, %v2104_v18  ;;  %v2150_v45 = vcvt.f32.s32 %v2148_v28  ;;  %v2086_v30 = vadd.s32 %v2085_v25, %v2084_v20 }
 0x51d   :  { %v2128_v31 = vadd.s32 %v2127_v26, %v2125_v27  ;;  %v2107_v32 = vrot.slane %v2106_v29, 2  ;;  %v2151_v34 = vshll.u32 %v2150_v45, 16  ;;  %5543 = vpush %v2086_v30  ;;  %v6360_v27 = vand.u32 4294967040, %v5813_v9 }
 0x51f   :  { %v2129_v35 = vrot.slane %v2128_v31, 4  ;;  %v2108_v36 = vadd.s32 %v2107_v32, %v2106_v29  ;;  %v2152_v37 = vadd.s32 %v2151_v34, %v2149_v33 }
 0x521   :  { %v2109_v38 = vrot.slane %v2108_v36, 1  ;;  %v2130_v39 = vadd.s32 %v2129_v35, %v2128_v31  ;;  %v2153_v40 = vrot.slane %v2152_v37, 4  ;;  %v2196_v41 = vpop.xlane.xlu2 %2195 }
 0x522   :  { %v2172_v42 = vpop.xlane.xlu0 %2171  ;;  %v2170_v44 = vpop.xlane.xlu1 %2169  ;;  %v2198_v52 = vcvt.f32.s32 %v2196_v41 }
 0x523   :  { %v2174_v43 = vcvt.f32.s32 %v2172_v42  ;;  %v2110_v46 = vadd.s32 %v2109_v38, %v2108_v36  ;;  %v2131_v47 = vrot.slane %v2130_v39, 2  ;;  %v2154_v63 = vadd.s32 %v2153_v40, %v2152_v37 }
 0x524   :  { %v2173_v49 = vcvt.f32.s32 %v2170_v44  ;;  %v2199_v60 = vshll.u32 %v2198_v52, 16 }
 0x525   :  { %v2175_v48 = vshll.u32 %v2174_v43, 16  ;;  %5545 = vpush %v2110_v46  ;;  %v2132_v50 = vadd.s32 %v2131_v47, %v2130_v39  ;;  %v2155_v51 = vrot.slane %v2154_v63, 2 }
 0x526   :  { %s6310_s7 = spop %5527 }
 0x527   :  { %v2176_v53 = vadd.s32 %v2175_v48, %v2173_v49  ;;  %p2232_p8 = scmp.ge.s32.totalorder %s6310_s7, %s6308_s5  ;;  %v2133_v54 = vrot.slane %v2132_v50, 1  ;;  %v2156_v55 = vadd.s32 %v2155_v51, %v2154_v63 }
 0x529   :  { %v2177_v56 = vrot.slane %v2176_v53, 4  ;;  %v2134_v57 = vadd.s32 %v2133_v54, %v2132_v50  ;;  %s2233_s8 = scalar_select %p2232_p8, 15, 0  ;;  %v2157_v59 = vrot.slane %v2156_v55, 1  ;;  %v2218_v61 = vpop.xlane.xlu2 %2217 }
 0x52a   :  { %v2194_v58 = vpop.xlane.xlu0 %2193  ;;  %v2220_v0 = vpop.xlane.xlu1 %2219  ;;  %v2221_v6 = vcvt.f32.s32 %v2218_v61 }
 0x52b   :  { %v2197_v62 = vcvt.f32.s32 %v2194_v58  ;;  %5547 = vpush %v2134_v57  ;;  %v2178_v1 = vadd.s32 %v2177_v56, %v2176_v53  ;;  %v2222_v21 = vcvt.f32.s32 %v2220_v0  ;;  %v2158_v2 = vadd.s32 %v2157_v59, %v2156_v55  ;;  %p2236_p9 = scmp.eq.s32.totalorder %s2233_s8, 0 }
 0x52c   :  { %s5530_s11 = spop %5529 }
 0x52d   :  { %v2200_v3 = vadd.s32 %v2199_v60, %v2197_v62  ;;  %s6315_s9 = sadd.s32 %s5530_s11, %s6310_s7  ;;  %v2179_v5 = vrot.slane %v2178_v1, 2  ;;  %v2223_v7 = vshll.u32 %v2222_v21, 16  ;;  %5549 = vpush %v2158_v2 }
 0x52e   :  { %p2235_p10 = scmp.ge.s32.totalorder %s6315_s9, %s6308_s5  ;;  %s5532_s12 = spop %5531 }
 0x52f   :  { %v2201_v8 = vrot.slane %v2200_v3, 4  ;;  %v2180_v12 = vadd.s32 %v2179_v5, %v2178_v1  ;;  %v2224_v13 = vadd.s32 %v2223_v7, %v2221_v6  ;;  %s6324_s29 = sadd.s32 %s5532_s12, %s6315_s9 }
 0x530   :  { %p6319_p11 = pnand %p2236_p9, %p2235_p10  ;;  %p2242_p12 = scmp.ge.s32.totalorder %s6324_s29, %s6308_s5 }
 0x531   :  { %v2181_v14 = vrot.slane %v2180_v12, 1  ;;  %v2202_v15 = vadd.s32 %v2201_v8, %v2200_v3  ;;  %v2225_v16 = vrot.slane %v2224_v13, 4 }
 0x532   :  { %s7277_s8 = smov (!%p6319_p11, %s2233_s8), 14  ;;  %s7279_s7 = smov (%p6319_p11, %s6310_s7), 0 }
 0x533   :  { %v2182_v17 = vadd.s32 %v2181_v14, %v2180_v12  ;;  %v2203_v18 = vrot.slane %v2202_v15, 2  ;;  %p2243_p13 = scmp.eq.s32.totalorder %s7277_s8, 0  ;;  %v2226_v19 = vadd.s32 %v2225_v16, %v2224_v13 }
 0x535   :  { %5551 = vpush %v2182_v17  ;;  %v2204_v20 = vadd.s32 %v2203_v18, %v2202_v15  ;;  %p2244_p0 = pnand %p2243_p13, %p2242_p12  ;;  %v2227_v22 = vrot.slane %v2226_v19, 2 }
 0x536   :  { %s5534_s10 = spop %5533 }
 0x537   :  { %s2248_s19 = sadd.s32 %s5534_s10, %s6324_s29  ;;  %v2205_v23 = vrot.slane %v2204_v20, 1  ;;  %s7281_s8 = smov (!%p2244_p0, %s7277_s8), 13  ;;  %v2228_v10 = vadd.s32 %v2227_v22, %v2226_v19 }
 0x538   :  { %s7283_s7 = smov (!%p2244_p0, %s7279_s7), %s6315_s9  ;;  %p2249_p1 = scmp.ge.s32.totalorder %s2248_s19, %s6308_s5 }
 0x539   :  { %v2206_v24 = vadd.s32 %v2205_v23, %v2204_v20  ;;  %p2250_p2 = scmp.eq.s32.totalorder %s7281_s8, 0  ;;  %v2229_v25 = vrot.slane %v2228_v10, 1 }
 0x53b   :  { %5553 = vpush %v2206_v24  ;;  %p6336_p3 = pnand %p2250_p2, %p2249_p1  ;;  %v2230_v26 = vadd.s32 %v2229_v25, %v2228_v10 }
 0x53c   :  { %s5536_s14 = spop %5535 }
 0x53d   :  { %s2255_s0 = sadd.s32 %s5536_s14, %s2248_s19  ;;  %s7285_s8 = smov (!%p6336_p3, %s7281_s8), 12  ;;  %5555 = vpush %v2230_v26 }
 0x53e   :  { %s7287_s7 = smov (!%p6336_p3, %s7283_s7), %s6324_s29  ;;  %p2256_p4 = scmp.ge.s32.totalorder %s2255_s0, %s6308_s5 }
 0x53f   :  { %p2257_p5 = scmp.eq.s32.totalorder %s7285_s8, 0  ;;  %s5538_s17 = spop %5537 }
 0x540   :  { %s2262_s27 = sadd.s32 %s5538_s17, %s2255_s0 }
 0x541   :  { %p2258_p6 = pnand %p2257_p5, %p2256_p4  ;;  %p2263_p7 = scmp.ge.s32.totalorder %s2262_s27, %s6308_s5 }
 0x543   :  { %s7289_s8 = smov (!%p2258_p6, %s7285_s8), 11  ;;  %s7291_s7 = smov (!%p2258_p6, %s7287_s7), %s2248_s19 }
 0x544   :  { %p2264_p8 = scmp.eq.s32.totalorder %s7289_s8, 0 }
 0x546   :  { %s5540_s22 = spop %5539  ;;  %p2265_p9 = pnand %p2264_p8, %p2263_p7 }
 0x547   :  { %s2269_s23 = sadd.s32 %s5540_s22, %s2262_s27 }
 0x548   :  { %p2270_p10 = scmp.ge.s32.totalorder %s2269_s23, %s6308_s5  ;;  %s7293_s8 = smov (!%p2265_p9, %s7289_s8), 10 }
 0x549   :  { %s7295_s7 = smov (!%p2265_p9, %s7291_s7), %s2255_s0  ;;  %p2271_p11 = scmp.eq.s32.totalorder %s7293_s8, 0 }
 0x54b   :  { %p2272_p12 = pnand %p2271_p11, %p2270_p10 }
 0x54c   :  { %s5542_s26 = spop %5541 }
 0x54d   :  { %s2276_s13 = sadd.s32 %s5542_s26, %s2269_s23  ;;  %s7297_s8 = smov (!%p2272_p12, %s7293_s8), 9 }
 0x54e   :  { %p2277_p13 = scmp.ge.s32.totalorder %s2276_s13, %s6308_s5  ;;  %s5544_s15 = spop %5543 }
 0x54f   :  { %s7299_s7 = smov (!%p2272_p12, %s7295_s7), %s2262_s27  ;;  %p2278_p0 = scmp.eq.s32.totalorder %s7297_s8, 0 }
 0x550   :  { %s2283_s24 = sadd.s32 %s5544_s15, %s2276_s13 }
 0x551   :  { %p2279_p1 = pnand %p2278_p0, %p2277_p13  ;;  %p2284_p2 = scmp.ge.s32.totalorder %s2283_s24, %s6308_s5 }
 0x553   :  { %s7301_s8 = smov (!%p2279_p1, %s7297_s8), 8  ;;  %s7303_s7 = smov (!%p2279_p1, %s7299_s7), %s2269_s23 }
 0x554   :  { %p2285_p3 = scmp.eq.s32.totalorder %s7301_s8, 0 }
 0x556   :  { %s5546_s25 = spop %5545  ;;  %p2286_p4 = pnand %p2285_p3, %p2284_p2 }
 0x557   :  { %s2290_s30 = sadd.s32 %s5546_s25, %s2283_s24 }
 0x558   :  { %p2291_p5 = scmp.ge.s32.totalorder %s2290_s30, %s6308_s5  ;;  %s7305_s8 = smov (!%p2286_p4, %s7301_s8), 7 }
 0x559   :  { %s7307_s7 = smov (!%p2286_p4, %s7303_s7), %s2276_s13  ;;  %p2292_p6 = scmp.eq.s32.totalorder %s7305_s8, 0 }
 0x55b   :  { %p2293_p7 = pnand %p2292_p6, %p2291_p5 }
 0x55c   :  { %s5548_s2 = spop %5547 }
 0x55d   :  { %s2297_s3 = sadd.s32 %s5548_s2, %s2290_s30  ;;  %s7309_s8 = smov (!%p2293_p7, %s7305_s8), 6 }
 0x55e   :  { %p2298_p8 = scmp.ge.s32.totalorder %s2297_s3, %s6308_s5  ;;  %s5550_s6 = spop %5549 }
 0x55f   :  { %s7311_s7 = smov (!%p2293_p7, %s7307_s7), %s2283_s24  ;;  %p2299_p9 = scmp.eq.s32.totalorder %s7309_s8, 0 }
 0x560   :  { %s2304_s20 = sadd.s32 %s5550_s6, %s2297_s3 }
 0x561   :  { %p2300_p10 = pnand %p2299_p9, %p2298_p8  ;;  %p2305_p11 = scmp.ge.s32.totalorder %s2304_s20, %s6308_s5 }
 0x563   :  { %s7313_s8 = smov (!%p2300_p10, %s7309_s8), 5  ;;  %s7315_s7 = smov (!%p2300_p10, %s7311_s7), %s2290_s30 }
 0x564   :  { %p2306_p12 = scmp.eq.s32.totalorder %s7313_s8, 0 }
 0x566   :  { %s5552_s21 = spop %5551  ;;  %p2307_p13 = pnand %p2306_p12, %p2305_p11 }
 0x567   :  { %s2311_s4 = sadd.s32 %s5552_s21, %s2304_s20 }
 0x568   :  { %p2312_p0 = scmp.ge.s32.totalorder %s2311_s4, %s6308_s5  ;;  %s7317_s8 = smov (!%p2307_p13, %s7313_s8), 4 }
 0x569   :  { %s7319_s7 = smov (!%p2307_p13, %s7315_s7), %s2297_s3  ;;  %p2313_p1 = scmp.eq.s32.totalorder %s7317_s8, 0 }
 0x56b   :  { %p2314_p2 = pnand %p2313_p1, %p2312_p0 }
 0x56c   :  { %s5554_s11 = spop %5553 }
 0x56d   :  { %s2318_s9 = sadd.s32 %s5554_s11, %s2311_s4  ;;  %s7321_s8 = smov (!%p2314_p2, %s7317_s8), 3 }
 0x56e   :  { %p2319_p3 = scmp.ge.s32.totalorder %s2318_s9, %s6308_s5  ;;  %s7323_s7 = smov (!%p2314_p2, %s7319_s7), %s2304_s20 }
 0x56f   :  { %p2320_p4 = scmp.eq.s32.totalorder %s7321_s8, 0  ;;  %s5556_s12 = spop %5555 }
 0x570   :  { %s2325_s28 = sadd.s32 %s5556_s12, %s2318_s9 }
 0x571   :  { %p2321_p5 = pnand %p2320_p4, %p2319_p3  ;;  %p2326_p6 = scmp.ge.s32.totalorder %s2325_s28, %s6308_s5 }
 0x573   :  { %s7325_s8 = smov (!%p2321_p5, %s7321_s8), 2  ;;  %s7327_s7 = smov (!%p2321_p5, %s7323_s7), %s2311_s4 }
 0x574   :  { %p2327_p7 = scmp.eq.s32.totalorder %s7325_s8, 0 }
 0x576   :  { %p2328_p8 = pnand %p2327_p7, %p2326_p6 }
 0x578   :  { %s7329_s8 = smov (!%p2328_p8, %s7325_s8), 1  ;;  %s7331_s7 = smov (!%p2328_p8, %s7327_s7), %s2318_s9 }
 0x579   :  { %p2332_p9 = scmp.eq.s32.totalorder %s7329_s8, 0  ;;  %s2335_s29 = sshll.u32 %s7329_s8, 12 }
 0x57a   :  { %s6357_s10 = sor.u32 %s2335_s29, %s6239_s18 }
 0x57b   :  { %s7333_s28 = smov (!%p2332_p9, %s2325_s28), %s7331_s7  ;;  %s2362_s19 = sor.u32 3584, %s6357_s10 }
 0x57c   :  { %s2338_s16 = sor.u32 3840, %s6357_s10  ;;  %v2363_v28 = vstv %s2362_s19  ;;  %s2386_s14 = sor.u32 3328, %s6357_s10 }
 0x57d   :  { %v2339_v29 = vstv %s2338_s16  ;;  %vm2364_vm3 = vcmp.eq.s32.totalorder %v6360_v27, %v2363_v28  ;;  %v2387_v45 = vstv %s2386_s14  ;;  %s2434_s18 = sor.u32 2816, %s6357_s10  ;;  %s2410_s7 = sor.u32 3072, %s6357_s10 }
 0x57e   :  { %vm2340_vm4 = vcmp.eq.s32.totalorder %v6360_v27, %v2339_v29  ;;  %v2365_v30 = vsel %vm2364_vm3, 1, %v5794_v11  ;;  %vm2388_vm5 = vcmp.eq.s32.totalorder %v6360_v27, %v2387_v45  ;;  %v2435_v41 = vstv %s2434_s18  ;;  %s2458_s8 = sor.u32 2560, %s6357_s10  ;;  %s2506_s0 = sor.u32 2048, %s6357_s10 }
 0x57f   :  { %v2341_v31 = vsel %vm2340_vm4, 1, %v5794_v11  ;;  %v2366_v32 = vsel %vm40_vm2, %v2365_v30, 0  ;;  %v2389_v37 = vsel %vm2388_vm5, 1, %v5794_v11  ;;  %v2411_v43 = vstv %s2410_s7  ;;  %s2482_s17 = sor.u32 2304, %s6357_s10  ;;  %s2530_s27 = sor.u32 1792, %s6357_s10 }
 0x580   :  { %v2342_v33 = vsel %vm40_vm2, %v2341_v31, 0  ;;  %v2368_v34 = vshrl.u32 %v2366_v32, 16  ;;  %v2390_v42 = vsel %vm40_vm2, %v2389_v37, 0  ;;  %vm2436_vm6 = vcmp.eq.s32.totalorder %v6360_v27, %v2435_v41  ;;  %s2578_s22 = sor.u32 1280, %s6357_s10  ;;  %s2554_s23 = sor.u32 1536, %s6357_s10 }
 0x581   :  { %v2344_v35 = vshrl.u32 %v2342_v33, 16  ;;  %v2343_v36 = vand.u32 65535, %v2342_v33  ;;  %vm2412_vm7 = vcmp.eq.s32.totalorder %v6360_v27, %v2411_v43  ;;  %v2391_v44 = vand.u32 65535, %v2390_v42  ;;  %s2602_s26 = sor.u32 1024, %s6357_s10  ;;  %s2650_s13 = sor.u32 512, %s6357_s10 }
 0x582   :  { %v2370_v38 = vcvt.s32.f32 %v2368_v34  ;;  %v2367_v46 = vand.u32 65535, %v2366_v32  ;;  %v2392_v47 = vshrl.u32 %v2390_v42, 16  ;;  %v2437_v63 = vsel %vm2436_vm6, 1, %v5794_v11  ;;  %s2626_s15 = sor.u32 768, %s6357_s10  ;;  %s2674_s24 = sor.u32 256, %s6357_s10 }
 0x583   :  { %v2346_v39 = vcvt.s32.f32 %v2344_v35  ;;  %v2345_v40 = vcvt.s32.f32 %v2343_v36  ;;  %v2413_v48 = vsel %vm2412_vm7, 1, %v5794_v11  ;;  %v2393_v49 = vcvt.s32.f32 %v2391_v44  ;;  %s6426_s25 = ssub.s32 %s6308_s5, %s7333_s28 }
 0x584   :  { %2373 = vadd.xlane.f32.xlu2 %v2370_v38  ;;  %v2369_v50 = vcvt.s32.f32 %v2367_v46  ;;  %v2459_v51 = vstv %s2458_s8  ;;  %v2394_v52 = vcvt.s32.f32 %v2392_v47  ;;  %v2438_v53 = vsel %vm40_vm2, %v2437_v63, 0 }
 0x585   :  { %2349 = vadd.xlane.f32.xlu0 %v2346_v39  ;;  %2347 = vadd.xlane.f32.xlu1 %v2345_v40  ;;  %v2414_v54 = vsel %vm40_vm2, %v2413_v48, 0  ;;  %vm2460_vm8 = vcmp.eq.s32.totalorder %v6360_v27, %v2459_v51  ;;  %v2440_v55 = vshrl.u32 %v2438_v53, 16  ;;  %v2507_v61 = vstv %s2506_s0 }
 0x586   :  { %v2416_v56 = vshrl.u32 %v2414_v54, 16  ;;  %v2415_v57 = vand.u32 65535, %v2414_v54  ;;  %v2461_v58 = vsel %vm2460_vm8, 1, %v5794_v11  ;;  %v2483_v62 = vstv %s2482_s17 }
 0x587   :  { %v2442_v59 = vcvt.s32.f32 %v2440_v55  ;;  %v2462_v1 = vsel %vm40_vm2, %v2461_v58, 0  ;;  %vm2508_vm9 = vcmp.eq.s32.totalorder %v6360_v27, %v2507_v61  ;;  %vm2484_vm10 = vcmp.eq.s32.totalorder %v6360_v27, %v2483_v62 }
 0x588   :  { %v2418_v60 = vcvt.s32.f32 %v2416_v56  ;;  %v2417_v0 = vcvt.s32.f32 %v2415_v57  ;;  %v2463_v21 = vand.u32 65535, %v2462_v1  ;;  %v2439_v2 = vand.u32 65535, %v2438_v53 }
 0x589   :  { %v2464_v3 = vshrl.u32 %v2462_v1, 16  ;;  %v2509_v5 = vsel %vm2508_vm9, 1, %v5794_v11  ;;  %v2485_v6 = vsel %vm2484_vm10, 1, %v5794_v11  ;;  %v2531_v12 = vstv %s2530_s27 }
 0x58a   :  { %v2465_v7 = vcvt.s32.f32 %v2463_v21  ;;  %v2441_v8 = vcvt.s32.f32 %v2439_v2  ;;  %v2510_v14 = vsel %vm40_vm2, %v2509_v5, 0  ;;  %v2486_v15 = vsel %vm40_vm2, %v2485_v6, 0 }
 0x58b   :  { %v2466_v13 = vcvt.s32.f32 %v2464_v3  ;;  %vm2532_vm11 = vcmp.eq.s32.totalorder %v6360_v27, %v2531_v12  ;;  %v2512_v16 = vshrl.u32 %v2510_v14, 16  ;;  %v2488_v17 = vshrl.u32 %v2486_v15, 16 }
 0x58c   :  { %2395 = vadd.xlane.f32.xlu2 %v2393_v49  ;;  %v2487_v18 = vand.u32 65535, %v2486_v15  ;;  %v2533_v19 = vsel %vm2532_vm11, 1, %v5794_v11  ;;  %v2579_v23 = vstv %s2578_s22  ;;  %v2555_v10 = vstv %s2554_s23 }
 0x58d   :  { %2371 = vadd.xlane.f32.xlu0 %v2369_v50  ;;  %2397 = vadd.xlane.f32.xlu1 %v2394_v52  ;;  %v2514_v20 = vcvt.s32.f32 %v2512_v16  ;;  %v2490_v22 = vcvt.s32.f32 %v2488_v17  ;;  %v2534_v25 = vsel %vm40_vm2, %v2533_v19, 0  ;;  %vm2580_vm12 = vcmp.eq.s32.totalorder %v6360_v27, %v2579_v23 }
 0x58e   :  { %v2489_v24 = vcvt.s32.f32 %v2487_v18  ;;  %vm2556_vm13 = vcmp.eq.s32.totalorder %v6360_v27, %v2555_v10  ;;  %v2535_v26 = vand.u32 65535, %v2534_v25  ;;  %v2511_v28 = vand.u32 65535, %v2510_v14 }
 0x58f   :  { %v2536_v29 = vshrl.u32 %v2534_v25, 16  ;;  %v2581_v45 = vsel %vm2580_vm12, 1, %v5794_v11  ;;  %v2557_v30 = vsel %vm2556_vm13, 1, %v5794_v11  ;;  %v2603_v33 = vstv %s2602_s26 }
 0x590   :  { %v2537_v31 = vcvt.s32.f32 %v2535_v26  ;;  %v2513_v32 = vcvt.s32.f32 %v2511_v28  ;;  %v2582_v35 = vsel %vm40_vm2, %v2581_v45, 0  ;;  %v2558_v36 = vsel %vm40_vm2, %v2557_v30, 0 }
 0x591   :  { %v2538_v34 = vcvt.s32.f32 %v2536_v29  ;;  %vm2604_vm14 = vcmp.eq.s32.totalorder %v6360_v27, %v2603_v33  ;;  %v2584_v37 = vshrl.u32 %v2582_v35, 16  ;;  %v2560_v38 = vshrl.u32 %v2558_v36, 16 }
 0x592   :  { %v2559_v39 = vand.u32 65535, %v2558_v36  ;;  %v2605_v40 = vsel %vm2604_vm14, 1, %v5794_v11  ;;  %v2651_v43 = vstv %s2650_s13  ;;  %v2627_v44 = vstv %s2626_s15 }
 0x593   :  { %v2586_v41 = vcvt.s32.f32 %v2584_v37  ;;  %v2562_v42 = vcvt.s32.f32 %v2560_v38  ;;  %v2606_v47 = vsel %vm40_vm2, %v2605_v40, 0  ;;  %vm2652_vm15 = vcmp.eq.s32.totalorder %v6360_v27, %v2651_v43 }
 0x594   :  { %2445 = vadd.xlane.f32.xlu2 %v2442_v59  ;;  %v2561_v46 = vcvt.s32.f32 %v2559_v39  ;;  %vm2628_vm0 = vcmp.eq.s32.totalorder %v6360_v27, %v2627_v44  ;;  %v2607_v63 = vand.u32 65535, %v2606_v47  ;;  %v2583_v48 = vand.u32 65535, %v2582_v35 }
 0x595   :  { %2421 = vadd.xlane.f32.xlu0 %v2418_v60  ;;  %2419 = vadd.xlane.f32.xlu1 %v2417_v0  ;;  %v2608_v49 = vshrl.u32 %v2606_v47, 16  ;;  %v2653_v50 = vsel %vm2652_vm15, 1, %v5794_v11  ;;  %v2629_v51 = vsel %vm2628_vm0, 1, %v5794_v11  ;;  %v2675_v54 = vstv %s2674_s24 }
 0x596   :  { %v2609_v52 = vcvt.s32.f32 %v2607_v63  ;;  %v2585_v53 = vcvt.s32.f32 %v2583_v48  ;;  %v2654_v56 = vsel %vm40_vm2, %v2653_v50, 0  ;;  %v2630_v57 = vsel %vm40_vm2, %v2629_v51, 0 }
 0x597   :  { %v2610_v55 = vcvt.s32.f32 %v2608_v49  ;;  %vm2676_vm1 = vcmp.eq.s32.totalorder %v6360_v27, %v2675_v54  ;;  %v2656_v58 = vshrl.u32 %v2654_v56, 16  ;;  %v2632_v59 = vshrl.u32 %v2630_v57, 16 }
 0x598   :  { %v2631_v60 = vand.u32 65535, %v2630_v57  ;;  %v2677_v61 = vsel %vm2676_vm1, 1, %v5794_v11  ;;  %v2655_v3 = vand.u32 65535, %v2654_v56 }
 0x599   :  { %v2658_v62 = vcvt.s32.f32 %v2656_v58  ;;  %v2634_v0 = vcvt.s32.f32 %v2632_v59  ;;  %v2678_v21 = vsel %vm40_vm2, %v2677_v61, 0 }
 0x59a   :  { %v2633_v1 = vcvt.s32.f32 %v2631_v60  ;;  %v2679_v2 = vand.u32 65535, %v2678_v21  ;;  %v2680_v5 = vshrl.u32 %v2678_v21, 16 }
 0x59c   :  { %2467 = vadd.xlane.f32.xlu2 %v2465_v7  ;;  %v2681_v6 = vcvt.s32.f32 %v2679_v2  ;;  %v2657_v7 = vcvt.s32.f32 %v2655_v3 }
 0x59d   :  { %2443 = vadd.xlane.f32.xlu0 %v2441_v8  ;;  %2469 = vadd.xlane.f32.xlu1 %v2466_v13  ;;  %v2682_v8 = vcvt.s32.f32 %v2680_v5 }
 0x5a4   :  { %2517 = vadd.xlane.f32.xlu2 %v2514_v20 }
 0x5a5   :  { %2493 = vadd.xlane.f32.xlu0 %v2490_v22  ;;  %2491 = vadd.xlane.f32.xlu1 %v2489_v24 }
 0x5ac   :  { %2539 = vadd.xlane.f32.xlu2 %v2537_v31 }
 0x5ad   :  { %2515 = vadd.xlane.f32.xlu0 %v2513_v32  ;;  %2541 = vadd.xlane.f32.xlu1 %v2538_v34 }
 0x5b4   :  { %2589 = vadd.xlane.f32.xlu2 %v2586_v41 }
 0x5b5   :  { %2565 = vadd.xlane.f32.xlu0 %v2562_v42  ;;  %2563 = vadd.xlane.f32.xlu1 %v2561_v46 }
 0x5bc   :  { %2611 = vadd.xlane.f32.xlu2 %v2609_v52 }
 0x5bd   :  { %2587 = vadd.xlane.f32.xlu0 %v2585_v53  ;;  %2613 = vadd.xlane.f32.xlu1 %v2610_v55 }
 0x5c4   :  { %2661 = vadd.xlane.f32.xlu2 %v2658_v62 }
 0x5c5   :  { %2637 = vadd.xlane.f32.xlu0 %v2634_v0  ;;  %2635 = vadd.xlane.f32.xlu1 %v2633_v1 }
 0x5cc   :  { %2683 = vadd.xlane.f32.xlu2 %v2681_v6 }
 0x5cd   :  { %2659 = vadd.xlane.f32.xlu0 %v2657_v7  ;;  %2685 = vadd.xlane.f32.xlu1 %v2682_v8 }
 0x5f7   :  { %v2374_v27 = vpop.xlane.xlu2 %2373 }
 0x5f8   :  { %v2350_v12 = vpop.xlane.xlu0 %2349  ;;  %v2348_v14 = vpop.xlane.xlu1 %2347  ;;  %v2376_v17 = vcvt.f32.s32 %v2374_v27 }
 0x5f9   :  { %v2352_v13 = vcvt.f32.s32 %v2350_v12  ;;  %v2351_v16 = vcvt.f32.s32 %v2348_v14 }
 0x5fa   :  { %v2377_v23 = vshll.u32 %v2376_v17, 16 }
 0x5fb   :  { %v2353_v15 = vshll.u32 %v2352_v13, 16 }
 0x5fd   :  { %v2354_v18 = vadd.s32 %v2353_v15, %v2351_v16 }
 0x5ff   :  { %v2355_v19 = vrot.slane %v2354_v18, 4  ;;  %v2396_v20 = vpop.xlane.xlu2 %2395 }
 0x600   :  { %v2372_v22 = vpop.xlane.xlu0 %2371  ;;  %v2398_v24 = vpop.xlane.xlu1 %2397  ;;  %v2399_v45 = vcvt.f32.s32 %v2396_v20 }
 0x601   :  { %v2375_v10 = vcvt.f32.s32 %v2372_v22  ;;  %v2356_v25 = vadd.s32 %v2355_v19, %v2354_v18  ;;  %v2400_v26 = vcvt.f32.s32 %v2398_v24 }
 0x603   :  { %v2378_v28 = vadd.s32 %v2377_v23, %v2375_v10  ;;  %v2357_v29 = vrot.slane %v2356_v25, 2  ;;  %v2401_v30 = vshll.u32 %v2400_v26, 16 }
 0x605   :  { %v2379_v31 = vrot.slane %v2378_v28, 4  ;;  %v2358_v32 = vadd.s32 %v2357_v29, %v2356_v25  ;;  %v2402_v33 = vadd.s32 %v2401_v30, %v2399_v45 }
 0x607   :  { %v2359_v34 = vrot.slane %v2358_v32, 1  ;;  %v2380_v35 = vadd.s32 %v2379_v31, %v2378_v28  ;;  %v2403_v36 = vrot.slane %v2402_v33, 4  ;;  %v2446_v37 = vpop.xlane.xlu2 %2445 }
 0x608   :  { %v2422_v38 = vpop.xlane.xlu0 %2421  ;;  %v2420_v40 = vpop.xlane.xlu1 %2419  ;;  %v2448_v48 = vcvt.f32.s32 %v2446_v37 }
 0x609   :  { %v2424_v39 = vcvt.f32.s32 %v2422_v38  ;;  %v2360_v41 = vadd.s32 %v2359_v34, %v2358_v32  ;;  %v2381_v42 = vrot.slane %v2380_v35, 2  ;;  %v2404_v43 = vadd.s32 %v2403_v36, %v2402_v33 }
 0x60a   :  { %v2423_v46 = vcvt.f32.s32 %v2420_v40  ;;  %v2449_v57 = vshll.u32 %v2448_v48, 16 }
 0x60b   :  { %v2425_v44 = vshll.u32 %v2424_v39, 16  ;;  %5557 = vpush %v2360_v41  ;;  %v2382_v47 = vadd.s32 %v2381_v42, %v2380_v35  ;;  %v2405_v63 = vrot.slane %v2404_v43, 2 }
 0x60d   :  { %v2426_v49 = vadd.s32 %v2425_v44, %v2423_v46  ;;  %v2383_v50 = vrot.slane %v2382_v47, 1  ;;  %v2406_v51 = vadd.s32 %v2405_v63, %v2404_v43 }
 0x60f   :  { %v2427_v52 = vrot.slane %v2426_v49, 4  ;;  %v2384_v53 = vadd.s32 %v2383_v50, %v2382_v47  ;;  %v2468_v54 = vpop.xlane.xlu2 %2467  ;;  %v2407_v56 = vrot.slane %v2406_v51, 1 }
 0x610   :  { %v2444_v55 = vpop.xlane.xlu0 %2443  ;;  %v2470_v59 = vpop.xlane.xlu1 %2469  ;;  %v2471_v21 = vcvt.f32.s32 %v2468_v54 }
 0x611   :  { %v2447_v58 = vcvt.f32.s32 %v2444_v55  ;;  %5559 = vpush %v2384_v53  ;;  %v2428_v60 = vadd.s32 %v2427_v52, %v2426_v49  ;;  %v2472_v61 = vcvt.f32.s32 %v2470_v59  ;;  %v2408_v62 = vadd.s32 %v2407_v56, %v2406_v51 }
 0x613   :  { %v2450_v0 = vadd.s32 %v2449_v57, %v2447_v58  ;;  %v2429_v1 = vrot.slane %v2428_v60, 2  ;;  %v2473_v2 = vshll.u32 %v2472_v61, 16  ;;  %5561 = vpush %v2408_v62 }
 0x615   :  { %v2451_v3 = vrot.slane %v2450_v0, 4  ;;  %v2430_v5 = vadd.s32 %v2429_v1, %v2428_v60  ;;  %v2474_v6 = vadd.s32 %v2473_v2, %v2471_v21 }
 0x617   :  { %v2431_v7 = vrot.slane %v2430_v5, 1  ;;  %v2452_v8 = vadd.s32 %v2451_v3, %v2450_v0  ;;  %v2475_v27 = vrot.slane %v2474_v6, 4  ;;  %v2518_v12 = vpop.xlane.xlu2 %2517 }
 0x618   :  { %v2494_v13 = vpop.xlane.xlu0 %2493  ;;  %v2492_v15 = vpop.xlane.xlu1 %2491  ;;  %v2520_v10 = vcvt.f32.s32 %v2518_v12 }
 0x619   :  { %v2496_v14 = vcvt.f32.s32 %v2494_v13  ;;  %v2432_v16 = vadd.s32 %v2431_v7, %v2430_v5  ;;  %v2453_v17 = vrot.slane %v2452_v8, 2  ;;  %v2476_v18 = vadd.s32 %v2475_v27, %v2474_v6 }
 0x61a   :  { %v2495_v20 = vcvt.f32.s32 %v2492_v15  ;;  %v2521_v32 = vshll.u32 %v2520_v10, 16 }
 0x61b   :  { %v2497_v19 = vshll.u32 %v2496_v14, 16  ;;  %5563 = vpush %v2432_v16  ;;  %v2454_v22 = vadd.s32 %v2453_v17, %v2452_v8  ;;  %v2477_v23 = vrot.slane %v2476_v18, 2 }
 0x61d   :  { %v2498_v24 = vadd.s32 %v2497_v19, %v2495_v20  ;;  %v2455_v25 = vrot.slane %v2454_v22, 1  ;;  %v2478_v26 = vadd.s32 %v2477_v23, %v2476_v18 }
 0x61f   :  { %v2499_v28 = vrot.slane %v2498_v24, 4  ;;  %v2456_v29 = vadd.s32 %v2455_v25, %v2454_v22  ;;  %v2540_v45 = vpop.xlane.xlu2 %2539  ;;  %v2479_v31 = vrot.slane %v2478_v26, 1 }
 0x620   :  { %v2516_v30 = vpop.xlane.xlu0 %2515  ;;  %v2542_v34 = vpop.xlane.xlu1 %2541  ;;  %v2543_v40 = vcvt.f32.s32 %v2540_v45 }
 0x621   :  { %v2519_v33 = vcvt.f32.s32 %v2516_v30  ;;  %5565 = vpush %v2456_v29  ;;  %v2500_v35 = vadd.s32 %v2499_v28, %v2498_v24  ;;  %v2544_v36 = vcvt.f32.s32 %v2542_v34  ;;  %v2480_v37 = vadd.s32 %v2479_v31, %v2478_v26 }
 0x623   :  { %v2522_v38 = vadd.s32 %v2521_v32, %v2519_v33  ;;  %v2501_v39 = vrot.slane %v2500_v35, 2  ;;  %v2545_v41 = vshll.u32 %v2544_v36, 16  ;;  %5567 = vpush %v2480_v37 }
 0x625   :  { %v2523_v42 = vrot.slane %v2522_v38, 4  ;;  %v2502_v43 = vadd.s32 %v2501_v39, %v2500_v35  ;;  %v2546_v44 = vadd.s32 %v2545_v41, %v2543_v40 }
 0x627   :  { %v2503_v46 = vrot.slane %v2502_v43, 1  ;;  %v2524_v47 = vadd.s32 %v2523_v42, %v2522_v38  ;;  %v2547_v63 = vrot.slane %v2546_v44, 4  ;;  %v2590_v48 = vpop.xlane.xlu2 %2589 }
 0x628   :  { %v2566_v49 = vpop.xlane.xlu0 %2565  ;;  %v2564_v51 = vpop.xlane.xlu1 %2563  ;;  %v2592_v59 = vcvt.f32.s32 %v2590_v48 }
 0x629   :  { %v2568_v50 = vcvt.f32.s32 %v2566_v49  ;;  %v2504_v52 = vadd.s32 %v2503_v46, %v2502_v43  ;;  %v2525_v53 = vrot.slane %v2524_v47, 2  ;;  %v2548_v54 = vadd.s32 %v2547_v63, %v2546_v44 }
 0x62a   :  { %v2567_v56 = vcvt.f32.s32 %v2564_v51  ;;  %v2593_v5 = vshll.u32 %v2592_v59, 16 }
 0x62b   :  { %v2569_v55 = vshll.u32 %v2568_v50, 16  ;;  %5569 = vpush %v2504_v52  ;;  %v2526_v57 = vadd.s32 %v2525_v53, %v2524_v47  ;;  %v2549_v58 = vrot.slane %v2548_v54, 2 }
 0x62d   :  { %v2570_v60 = vadd.s32 %v2569_v55, %v2567_v56  ;;  %v2527_v61 = vrot.slane %v2526_v57, 1  ;;  %v2550_v62 = vadd.s32 %v2549_v58, %v2548_v54 }
 0x62f   :  { %v2571_v0 = vrot.slane %v2570_v60, 4  ;;  %v2528_v1 = vadd.s32 %v2527_v61, %v2526_v57  ;;  %v2612_v21 = vpop.xlane.xlu2 %2611  ;;  %v2551_v3 = vrot.slane %v2550_v62, 1 }
 0x630   :  { %v2588_v2 = vpop.xlane.xlu0 %2587  ;;  %v2614_v7 = vpop.xlane.xlu1 %2613  ;;  %v2615_v15 = vcvt.f32.s32 %v2612_v21 }
 0x631   :  { %v2591_v6 = vcvt.f32.s32 %v2588_v2  ;;  %5571 = vpush %v2528_v1  ;;  %v2572_v8 = vadd.s32 %v2571_v0, %v2570_v60  ;;  %v2616_v27 = vcvt.f32.s32 %v2614_v7  ;;  %v2552_v12 = vadd.s32 %v2551_v3, %v2550_v62 }
 0x633   :  { %v2594_v13 = vadd.s32 %v2593_v5, %v2591_v6  ;;  %v2573_v14 = vrot.slane %v2572_v8, 2  ;;  %v2617_v16 = vshll.u32 %v2616_v27, 16  ;;  %5573 = vpush %v2552_v12  ;;  %v6478_v6 = vand.u32 4294967280, %v5813_v9 }
 0x635   :  { %v2595_v17 = vrot.slane %v2594_v13, 4  ;;  %v2574_v18 = vadd.s32 %v2573_v14, %v2572_v8  ;;  %v2618_v19 = vadd.s32 %v2617_v16, %v2615_v15 }
 0x637   :  { %v2575_v20 = vrot.slane %v2574_v18, 1  ;;  %v2596_v22 = vadd.s32 %v2595_v17, %v2594_v13  ;;  %v2619_v23 = vrot.slane %v2618_v19, 4  ;;  %v2662_v10 = vpop.xlane.xlu2 %2661 }
 0x638   :  { %v2638_v24 = vpop.xlane.xlu0 %2637  ;;  %v2636_v26 = vpop.xlane.xlu1 %2635  ;;  %v2664_v34 = vcvt.f32.s32 %v2662_v10 }
 0x639   :  { %v2640_v25 = vcvt.f32.s32 %v2638_v24  ;;  %v2576_v28 = vadd.s32 %v2575_v20, %v2574_v18  ;;  %v2597_v29 = vrot.slane %v2596_v22, 2  ;;  %v2620_v45 = vadd.s32 %v2619_v23, %v2618_v19 }
 0x63a   :  { %v2639_v31 = vcvt.f32.s32 %v2636_v26  ;;  %v2665_v42 = vshll.u32 %v2664_v34, 16 }
 0x63b   :  { %v2641_v30 = vshll.u32 %v2640_v25, 16  ;;  %5575 = vpush %v2576_v28  ;;  %v2598_v32 = vadd.s32 %v2597_v29, %v2596_v22  ;;  %v2621_v33 = vrot.slane %v2620_v45, 2 }
 0x63c   :  { %s6428_s30 = spop %5557 }
 0x63d   :  { %v2642_v35 = vadd.s32 %v2641_v30, %v2639_v31  ;;  %p2698_p10 = scmp.ge.s32.totalorder %s6428_s30, %s6426_s25  ;;  %v2599_v36 = vrot.slane %v2598_v32, 1  ;;  %v2622_v37 = vadd.s32 %v2621_v33, %v2620_v45 }
 0x63f   :  { %v2643_v38 = vrot.slane %v2642_v35, 4  ;;  %v2600_v39 = vadd.s32 %v2599_v36, %v2598_v32  ;;  %s2699_s2 = scalar_select %p2698_p10, 15, 0  ;;  %v2623_v41 = vrot.slane %v2622_v37, 1  ;;  %v2684_v43 = vpop.xlane.xlu2 %2683 }
 0x640   :  { %v2660_v40 = vpop.xlane.xlu0 %2659  ;;  %v2686_v46 = vpop.xlane.xlu1 %2685  ;;  %v2687_v51 = vcvt.f32.s32 %v2684_v43 }
 0x641   :  { %v2663_v44 = vcvt.f32.s32 %v2660_v40  ;;  %5577 = vpush %v2600_v39  ;;  %v2644_v47 = vadd.s32 %v2643_v38, %v2642_v35  ;;  %v2688_v63 = vcvt.f32.s32 %v2686_v46  ;;  %v2624_v48 = vadd.s32 %v2623_v41, %v2622_v37  ;;  %p2702_p11 = scmp.eq.s32.totalorder %s2699_s2, 0 }
 0x642   :  { %s5560_s5 = spop %5559 }
 0x643   :  { %v2666_v49 = vadd.s32 %v2665_v42, %v2663_v44  ;;  %s6433_s3 = sadd.s32 %s5560_s5, %s6428_s30  ;;  %v2645_v50 = vrot.slane %v2644_v47, 2  ;;  %v2689_v52 = vshll.u32 %v2688_v63, 16  ;;  %5579 = vpush %v2624_v48 }
 0x644   :  { %p2701_p12 = scmp.ge.s32.totalorder %s6433_s3, %s6426_s25  ;;  %s5562_s6 = spop %5561 }
 0x645   :  { %v2667_v53 = vrot.slane %v2666_v49, 4  ;;  %v2646_v54 = vadd.s32 %v2645_v50, %v2644_v47  ;;  %v2690_v55 = vadd.s32 %v2689_v52, %v2687_v51  ;;  %s6442_s21 = sadd.s32 %s5562_s6, %s6433_s3 }
 0x646   :  { %p6437_p13 = pnand %p2702_p11, %p2701_p12  ;;  %p2708_p0 = scmp.ge.s32.totalorder %s6442_s21, %s6426_s25 }
 0x647   :  { %v2647_v56 = vrot.slane %v2646_v54, 1  ;;  %v2668_v57 = vadd.s32 %v2667_v53, %v2666_v49  ;;  %v2691_v58 = vrot.slane %v2690_v55, 4 }
 0x648   :  { %s7335_s2 = smov (!%p6437_p13, %s2699_s2), 14  ;;  %s7337_s30 = smov (%p6437_p13, %s6428_s30), 0 }
 0x649   :  { %v2648_v59 = vadd.s32 %v2647_v56, %v2646_v54  ;;  %v2669_v60 = vrot.slane %v2668_v57, 2  ;;  %p2709_p1 = scmp.eq.s32.totalorder %s7335_s2, 0  ;;  %v2692_v61 = vadd.s32 %v2691_v58, %v2690_v55 }
 0x64b   :  { %5581 = vpush %v2648_v59  ;;  %v2670_v62 = vadd.s32 %v2669_v60, %v2668_v57  ;;  %p2710_p2 = pnand %p2709_p1, %p2708_p0  ;;  %v2693_v0 = vrot.slane %v2692_v61, 2 }
 0x64c   :  { %s5564_s4 = spop %5563 }
 0x64d   :  { %s2714_s11 = sadd.s32 %s5564_s4, %s6442_s21  ;;  %v2671_v1 = vrot.slane %v2670_v62, 1  ;;  %s7339_s2 = smov (!%p2710_p2, %s7335_s2), 13  ;;  %v2694_v21 = vadd.s32 %v2693_v0, %v2692_v61 }
 0x64e   :  { %s7341_s30 = smov (!%p2710_p2, %s7337_s30), %s6433_s3  ;;  %p2715_p3 = scmp.ge.s32.totalorder %s2714_s11, %s6426_s25 }
 0x64f   :  { %v2672_v2 = vadd.s32 %v2671_v1, %v2670_v62  ;;  %p2716_p4 = scmp.eq.s32.totalorder %s7339_s2, 0  ;;  %v2695_v3 = vrot.slane %v2694_v21, 1 }
 0x651   :  { %5583 = vpush %v2672_v2  ;;  %p6454_p5 = pnand %p2716_p4, %p2715_p3  ;;  %v2696_v5 = vadd.s32 %v2695_v3, %v2694_v21 }
 0x652   :  { %s5566_s12 = spop %5565 }
 0x653   :  { %s2721_s28 = sadd.s32 %s5566_s12, %s2714_s11  ;;  %s7343_s2 = smov (!%p6454_p5, %s7339_s2), 12  ;;  %5585 = vpush %v2696_v5 }
 0x654   :  { %s7345_s30 = smov (!%p6454_p5, %s7341_s30), %s6442_s21  ;;  %p2722_p6 = scmp.ge.s32.totalorder %s2721_s28, %s6426_s25 }
 0x655   :  { %p2723_p7 = scmp.eq.s32.totalorder %s7343_s2, 0  ;;  %s5568_s29 = spop %5567 }
 0x656   :  { %s2728_s19 = sadd.s32 %s5568_s29, %s2721_s28 }
 0x657   :  { %p2724_p8 = pnand %p2723_p7, %p2722_p6  ;;  %p2729_p9 = scmp.ge.s32.totalorder %s2728_s19, %s6426_s25 }
 0x659   :  { %s7347_s2 = smov (!%p2724_p8, %s7343_s2), 11  ;;  %s7349_s30 = smov (!%p2724_p8, %s7345_s30), %s2714_s11 }
 0x65a   :  { %p2730_p10 = scmp.eq.s32.totalorder %s7347_s2, 0 }
 0x65c   :  { %s5570_s16 = spop %5569  ;;  %p2731_p11 = pnand %p2730_p10, %p2729_p9 }
 0x65d   :  { %s2735_s14 = sadd.s32 %s5570_s16, %s2728_s19 }
 0x65e   :  { %p2736_p12 = scmp.ge.s32.totalorder %s2735_s14, %s6426_s25  ;;  %s7351_s2 = smov (!%p2731_p11, %s7347_s2), 10 }
 0x65f   :  { %s7353_s30 = smov (!%p2731_p11, %s7349_s30), %s2721_s28  ;;  %p2737_p13 = scmp.eq.s32.totalorder %s7351_s2, 0 }
 0x661   :  { %p2738_p0 = pnand %p2737_p13, %p2736_p12 }
 0x662   :  { %s5572_s18 = spop %5571 }
 0x663   :  { %s2742_s7 = sadd.s32 %s5572_s18, %s2735_s14  ;;  %s7355_s2 = smov (!%p2738_p0, %s7351_s2), 9 }
 0x664   :  { %p2743_p1 = scmp.ge.s32.totalorder %s2742_s7, %s6426_s25  ;;  %s5574_s8 = spop %5573 }
 0x665   :  { %s7357_s30 = smov (!%p2738_p0, %s7353_s30), %s2728_s19  ;;  %p2744_p2 = scmp.eq.s32.totalorder %s7355_s2, 0 }
 0x666   :  { %s2749_s0 = sadd.s32 %s5574_s8, %s2742_s7 }
 0x667   :  { %p2745_p3 = pnand %p2744_p2, %p2743_p1  ;;  %p2750_p4 = scmp.ge.s32.totalorder %s2749_s0, %s6426_s25 }
 0x669   :  { %s7359_s2 = smov (!%p2745_p3, %s7355_s2), 8  ;;  %s7361_s30 = smov (!%p2745_p3, %s7357_s30), %s2735_s14 }
 0x66a   :  { %p2751_p5 = scmp.eq.s32.totalorder %s7359_s2, 0 }
 0x66c   :  { %s5576_s17 = spop %5575  ;;  %p2752_p6 = pnand %p2751_p5, %p2750_p4 }
 0x66d   :  { %s2756_s27 = sadd.s32 %s5576_s17, %s2749_s0 }
 0x66e   :  { %p2757_p7 = scmp.ge.s32.totalorder %s2756_s27, %s6426_s25  ;;  %s7363_s2 = smov (!%p2752_p6, %s7359_s2), 7 }
 0x66f   :  { %s7365_s30 = smov (!%p2752_p6, %s7361_s30), %s2742_s7  ;;  %p2758_p8 = scmp.eq.s32.totalorder %s7363_s2, 0 }
 0x671   :  { %p2759_p9 = pnand %p2758_p8, %p2757_p7 }
 0x672   :  { %s5578_s22 = spop %5577 }
 0x673   :  { %s2763_s23 = sadd.s32 %s5578_s22, %s2756_s27  ;;  %s7367_s2 = smov (!%p2759_p9, %s7363_s2), 6 }
 0x674   :  { %p2764_p10 = scmp.ge.s32.totalorder %s2763_s23, %s6426_s25  ;;  %s5580_s26 = spop %5579 }
 0x675   :  { %s7369_s30 = smov (!%p2759_p9, %s7365_s30), %s2749_s0  ;;  %p2765_p11 = scmp.eq.s32.totalorder %s7367_s2, 0 }
 0x676   :  { %s2770_s13 = sadd.s32 %s5580_s26, %s2763_s23 }
 0x677   :  { %p2766_p12 = pnand %p2765_p11, %p2764_p10  ;;  %p2771_p13 = scmp.ge.s32.totalorder %s2770_s13, %s6426_s25 }
 0x679   :  { %s7371_s2 = smov (!%p2766_p12, %s7367_s2), 5  ;;  %s7373_s30 = smov (!%p2766_p12, %s7369_s30), %s2756_s27 }
 0x67a   :  { %p2772_p0 = scmp.eq.s32.totalorder %s7371_s2, 0 }
 0x67c   :  { %s5582_s15 = spop %5581  ;;  %p2773_p1 = pnand %p2772_p0, %p2771_p13 }
 0x67d   :  { %s2777_s24 = sadd.s32 %s5582_s15, %s2770_s13 }
 0x67e   :  { %p2778_p2 = scmp.ge.s32.totalorder %s2777_s24, %s6426_s25  ;;  %s7375_s2 = smov (!%p2773_p1, %s7371_s2), 4 }
 0x67f   :  { %s7377_s30 = smov (!%p2773_p1, %s7373_s30), %s2763_s23  ;;  %p2779_p3 = scmp.eq.s32.totalorder %s7375_s2, 0 }
 0x681   :  { %p2780_p4 = pnand %p2779_p3, %p2778_p2 }
 0x682   :  { %s5584_s5 = spop %5583 }
 0x683   :  { %s2784_s3 = sadd.s32 %s5584_s5, %s2777_s24  ;;  %s7379_s2 = smov (!%p2780_p4, %s7375_s2), 3 }
 0x684   :  { %p2785_p5 = scmp.ge.s32.totalorder %s2784_s3, %s6426_s25  ;;  %s7381_s30 = smov (!%p2780_p4, %s7377_s30), %s2770_s13 }
 0x685   :  { %p2786_p6 = scmp.eq.s32.totalorder %s7379_s2, 0  ;;  %s5586_s6 = spop %5585 }
 0x686   :  { %s2791_s20 = sadd.s32 %s5586_s6, %s2784_s3 }
 0x687   :  { %p2787_p7 = pnand %p2786_p6, %p2785_p5  ;;  %p2792_p8 = scmp.ge.s32.totalorder %s2791_s20, %s6426_s25 }
 0x689   :  { %s7383_s2 = smov (!%p2787_p7, %s7379_s2), 2  ;;  %s7385_s30 = smov (!%p2787_p7, %s7381_s30), %s2777_s24 }
 0x68a   :  { %p2793_p9 = scmp.eq.s32.totalorder %s7383_s2, 0 }
 0x68c   :  { %p2794_p10 = pnand %p2793_p9, %p2792_p8 }
 0x68e   :  { %s7387_s2 = smov (!%p2794_p10, %s7383_s2), 1  ;;  %s7389_s30 = smov (!%p2794_p10, %s7385_s30), %s2784_s3 }
 0x68f   :  { %p2798_p11 = scmp.eq.s32.totalorder %s7387_s2, 0  ;;  %s2801_s21 = sshll.u32 %s7387_s2, 8 }
 0x690   :  { %s6475_s4 = sor.u32 %s2801_s21, %s6357_s10 }
 0x691   :  { %s7391_s20 = smov (!%p2798_p11, %s2791_s20), %s7389_s30  ;;  %s2828_s11 = sor.u32 224, %s6475_s4 }
 0x692   :  { %s2804_s9 = sor.u32 240, %s6475_s4  ;;  %v2829_v7 = vstv %s2828_s11  ;;  %s2852_s12 = sor.u32 208, %s6475_s4 }
 0x693   :  { %v2805_v8 = vstv %s2804_s9  ;;  %vm2830_vm3 = vcmp.eq.s32.totalorder %v6478_v6, %v2829_v7  ;;  %v2853_v27 = vstv %s2852_s12  ;;  %s2900_s10 = sor.u32 176, %s6475_s4  ;;  %s2876_s30 = sor.u32 192, %s6475_s4 }
 0x694   :  { %vm2806_vm4 = vcmp.eq.s32.totalorder %v6478_v6, %v2805_v8  ;;  %v2831_v12 = vsel %vm2830_vm3, 1, %v5794_v11  ;;  %vm2854_vm5 = vcmp.eq.s32.totalorder %v6478_v6, %v2853_v27  ;;  %v2901_v10 = vstv %s2900_s10  ;;  %s2924_s2 = sor.u32 160, %s6475_s4  ;;  %s2972_s28 = sor.u32 128, %s6475_s4 }
 0x695   :  { %v2807_v13 = vsel %vm2806_vm4, 1, %v5794_v11  ;;  %v2832_v14 = vsel %vm40_vm2, %v2831_v12, 0  ;;  %v2855_v19 = vsel %vm2854_vm5, 1, %v5794_v11  ;;  %v2877_v25 = vstv %s2876_s30  ;;  %s2948_s29 = sor.u32 144, %s6475_s4  ;;  %s2996_s19 = sor.u32 112, %s6475_s4 }
 0x696   :  { %v2808_v15 = vsel %vm40_vm2, %v2807_v13, 0  ;;  %v2834_v16 = vshrl.u32 %v2832_v14, 16  ;;  %v2856_v24 = vsel %vm40_vm2, %v2855_v19, 0  ;;  %vm2902_vm6 = vcmp.eq.s32.totalorder %v6478_v6, %v2901_v10  ;;  %s3044_s16 = sor.u32 80, %s6475_s4  ;;  %s3020_s14 = sor.u32 96, %s6475_s4 }
 0x697   :  { %v2810_v17 = vshrl.u32 %v2808_v15, 16  ;;  %v2809_v18 = vand.u32 65535, %v2808_v15  ;;  %vm2878_vm7 = vcmp.eq.s32.totalorder %v6478_v6, %v2877_v25  ;;  %v2857_v26 = vand.u32 65535, %v2856_v24  ;;  %s3068_s18 = sor.u32 64, %s6475_s4  ;;  %s3116_s7 = sor.u32 32, %s6475_s4 }
 0x698   :  { %v2836_v20 = vcvt.s32.f32 %v2834_v16  ;;  %v2833_v28 = vand.u32 65535, %v2832_v14  ;;  %v2858_v29 = vshrl.u32 %v2856_v24, 16  ;;  %v2903_v45 = vsel %vm2902_vm6, 1, %v5794_v11  ;;  %s3092_s8 = sor.u32 48, %s6475_s4  ;;  %s3140_s0 = sor.u32 16, %s6475_s4 }
 0x699   :  { %v2812_v22 = vcvt.s32.f32 %v2810_v17  ;;  %v2811_v23 = vcvt.s32.f32 %v2809_v18  ;;  %v2879_v30 = vsel %vm2878_vm7, 1, %v5794_v11  ;;  %v2859_v31 = vcvt.s32.f32 %v2857_v26  ;;  %s6544_s17 = ssub.s32 %s6426_s25, %s7391_s20 }
 0x69a   :  { %2839 = vadd.xlane.f32.xlu2 %v2836_v20  ;;  %v2835_v32 = vcvt.s32.f32 %v2833_v28  ;;  %v2925_v33 = vstv %s2924_s2  ;;  %v2860_v34 = vcvt.s32.f32 %v2858_v29  ;;  %v2904_v35 = vsel %vm40_vm2, %v2903_v45, 0 }
 0x69b   :  { %2815 = vadd.xlane.f32.xlu0 %v2812_v22  ;;  %2813 = vadd.xlane.f32.xlu1 %v2811_v23  ;;  %v2880_v36 = vsel %vm40_vm2, %v2879_v30, 0  ;;  %vm2926_vm8 = vcmp.eq.s32.totalorder %v6478_v6, %v2925_v33  ;;  %v2906_v37 = vshrl.u32 %v2904_v35, 16  ;;  %v2973_v43 = vstv %s2972_s28 }
 0x69c   :  { %v2882_v38 = vshrl.u32 %v2880_v36, 16  ;;  %v2881_v39 = vand.u32 65535, %v2880_v36  ;;  %v2927_v40 = vsel %vm2926_vm8, 1, %v5794_v11  ;;  %v2949_v44 = vstv %s2948_s29 }
 0x69d   :  { %v2908_v41 = vcvt.s32.f32 %v2906_v37  ;;  %v2928_v47 = vsel %vm40_vm2, %v2927_v40, 0  ;;  %vm2974_vm9 = vcmp.eq.s32.totalorder %v6478_v6, %v2973_v43  ;;  %vm2950_vm10 = vcmp.eq.s32.totalorder %v6478_v6, %v2949_v44 }
 0x69e   :  { %v2884_v42 = vcvt.s32.f32 %v2882_v38  ;;  %v2883_v46 = vcvt.s32.f32 %v2881_v39  ;;  %v2929_v63 = vand.u32 65535, %v2928_v47  ;;  %v2905_v48 = vand.u32 65535, %v2904_v35 }
 0x69f   :  { %v2930_v49 = vshrl.u32 %v2928_v47, 16  ;;  %v2975_v50 = vsel %vm2974_vm9, 1, %v5794_v11  ;;  %v2951_v51 = vsel %vm2950_vm10, 1, %v5794_v11  ;;  %v2997_v54 = vstv %s2996_s19 }
 0x6a0   :  { %v2931_v52 = vcvt.s32.f32 %v2929_v63  ;;  %v2907_v53 = vcvt.s32.f32 %v2905_v48  ;;  %v2976_v56 = vsel %vm40_vm2, %v2975_v50, 0  ;;  %v2952_v57 = vsel %vm40_vm2, %v2951_v51, 0 }
 0x6a1   :  { %v2932_v55 = vcvt.s32.f32 %v2930_v49  ;;  %vm2998_vm11 = vcmp.eq.s32.totalorder %v6478_v6, %v2997_v54  ;;  %v2978_v58 = vshrl.u32 %v2976_v56, 16  ;;  %v2954_v59 = vshrl.u32 %v2952_v57, 16 }
 0x6a2   :  { %2861 = vadd.xlane.f32.xlu2 %v2859_v31  ;;  %v2953_v60 = vand.u32 65535, %v2952_v57  ;;  %v2999_v61 = vsel %vm2998_vm11, 1, %v5794_v11  ;;  %v3045_v1 = vstv %s3044_s16  ;;  %v3021_v21 = vstv %s3020_s14 }
 0x6a3   :  { %2837 = vadd.xlane.f32.xlu0 %v2835_v32  ;;  %2863 = vadd.xlane.f32.xlu1 %v2860_v34  ;;  %v2980_v62 = vcvt.s32.f32 %v2978_v58  ;;  %v2956_v0 = vcvt.s32.f32 %v2954_v59  ;;  %v3000_v3 = vsel %vm40_vm2, %v2999_v61, 0  ;;  %vm3046_vm12 = vcmp.eq.s32.totalorder %v6478_v6, %v3045_v1 }
 0x6a4   :  { %v2955_v2 = vcvt.s32.f32 %v2953_v60  ;;  %vm3022_vm13 = vcmp.eq.s32.totalorder %v6478_v6, %v3021_v21  ;;  %v3001_v5 = vand.u32 65535, %v3000_v3  ;;  %v2977_v7 = vand.u32 65535, %v2976_v56 }
 0x6a5   :  { %v3002_v8 = vshrl.u32 %v3000_v3, 16  ;;  %v3047_v27 = vsel %vm3046_vm12, 1, %v5794_v11  ;;  %v3023_v12 = vsel %vm3022_vm13, 1, %v5794_v11  ;;  %v3069_v15 = vstv %s3068_s18 }
 0x6a6   :  { %v3003_v13 = vcvt.s32.f32 %v3001_v5  ;;  %v2979_v14 = vcvt.s32.f32 %v2977_v7  ;;  %v3048_v17 = vsel %vm40_vm2, %v3047_v27, 0  ;;  %v3024_v18 = vsel %vm40_vm2, %v3023_v12, 0 }
 0x6a7   :  { %v3004_v16 = vcvt.s32.f32 %v3002_v8  ;;  %vm3070_vm14 = vcmp.eq.s32.totalorder %v6478_v6, %v3069_v15  ;;  %v3050_v19 = vshrl.u32 %v3048_v17, 16  ;;  %v3026_v20 = vshrl.u32 %v3024_v18, 16 }
 0x6a8   :  { %v3025_v22 = vand.u32 65535, %v3024_v18  ;;  %v3071_v23 = vsel %vm3070_vm14, 1, %v5794_v11  ;;  %v3117_v25 = vstv %s3116_s7  ;;  %v3093_v26 = vstv %s3092_s8 }
 0x6a9   :  { %v3052_v10 = vcvt.s32.f32 %v3050_v19  ;;  %v3028_v24 = vcvt.s32.f32 %v3026_v20  ;;  %v3072_v29 = vsel %vm40_vm2, %v3071_v23, 0  ;;  %vm3118_vm15 = vcmp.eq.s32.totalorder %v6478_v6, %v3117_v25 }
 0x6aa   :  { %2911 = vadd.xlane.f32.xlu2 %v2908_v41  ;;  %v3027_v28 = vcvt.s32.f32 %v3025_v22  ;;  %vm3094_vm0 = vcmp.eq.s32.totalorder %v6478_v6, %v3093_v26  ;;  %v3073_v45 = vand.u32 65535, %v3072_v29  ;;  %v3049_v30 = vand.u32 65535, %v3048_v17 }
 0x6ab   :  { %2887 = vadd.xlane.f32.xlu0 %v2884_v42  ;;  %2885 = vadd.xlane.f32.xlu1 %v2883_v46  ;;  %v3074_v31 = vshrl.u32 %v3072_v29, 16  ;;  %v3119_v32 = vsel %vm3118_vm15, 1, %v5794_v11  ;;  %v3095_v33 = vsel %vm3094_vm0, 1, %v5794_v11  ;;  %v3141_v36 = vstv %s3140_s0 }
 0x6ac   :  { %v3075_v34 = vcvt.s32.f32 %v3073_v45  ;;  %v3051_v35 = vcvt.s32.f32 %v3049_v30  ;;  %v3120_v38 = vsel %vm40_vm2, %v3119_v32, 0  ;;  %v3096_v39 = vsel %vm40_vm2, %v3095_v33, 0 }
 0x6ad   :  { %v3076_v37 = vcvt.s32.f32 %v3074_v31  ;;  %vm3142_vm1 = vcmp.eq.s32.totalorder %v6478_v6, %v3141_v36  ;;  %v3122_v40 = vshrl.u32 %v3120_v38, 16  ;;  %v3098_v41 = vshrl.u32 %v3096_v39, 16 }
 0x6ae   :  { %v3097_v42 = vand.u32 65535, %v3096_v39  ;;  %v3143_v43 = vsel %vm3142_vm1, 1, %v5794_v11  ;;  %v3121_v49 = vand.u32 65535, %v3120_v38 }
 0x6af   :  { %v3124_v44 = vcvt.s32.f32 %v3122_v40  ;;  %v3100_v46 = vcvt.s32.f32 %v3098_v41  ;;  %v3144_v63 = vsel %vm40_vm2, %v3143_v43, 0 }
 0x6b0   :  { %v3099_v47 = vcvt.s32.f32 %v3097_v42  ;;  %v3145_v48 = vand.u32 65535, %v3144_v63  ;;  %v3146_v50 = vshrl.u32 %v3144_v63, 16 }
 0x6b2   :  { %2933 = vadd.xlane.f32.xlu2 %v2931_v52  ;;  %v3147_v51 = vcvt.s32.f32 %v3145_v48  ;;  %v3123_v52 = vcvt.s32.f32 %v3121_v49 }
 0x6b3   :  { %2909 = vadd.xlane.f32.xlu0 %v2907_v53  ;;  %2935 = vadd.xlane.f32.xlu1 %v2932_v55  ;;  %v3148_v53 = vcvt.s32.f32 %v3146_v50 }
 0x6ba   :  { %2983 = vadd.xlane.f32.xlu2 %v2980_v62 }
 0x6bb   :  { %2959 = vadd.xlane.f32.xlu0 %v2956_v0  ;;  %2957 = vadd.xlane.f32.xlu1 %v2955_v2 }
 0x6c2   :  { %3005 = vadd.xlane.f32.xlu2 %v3003_v13 }
 0x6c3   :  { %2981 = vadd.xlane.f32.xlu0 %v2979_v14  ;;  %3007 = vadd.xlane.f32.xlu1 %v3004_v16 }
 0x6ca   :  { %3055 = vadd.xlane.f32.xlu2 %v3052_v10 }
 0x6cb   :  { %3031 = vadd.xlane.f32.xlu0 %v3028_v24  ;;  %3029 = vadd.xlane.f32.xlu1 %v3027_v28 }
 0x6d2   :  { %3077 = vadd.xlane.f32.xlu2 %v3075_v34 }
 0x6d3   :  { %3053 = vadd.xlane.f32.xlu0 %v3051_v35  ;;  %3079 = vadd.xlane.f32.xlu1 %v3076_v37 }
 0x6da   :  { %3127 = vadd.xlane.f32.xlu2 %v3124_v44 }
 0x6db   :  { %3103 = vadd.xlane.f32.xlu0 %v3100_v46  ;;  %3101 = vadd.xlane.f32.xlu1 %v3099_v47 }
 0x6e2   :  { %3149 = vadd.xlane.f32.xlu2 %v3147_v51 }
 0x6e3   :  { %3125 = vadd.xlane.f32.xlu0 %v3123_v52  ;;  %3151 = vadd.xlane.f32.xlu1 %v3148_v53 }
 0x70d   :  { %v2840_v6 = vpop.xlane.xlu2 %2839 }
 0x70e   :  { %v2816_v54 = vpop.xlane.xlu0 %2815  ;;  %v2814_v56 = vpop.xlane.xlu1 %2813  ;;  %v2842_v59 = vcvt.f32.s32 %v2840_v6 }
 0x70f   :  { %v2818_v55 = vcvt.f32.s32 %v2816_v54  ;;  %v2817_v58 = vcvt.f32.s32 %v2814_v56 }
 0x710   :  { %v2843_v1 = vshll.u32 %v2842_v59, 16 }
 0x711   :  { %v2819_v57 = vshll.u32 %v2818_v55, 16 }
 0x713   :  { %v2820_v60 = vadd.s32 %v2819_v57, %v2817_v58 }
 0x715   :  { %v2821_v61 = vrot.slane %v2820_v60, 4  ;;  %v2862_v62 = vpop.xlane.xlu2 %2861 }
 0x716   :  { %v2838_v0 = vpop.xlane.xlu0 %2837  ;;  %v2864_v2 = vpop.xlane.xlu1 %2863  ;;  %v2865_v27 = vcvt.f32.s32 %v2862_v62 }
 0x717   :  { %v2841_v21 = vcvt.f32.s32 %v2838_v0  ;;  %v2822_v3 = vadd.s32 %v2821_v61, %v2820_v60  ;;  %v2866_v5 = vcvt.f32.s32 %v2864_v2 }
 0x719   :  { %v2844_v7 = vadd.s32 %v2843_v1, %v2841_v21  ;;  %v2823_v8 = vrot.slane %v2822_v3, 2  ;;  %v2867_v12 = vshll.u32 %v2866_v5, 16 }
 0x71b   :  { %v2845_v13 = vrot.slane %v2844_v7, 4  ;;  %v2824_v14 = vadd.s32 %v2823_v8, %v2822_v3  ;;  %v2868_v15 = vadd.s32 %v2867_v12, %v2865_v27 }
 0x71d   :  { %v2846_v16 = vadd.s32 %v2845_v13, %v2844_v7  ;;  %v2825_v17 = vrot.slane %v2824_v14, 1  ;;  %v2869_v18 = vrot.slane %v2868_v15, 4  ;;  %v2912_v19 = vpop.xlane.xlu2 %2911 }
 0x71e   :  { %v2888_v20 = vpop.xlane.xlu0 %2887  ;;  %v2886_v23 = vpop.xlane.xlu1 %2885  ;;  %v2914_v30 = vcvt.f32.s32 %v2912_v19 }
 0x71f   :  { %v2890_v22 = vcvt.f32.s32 %v2888_v20  ;;  %v2826_v10 = vadd.s32 %v2825_v17, %v2824_v14  ;;  %v2847_v24 = vrot.slane %v2846_v16, 2  ;;  %v2870_v25 = vadd.s32 %v2869_v18, %v2868_v15 }
 0x720   :  { %v2889_v28 = vcvt.f32.s32 %v2886_v23  ;;  %v2915_v39 = vshll.u32 %v2914_v30, 16 }
 0x721   :  { %v2891_v26 = vshll.u32 %v2890_v22, 16  ;;  %5587 = vpush %v2826_v10  ;;  %v2848_v29 = vadd.s32 %v2847_v24, %v2846_v16  ;;  %v2871_v45 = vrot.slane %v2870_v25, 2 }
 0x723   :  { %v2892_v31 = vadd.s32 %v2891_v26, %v2889_v28  ;;  %v2849_v32 = vrot.slane %v2848_v29, 1  ;;  %v2872_v33 = vadd.s32 %v2871_v45, %v2870_v25 }
 0x725   :  { %v2893_v34 = vrot.slane %v2892_v31, 4  ;;  %v2850_v35 = vadd.s32 %v2849_v32, %v2848_v29  ;;  %v2934_v36 = vpop.xlane.xlu2 %2933  ;;  %v2873_v38 = vrot.slane %v2872_v33, 1 }
 0x726   :  { %v2910_v37 = vpop.xlane.xlu0 %2909  ;;  %v2936_v42 = vpop.xlane.xlu1 %2935  ;;  %v2937_v63 = vcvt.f32.s32 %v2934_v36 }
 0x727   :  { %v2894_v40 = vadd.s32 %v2893_v34, %v2892_v31  ;;  %v2913_v41 = vcvt.f32.s32 %v2910_v37  ;;  %5589 = vpush %v2850_v35  ;;  %v2938_v43 = vcvt.f32.s32 %v2936_v42  ;;  %v2874_v44 = vadd.s32 %v2873_v38, %v2872_v33 }
 0x729   :  { %v2916_v46 = vadd.s32 %v2915_v39, %v2913_v41  ;;  %v2895_v47 = vrot.slane %v2894_v40, 2  ;;  %v2939_v48 = vshll.u32 %v2938_v43, 16  ;;  %5591 = vpush %v2874_v44 }
 0x72b   :  { %v2917_v49 = vrot.slane %v2916_v46, 4  ;;  %v2896_v50 = vadd.s32 %v2895_v47, %v2894_v40  ;;  %v2940_v51 = vadd.s32 %v2939_v48, %v2937_v63 }
 0x72d   :  { %v2918_v52 = vadd.s32 %v2917_v49, %v2916_v46  ;;  %v2897_v53 = vrot.slane %v2896_v50, 1  ;;  %v2941_v6 = vrot.slane %v2940_v51, 4  ;;  %v2984_v54 = vpop.xlane.xlu2 %2983 }
 0x72e   :  { %v2960_v55 = vpop.xlane.xlu0 %2959  ;;  %v2958_v57 = vpop.xlane.xlu1 %2957  ;;  %v2986_v21 = vcvt.f32.s32 %v2984_v54 }
 0x72f   :  { %v2962_v56 = vcvt.f32.s32 %v2960_v55  ;;  %v2898_v58 = vadd.s32 %v2897_v53, %v2896_v50  ;;  %v2919_v59 = vrot.slane %v2918_v52, 2  ;;  %v2942_v60 = vadd.s32 %v2941_v6, %v2940_v51 }
 0x730   :  { %v2961_v62 = vcvt.f32.s32 %v2958_v57  ;;  %v2987_v14 = vshll.u32 %v2986_v21, 16 }
 0x731   :  { %v2963_v61 = vshll.u32 %v2962_v56, 16  ;;  %5593 = vpush %v2898_v58  ;;  %v2920_v0 = vadd.s32 %v2919_v59, %v2918_v52  ;;  %v2943_v1 = vrot.slane %v2942_v60, 2 }
 0x733   :  { %v2964_v2 = vadd.s32 %v2963_v61, %v2961_v62  ;;  %v2921_v3 = vrot.slane %v2920_v0, 1  ;;  %v2944_v5 = vadd.s32 %v2943_v1, %v2942_v60 }
 0x735   :  { %v2965_v7 = vrot.slane %v2964_v2, 4  ;;  %v2922_v8 = vadd.s32 %v2921_v3, %v2920_v0  ;;  %v3006_v27 = vpop.xlane.xlu2 %3005  ;;  %v2945_v13 = vrot.slane %v2944_v5, 1 }
 0x736   :  { %v2982_v12 = vpop.xlane.xlu0 %2981  ;;  %v3008_v17 = vpop.xlane.xlu1 %3007  ;;  %v3009_v23 = vcvt.f32.s32 %v3006_v27 }
 0x737   :  { %v2966_v15 = vadd.s32 %v2965_v7, %v2964_v2  ;;  %v2985_v16 = vcvt.f32.s32 %v2982_v12  ;;  %5595 = vpush %v2922_v8  ;;  %v3010_v18 = vcvt.f32.s32 %v3008_v17  ;;  %v2946_v19 = vadd.s32 %v2945_v13, %v2944_v5 }
 0x739   :  { %v2988_v20 = vadd.s32 %v2987_v14, %v2985_v16  ;;  %v2967_v22 = vrot.slane %v2966_v15, 2  ;;  %v3011_v10 = vshll.u32 %v3010_v18, 16  ;;  %5597 = vpush %v2946_v19 }
 0x73b   :  { %v2989_v24 = vrot.slane %v2988_v20, 4  ;;  %v2968_v25 = vadd.s32 %v2967_v22, %v2966_v15  ;;  %v3012_v26 = vadd.s32 %v3011_v10, %v3009_v23 }
 0x73d   :  { %v2990_v28 = vadd.s32 %v2989_v24, %v2988_v20  ;;  %v2969_v29 = vrot.slane %v2968_v25, 1  ;;  %v3013_v45 = vrot.slane %v3012_v26, 4  ;;  %v3056_v30 = vpop.xlane.xlu2 %3055 }
 0x73e   :  { %v3032_v31 = vpop.xlane.xlu0 %3031  ;;  %v3030_v33 = vpop.xlane.xlu1 %3029  ;;  %v3058_v41 = vcvt.f32.s32 %v3056_v30 }
 0x73f   :  { %v3034_v32 = vcvt.f32.s32 %v3032_v31  ;;  %v2970_v34 = vadd.s32 %v2969_v29, %v2968_v25  ;;  %v2991_v35 = vrot.slane %v2990_v28, 2  ;;  %v3014_v36 = vadd.s32 %v3013_v45, %v3012_v26 }
 0x740   :  { %v3033_v38 = vcvt.f32.s32 %v3030_v33  ;;  %v3059_v50 = vshll.u32 %v3058_v41, 16 }
 0x741   :  { %v3035_v37 = vshll.u32 %v3034_v32, 16  ;;  %5599 = vpush %v2970_v34  ;;  %v2992_v39 = vadd.s32 %v2991_v35, %v2990_v28  ;;  %v3015_v40 = vrot.slane %v3014_v36, 2 }
 0x743   :  { %v3036_v42 = vadd.s32 %v3035_v37, %v3033_v38  ;;  %v2993_v43 = vrot.slane %v2992_v39, 1  ;;  %v3016_v44 = vadd.s32 %v3015_v40, %v3014_v36 }
 0x745   :  { %v3037_v46 = vrot.slane %v3036_v42, 4  ;;  %v2994_v47 = vadd.s32 %v2993_v43, %v2992_v39  ;;  %v3078_v63 = vpop.xlane.xlu2 %3077  ;;  %v3017_v49 = vrot.slane %v3016_v44, 1 }
 0x746   :  { %v3054_v48 = vpop.xlane.xlu0 %3053  ;;  %v3080_v53 = vpop.xlane.xlu1 %3079  ;;  %v3081_v57 = vcvt.f32.s32 %v3078_v63 }
 0x747   :  { %v3038_v51 = vadd.s32 %v3037_v46, %v3036_v42  ;;  %v3057_v52 = vcvt.f32.s32 %v3054_v48  ;;  %5601 = vpush %v2994_v47  ;;  %v3082_v6 = vcvt.f32.s32 %v3080_v53  ;;  %v3018_v54 = vadd.s32 %v3017_v49, %v3016_v44 }
 0x749   :  { %v3060_v55 = vadd.s32 %v3059_v50, %v3057_v52  ;;  %v3039_v56 = vrot.slane %v3038_v51, 2  ;;  %v3083_v58 = vshll.u32 %v3082_v6, 16  ;;  %5603 = vpush %v3018_v54 }
 0x74b   :  { %v3061_v59 = vrot.slane %v3060_v55, 4  ;;  %v3040_v60 = vadd.s32 %v3039_v56, %v3038_v51  ;;  %v3084_v61 = vadd.s32 %v3083_v58, %v3081_v57 }
 0x74d   :  { %v3062_v62 = vadd.s32 %v3061_v59, %v3060_v55  ;;  %v3041_v0 = vrot.slane %v3040_v60, 1  ;;  %v3085_v1 = vrot.slane %v3084_v61, 4  ;;  %v3128_v21 = vpop.xlane.xlu2 %3127 }
 0x74e   :  { %v3104_v2 = vpop.xlane.xlu0 %3103  ;;  %v3102_v5 = vpop.xlane.xlu1 %3101  ;;  %v3130_v16 = vcvt.f32.s32 %v3128_v21 }
 0x74f   :  { %v3106_v3 = vcvt.f32.s32 %v3104_v2  ;;  %v3042_v7 = vadd.s32 %v3041_v0, %v3040_v60  ;;  %v3063_v8 = vrot.slane %v3062_v62, 2  ;;  %v3086_v27 = vadd.s32 %v3085_v1, %v3084_v61 }
 0x750   :  { %v3105_v13 = vcvt.f32.s32 %v3102_v5  ;;  %v3131_v24 = vshll.u32 %v3130_v16, 16 }
 0x751   :  { %v3107_v12 = vshll.u32 %v3106_v3, 16  ;;  %5605 = vpush %v3042_v7  ;;  %v3064_v14 = vadd.s32 %v3063_v8, %v3062_v62  ;;  %v3087_v15 = vrot.slane %v3086_v27, 2 }
 0x752   :  { %s6546_s27 = spop %5587 }
 0x753   :  { %v3108_v17 = vadd.s32 %v3107_v12, %v3105_v13  ;;  %p3164_p12 = scmp.ge.s32.totalorder %s6546_s27, %s6544_s17  ;;  %v3065_v18 = vrot.slane %v3064_v14, 1  ;;  %v3088_v19 = vadd.s32 %v3087_v15, %v3086_v27 }
 0x755   :  { %v3109_v20 = vrot.slane %v3108_v17, 4  ;;  %v3066_v22 = vadd.s32 %v3065_v18, %v3064_v14  ;;  %s3165_s22 = scalar_select %p3164_p12, 15, 0  ;;  %v3089_v10 = vrot.slane %v3088_v19, 1  ;;  %v3150_v26 = vpop.xlane.xlu2 %3149 }
 0x756   :  { %v3126_v23 = vpop.xlane.xlu0 %3125  ;;  %v3152_v29 = vpop.xlane.xlu1 %3151  ;;  %v3153_v33 = vcvt.f32.s32 %v3150_v26 }
 0x757   :  { %v3110_v25 = vadd.s32 %v3109_v20, %v3108_v17  ;;  %v3129_v28 = vcvt.f32.s32 %v3126_v23  ;;  %5607 = vpush %v3066_v22  ;;  %v3154_v45 = vcvt.f32.s32 %v3152_v29  ;;  %v3090_v30 = vadd.s32 %v3089_v10, %v3088_v19  ;;  %p3168_p13 = scmp.eq.s32.totalorder %s3165_s22, 0 }
 0x758   :  { %s5590_s25 = spop %5589 }
 0x759   :  { %v3132_v31 = vadd.s32 %v3131_v24, %v3129_v28  ;;  %s6551_s23 = sadd.s32 %s5590_s25, %s6546_s27  ;;  %v3111_v32 = vrot.slane %v3110_v25, 2  ;;  %v3155_v34 = vshll.u32 %v3154_v45, 16  ;;  %5609 = vpush %v3090_v30 }
 0x75a   :  { %p3167_p0 = scmp.ge.s32.totalorder %s6551_s23, %s6544_s17  ;;  %s5592_s26 = spop %5591 }
 0x75b   :  { %v3133_v35 = vrot.slane %v3132_v31, 4  ;;  %v3112_v36 = vadd.s32 %v3111_v32, %v3110_v25  ;;  %v3156_v37 = vadd.s32 %v3155_v34, %v3153_v33  ;;  %s6560_s15 = sadd.s32 %s5592_s26, %s6551_s23 }
 0x75c   :  { %p6555_p1 = pnand %p3168_p13, %p3167_p0  ;;  %p3174_p2 = scmp.ge.s32.totalorder %s6560_s15, %s6544_s17 }
 0x75d   :  { %v3134_v38 = vadd.s32 %v3133_v35, %v3132_v31  ;;  %v3113_v39 = vrot.slane %v3112_v36, 1  ;;  %v3157_v40 = vrot.slane %v3156_v37, 4 }
 0x75e   :  { %s7393_s22 = smov (!%p6555_p1, %s3165_s22), 14  ;;  %s7395_s27 = smov (%p6555_p1, %s6546_s27), 0 }
 0x75f   :  { %v3114_v41 = vadd.s32 %v3113_v39, %v3112_v36  ;;  %v3135_v42 = vrot.slane %v3134_v38, 2  ;;  %v3158_v43 = vadd.s32 %v3157_v40, %v3156_v37  ;;  %p3175_p3 = scmp.eq.s32.totalorder %s7393_s22, 0 }
 0x761   :  { %5611 = vpush %v3114_v41  ;;  %v3136_v44 = vadd.s32 %v3135_v42, %v3134_v38  ;;  %p3176_p4 = pnand %p3175_p3, %p3174_p2  ;;  %v3159_v46 = vrot.slane %v3158_v43, 2 }
 0x762   :  { %s5594_s24 = spop %5593 }
 0x763   :  { %s3180_s5 = sadd.s32 %s5594_s24, %s6560_s15  ;;  %v3137_v47 = vrot.slane %v3136_v44, 1  ;;  %s7397_s22 = smov (!%p3176_p4, %s7393_s22), 13  ;;  %v3160_v63 = vadd.s32 %v3159_v46, %v3158_v43 }
 0x764   :  { %s7399_s27 = smov (!%p3176_p4, %s7395_s27), %s6551_s23  ;;  %p3181_p5 = scmp.ge.s32.totalorder %s3180_s5, %s6544_s17 }
 0x765   :  { %v3138_v48 = vadd.s32 %v3137_v47, %v3136_v44  ;;  %p3182_p6 = scmp.eq.s32.totalorder %s7397_s22, 0  ;;  %v3161_v49 = vrot.slane %v3160_v63, 1 }
 0x767   :  { %5613 = vpush %v3138_v48  ;;  %p6572_p7 = pnand %p3182_p6, %p3181_p5  ;;  %v3162_v50 = vadd.s32 %v3161_v49, %v3160_v63 }
 0x768   :  { %s5596_s6 = spop %5595 }
 0x769   :  { %s3187_s20 = sadd.s32 %s5596_s6, %s3180_s5  ;;  %s7401_s22 = smov (!%p6572_p7, %s7397_s22), 12  ;;  %5615 = vpush %v3162_v50 }
 0x76a   :  { %s7403_s27 = smov (!%p6572_p7, %s7399_s27), %s6560_s15  ;;  %p3188_p8 = scmp.ge.s32.totalorder %s3187_s20, %s6544_s17 }
 0x76b   :  { %p3189_p9 = scmp.eq.s32.totalorder %s7401_s22, 0  ;;  %s5598_s21 = spop %5597 }
 0x76c   :  { %s3194_s11 = sadd.s32 %s5598_s21, %s3187_s20 }
 0x76d   :  { %p3190_p10 = pnand %p3189_p9, %p3188_p8  ;;  %p3195_p11 = scmp.ge.s32.totalorder %s3194_s11, %s6544_s17 }
 0x76f   :  { %s7405_s22 = smov (!%p3190_p10, %s7401_s22), 11  ;;  %s7407_s27 = smov (!%p3190_p10, %s7403_s27), %s3180_s5 }
 0x770   :  { %p3196_p12 = scmp.eq.s32.totalorder %s7405_s22, 0 }
 0x772   :  { %s5600_s9 = spop %5599  ;;  %p3197_p13 = pnand %p3196_p12, %p3195_p11 }
 0x773   :  { %s3201_s12 = sadd.s32 %s5600_s9, %s3194_s11 }
 0x774   :  { %p3202_p0 = scmp.ge.s32.totalorder %s3201_s12, %s6544_s17  ;;  %s7409_s22 = smov (!%p3197_p13, %s7405_s22), 10 }
 0x775   :  { %s7411_s27 = smov (!%p3197_p13, %s7407_s27), %s3187_s20  ;;  %p3203_p1 = scmp.eq.s32.totalorder %s7409_s22, 0 }
 0x777   :  { %p3204_p2 = pnand %p3203_p1, %p3202_p0 }
 0x778   :  { %s5602_s10 = spop %5601 }
 0x779   :  { %s3208_s30 = sadd.s32 %s5602_s10, %s3201_s12  ;;  %s7413_s22 = smov (!%p3204_p2, %s7409_s22), 9 }
 0x77a   :  { %p3209_p3 = scmp.ge.s32.totalorder %s3208_s30, %s6544_s17  ;;  %s5604_s2 = spop %5603 }
 0x77b   :  { %s7415_s27 = smov (!%p3204_p2, %s7411_s27), %s3194_s11  ;;  %p3210_p4 = scmp.eq.s32.totalorder %s7413_s22, 0 }
 0x77c   :  { %s3215_s28 = sadd.s32 %s5604_s2, %s3208_s30 }
 0x77d   :  { %p3211_p5 = pnand %p3210_p4, %p3209_p3  ;;  %p3216_p6 = scmp.ge.s32.totalorder %s3215_s28, %s6544_s17 }
 0x77f   :  { %s7417_s22 = smov (!%p3211_p5, %s7413_s22), 8  ;;  %s7419_s27 = smov (!%p3211_p5, %s7415_s27), %s3201_s12 }
 0x780   :  { %p3217_p7 = scmp.eq.s32.totalorder %s7417_s22, 0 }
 0x782   :  { %s5606_s29 = spop %5605  ;;  %p3218_p8 = pnand %p3217_p7, %p3216_p6 }
 0x783   :  { %s3222_s19 = sadd.s32 %s5606_s29, %s3215_s28 }
 0x784   :  { %p3223_p9 = scmp.ge.s32.totalorder %s3222_s19, %s6544_s17  ;;  %s7421_s22 = smov (!%p3218_p8, %s7417_s22), 7 }
 0x785   :  { %s7423_s27 = smov (!%p3218_p8, %s7419_s27), %s3208_s30  ;;  %p3224_p10 = scmp.eq.s32.totalorder %s7421_s22, 0 }
 0x787   :  { %p3225_p11 = pnand %p3224_p10, %p3223_p9 }
 0x788   :  { %s5608_s16 = spop %5607 }
 0x789   :  { %s3229_s14 = sadd.s32 %s5608_s16, %s3222_s19  ;;  %s7425_s22 = smov (!%p3225_p11, %s7421_s22), 6 }
 0x78a   :  { %p3230_p12 = scmp.ge.s32.totalorder %s3229_s14, %s6544_s17  ;;  %s5610_s18 = spop %5609 }
 0x78b   :  { %s7427_s27 = smov (!%p3225_p11, %s7423_s27), %s3215_s28  ;;  %p3231_p13 = scmp.eq.s32.totalorder %s7425_s22, 0 }
 0x78c   :  { %s3236_s7 = sadd.s32 %s5610_s18, %s3229_s14 }
 0x78d   :  { %p3232_p0 = pnand %p3231_p13, %p3230_p12  ;;  %p3237_p1 = scmp.ge.s32.totalorder %s3236_s7, %s6544_s17 }
 0x78f   :  { %s7429_s22 = smov (!%p3232_p0, %s7425_s22), 5  ;;  %s7431_s27 = smov (!%p3232_p0, %s7427_s27), %s3222_s19 }
 0x790   :  { %p3238_p2 = scmp.eq.s32.totalorder %s7429_s22, 0 }
 0x792   :  { %s5612_s8 = spop %5611  ;;  %p3239_p3 = pnand %p3238_p2, %p3237_p1 }
 0x793   :  { %s3243_s0 = sadd.s32 %s5612_s8, %s3236_s7 }
 0x794   :  { %p3244_p4 = scmp.ge.s32.totalorder %s3243_s0, %s6544_s17  ;;  %s7433_s22 = smov (!%p3239_p3, %s7429_s22), 4 }
 0x795   :  { %s7435_s27 = smov (!%p3239_p3, %s7431_s27), %s3229_s14  ;;  %p3245_p5 = scmp.eq.s32.totalorder %s7433_s22, 0 }
 0x797   :  { %p3246_p6 = pnand %p3245_p5, %p3244_p4 }
 0x798   :  { %s5614_s25 = spop %5613 }
 0x799   :  { %s3250_s23 = sadd.s32 %s5614_s25, %s3243_s0  ;;  %s7437_s22 = smov (!%p3246_p6, %s7433_s22), 3 }
 0x79a   :  { %p3251_p7 = scmp.ge.s32.totalorder %s3250_s23, %s6544_s17  ;;  %s7439_s27 = smov (!%p3246_p6, %s7435_s27), %s3236_s7 }
 0x79b   :  { %p3252_p8 = scmp.eq.s32.totalorder %s7437_s22, 0  ;;  %s5616_s26 = spop %5615 }
 0x79c   :  { %s3257_s13 = sadd.s32 %s5616_s26, %s3250_s23 }
 0x79d   :  { %p3253_p9 = pnand %p3252_p8, %p3251_p7  ;;  %p3258_p10 = scmp.ge.s32.totalorder %s3257_s13, %s6544_s17 }
 0x79f   :  { %s7441_s22 = smov (!%p3253_p9, %s7437_s22), 2  ;;  %s7443_s27 = smov (!%p3253_p9, %s7439_s27), %s3243_s0 }
 0x7a0   :  { %p3259_p11 = scmp.eq.s32.totalorder %s7441_s22, 0 }
 0x7a2   :  { %p3260_p12 = pnand %p3259_p11, %p3258_p10 }
 0x7a4   :  { %s7445_s22 = smov (!%p3260_p12, %s7441_s22), 1  ;;  %s7447_s27 = smov (!%p3260_p12, %s7443_s27), %s3250_s23 }
 0x7a5   :  { %p3264_p13 = scmp.eq.s32.totalorder %s7445_s22, 0  ;;  %s3267_s15 = sshll.u32 %s7445_s22, 4 }
 0x7a6   :  { %s6593_s24 = sor.u32 %s3267_s15, %s6475_s4 }
 0x7a7   :  { %s7449_s13 = smov (!%p3264_p13, %s3257_s13), %s7447_s27  ;;  %s3293_s5 = sor.u32 14, %s6593_s24 }
 0x7a8   :  { %s3269_s3 = sor.u32 15, %s6593_s24  ;;  %v3294_v51 = vstv %s3293_s5  ;;  %s3317_s6 = sor.u32 13, %s6593_s24 }
 0x7a9   :  { %v3270_v52 = vstv %s3269_s3  ;;  %vm3295_vm3 = vcmp.eq.s32.totalorder %v5813_v9, %v3294_v51  ;;  %v3318_v53 = vstv %s3317_s6  ;;  %s3365_s4 = sor.u32 11, %s6593_s24  ;;  %s3341_s27 = sor.u32 12, %s6593_s24 }
 0x7aa   :  { %vm3271_vm4 = vcmp.eq.s32.totalorder %v5813_v9, %v3270_v52  ;;  %v3296_v6 = vsel %vm3295_vm3, 1, %v5794_v11  ;;  %vm3319_vm5 = vcmp.eq.s32.totalorder %v5813_v9, %v3318_v53  ;;  %v3366_v1 = vstv %s3365_s4  ;;  %s3389_s22 = sor.u32 10, %s6593_s24  ;;  %s3437_s20 = sor.u32 8, %s6593_s24 }
 0x7ab   :  { %v3272_v54 = vsel %vm3271_vm4, 1, %v5794_v11  ;;  %v3297_v55 = vsel %vm40_vm2, %v3296_v6, 0  ;;  %v3320_v60 = vsel %vm3319_vm5, 1, %v5794_v11  ;;  %v3342_v2 = vstv %s3341_s27  ;;  %s3413_s21 = sor.u32 9, %s6593_s24  ;;  %s3461_s11 = sor.u32 7, %s6593_s24 }
 0x7ac   :  { %v3273_v56 = vsel %vm40_vm2, %v3272_v54, 0  ;;  %v3299_v57 = vshrl.u32 %v3297_v55, 16  ;;  %v3321_v21 = vsel %vm40_vm2, %v3320_v60, 0  ;;  %vm3367_vm6 = vcmp.eq.s32.totalorder %v5813_v9, %v3366_v1  ;;  %s3509_s9 = sor.u32 5, %s6593_s24  ;;  %s3485_s12 = sor.u32 6, %s6593_s24 }
 0x7ad   :  { %v3275_v58 = vshrl.u32 %v3273_v56, 16  ;;  %v3274_v59 = vand.u32 65535, %v3273_v56  ;;  %vm3343_vm7 = vcmp.eq.s32.totalorder %v5813_v9, %v3342_v2  ;;  %v3322_v3 = vand.u32 65535, %v3321_v21  ;;  %s3533_s10 = sor.u32 4, %s6593_s24  ;;  %s3581_s30 = sor.u32 2, %s6593_s24 }
 0x7ae   :  { %v3301_v61 = vcvt.s32.f32 %v3299_v57  ;;  %v3298_v5 = vand.u32 65535, %v3297_v55  ;;  %v3323_v7 = vshrl.u32 %v3321_v21, 16  ;;  %v3368_v8 = vsel %vm3367_vm6, 1, %v5794_v11  ;;  %s3557_s2 = sor.u32 3, %s6593_s24  ;;  %s3605_s28 = sor.u32 1, %s6593_s24 }
 0x7af   :  { %v3277_v62 = vcvt.s32.f32 %v3275_v58  ;;  %v3276_v0 = vcvt.s32.f32 %v3274_v59  ;;  %v3344_v27 = vsel %vm3343_vm7, 1, %v5794_v11  ;;  %v3324_v12 = vcvt.s32.f32 %v3322_v3  ;;  %s6659_s29 = ssub.s32 %s6544_s17, %s7449_s13 }
 0x7b0   :  { %3304 = vadd.xlane.f32.xlu2 %v3301_v61  ;;  %v3300_v13 = vcvt.s32.f32 %v3298_v5  ;;  %v3390_v14 = vstv %s3389_s22  ;;  %v3325_v15 = vcvt.s32.f32 %v3323_v7  ;;  %v3369_v16 = vsel %vm40_vm2, %v3368_v8, 0 }
 0x7b1   :  { %3280 = vadd.xlane.f32.xlu0 %v3277_v62  ;;  %3278 = vadd.xlane.f32.xlu1 %v3276_v0  ;;  %v3345_v17 = vsel %vm40_vm2, %v3344_v27, 0  ;;  %vm3391_vm8 = vcmp.eq.s32.totalorder %v5813_v9, %v3390_v14  ;;  %v3371_v18 = vshrl.u32 %v3369_v16, 16  ;;  %v3438_v24 = vstv %s3437_s20 }
 0x7b2   :  { %v3347_v19 = vshrl.u32 %v3345_v17, 16  ;;  %v3346_v20 = vand.u32 65535, %v3345_v17  ;;  %v3392_v22 = vsel %vm3391_vm8, 1, %v5794_v11  ;;  %v3414_v25 = vstv %s3413_s21 }
 0x7b3   :  { %v3373_v23 = vcvt.s32.f32 %v3371_v18  ;;  %v3393_v28 = vsel %vm40_vm2, %v3392_v22, 0  ;;  %vm3439_vm9 = vcmp.eq.s32.totalorder %v5813_v9, %v3438_v24  ;;  %vm3415_vm10 = vcmp.eq.s32.totalorder %v5813_v9, %v3414_v25 }
 0x7b4   :  { %v3349_v10 = vcvt.s32.f32 %v3347_v19  ;;  %v3348_v26 = vcvt.s32.f32 %v3346_v20  ;;  %v3394_v29 = vand.u32 65535, %v3393_v28  ;;  %v3370_v45 = vand.u32 65535, %v3369_v16 }
 0x7b5   :  { %v3395_v30 = vshrl.u32 %v3393_v28, 16  ;;  %v3440_v31 = vsel %vm3439_vm9, 1, %v5794_v11  ;;  %v3416_v32 = vsel %vm3415_vm10, 1, %v5794_v11  ;;  %v3462_v35 = vstv %s3461_s11 }
 0x7b6   :  { %v3396_v33 = vcvt.s32.f32 %v3394_v29  ;;  %v3372_v34 = vcvt.s32.f32 %v3370_v45  ;;  %v3441_v37 = vsel %vm40_vm2, %v3440_v31, 0  ;;  %v3417_v38 = vsel %vm40_vm2, %v3416_v32, 0 }
 0x7b7   :  { %v3397_v36 = vcvt.s32.f32 %v3395_v30  ;;  %vm3463_vm11 = vcmp.eq.s32.totalorder %v5813_v9, %v3462_v35  ;;  %v3443_v39 = vshrl.u32 %v3441_v37, 16  ;;  %v3419_v40 = vshrl.u32 %v3417_v38, 16 }
 0x7b8   :  { %3326 = vadd.xlane.f32.xlu2 %v3324_v12  ;;  %v3418_v41 = vand.u32 65535, %v3417_v38  ;;  %v3464_v42 = vsel %vm3463_vm11, 1, %v5794_v11  ;;  %v3510_v46 = vstv %s3509_s9  ;;  %v3486_v47 = vstv %s3485_s12 }
 0x7b9   :  { %3302 = vadd.xlane.f32.xlu0 %v3300_v13  ;;  %3328 = vadd.xlane.f32.xlu1 %v3325_v15  ;;  %v3445_v43 = vcvt.s32.f32 %v3443_v39  ;;  %v3421_v44 = vcvt.s32.f32 %v3419_v40  ;;  %v3465_v48 = vsel %vm40_vm2, %v3464_v42, 0  ;;  %vm3511_vm12 = vcmp.eq.s32.totalorder %v5813_v9, %v3510_v46 }
 0x7ba   :  { %v3420_v63 = vcvt.s32.f32 %v3418_v41  ;;  %vm3487_vm13 = vcmp.eq.s32.totalorder %v5813_v9, %v3486_v47  ;;  %v3466_v49 = vand.u32 65535, %v3465_v48  ;;  %v3442_v50 = vand.u32 65535, %v3441_v37 }
 0x7bb   :  { %v3467_v51 = vshrl.u32 %v3465_v48, 16  ;;  %v3512_v52 = vsel %vm3511_vm12, 1, %v5794_v11  ;;  %v3488_v53 = vsel %vm3487_vm13, 1, %v5794_v11  ;;  %v3534_v55 = vstv %s3533_s10 }
 0x7bc   :  { %v3468_v6 = vcvt.s32.f32 %v3466_v49  ;;  %v3444_v54 = vcvt.s32.f32 %v3442_v50  ;;  %v3513_v57 = vsel %vm40_vm2, %v3512_v52, 0  ;;  %v3489_v58 = vsel %vm40_vm2, %v3488_v53, 0 }
 0x7bd   :  { %v3469_v56 = vcvt.s32.f32 %v3467_v51  ;;  %vm3535_vm14 = vcmp.eq.s32.totalorder %v5813_v9, %v3534_v55  ;;  %v3515_v59 = vshrl.u32 %v3513_v57, 16  ;;  %v3491_v60 = vshrl.u32 %v3489_v58, 16 }
 0x7be   :  { %v3490_v61 = vand.u32 65535, %v3489_v58  ;;  %v3536_v62 = vsel %vm3535_vm14, 1, %v5794_v11  ;;  %v3582_v21 = vstv %s3581_s30  ;;  %v3558_v2 = vstv %s3557_s2 }
 0x7bf   :  { %v3517_v0 = vcvt.s32.f32 %v3515_v59  ;;  %v3493_v1 = vcvt.s32.f32 %v3491_v60  ;;  %v3537_v5 = vsel %vm40_vm2, %v3536_v62, 0  ;;  %vm3583_vm15 = vcmp.eq.s32.totalorder %v5813_v9, %v3582_v21 }
 0x7c0   :  { %3376 = vadd.xlane.f32.xlu2 %v3373_v23  ;;  %v3492_v3 = vcvt.s32.f32 %v3490_v61  ;;  %vm3559_vm0 = vcmp.eq.s32.totalorder %v5813_v9, %v3558_v2  ;;  %v3538_v7 = vand.u32 65535, %v3537_v5  ;;  %v3514_v8 = vand.u32 65535, %v3513_v57 }
 0x7c1   :  { %3352 = vadd.xlane.f32.xlu0 %v3349_v10  ;;  %3350 = vadd.xlane.f32.xlu1 %v3348_v26  ;;  %v3539_v27 = vshrl.u32 %v3537_v5, 16  ;;  %v3584_v12 = vsel %vm3583_vm15, 1, %v5794_v11  ;;  %v3560_v13 = vsel %vm3559_vm0, 1, %v5794_v11  ;;  %v3606_v16 = vstv %s3605_s28 }
 0x7c2   :  { %v3540_v14 = vcvt.s32.f32 %v3538_v7  ;;  %v3516_v15 = vcvt.s32.f32 %v3514_v8  ;;  %v3585_v18 = vsel %vm40_vm2, %v3584_v12, 0  ;;  %v3561_v19 = vsel %vm40_vm2, %v3560_v13, 0 }
 0x7c3   :  { %v3541_v17 = vcvt.s32.f32 %v3539_v27  ;;  %vm3607_vm1 = vcmp.eq.s32.totalorder %v5813_v9, %v3606_v16  ;;  %v3587_v20 = vshrl.u32 %v3585_v18, 16  ;;  %v3563_v22 = vshrl.u32 %v3561_v19, 16 }
 0x7c4   :  { %v3562_v23 = vand.u32 65535, %v3561_v19  ;;  %v3608_v10 = vsel %vm3607_vm1, 1, %v5794_v11  ;;  %v3586_v45 = vand.u32 65535, %v3585_v18 }
 0x7c5   :  { %v3589_v24 = vcvt.s32.f32 %v3587_v20  ;;  %v3565_v25 = vcvt.s32.f32 %v3563_v22  ;;  %v3609_v28 = vsel %vm40_vm2, %v3608_v10, 0 }
 0x7c6   :  { %v3564_v26 = vcvt.s32.f32 %v3562_v23  ;;  %v3610_v29 = vand.u32 65535, %v3609_v28  ;;  %v3611_v30 = vshrl.u32 %v3609_v28, 16  ;;  %v3588_v32 = vcvt.s32.f32 %v3586_v45 }
 0x7c8   :  { %3398 = vadd.xlane.f32.xlu2 %v3396_v33  ;;  %v3612_v31 = vcvt.s32.f32 %v3610_v29  ;;  %v3613_v33 = vcvt.s32.f32 %v3611_v30 }
 0x7c9   :  { %3374 = vadd.xlane.f32.xlu0 %v3372_v34  ;;  %3400 = vadd.xlane.f32.xlu1 %v3397_v36 }
 0x7d0   :  { %3448 = vadd.xlane.f32.xlu2 %v3445_v43 }
 0x7d1   :  { %3424 = vadd.xlane.f32.xlu0 %v3421_v44  ;;  %3422 = vadd.xlane.f32.xlu1 %v3420_v63 }
 0x7d8   :  { %3470 = vadd.xlane.f32.xlu2 %v3468_v6 }
 0x7d9   :  { %3446 = vadd.xlane.f32.xlu0 %v3444_v54  ;;  %3472 = vadd.xlane.f32.xlu1 %v3469_v56 }
 0x7e0   :  { %3520 = vadd.xlane.f32.xlu2 %v3517_v0 }
 0x7e1   :  { %3496 = vadd.xlane.f32.xlu0 %v3493_v1  ;;  %3494 = vadd.xlane.f32.xlu1 %v3492_v3 }
 0x7e8   :  { %3542 = vadd.xlane.f32.xlu2 %v3540_v14 }
 0x7e9   :  { %3518 = vadd.xlane.f32.xlu0 %v3516_v15  ;;  %3544 = vadd.xlane.f32.xlu1 %v3541_v17 }
 0x7f0   :  { %3592 = vadd.xlane.f32.xlu2 %v3589_v24 }
 0x7f1   :  { %3568 = vadd.xlane.f32.xlu0 %v3565_v25  ;;  %3566 = vadd.xlane.f32.xlu1 %v3564_v26 }
 0x7f8   :  { %3614 = vadd.xlane.f32.xlu2 %v3612_v31 }
 0x7f9   :  { %3590 = vadd.xlane.f32.xlu0 %v3588_v32  ;;  %3616 = vadd.xlane.f32.xlu1 %v3613_v33 }
 0x823   :  { %v3305_v34 = vpop.xlane.xlu2 %3304 }
 0x824   :  { %v3281_v35 = vpop.xlane.xlu0 %3280  ;;  %v3279_v37 = vpop.xlane.xlu1 %3278  ;;  %v3307_v40 = vcvt.f32.s32 %v3305_v34 }
 0x825   :  { %v3283_v36 = vcvt.f32.s32 %v3281_v35  ;;  %v3282_v39 = vcvt.f32.s32 %v3279_v37 }
 0x826   :  { %v3308_v46 = vshll.u32 %v3307_v40, 16 }
 0x827   :  { %v3284_v38 = vshll.u32 %v3283_v36, 16 }
 0x829   :  { %v3285_v41 = vadd.s32 %v3284_v38, %v3282_v39 }
 0x82b   :  { %v3286_v42 = vrot.slane %v3285_v41, 4  ;;  %v3327_v43 = vpop.xlane.xlu2 %3326 }
 0x82c   :  { %v3303_v44 = vpop.xlane.xlu0 %3302  ;;  %v3329_v48 = vpop.xlane.xlu1 %3328  ;;  %v3330_v52 = vcvt.f32.s32 %v3327_v43 }
 0x82d   :  { %v3287_v47 = vadd.s32 %v3286_v42, %v3285_v41  ;;  %v3306_v63 = vcvt.f32.s32 %v3303_v44  ;;  %v3331_v49 = vcvt.f32.s32 %v3329_v48 }
 0x82f   :  { %v3309_v50 = vadd.s32 %v3308_v46, %v3306_v63  ;;  %v3288_v51 = vrot.slane %v3287_v47, 2  ;;  %v3332_v53 = vshll.u32 %v3331_v49, 16 }
 0x831   :  { %v3310_v6 = vrot.slane %v3309_v50, 4  ;;  %v3289_v54 = vadd.s32 %v3288_v51, %v3287_v47  ;;  %v3333_v55 = vadd.s32 %v3332_v53, %v3330_v52 }
 0x833   :  { %v3311_v56 = vadd.s32 %v3310_v6, %v3309_v50  ;;  %v3290_v57 = vrot.slane %v3289_v54, 1  ;;  %v3334_v58 = vrot.slane %v3333_v55, 4  ;;  %v3377_v59 = vpop.xlane.xlu2 %3376 }
 0x834   :  { %v3353_v60 = vpop.xlane.xlu0 %3352  ;;  %v3351_v62 = vpop.xlane.xlu1 %3350  ;;  %v3379_v8 = vcvt.f32.s32 %v3377_v59 }
 0x835   :  { %v3355_v61 = vcvt.f32.s32 %v3353_v60  ;;  %v3291_v0 = vadd.s32 %v3290_v57, %v3289_v54  ;;  %v3312_v1 = vrot.slane %v3311_v56, 2  ;;  %v3335_v21 = vadd.s32 %v3334_v58, %v3333_v55 }
 0x836   :  { %v3354_v3 = vcvt.f32.s32 %v3351_v62  ;;  %v3380_v19 = vshll.u32 %v3379_v8, 16 }
 0x837   :  { %v3356_v2 = vshll.u32 %v3355_v61, 16  ;;  %5617 = vpush %v3291_v0  ;;  %v3313_v5 = vadd.s32 %v3312_v1, %v3311_v56  ;;  %v3336_v7 = vrot.slane %v3335_v21, 2 }
 0x839   :  { %v3357_v27 = vadd.s32 %v3356_v2, %v3354_v3  ;;  %v3314_v12 = vrot.slane %v3313_v5, 1  ;;  %v3337_v13 = vadd.s32 %v3336_v7, %v3335_v21 }
 0x83b   :  { %v3358_v14 = vrot.slane %v3357_v27, 4  ;;  %v3315_v15 = vadd.s32 %v3314_v12, %v3313_v5  ;;  %v3399_v16 = vpop.xlane.xlu2 %3398  ;;  %v3338_v18 = vrot.slane %v3337_v13, 1 }
 0x83c   :  { %v3375_v17 = vpop.xlane.xlu0 %3374  ;;  %v3401_v23 = vpop.xlane.xlu1 %3400  ;;  %v3402_v28 = vcvt.f32.s32 %v3399_v16 }
 0x83d   :  { %v3359_v20 = vadd.s32 %v3358_v14, %v3357_v27  ;;  %v3378_v22 = vcvt.f32.s32 %v3375_v17  ;;  %5619 = vpush %v3315_v15  ;;  %v3403_v10 = vcvt.f32.s32 %v3401_v23  ;;  %v3339_v24 = vadd.s32 %v3338_v18, %v3337_v13 }
 0x83f   :  { %v3381_v25 = vadd.s32 %v3380_v19, %v3378_v22  ;;  %v3360_v26 = vrot.slane %v3359_v20, 2  ;;  %v3404_v29 = vshll.u32 %v3403_v10, 16  ;;  %5621 = vpush %v3339_v24 }
 0x841   :  { %v3382_v45 = vrot.slane %v3381_v25, 4  ;;  %v3361_v30 = vadd.s32 %v3360_v26, %v3359_v20  ;;  %v3405_v31 = vadd.s32 %v3404_v29, %v3402_v28 }
 0x843   :  { %v3383_v32 = vadd.s32 %v3382_v45, %v3381_v25  ;;  %v3362_v33 = vrot.slane %v3361_v30, 1  ;;  %v3406_v34 = vrot.slane %v3405_v31, 4  ;;  %v3449_v35 = vpop.xlane.xlu2 %3448 }
 0x844   :  { %v3425_v36 = vpop.xlane.xlu0 %3424  ;;  %v3423_v38 = vpop.xlane.xlu1 %3422  ;;  %v3451_v47 = vcvt.f32.s32 %v3449_v35 }
 0x845   :  { %v3427_v37 = vcvt.f32.s32 %v3425_v36  ;;  %v3363_v39 = vadd.s32 %v3362_v33, %v3361_v30  ;;  %v3384_v40 = vrot.slane %v3383_v32, 2  ;;  %v3407_v41 = vadd.s32 %v3406_v34, %v3405_v31 }
 0x846   :  { %v3426_v43 = vcvt.f32.s32 %v3423_v38  ;;  %v3452_v54 = vshll.u32 %v3451_v47, 16 }
 0x847   :  { %v3428_v42 = vshll.u32 %v3427_v37, 16  ;;  %5623 = vpush %v3363_v39  ;;  %v3385_v44 = vadd.s32 %v3384_v40, %v3383_v32  ;;  %v3408_v46 = vrot.slane %v3407_v41, 2 }
 0x849   :  { %v3429_v63 = vadd.s32 %v3428_v42, %v3426_v43  ;;  %v3386_v48 = vrot.slane %v3385_v44, 1  ;;  %v3409_v49 = vadd.s32 %v3408_v46, %v3407_v41 }
 0x84b   :  { %v3430_v50 = vrot.slane %v3429_v63, 4  ;;  %v3387_v51 = vadd.s32 %v3386_v48, %v3385_v44  ;;  %v3471_v52 = vpop.xlane.xlu2 %3470  ;;  %v3410_v6 = vrot.slane %v3409_v49, 1 }
 0x84c   :  { %v3447_v53 = vpop.xlane.xlu0 %3446  ;;  %v3473_v57 = vpop.xlane.xlu1 %3472  ;;  %v3474_v62 = vcvt.f32.s32 %v3471_v52 }
 0x84d   :  { %v3431_v55 = vadd.s32 %v3430_v50, %v3429_v63  ;;  %v3450_v56 = vcvt.f32.s32 %v3447_v53  ;;  %5625 = vpush %v3387_v51  ;;  %v3475_v58 = vcvt.f32.s32 %v3473_v57  ;;  %v3411_v59 = vadd.s32 %v3410_v6, %v3409_v49 }
 0x84f   :  { %v3453_v60 = vadd.s32 %v3452_v54, %v3450_v56  ;;  %v3432_v61 = vrot.slane %v3431_v55, 2  ;;  %v3476_v0 = vshll.u32 %v3475_v58, 16  ;;  %5627 = vpush %v3411_v59 }
 0x851   :  { %v3454_v1 = vrot.slane %v3453_v60, 4  ;;  %v3433_v21 = vadd.s32 %v3432_v61, %v3431_v55  ;;  %v3477_v2 = vadd.s32 %v3476_v0, %v3474_v62 }
 0x853   :  { %v3455_v3 = vadd.s32 %v3454_v1, %v3453_v60  ;;  %v3434_v5 = vrot.slane %v3433_v21, 1  ;;  %v3478_v7 = vrot.slane %v3477_v2, 4  ;;  %v3521_v8 = vpop.xlane.xlu2 %3520 }
 0x854   :  { %v3497_v27 = vpop.xlane.xlu0 %3496  ;;  %v3495_v13 = vpop.xlane.xlu1 %3494  ;;  %v3523_v22 = vcvt.f32.s32 %v3521_v8 }
 0x855   :  { %v3499_v12 = vcvt.f32.s32 %v3497_v27  ;;  %v3435_v14 = vadd.s32 %v3434_v5, %v3433_v21  ;;  %v3456_v15 = vrot.slane %v3455_v3, 2  ;;  %v3479_v16 = vadd.s32 %v3478_v7, %v3477_v2 }
 0x856   :  { %v3498_v18 = vcvt.f32.s32 %v3495_v13  ;;  %v3524_v30 = vshll.u32 %v3523_v22, 16 }
 0x857   :  { %v3500_v17 = vshll.u32 %v3499_v12, 16  ;;  %5629 = vpush %v3435_v14  ;;  %v3457_v19 = vadd.s32 %v3456_v15, %v3455_v3  ;;  %v3480_v20 = vrot.slane %v3479_v16, 2 }
 0x859   :  { %v3501_v23 = vadd.s32 %v3500_v17, %v3498_v18  ;;  %v3458_v10 = vrot.slane %v3457_v19, 1  ;;  %v3481_v24 = vadd.s32 %v3480_v20, %v3479_v16 }
 0x85b   :  { %v3502_v25 = vrot.slane %v3501_v23, 4  ;;  %v3459_v26 = vadd.s32 %v3458_v10, %v3457_v19  ;;  %v3543_v28 = vpop.xlane.xlu2 %3542  ;;  %v3482_v45 = vrot.slane %v3481_v24, 1 }
 0x85c   :  { %v3519_v29 = vpop.xlane.xlu0 %3518  ;;  %v3545_v33 = vpop.xlane.xlu1 %3544  ;;  %v3546_v38 = vcvt.f32.s32 %v3543_v28 }
 0x85d   :  { %v3503_v31 = vadd.s32 %v3502_v25, %v3501_v23  ;;  %v3522_v32 = vcvt.f32.s32 %v3519_v29  ;;  %5631 = vpush %v3459_v26  ;;  %v3547_v34 = vcvt.f32.s32 %v3545_v33  ;;  %v3483_v35 = vadd.s32 %v3482_v45, %v3481_v24 }
 0x85f   :  { %v3525_v36 = vadd.s32 %v3524_v30, %v3522_v32  ;;  %v3504_v37 = vrot.slane %v3503_v31, 2  ;;  %v3548_v39 = vshll.u32 %v3547_v34, 16  ;;  %5633 = vpush %v3483_v35 }
 0x861   :  { %v3526_v40 = vrot.slane %v3525_v36, 4  ;;  %v3505_v41 = vadd.s32 %v3504_v37, %v3503_v31  ;;  %v3549_v42 = vadd.s32 %v3548_v39, %v3546_v38  ;;  %v3739_v31 = vsub.s32 384, %v5810_v4 }
 0x863   :  { %v3527_v43 = vadd.s32 %v3526_v40, %v3525_v36  ;;  %v3506_v44 = vrot.slane %v3505_v41, 1  ;;  %v3550_v46 = vrot.slane %v3549_v42, 4  ;;  %v3593_v47 = vpop.xlane.xlu2 %3592 }
 0x864   :  { %v3569_v63 = vpop.xlane.xlu0 %3568  ;;  %v3567_v49 = vpop.xlane.xlu1 %3566  ;;  %v3595_v56 = vcvt.f32.s32 %v3593_v47 }
 0x865   :  { %v3571_v48 = vcvt.f32.s32 %v3569_v63  ;;  %v3507_v50 = vadd.s32 %v3506_v44, %v3505_v41  ;;  %v3528_v51 = vrot.slane %v3527_v43, 2  ;;  %v3551_v52 = vadd.s32 %v3550_v46, %v3549_v42 }
 0x866   :  { %v3570_v6 = vcvt.f32.s32 %v3567_v49  ;;  %v3596_v1 = vshll.u32 %v3595_v56, 16 }
 0x867   :  { %v3572_v53 = vshll.u32 %v3571_v48, 16  ;;  %5635 = vpush %v3507_v50  ;;  %v3529_v54 = vadd.s32 %v3528_v51, %v3527_v43  ;;  %v3552_v55 = vrot.slane %v3551_v52, 2 }
 0x868   :  { %s6661_s19 = spop %5617 }
 0x869   :  { %v3573_v57 = vadd.s32 %v3572_v53, %v3570_v6  ;;  %p3629_p0 = scmp.ge.s32.totalorder %s6661_s19, %s6659_s29  ;;  %v3530_v58 = vrot.slane %v3529_v54, 1  ;;  %v3553_v59 = vadd.s32 %v3552_v55, %v3551_v52 }
 0x86b   :  { %v3574_v60 = vrot.slane %v3573_v57, 4  ;;  %v3531_v61 = vadd.s32 %v3530_v58, %v3529_v54  ;;  %s3630_s16 = scalar_select %p3629_p0, 15, 0  ;;  %v3554_v0 = vrot.slane %v3553_v59, 1  ;;  %v3615_v2 = vpop.xlane.xlu2 %3614 }
 0x86c   :  { %v3591_v62 = vpop.xlane.xlu0 %3590  ;;  %v3617_v5 = vpop.xlane.xlu1 %3616  ;;  %v3618_v13 = vcvt.f32.s32 %v3615_v2 }
 0x86d   :  { %v3575_v21 = vadd.s32 %v3574_v60, %v3573_v57  ;;  %v3594_v3 = vcvt.f32.s32 %v3591_v62  ;;  %5637 = vpush %v3531_v61  ;;  %v3619_v7 = vcvt.f32.s32 %v3617_v5  ;;  %v3555_v8 = vadd.s32 %v3554_v0, %v3553_v59  ;;  %p3633_p1 = scmp.eq.s32.totalorder %s3630_s16, 0 }
 0x86e   :  { %s5620_s17 = spop %5619 }
 0x86f   :  { %v3597_v27 = vadd.s32 %v3596_v1, %v3594_v3  ;;  %s6666_s14 = sadd.s32 %s5620_s17, %s6661_s19  ;;  %v3576_v12 = vrot.slane %v3575_v21, 2  ;;  %v3620_v14 = vshll.u32 %v3619_v7, 16  ;;  %5639 = vpush %v3555_v8 }
 0x870   :  { %p3632_p2 = scmp.ge.s32.totalorder %s6666_s14, %s6659_s29  ;;  %s5622_s18 = spop %5621 }
 0x871   :  { %v3598_v15 = vrot.slane %v3597_v27, 4  ;;  %v3577_v16 = vadd.s32 %v3576_v12, %v3575_v21  ;;  %v3621_v17 = vadd.s32 %v3620_v14, %v3618_v13  ;;  %s6675_s8 = sadd.s32 %s5622_s18, %s6666_s14 }
 0x872   :  { %p6670_p3 = pnand %p3633_p1, %p3632_p2  ;;  %p3639_p4 = scmp.ge.s32.totalorder %s6675_s8, %s6659_s29 }
 0x873   :  { %v3599_v18 = vadd.s32 %v3598_v15, %v3597_v27  ;;  %v3578_v19 = vrot.slane %v3577_v16, 1  ;;  %v3622_v20 = vrot.slane %v3621_v17, 4 }
 0x874   :  { %s7451_s16 = smov (!%p6670_p3, %s3630_s16), 14  ;;  %s7453_s19 = smov (%p6670_p3, %s6661_s19), 0 }
 0x875   :  { %v3579_v22 = vadd.s32 %v3578_v19, %v3577_v16  ;;  %v3600_v23 = vrot.slane %v3599_v18, 2  ;;  %v3623_v10 = vadd.s32 %v3622_v20, %v3621_v17  ;;  %p3640_p5 = scmp.eq.s32.totalorder %s7451_s16, 0 }
 0x877   :  { %5641 = vpush %v3579_v22  ;;  %v3601_v24 = vadd.s32 %v3600_v23, %v3599_v18  ;;  %p3641_p6 = pnand %p3640_p5, %p3639_p4  ;;  %v3624_v25 = vrot.slane %v3623_v10, 2 }
 0x878   :  { %s5624_s0 = spop %5623 }
 0x879   :  { %s3645_s25 = sadd.s32 %s5624_s0, %s6675_s8  ;;  %v3602_v26 = vrot.slane %v3601_v24, 1  ;;  %s7455_s16 = smov (!%p3641_p6, %s7451_s16), 13  ;;  %v3625_v28 = vadd.s32 %v3624_v25, %v3623_v10 }
 0x87a   :  { %s7457_s19 = smov (!%p3641_p6, %s7453_s19), %s6666_s14  ;;  %p3646_p7 = scmp.ge.s32.totalorder %s3645_s25, %s6659_s29 }
 0x87b   :  { %v3603_v29 = vadd.s32 %v3602_v26, %v3601_v24  ;;  %p3647_p8 = scmp.eq.s32.totalorder %s7455_s16, 0  ;;  %v3626_v45 = vrot.slane %v3625_v28, 1 }
 0x87d   :  { %5643 = vpush %v3603_v29  ;;  %p6687_p9 = pnand %p3647_p8, %p3646_p7  ;;  %v3627_v30 = vadd.s32 %v3626_v45, %v3625_v28 }
 0x87e   :  { %s5626_s26 = spop %5625 }
 0x87f   :  { %s3652_s13 = sadd.s32 %s5626_s26, %s3645_s25  ;;  %s7459_s16 = smov (!%p6687_p9, %s7455_s16), 12  ;;  %5645 = vpush %v3627_v30 }
 0x880   :  { %s7461_s19 = smov (!%p6687_p9, %s7457_s19), %s6675_s8  ;;  %p3653_p10 = scmp.ge.s32.totalorder %s3652_s13, %s6659_s29 }
 0x881   :  { %p3654_p11 = scmp.eq.s32.totalorder %s7459_s16, 0  ;;  %s5628_s15 = spop %5627 }
 0x882   :  { %s3659_s5 = sadd.s32 %s5628_s15, %s3652_s13 }
 0x883   :  { %p3655_p12 = pnand %p3654_p11, %p3653_p10  ;;  %p3660_p13 = scmp.ge.s32.totalorder %s3659_s5, %s6659_s29 }
 0x885   :  { %s7463_s16 = smov (!%p3655_p12, %s7459_s16), 11  ;;  %s7465_s19 = smov (!%p3655_p12, %s7461_s19), %s3645_s25 }
 0x886   :  { %p3661_p0 = scmp.eq.s32.totalorder %s7463_s16, 0 }
 0x888   :  { %s5630_s3 = spop %5629  ;;  %p3662_p1 = pnand %p3661_p0, %p3660_p13 }
 0x889   :  { %s3666_s6 = sadd.s32 %s5630_s3, %s3659_s5 }
 0x88a   :  { %p3667_p2 = scmp.ge.s32.totalorder %s3666_s6, %s6659_s29  ;;  %s7467_s16 = smov (!%p3662_p1, %s7463_s16), 10 }
 0x88b   :  { %s7469_s19 = smov (!%p3662_p1, %s7465_s19), %s3652_s13  ;;  %p3668_p3 = scmp.eq.s32.totalorder %s7467_s16, 0 }
 0x88d   :  { %p3669_p4 = pnand %p3668_p3, %p3667_p2 }
 0x88e   :  { %s5632_s4 = spop %5631 }
 0x88f   :  { %s3673_s27 = sadd.s32 %s5632_s4, %s3666_s6  ;;  %s7471_s16 = smov (!%p3669_p4, %s7467_s16), 9 }
 0x890   :  { %p3674_p5 = scmp.ge.s32.totalorder %s3673_s27, %s6659_s29  ;;  %s5634_s22 = spop %5633 }
 0x891   :  { %s7473_s19 = smov (!%p3669_p4, %s7469_s19), %s3659_s5  ;;  %p3675_p6 = scmp.eq.s32.totalorder %s7471_s16, 0 }
 0x892   :  { %s3680_s20 = sadd.s32 %s5634_s22, %s3673_s27 }
 0x893   :  { %p3676_p7 = pnand %p3675_p6, %p3674_p5  ;;  %p3681_p8 = scmp.ge.s32.totalorder %s3680_s20, %s6659_s29 }
 0x895   :  { %s7475_s16 = smov (!%p3676_p7, %s7471_s16), 8  ;;  %s7477_s19 = smov (!%p3676_p7, %s7473_s19), %s3666_s6 }
 0x896   :  { %p3682_p9 = scmp.eq.s32.totalorder %s7475_s16, 0 }
 0x898   :  { %s5636_s21 = spop %5635  ;;  %p3683_p10 = pnand %p3682_p9, %p3681_p8 }
 0x899   :  { %s3687_s11 = sadd.s32 %s5636_s21, %s3680_s20 }
 0x89a   :  { %p3688_p11 = scmp.ge.s32.totalorder %s3687_s11, %s6659_s29  ;;  %s7479_s16 = smov (!%p3683_p10, %s7475_s16), 7 }
 0x89b   :  { %s7481_s19 = smov (!%p3683_p10, %s7477_s19), %s3673_s27  ;;  %p3689_p12 = scmp.eq.s32.totalorder %s7479_s16, 0 }
 0x89d   :  { %p3690_p13 = pnand %p3689_p12, %p3688_p11 }
 0x89e   :  { %s5638_s9 = spop %5637 }
 0x89f   :  { %s3694_s12 = sadd.s32 %s5638_s9, %s3687_s11  ;;  %s7483_s16 = smov (!%p3690_p13, %s7479_s16), 6 }
 0x8a0   :  { %p3695_p0 = scmp.ge.s32.totalorder %s3694_s12, %s6659_s29  ;;  %s5640_s10 = spop %5639 }
 0x8a1   :  { %s7485_s19 = smov (!%p3690_p13, %s7481_s19), %s3680_s20  ;;  %p3696_p1 = scmp.eq.s32.totalorder %s7483_s16, 0 }
 0x8a2   :  { %s3701_s30 = sadd.s32 %s5640_s10, %s3694_s12 }
 0x8a3   :  { %p3697_p2 = pnand %p3696_p1, %p3695_p0  ;;  %p3702_p3 = scmp.ge.s32.totalorder %s3701_s30, %s6659_s29 }
 0x8a5   :  { %s7487_s16 = smov (!%p3697_p2, %s7483_s16), 5  ;;  %s7489_s19 = smov (!%p3697_p2, %s7485_s19), %s3687_s11 }
 0x8a6   :  { %p3703_p4 = scmp.eq.s32.totalorder %s7487_s16, 0 }
 0x8a8   :  { %s5642_s2 = spop %5641  ;;  %p3704_p5 = pnand %p3703_p4, %p3702_p3 }
 0x8a9   :  { %s3708_s28 = sadd.s32 %s5642_s2, %s3701_s30 }
 0x8aa   :  { %p3709_p6 = scmp.ge.s32.totalorder %s3708_s28, %s6659_s29  ;;  %s7491_s16 = smov (!%p3704_p5, %s7487_s16), 4 }
 0x8ab   :  { %s7493_s19 = smov (!%p3704_p5, %s7489_s19), %s3694_s12  ;;  %p3710_p7 = scmp.eq.s32.totalorder %s7491_s16, 0 }
 0x8ad   :  { %p3711_p8 = pnand %p3710_p7, %p3709_p6 }
 0x8ae   :  { %s5644_s17 = spop %5643 }
 0x8af   :  { %s3715_s14 = sadd.s32 %s5644_s17, %s3708_s28  ;;  %s7495_s16 = smov (!%p3711_p8, %s7491_s16), 3 }
 0x8b0   :  { %p3716_p9 = scmp.ge.s32.totalorder %s3715_s14, %s6659_s29  ;;  %s7497_s19 = smov (!%p3711_p8, %s7493_s19), %s3701_s30 }
 0x8b1   :  { %p3717_p10 = scmp.eq.s32.totalorder %s7495_s16, 0  ;;  %s5646_s18 = spop %5645 }
 0x8b2   :  { %s3722_s7 = sadd.s32 %s5646_s18, %s3715_s14 }
 0x8b3   :  { %p3718_p11 = pnand %p3717_p10, %p3716_p9  ;;  %p3723_p12 = scmp.ge.s32.totalorder %s3722_s7, %s6659_s29 }
 0x8b5   :  { %s7499_s16 = smov (!%p3718_p11, %s7495_s16), 2  ;;  %s7501_s19 = smov (!%p3718_p11, %s7497_s19), %s3708_s28 }
 0x8b6   :  { %p3724_p13 = scmp.eq.s32.totalorder %s7499_s16, 0 }
 0x8b8   :  { %p3725_p0 = pnand %p3724_p13, %p3723_p12 }
 0x8ba   :  { %s7503_s16 = smov (!%p3725_p0, %s7499_s16), 1  ;;  %s7505_s19 = smov (!%p3725_p0, %s7501_s19), %s3715_s14 }
 0x8bb   :  { %p3729_p1 = scmp.eq.s32.totalorder %s7503_s16, 0  ;;  %s6709_s8 = sor.u32 %s7503_s16, %s6593_s24 }
 0x8bc   :  { %v3733_v32 = vstv %s6709_s8 }
 0x8bd   :  { %s7507_s7 = smov (!%p3729_p1, %s3722_s7), %s7505_s19  ;;  %vm3734_vm3 = vcmp.eq.s32.totalorder %v5813_v9, %v3733_v32 }
 0x8be   :  { %v6715_v33 = vsel %vm3734_vm3, %v3739_v31, 0  ;;  %s6767_s24 = ssub.s32 %s6659_s29, %s7507_s7 }
 0x8bf   :  { %v6718_v34 = vand.u32 4294967040, %v6715_v33 }
 0x8c1   :  { %vm3764_vm4 = vcmp.eq.s32.totalorder %v6718_v34, 3584  ;;  %vm3742_vm5 = vcmp.eq.s32.totalorder %v6718_v34, 3840  ;;  %vm3786_vm6 = vcmp.eq.s32.totalorder %v6718_v34, 3328  ;;  %vm3830_vm7 = vcmp.eq.s32.totalorder %v6718_v34, 2816 }
 0x8c2   :  { %v3765_v4 = vsel %vm3764_vm4, 1, %v5794_v11  ;;  %v3743_v35 = vsel %vm3742_vm5, 1, %v5794_v11  ;;  %v3787_v41 = vsel %vm3786_vm6, 1, %v5794_v11  ;;  %vm3808_vm8 = vcmp.eq.s32.totalorder %v6718_v34, 3072 }
 0x8c3   :  { %v3766_v36 = vsel %vm40_vm2, %v3765_v4, 0  ;;  %v3744_v37 = vsel %vm40_vm2, %v3743_v35, 0  ;;  %v3788_v46 = vsel %vm40_vm2, %v3787_v41, 0  ;;  %v3831_v49 = vsel %vm3830_vm7, 1, %v5794_v11 }
 0x8c4   :  { %v3768_v38 = vshrl.u32 %v3766_v36, 16  ;;  %v3746_v39 = vshrl.u32 %v3744_v37, 16  ;;  %v3745_v40 = vand.u32 65535, %v3744_v37  ;;  %v3789_v47 = vand.u32 65535, %v3788_v46 }
 0x8c5   :  { %v3767_v63 = vand.u32 65535, %v3766_v36  ;;  %v3790_v48 = vshrl.u32 %v3788_v46, 16  ;;  %v3809_v50 = vsel %vm3808_vm8, 1, %v5794_v11  ;;  %v3832_v6 = vsel %vm40_vm2, %v3831_v49, 0 }
 0x8c6   :  { %v3770_v42 = vcvt.s32.f32 %v3768_v38  ;;  %v3748_v43 = vcvt.s32.f32 %v3746_v39  ;;  %v3747_v44 = vcvt.s32.f32 %v3745_v40  ;;  %v3791_v51 = vcvt.s32.f32 %v3789_v47 }
 0x8c7   :  { %v3769_v52 = vcvt.s32.f32 %v3767_v63  ;;  %v3792_v53 = vcvt.s32.f32 %v3790_v48  ;;  %v3810_v54 = vsel %vm40_vm2, %v3809_v50, 0  ;;  %vm3852_vm9 = vcmp.eq.s32.totalorder %v6718_v34, 2560 }
 0x8c8   :  { %3773 = vadd.xlane.f32.xlu2 %v3770_v42  ;;  %3751 = vadd.xlane.f32.xlu0 %v3748_v43  ;;  %v3834_v55 = vshrl.u32 %v3832_v6, 16  ;;  %v3812_v56 = vshrl.u32 %v3810_v54, 16  ;;  %v3811_v57 = vand.u32 65535, %v3810_v54  ;;  %v3853_v58 = vsel %vm3852_vm9, 1, %v5794_v11 }
 0x8c9   :  { %3749 = vadd.xlane.f32.xlu1 %v3747_v44  ;;  %v3854_v62 = vsel %vm40_vm2, %v3853_v58, 0  ;;  %vm3896_vm10 = vcmp.eq.s32.totalorder %v6718_v34, 2048  ;;  %vm3874_vm11 = vcmp.eq.s32.totalorder %v6718_v34, 2304  ;;  %v3833_v1 = vand.u32 65535, %v3832_v6 }
 0x8ca   :  { %v3836_v59 = vcvt.s32.f32 %v3834_v55  ;;  %v3814_v60 = vcvt.s32.f32 %v3812_v56  ;;  %v3813_v61 = vcvt.s32.f32 %v3811_v57  ;;  %v3855_v0 = vand.u32 65535, %v3854_v62 }
 0x8cb   :  { %v3856_v21 = vshrl.u32 %v3854_v62, 16  ;;  %v3897_v2 = vsel %vm3896_vm10, 1, %v5794_v11  ;;  %v3875_v3 = vsel %vm3874_vm11, 1, %v5794_v11  ;;  %v3835_v7 = vcvt.s32.f32 %v3833_v1 }
 0x8cc   :  { %v3857_v5 = vcvt.s32.f32 %v3855_v0  ;;  %v3898_v27 = vsel %vm40_vm2, %v3897_v2, 0  ;;  %v3876_v12 = vsel %vm40_vm2, %v3875_v3, 0  ;;  %vm3918_vm12 = vcmp.eq.s32.totalorder %v6718_v34, 1792 }
 0x8cd   :  { %v3858_v8 = vcvt.s32.f32 %v3856_v21  ;;  %v3900_v13 = vshrl.u32 %v3898_v27, 16  ;;  %v3878_v14 = vshrl.u32 %v3876_v12, 16  ;;  %v3877_v15 = vand.u32 65535, %v3876_v12 }
 0x8ce   :  { %v3919_v16 = vsel %vm3918_vm12, 1, %v5794_v11  ;;  %vm3962_vm13 = vcmp.eq.s32.totalorder %v6718_v34, 1280  ;;  %vm3940_vm14 = vcmp.eq.s32.totalorder %v6718_v34, 1536  ;;  %v3899_v23 = vand.u32 65535, %v3898_v27 }
 0x8cf   :  { %v3902_v17 = vcvt.s32.f32 %v3900_v13  ;;  %v3880_v18 = vcvt.s32.f32 %v3878_v14  ;;  %v3879_v19 = vcvt.s32.f32 %v3877_v15  ;;  %v3920_v20 = vsel %vm40_vm2, %v3919_v16, 0 }
 0x8d0   :  { %3793 = vadd.xlane.f32.xlu2 %v3791_v51  ;;  %3771 = vadd.xlane.f32.xlu0 %v3769_v52  ;;  %v3921_v22 = vand.u32 65535, %v3920_v20  ;;  %v3922_v10 = vshrl.u32 %v3920_v20, 16  ;;  %v3963_v24 = vsel %vm3962_vm13, 1, %v5794_v11  ;;  %v3941_v25 = vsel %vm3940_vm14, 1, %v5794_v11 }
 0x8d1   :  { %3795 = vadd.xlane.f32.xlu1 %v3792_v53  ;;  %v3901_v28 = vcvt.s32.f32 %v3899_v23  ;;  %v3964_v45 = vsel %vm40_vm2, %v3963_v24, 0  ;;  %v3942_v30 = vsel %vm40_vm2, %v3941_v25, 0  ;;  %vm3984_vm15 = vcmp.eq.s32.totalorder %v6718_v34, 1024 }
 0x8d2   :  { %v3923_v26 = vcvt.s32.f32 %v3921_v22  ;;  %v3924_v29 = vcvt.s32.f32 %v3922_v10  ;;  %v3966_v31 = vshrl.u32 %v3964_v45, 16  ;;  %v3944_v32 = vshrl.u32 %v3942_v30, 16 }
 0x8d3   :  { %v3943_v4 = vand.u32 65535, %v3942_v30  ;;  %v3985_v35 = vsel %vm3984_vm15, 1, %v5794_v11  ;;  %vm4028_vm0 = vcmp.eq.s32.totalorder %v6718_v34, 512  ;;  %vm4006_vm1 = vcmp.eq.s32.totalorder %v6718_v34, 768 }
 0x8d4   :  { %v3968_v36 = vcvt.s32.f32 %v3966_v31  ;;  %v3946_v37 = vcvt.s32.f32 %v3944_v32  ;;  %v3986_v39 = vsel %vm40_vm2, %v3985_v35, 0  ;;  %v3965_v41 = vand.u32 65535, %v3964_v45 }
 0x8d5   :  { %v3945_v38 = vcvt.s32.f32 %v3943_v4  ;;  %v3987_v40 = vand.u32 65535, %v3986_v39  ;;  %v3988_v42 = vshrl.u32 %v3986_v39, 16  ;;  %v4029_v43 = vsel %vm4028_vm0, 1, %v5794_v11 }
 0x8d6   :  { %v4007_v44 = vsel %vm4006_vm1, 1, %v5794_v11  ;;  %v3967_v47 = vcvt.s32.f32 %v3965_v41  ;;  %v4030_v48 = vsel %vm40_vm2, %v4029_v43, 0  ;;  %vm4050_vm3 = vcmp.eq.s32.totalorder %v6718_v34, 256 }
 0x8d7   :  { %v3989_v46 = vcvt.s32.f32 %v3987_v40  ;;  %v3990_v63 = vcvt.s32.f32 %v3988_v42  ;;  %v4008_v49 = vsel %vm40_vm2, %v4007_v44, 0  ;;  %v4032_v50 = vshrl.u32 %v4030_v48, 16 }
 0x8d8   :  { %3839 = vadd.xlane.f32.xlu2 %v3836_v59  ;;  %3817 = vadd.xlane.f32.xlu0 %v3814_v60  ;;  %v4010_v51 = vshrl.u32 %v4008_v49, 16  ;;  %v4009_v52 = vand.u32 65535, %v4008_v49  ;;  %v4051_v53 = vsel %vm4050_vm3, 1, %v5794_v11  ;;  %v4031_v58 = vand.u32 65535, %v4030_v48 }
 0x8d9   :  { %3815 = vadd.xlane.f32.xlu1 %v3813_v61  ;;  %v4034_v6 = vcvt.s32.f32 %v4032_v50  ;;  %v4052_v56 = vsel %vm40_vm2, %v4051_v53, 0 }
 0x8da   :  { %v4012_v54 = vcvt.s32.f32 %v4010_v51  ;;  %v4011_v55 = vcvt.s32.f32 %v4009_v52  ;;  %v4053_v57 = vand.u32 65535, %v4052_v56  ;;  %v4054_v59 = vshrl.u32 %v4052_v56, 16 }
 0x8db   :  { %v4033_v61 = vcvt.s32.f32 %v4031_v58 }
 0x8dc   :  { %v4055_v60 = vcvt.s32.f32 %v4053_v57  ;;  %v4056_v62 = vcvt.s32.f32 %v4054_v59 }
 0x8e0   :  { %3859 = vadd.xlane.f32.xlu2 %v3857_v5  ;;  %3837 = vadd.xlane.f32.xlu0 %v3835_v7 }
 0x8e1   :  { %3861 = vadd.xlane.f32.xlu1 %v3858_v8 }
 0x8e8   :  { %3905 = vadd.xlane.f32.xlu2 %v3902_v17  ;;  %3883 = vadd.xlane.f32.xlu0 %v3880_v18 }
 0x8e9   :  { %3881 = vadd.xlane.f32.xlu1 %v3879_v19 }
 0x8f0   :  { %3925 = vadd.xlane.f32.xlu2 %v3923_v26  ;;  %3903 = vadd.xlane.f32.xlu0 %v3901_v28 }
 0x8f1   :  { %3927 = vadd.xlane.f32.xlu1 %v3924_v29 }
 0x8f8   :  { %3971 = vadd.xlane.f32.xlu2 %v3968_v36  ;;  %3949 = vadd.xlane.f32.xlu0 %v3946_v37 }
 0x8f9   :  { %3947 = vadd.xlane.f32.xlu1 %v3945_v38 }
 0x900   :  { %3991 = vadd.xlane.f32.xlu2 %v3989_v46  ;;  %3969 = vadd.xlane.f32.xlu0 %v3967_v47 }
 0x901   :  { %3993 = vadd.xlane.f32.xlu1 %v3990_v63 }
 0x908   :  { %4037 = vadd.xlane.f32.xlu2 %v4034_v6  ;;  %4015 = vadd.xlane.f32.xlu0 %v4012_v54 }
 0x909   :  { %4013 = vadd.xlane.f32.xlu1 %v4011_v55 }
 0x910   :  { %4057 = vadd.xlane.f32.xlu2 %v4055_v60  ;;  %4035 = vadd.xlane.f32.xlu0 %v4033_v61 }
 0x911   :  { %4059 = vadd.xlane.f32.xlu1 %v4056_v62 }
 0x93b   :  { %v3774_v34 = vpop.xlane.xlu2 %3773  ;;  %v3752_v0 = vpop.xlane.xlu0 %3751 }
 0x93c   :  { %v3754_v1 = vcvt.f32.s32 %v3752_v0  ;;  %v3750_v21 = vpop.xlane.xlu1 %3749  ;;  %v3776_v5 = vcvt.f32.s32 %v3774_v34 }
 0x93d   :  { %v3753_v3 = vcvt.f32.s32 %v3750_v21 }
 0x93e   :  { %v3755_v2 = vshll.u32 %v3754_v1, 16  ;;  %v3777_v13 = vshll.u32 %v3776_v5, 16 }
 0x940   :  { %v3756_v7 = vadd.s32 %v3755_v2, %v3753_v3 }
 0x942   :  { %v3757_v8 = vrot.slane %v3756_v7, 4 }
 0x943   :  { %v3794_v27 = vpop.xlane.xlu2 %3793  ;;  %v3772_v12 = vpop.xlane.xlu0 %3771 }
 0x944   :  { %v3758_v14 = vadd.s32 %v3757_v8, %v3756_v7  ;;  %v3775_v15 = vcvt.f32.s32 %v3772_v12  ;;  %v3796_v16 = vpop.xlane.xlu1 %3795  ;;  %v3797_v20 = vcvt.f32.s32 %v3794_v27 }
 0x945   :  { %v3798_v17 = vcvt.f32.s32 %v3796_v16 }
 0x946   :  { %v3778_v18 = vadd.s32 %v3777_v13, %v3775_v15  ;;  %v3759_v19 = vrot.slane %v3758_v14, 2 }
 0x947   :  { %v3799_v22 = vshll.u32 %v3798_v17, 16 }
 0x948   :  { %v3779_v23 = vrot.slane %v3778_v18, 4  ;;  %v3760_v10 = vadd.s32 %v3759_v19, %v3758_v14 }
 0x949   :  { %v3800_v24 = vadd.s32 %v3799_v22, %v3797_v20 }
 0x94a   :  { %v3780_v25 = vadd.s32 %v3779_v23, %v3778_v18  ;;  %v3761_v26 = vrot.slane %v3760_v10, 1 }
 0x94b   :  { %v3801_v28 = vrot.slane %v3800_v24, 4  ;;  %v3840_v29 = vpop.xlane.xlu2 %3839  ;;  %v3818_v45 = vpop.xlane.xlu0 %3817 }
 0x94c   :  { %v3820_v30 = vcvt.f32.s32 %v3818_v45  ;;  %v3816_v31 = vpop.xlane.xlu1 %3815  ;;  %v3762_v32 = vadd.s32 %v3761_v26, %v3760_v10  ;;  %v3781_v4 = vrot.slane %v3780_v25, 2  ;;  %v3842_v40 = vcvt.f32.s32 %v3840_v29 }
 0x94d   :  { %v3802_v35 = vadd.s32 %v3801_v28, %v3800_v24  ;;  %v3819_v37 = vcvt.f32.s32 %v3816_v31 }
 0x94e   :  { %v3821_v36 = vshll.u32 %v3820_v30, 16  ;;  %5647 = vpush %v3762_v32  ;;  %v3782_v38 = vadd.s32 %v3781_v4, %v3780_v25  ;;  %v3843_v49 = vshll.u32 %v3842_v40, 16 }
 0x94f   :  { %v3803_v39 = vrot.slane %v3802_v35, 2 }
 0x950   :  { %v3822_v41 = vadd.s32 %v3821_v36, %v3819_v37  ;;  %v3783_v42 = vrot.slane %v3782_v38, 1 }
 0x951   :  { %v3804_v43 = vadd.s32 %v3803_v39, %v3802_v35 }
 0x952   :  { %v3823_v44 = vrot.slane %v3822_v41, 4  ;;  %v3784_v46 = vadd.s32 %v3783_v42, %v3782_v38 }
 0x953   :  { %v3860_v47 = vpop.xlane.xlu2 %3859  ;;  %v3838_v63 = vpop.xlane.xlu0 %3837  ;;  %v3805_v48 = vrot.slane %v3804_v43, 1 }
 0x954   :  { %v3824_v50 = vadd.s32 %v3823_v44, %v3822_v41  ;;  %v3841_v51 = vcvt.f32.s32 %v3838_v63  ;;  %v3862_v52 = vpop.xlane.xlu1 %3861  ;;  %5649 = vpush %v3784_v46  ;;  %v3863_v56 = vcvt.f32.s32 %v3860_v47 }
 0x955   :  { %v3864_v53 = vcvt.f32.s32 %v3862_v52  ;;  %v3806_v6 = vadd.s32 %v3805_v48, %v3804_v43 }
 0x956   :  { %v3844_v54 = vadd.s32 %v3843_v49, %v3841_v51  ;;  %v3825_v55 = vrot.slane %v3824_v50, 2 }
 0x957   :  { %v3865_v57 = vshll.u32 %v3864_v53, 16  ;;  %5651 = vpush %v3806_v6 }
 0x958   :  { %v3845_v58 = vrot.slane %v3844_v54, 4  ;;  %v3826_v59 = vadd.s32 %v3825_v55, %v3824_v50 }
 0x959   :  { %v3866_v60 = vadd.s32 %v3865_v57, %v3863_v56 }
 0x95a   :  { %v3846_v61 = vadd.s32 %v3845_v58, %v3844_v54  ;;  %v3827_v62 = vrot.slane %v3826_v59, 1 }
 0x95b   :  { %v3867_v34 = vrot.slane %v3866_v60, 4  ;;  %v3906_v0 = vpop.xlane.xlu2 %3905  ;;  %v3884_v1 = vpop.xlane.xlu0 %3883 }
 0x95c   :  { %v3886_v21 = vcvt.f32.s32 %v3884_v1  ;;  %v3882_v2 = vpop.xlane.xlu1 %3881  ;;  %v3828_v3 = vadd.s32 %v3827_v62, %v3826_v59  ;;  %v3847_v5 = vrot.slane %v3846_v61, 2  ;;  %v3908_v14 = vcvt.f32.s32 %v3906_v0 }
 0x95d   :  { %v3868_v7 = vadd.s32 %v3867_v34, %v3866_v60  ;;  %v3885_v27 = vcvt.f32.s32 %v3882_v2 }
 0x95e   :  { %v3887_v8 = vshll.u32 %v3886_v21, 16  ;;  %5653 = vpush %v3828_v3  ;;  %v3848_v12 = vadd.s32 %v3847_v5, %v3846_v61  ;;  %v3909_v10 = vshll.u32 %v3908_v14, 16 }
 0x95f   :  { %v3869_v13 = vrot.slane %v3868_v7, 2 }
 0x960   :  { %v3888_v15 = vadd.s32 %v3887_v8, %v3885_v27  ;;  %v3849_v16 = vrot.slane %v3848_v12, 1 }
 0x961   :  { %v3870_v17 = vadd.s32 %v3869_v13, %v3868_v7 }
 0x962   :  { %v3889_v18 = vrot.slane %v3888_v15, 4  ;;  %v3850_v19 = vadd.s32 %v3849_v16, %v3848_v12 }
 0x963   :  { %v3926_v20 = vpop.xlane.xlu2 %3925  ;;  %v3904_v22 = vpop.xlane.xlu0 %3903  ;;  %v3871_v23 = vrot.slane %v3870_v17, 1 }
 0x964   :  { %v3890_v24 = vadd.s32 %v3889_v18, %v3888_v15  ;;  %v3907_v25 = vcvt.f32.s32 %v3904_v22  ;;  %v3928_v26 = vpop.xlane.xlu1 %3927  ;;  %5655 = vpush %v3850_v19  ;;  %v3929_v31 = vcvt.f32.s32 %v3926_v20 }
 0x965   :  { %v3930_v28 = vcvt.f32.s32 %v3928_v26  ;;  %v3872_v29 = vadd.s32 %v3871_v23, %v3870_v17 }
 0x966   :  { %v3910_v45 = vadd.s32 %v3909_v10, %v3907_v25  ;;  %v3891_v30 = vrot.slane %v3890_v24, 2 }
 0x967   :  { %v3931_v32 = vshll.u32 %v3930_v28, 16  ;;  %5657 = vpush %v3872_v29 }
 0x968   :  { %v3911_v4 = vrot.slane %v3910_v45, 4  ;;  %v3892_v35 = vadd.s32 %v3891_v30, %v3890_v24 }
 0x969   :  { %v3932_v36 = vadd.s32 %v3931_v32, %v3929_v31 }
 0x96a   :  { %v3912_v37 = vadd.s32 %v3911_v4, %v3910_v45  ;;  %v3893_v38 = vrot.slane %v3892_v35, 1 }
 0x96b   :  { %v3933_v39 = vrot.slane %v3932_v36, 4  ;;  %v3972_v40 = vpop.xlane.xlu2 %3971  ;;  %v3950_v41 = vpop.xlane.xlu0 %3949 }
 0x96c   :  { %v3952_v42 = vcvt.f32.s32 %v3950_v41  ;;  %v3948_v43 = vpop.xlane.xlu1 %3947  ;;  %v3894_v44 = vadd.s32 %v3893_v38, %v3892_v35  ;;  %v3913_v46 = vrot.slane %v3912_v37, 2  ;;  %v3974_v51 = vcvt.f32.s32 %v3972_v40 }
 0x96d   :  { %v3934_v47 = vadd.s32 %v3933_v39, %v3932_v36  ;;  %v3951_v48 = vcvt.f32.s32 %v3948_v43 }
 0x96e   :  { %v3953_v63 = vshll.u32 %v3952_v42, 16  ;;  %5659 = vpush %v3894_v44  ;;  %v3914_v49 = vadd.s32 %v3913_v46, %v3912_v37  ;;  %v3975_v59 = vshll.u32 %v3974_v51, 16 }
 0x96f   :  { %v3935_v50 = vrot.slane %v3934_v47, 2 }
 0x970   :  { %v3954_v52 = vadd.s32 %v3953_v63, %v3951_v48  ;;  %v3915_v53 = vrot.slane %v3914_v49, 1 }
 0x971   :  { %v3936_v6 = vadd.s32 %v3935_v50, %v3934_v47 }
 0x972   :  { %v3955_v54 = vrot.slane %v3954_v52, 4  ;;  %v3916_v55 = vadd.s32 %v3915_v53, %v3914_v49 }
 0x973   :  { %v3992_v56 = vpop.xlane.xlu2 %3991  ;;  %v3970_v57 = vpop.xlane.xlu0 %3969  ;;  %v3937_v58 = vrot.slane %v3936_v6, 1 }
 0x974   :  { %v3956_v60 = vadd.s32 %v3955_v54, %v3954_v52  ;;  %v3973_v61 = vcvt.f32.s32 %v3970_v57  ;;  %v3994_v62 = vpop.xlane.xlu1 %3993  ;;  %5661 = vpush %v3916_v55  ;;  %v3995_v2 = vcvt.f32.s32 %v3992_v56 }
 0x975   :  { %v3996_v34 = vcvt.f32.s32 %v3994_v62  ;;  %v3938_v0 = vadd.s32 %v3937_v58, %v3936_v6 }
 0x976   :  { %v3957_v1 = vrot.slane %v3956_v60, 2  ;;  %v3976_v21 = vadd.s32 %v3975_v59, %v3973_v61 }
 0x977   :  { %v3997_v3 = vshll.u32 %v3996_v34, 16  ;;  %5663 = vpush %v3938_v0 }
 0x978   :  { %v3977_v5 = vrot.slane %v3976_v21, 4  ;;  %v3958_v7 = vadd.s32 %v3957_v1, %v3956_v60  ;;  %v6818_v60 = vand.u32 4294967280, %v6715_v33 }
 0x979   :  { %v3998_v8 = vadd.s32 %v3997_v3, %v3995_v2 }
 0x97a   :  { %v3978_v27 = vadd.s32 %v3977_v5, %v3976_v21  ;;  %v3959_v12 = vrot.slane %v3958_v7, 1 }
 0x97b   :  { %v3999_v13 = vrot.slane %v3998_v8, 4  ;;  %v4038_v14 = vpop.xlane.xlu2 %4037  ;;  %v4016_v15 = vpop.xlane.xlu0 %4015 }
 0x97c   :  { %v3979_v16 = vrot.slane %v3978_v27, 2  ;;  %v4018_v17 = vcvt.f32.s32 %v4016_v15  ;;  %v4014_v18 = vpop.xlane.xlu1 %4013  ;;  %v3960_v19 = vadd.s32 %v3959_v12, %v3958_v7  ;;  %v4040_v25 = vcvt.f32.s32 %v4038_v14 }
 0x97d   :  { %v4000_v20 = vadd.s32 %v3999_v13, %v3998_v8  ;;  %v4017_v23 = vcvt.f32.s32 %v4014_v18 }
 0x97e   :  { %v4019_v22 = vshll.u32 %v4018_v17, 16  ;;  %5665 = vpush %v3960_v19  ;;  %v3980_v10 = vadd.s32 %v3979_v16, %v3978_v27  ;;  %v4041_v4 = vshll.u32 %v4040_v25, 16 }
 0x97f   :  { %v4001_v24 = vrot.slane %v4000_v20, 2  ;;  %s6769_s19 = spop %5647 }
 0x980   :  { %v4020_v26 = vadd.s32 %v4019_v22, %v4017_v23  ;;  %p4072_p2 = scmp.ge.s32.totalorder %s6769_s19, %s6767_s24  ;;  %v3981_v28 = vrot.slane %v3980_v10, 1 }
 0x981   :  { %v4002_v29 = vadd.s32 %v4001_v24, %v4000_v20 }
 0x982   :  { %v4021_v45 = vrot.slane %v4020_v26, 4  ;;  %v3982_v30 = vadd.s32 %v3981_v28, %v3980_v10  ;;  %s4073_s16 = scalar_select %p4072_p2, 15, 0 }
 0x983   :  { %v4036_v31 = vpop.xlane.xlu0 %4035  ;;  %v4003_v32 = vrot.slane %v4002_v29, 1  ;;  %v4058_v36 = vpop.xlane.xlu2 %4057 }
 0x984   :  { %v4022_v35 = vadd.s32 %v4021_v45, %v4020_v26  ;;  %v4039_v37 = vcvt.f32.s32 %v4036_v31  ;;  %v4060_v38 = vpop.xlane.xlu1 %4059  ;;  %5667 = vpush %v3982_v30  ;;  %p4076_p3 = scmp.eq.s32.totalorder %s4073_s16, 0  ;;  %v4061_v43 = vcvt.f32.s32 %v4058_v36 }
 0x985   :  { %v4062_v39 = vcvt.f32.s32 %v4060_v38  ;;  %s5650_s29 = spop %5649  ;;  %v4004_v40 = vadd.s32 %v4003_v32, %v4002_v29 }
 0x986   :  { %v4023_v41 = vrot.slane %v4022_v35, 2  ;;  %v4042_v42 = vadd.s32 %v4041_v4, %v4039_v37  ;;  %s6774_s0 = sadd.s32 %s5650_s29, %s6769_s19 }
 0x987   :  { %v4063_v44 = vshll.u32 %v4062_v39, 16  ;;  %p4075_p4 = scmp.ge.s32.totalorder %s6774_s0, %s6767_s24  ;;  %5669 = vpush %v4004_v40 }
 0x988   :  { %v4043_v46 = vrot.slane %v4042_v42, 4  ;;  %s5652_s25 = spop %5651  ;;  %v4024_v47 = vadd.s32 %v4023_v41, %v4022_v35 }
 0x989   :  { %v4064_v63 = vadd.s32 %v4063_v44, %v4061_v43  ;;  %p6778_p5 = pnand %p4076_p3, %p4075_p4  ;;  %s6783_s26 = sadd.s32 %s5652_s25, %s6774_s0 }
 0x98a   :  { %v4044_v48 = vadd.s32 %v4043_v46, %v4042_v42  ;;  %v4025_v49 = vrot.slane %v4024_v47, 1  ;;  %p4082_p6 = scmp.ge.s32.totalorder %s6783_s26, %s6767_s24 }
 0x98b   :  { %v4065_v50 = vrot.slane %v4064_v63, 4  ;;  %s7509_s16 = smov (!%p6778_p5, %s4073_s16), 14  ;;  %s7511_s19 = smov (%p6778_p5, %s6769_s19), 0 }
 0x98c   :  { %v4045_v51 = vrot.slane %v4044_v48, 2  ;;  %v4026_v52 = vadd.s32 %v4025_v49, %v4024_v47  ;;  %p4083_p7 = scmp.eq.s32.totalorder %s7509_s16, 0 }
 0x98d   :  { %v4066_v53 = vadd.s32 %v4065_v50, %v4064_v63 }
 0x98e   :  { %5671 = vpush %v4026_v52  ;;  %v4046_v6 = vadd.s32 %v4045_v51, %v4044_v48  ;;  %p4084_p8 = pnand %p4083_p7, %p4082_p6 }
 0x98f   :  { %v4067_v54 = vrot.slane %v4066_v53, 2  ;;  %s5654_s13 = spop %5653 }
 0x990   :  { %s4088_s15 = sadd.s32 %s5654_s13, %s6783_s26  ;;  %v4047_v55 = vrot.slane %v4046_v6, 1  ;;  %s7513_s16 = smov (!%p4084_p8, %s7509_s16), 13 }
 0x991   :  { %v4068_v56 = vadd.s32 %v4067_v54, %v4066_v53  ;;  %s7515_s19 = smov (!%p4084_p8, %s7511_s19), %s6774_s0  ;;  %p4089_p9 = scmp.ge.s32.totalorder %s4088_s15, %s6767_s24 }
 0x992   :  { %v4048_v57 = vadd.s32 %v4047_v55, %v4046_v6  ;;  %p4090_p10 = scmp.eq.s32.totalorder %s7513_s16, 0 }
 0x993   :  { %v4069_v58 = vrot.slane %v4068_v56, 1 }
 0x994   :  { %5673 = vpush %v4048_v57  ;;  %p6795_p11 = pnand %p4090_p10, %p4089_p9 }
 0x995   :  { %s5656_s3 = spop %5655  ;;  %v4070_v59 = vadd.s32 %v4069_v58, %v4068_v56 }
 0x996   :  { %s4095_s6 = sadd.s32 %s5656_s3, %s4088_s15  ;;  %s7517_s16 = smov (!%p6795_p11, %s7513_s16), 12 }
 0x997   :  { %5675 = vpush %v4070_v59  ;;  %s7519_s19 = smov (!%p6795_p11, %s7515_s19), %s6783_s26  ;;  %p4096_p12 = scmp.ge.s32.totalorder %s4095_s6, %s6767_s24 }
 0x998   :  { %p4097_p13 = scmp.eq.s32.totalorder %s7517_s16, 0  ;;  %s5658_s4 = spop %5657 }
 0x999   :  { %s4102_s27 = sadd.s32 %s5658_s4, %s4095_s6 }
 0x99a   :  { %p4098_p0 = pnand %p4097_p13, %p4096_p12  ;;  %p4103_p1 = scmp.ge.s32.totalorder %s4102_s27, %s6767_s24 }
 0x99c   :  { %s7521_s16 = smov (!%p4098_p0, %s7517_s16), 11  ;;  %s7523_s19 = smov (!%p4098_p0, %s7519_s19), %s4088_s15 }
 0x99d   :  { %p4104_p2 = scmp.eq.s32.totalorder %s7521_s16, 0 }
 0x99f   :  { %s5660_s22 = spop %5659  ;;  %p4105_p3 = pnand %p4104_p2, %p4103_p1 }
 0x9a0   :  { %s4109_s20 = sadd.s32 %s5660_s22, %s4102_s27 }
 0x9a1   :  { %p4110_p4 = scmp.ge.s32.totalorder %s4109_s20, %s6767_s24  ;;  %s7525_s16 = smov (!%p4105_p3, %s7521_s16), 10 }
 0x9a2   :  { %s7527_s19 = smov (!%p4105_p3, %s7523_s19), %s4095_s6  ;;  %p4111_p5 = scmp.eq.s32.totalorder %s7525_s16, 0 }
 0x9a4   :  { %p4112_p6 = pnand %p4111_p5, %p4110_p4 }
 0x9a5   :  { %s5662_s21 = spop %5661 }
 0x9a6   :  { %s4116_s11 = sadd.s32 %s5662_s21, %s4109_s20  ;;  %s7529_s16 = smov (!%p4112_p6, %s7525_s16), 9 }
 0x9a7   :  { %p4117_p7 = scmp.ge.s32.totalorder %s4116_s11, %s6767_s24  ;;  %s7531_s19 = smov (!%p4112_p6, %s7527_s19), %s4102_s27 }
 0x9a8   :  { %s5664_s9 = spop %5663  ;;  %p4118_p8 = scmp.eq.s32.totalorder %s7529_s16, 0 }
 0x9a9   :  { %s4123_s12 = sadd.s32 %s5664_s9, %s4116_s11 }
 0x9aa   :  { %p4119_p9 = pnand %p4118_p8, %p4117_p7  ;;  %p4124_p10 = scmp.ge.s32.totalorder %s4123_s12, %s6767_s24 }
 0x9ac   :  { %s7533_s16 = smov (!%p4119_p9, %s7529_s16), 8  ;;  %s7535_s19 = smov (!%p4119_p9, %s7531_s19), %s4109_s20 }
 0x9ad   :  { %p4125_p11 = scmp.eq.s32.totalorder %s7533_s16, 0 }
 0x9af   :  { %s5666_s10 = spop %5665  ;;  %p4126_p12 = pnand %p4125_p11, %p4124_p10 }
 0x9b0   :  { %s4130_s30 = sadd.s32 %s5666_s10, %s4123_s12 }
 0x9b1   :  { %p4131_p13 = scmp.ge.s32.totalorder %s4130_s30, %s6767_s24  ;;  %s7537_s16 = smov (!%p4126_p12, %s7533_s16), 7 }
 0x9b2   :  { %s7539_s19 = smov (!%p4126_p12, %s7535_s19), %s4116_s11  ;;  %p4132_p0 = scmp.eq.s32.totalorder %s7537_s16, 0 }
 0x9b4   :  { %p4133_p1 = pnand %p4132_p0, %p4131_p13 }
 0x9b5   :  { %s5668_s2 = spop %5667 }
 0x9b6   :  { %s4137_s28 = sadd.s32 %s5668_s2, %s4130_s30  ;;  %s7541_s16 = smov (!%p4133_p1, %s7537_s16), 6 }
 0x9b7   :  { %p4138_p2 = scmp.ge.s32.totalorder %s4137_s28, %s6767_s24  ;;  %s7543_s19 = smov (!%p4133_p1, %s7539_s19), %s4123_s12 }
 0x9b8   :  { %s5670_s17 = spop %5669  ;;  %p4139_p3 = scmp.eq.s32.totalorder %s7541_s16, 0 }
 0x9b9   :  { %s4144_s14 = sadd.s32 %s5670_s17, %s4137_s28 }
 0x9ba   :  { %p4140_p4 = pnand %p4139_p3, %p4138_p2  ;;  %p4145_p5 = scmp.ge.s32.totalorder %s4144_s14, %s6767_s24 }
 0x9bc   :  { %s7545_s16 = smov (!%p4140_p4, %s7541_s16), 5  ;;  %s7547_s19 = smov (!%p4140_p4, %s7543_s19), %s4130_s30 }
 0x9bd   :  { %p4146_p6 = scmp.eq.s32.totalorder %s7545_s16, 0 }
 0x9bf   :  { %s5672_s18 = spop %5671  ;;  %p4147_p7 = pnand %p4146_p6, %p4145_p5 }
 0x9c0   :  { %s4151_s7 = sadd.s32 %s5672_s18, %s4144_s14 }
 0x9c1   :  { %p4152_p8 = scmp.ge.s32.totalorder %s4151_s7, %s6767_s24  ;;  %s7549_s16 = smov (!%p4147_p7, %s7545_s16), 4 }
 0x9c2   :  { %s7551_s19 = smov (!%p4147_p7, %s7547_s19), %s4137_s28  ;;  %p4153_p9 = scmp.eq.s32.totalorder %s7549_s16, 0 }
 0x9c4   :  { %p4154_p10 = pnand %p4153_p9, %p4152_p8 }
 0x9c5   :  { %s5674_s29 = spop %5673 }
 0x9c6   :  { %s4158_s0 = sadd.s32 %s5674_s29, %s4151_s7  ;;  %s7553_s16 = smov (!%p4154_p10, %s7549_s16), 3 }
 0x9c7   :  { %p4159_p11 = scmp.ge.s32.totalorder %s4158_s0, %s6767_s24  ;;  %s7555_s19 = smov (!%p4154_p10, %s7551_s19), %s4144_s14 }
 0x9c8   :  { %p4160_p12 = scmp.eq.s32.totalorder %s7553_s16, 0  ;;  %s5676_s25 = spop %5675 }
 0x9c9   :  { %s4165_s23 = sadd.s32 %s5676_s25, %s4158_s0 }
 0x9ca   :  { %p4161_p13 = pnand %p4160_p12, %p4159_p11  ;;  %p4166_p0 = scmp.ge.s32.totalorder %s4165_s23, %s6767_s24 }
 0x9cc   :  { %s7557_s16 = smov (!%p4161_p13, %s7553_s16), 2  ;;  %s7559_s19 = smov (!%p4161_p13, %s7555_s19), %s4151_s7 }
 0x9cd   :  { %p4167_p1 = scmp.eq.s32.totalorder %s7557_s16, 0 }
 0x9cf   :  { %p4168_p2 = pnand %p4167_p1, %p4166_p0 }
 0x9d1   :  { %s7561_s16 = smov (!%p4168_p2, %s7557_s16), 1  ;;  %s7563_s19 = smov (!%p4168_p2, %s7559_s19), %s4158_s0 }
 0x9d2   :  { %p4172_p3 = scmp.eq.s32.totalorder %s7561_s16, 0  ;;  %s6815_s26 = sshll.u32 %s7561_s16, 8 }
 0x9d3   :  { %s4201_s13 = sor.u32 224, %s6815_s26  ;;  %s4177_s15 = sor.u32 240, %s6815_s26 }
 0x9d4   :  { %s7565_s23 = smov (!%p4172_p3, %s4165_s23), %s7563_s19  ;;  %v4202_v61 = vstv %s4201_s13  ;;  %v4178_v62 = vstv %s4177_s15  ;;  %s4225_s16 = sor.u32 208, %s6815_s26 }
 0x9d5   :  { %vm4203_vm4 = vcmp.eq.s32.totalorder %v6818_v60, %v4202_v61  ;;  %vm4179_vm5 = vcmp.eq.s32.totalorder %v6818_v60, %v4178_v62  ;;  %v4226_v1 = vstv %s4225_s16  ;;  %s4273_s5 = sor.u32 176, %s6815_s26  ;;  %s4249_s19 = sor.u32 192, %s6815_s26 }
 0x9d6   :  { %v4204_v34 = vsel %vm4203_vm4, 1, %v5794_v11  ;;  %v4180_v0 = vsel %vm4179_vm5, 1, %v5794_v11  ;;  %vm4227_vm6 = vcmp.eq.s32.totalorder %v6818_v60, %v4226_v1  ;;  %v4274_v27 = vstv %s4273_s5  ;;  %s4297_s3 = sor.u32 160, %s6815_s26  ;;  %s4345_s6 = sor.u32 128, %s6815_s26 }
 0x9d7   :  { %v4205_v21 = vsel %vm40_vm2, %v4204_v34, 0  ;;  %v4181_v2 = vsel %vm40_vm2, %v4180_v0, 0  ;;  %v4228_v8 = vsel %vm4227_vm6, 1, %v5794_v11  ;;  %v4250_v15 = vstv %s4249_s19  ;;  %s4321_s4 = sor.u32 144, %s6815_s26  ;;  %s4369_s27 = sor.u32 112, %s6815_s26 }
 0x9d8   :  { %v4207_v3 = vshrl.u32 %v4205_v21, 16  ;;  %v4183_v5 = vshrl.u32 %v4181_v2, 16  ;;  %v4182_v7 = vand.u32 65535, %v4181_v2  ;;  %v4229_v16 = vsel %vm40_vm2, %v4228_v8, 0  ;;  %s4417_s22 = sor.u32 80, %s6815_s26  ;;  %s4393_s20 = sor.u32 96, %s6815_s26 }
 0x9d9   :  { %vm4275_vm7 = vcmp.eq.s32.totalorder %v6818_v60, %v4274_v27  ;;  %vm4251_vm8 = vcmp.eq.s32.totalorder %v6818_v60, %v4250_v15  ;;  %v4230_v17 = vand.u32 65535, %v4229_v16  ;;  %v4206_v18 = vand.u32 65535, %v4205_v21  ;;  %s4441_s21 = sor.u32 64, %s6815_s26  ;;  %s4489_s11 = sor.u32 32, %s6815_s26 }
 0x9da   :  { %v4209_v12 = vcvt.s32.f32 %v4207_v3  ;;  %v4185_v13 = vcvt.s32.f32 %v4183_v5  ;;  %v4184_v14 = vcvt.s32.f32 %v4182_v7  ;;  %v4231_v19 = vshrl.u32 %v4229_v16, 16  ;;  %s4465_s9 = sor.u32 48, %s6815_s26  ;;  %s4513_s12 = sor.u32 16, %s6815_s26 }
 0x9db   :  { %v4276_v20 = vsel %vm4275_vm7, 1, %v5794_v11  ;;  %v4252_v22 = vsel %vm4251_vm8, 1, %v5794_v11  ;;  %v4232_v23 = vcvt.s32.f32 %v4230_v17  ;;  %v4208_v10 = vcvt.s32.f32 %v4206_v18  ;;  %s6884_s10 = ssub.s32 %s6767_s24, %s7565_s23 }
 0x9dc   :  { %4212 = vadd.xlane.f32.xlu2 %v4209_v12  ;;  %4188 = vadd.xlane.f32.xlu0 %v4185_v13  ;;  %v4298_v24 = vstv %s4297_s3  ;;  %v4233_v25 = vcvt.s32.f32 %v4231_v19  ;;  %v4277_v26 = vsel %vm40_vm2, %v4276_v20, 0  ;;  %v4253_v28 = vsel %vm40_vm2, %v4252_v22, 0 }
 0x9dd   :  { %4186 = vadd.xlane.f32.xlu1 %v4184_v14  ;;  %vm4299_vm9 = vcmp.eq.s32.totalorder %v6818_v60, %v4298_v24  ;;  %v4279_v29 = vshrl.u32 %v4277_v26, 16  ;;  %v4255_v45 = vshrl.u32 %v4253_v28, 16  ;;  %v4254_v30 = vand.u32 65535, %v4253_v28 }
 0x9de   :  { %v4300_v31 = vsel %vm4299_vm9, 1, %v5794_v11  ;;  %v4346_v35 = vstv %s4345_s6  ;;  %v4322_v36 = vstv %s4321_s4  ;;  %v4278_v40 = vand.u32 65535, %v4277_v26 }
 0x9df   :  { %v4281_v32 = vcvt.s32.f32 %v4279_v29  ;;  %v4257_v4 = vcvt.s32.f32 %v4255_v45  ;;  %v4256_v37 = vcvt.s32.f32 %v4254_v30  ;;  %v4301_v38 = vsel %vm40_vm2, %v4300_v31, 0 }
 0x9e0   :  { %vm4347_vm10 = vcmp.eq.s32.totalorder %v6818_v60, %v4346_v35  ;;  %vm4323_vm11 = vcmp.eq.s32.totalorder %v6818_v60, %v4322_v36  ;;  %v4302_v39 = vand.u32 65535, %v4301_v38  ;;  %v4303_v41 = vshrl.u32 %v4301_v38, 16 }
 0x9e1   :  { %v4348_v42 = vsel %vm4347_vm10, 1, %v5794_v11  ;;  %v4324_v43 = vsel %vm4323_vm11, 1, %v5794_v11  ;;  %v4280_v46 = vcvt.s32.f32 %v4278_v40  ;;  %v4370_v47 = vstv %s4369_s27 }
 0x9e2   :  { %v4304_v44 = vcvt.s32.f32 %v4302_v39  ;;  %v4305_v63 = vcvt.s32.f32 %v4303_v41  ;;  %v4349_v48 = vsel %vm40_vm2, %v4348_v42, 0  ;;  %v4325_v49 = vsel %vm40_vm2, %v4324_v43, 0 }
 0x9e3   :  { %vm4371_vm12 = vcmp.eq.s32.totalorder %v6818_v60, %v4370_v47  ;;  %v4351_v50 = vshrl.u32 %v4349_v48, 16  ;;  %v4327_v51 = vshrl.u32 %v4325_v49, 16  ;;  %v4326_v52 = vand.u32 65535, %v4325_v49 }
 0x9e4   :  { %4234 = vadd.xlane.f32.xlu2 %v4232_v23  ;;  %4210 = vadd.xlane.f32.xlu0 %v4208_v10  ;;  %v4372_v53 = vsel %vm4371_vm12, 1, %v5794_v11  ;;  %v4418_v55 = vstv %s4417_s22  ;;  %v4394_v56 = vstv %s4393_s20  ;;  %v4350_v61 = vand.u32 65535, %v4349_v48 }
 0x9e5   :  { %4236 = vadd.xlane.f32.xlu1 %v4233_v25  ;;  %v4353_v6 = vcvt.s32.f32 %v4351_v50  ;;  %v4329_v54 = vcvt.s32.f32 %v4327_v51  ;;  %v4328_v57 = vcvt.s32.f32 %v4326_v52  ;;  %v4373_v58 = vsel %vm40_vm2, %v4372_v53, 0 }
 0x9e6   :  { %vm4419_vm13 = vcmp.eq.s32.totalorder %v6818_v60, %v4418_v55  ;;  %vm4395_vm14 = vcmp.eq.s32.totalorder %v6818_v60, %v4394_v56  ;;  %v4374_v59 = vand.u32 65535, %v4373_v58  ;;  %v4375_v62 = vshrl.u32 %v4373_v58, 16 }
 0x9e7   :  { %v4420_v34 = vsel %vm4419_vm13, 1, %v5794_v11  ;;  %v4396_v0 = vsel %vm4395_vm14, 1, %v5794_v11  ;;  %v4352_v21 = vcvt.s32.f32 %v4350_v61  ;;  %v4442_v2 = vstv %s4441_s21 }
 0x9e8   :  { %v4376_v1 = vcvt.s32.f32 %v4374_v59  ;;  %v4377_v3 = vcvt.s32.f32 %v4375_v62  ;;  %v4421_v5 = vsel %vm40_vm2, %v4420_v34, 0  ;;  %v4397_v7 = vsel %vm40_vm2, %v4396_v0, 0 }
 0x9e9   :  { %vm4443_vm15 = vcmp.eq.s32.totalorder %v6818_v60, %v4442_v2  ;;  %v4423_v8 = vshrl.u32 %v4421_v5, 16  ;;  %v4399_v27 = vshrl.u32 %v4397_v7, 16  ;;  %v4398_v12 = vand.u32 65535, %v4397_v7 }
 0x9ea   :  { %v4444_v13 = vsel %vm4443_vm15, 1, %v5794_v11  ;;  %v4490_v16 = vstv %s4489_s11  ;;  %v4466_v17 = vstv %s4465_s9  ;;  %v4422_v22 = vand.u32 65535, %v4421_v5 }
 0x9eb   :  { %v4425_v14 = vcvt.s32.f32 %v4423_v8  ;;  %v4401_v15 = vcvt.s32.f32 %v4399_v27  ;;  %v4400_v18 = vcvt.s32.f32 %v4398_v12  ;;  %v4445_v19 = vsel %vm40_vm2, %v4444_v13, 0 }
 0x9ec   :  { %4284 = vadd.xlane.f32.xlu2 %v4281_v32  ;;  %4260 = vadd.xlane.f32.xlu0 %v4257_v4  ;;  %vm4491_vm0 = vcmp.eq.s32.totalorder %v6818_v60, %v4490_v16  ;;  %vm4467_vm1 = vcmp.eq.s32.totalorder %v6818_v60, %v4466_v17  ;;  %v4446_v20 = vand.u32 65535, %v4445_v19  ;;  %v4447_v23 = vshrl.u32 %v4445_v19, 16 }
 0x9ed   :  { %4258 = vadd.xlane.f32.xlu1 %v4256_v37  ;;  %v4492_v10 = vsel %vm4491_vm0, 1, %v5794_v11  ;;  %v4468_v24 = vsel %vm4467_vm1, 1, %v5794_v11  ;;  %v4424_v26 = vcvt.s32.f32 %v4422_v22  ;;  %v4514_v28 = vstv %s4513_s12 }
 0x9ee   :  { %v4448_v25 = vcvt.s32.f32 %v4446_v20  ;;  %v4449_v29 = vcvt.s32.f32 %v4447_v23  ;;  %v4493_v45 = vsel %vm40_vm2, %v4492_v10, 0  ;;  %v4469_v30 = vsel %vm40_vm2, %v4468_v24, 0 }
 0x9ef   :  { %vm4515_vm3 = vcmp.eq.s32.totalorder %v6818_v60, %v4514_v28  ;;  %v4495_v31 = vshrl.u32 %v4493_v45, 16  ;;  %v4471_v32 = vshrl.u32 %v4469_v30, 16  ;;  %v4470_v4 = vand.u32 65535, %v4469_v30 }
 0x9f0   :  { %v4516_v35 = vsel %vm4515_vm3, 1, %v5794_v11  ;;  %v4494_v41 = vand.u32 65535, %v4493_v45 }
 0x9f1   :  { %v4497_v36 = vcvt.s32.f32 %v4495_v31  ;;  %v4473_v37 = vcvt.s32.f32 %v4471_v32  ;;  %v4472_v38 = vcvt.s32.f32 %v4470_v4  ;;  %v4517_v39 = vsel %vm40_vm2, %v4516_v35, 0 }
 0x9f2   :  { %v4518_v40 = vand.u32 65535, %v4517_v39  ;;  %v4519_v42 = vshrl.u32 %v4517_v39, 16 }
 0x9f4   :  { %4306 = vadd.xlane.f32.xlu2 %v4304_v44  ;;  %4282 = vadd.xlane.f32.xlu0 %v4280_v46  ;;  %v4520_v43 = vcvt.s32.f32 %v4518_v40  ;;  %v4496_v44 = vcvt.s32.f32 %v4494_v41  ;;  %v4521_v46 = vcvt.s32.f32 %v4519_v42 }
 0x9f5   :  { %4308 = vadd.xlane.f32.xlu1 %v4305_v63 }
 0x9fc   :  { %4356 = vadd.xlane.f32.xlu2 %v4353_v6  ;;  %4332 = vadd.xlane.f32.xlu0 %v4329_v54 }
 0x9fd   :  { %4330 = vadd.xlane.f32.xlu1 %v4328_v57 }
 0xa04   :  { %4378 = vadd.xlane.f32.xlu2 %v4376_v1  ;;  %4354 = vadd.xlane.f32.xlu0 %v4352_v21 }
 0xa05   :  { %4380 = vadd.xlane.f32.xlu1 %v4377_v3 }
 0xa0c   :  { %4428 = vadd.xlane.f32.xlu2 %v4425_v14  ;;  %4404 = vadd.xlane.f32.xlu0 %v4401_v15 }
 0xa0d   :  { %4402 = vadd.xlane.f32.xlu1 %v4400_v18 }
 0xa14   :  { %4450 = vadd.xlane.f32.xlu2 %v4448_v25  ;;  %4426 = vadd.xlane.f32.xlu0 %v4424_v26 }
 0xa15   :  { %4452 = vadd.xlane.f32.xlu1 %v4449_v29 }
 0xa1c   :  { %4500 = vadd.xlane.f32.xlu2 %v4497_v36  ;;  %4476 = vadd.xlane.f32.xlu0 %v4473_v37 }
 0xa1d   :  { %4474 = vadd.xlane.f32.xlu1 %v4472_v38 }
 0xa24   :  { %4522 = vadd.xlane.f32.xlu2 %v4520_v43  ;;  %4498 = vadd.xlane.f32.xlu0 %v4496_v44 }
 0xa25   :  { %4524 = vadd.xlane.f32.xlu1 %v4521_v46 }
 0xa4f   :  { %v4213_v60 = vpop.xlane.xlu2 %4212  ;;  %v4189_v47 = vpop.xlane.xlu0 %4188 }
 0xa50   :  { %v4191_v63 = vcvt.f32.s32 %v4189_v47  ;;  %v4187_v48 = vpop.xlane.xlu1 %4186  ;;  %v4215_v51 = vcvt.f32.s32 %v4213_v60 }
 0xa51   :  { %v4190_v50 = vcvt.f32.s32 %v4187_v48 }
 0xa52   :  { %v4192_v49 = vshll.u32 %v4191_v63, 16  ;;  %v4216_v55 = vshll.u32 %v4215_v51, 16 }
 0xa54   :  { %v4193_v52 = vadd.s32 %v4192_v49, %v4190_v50 }
 0xa56   :  { %v4194_v53 = vrot.slane %v4193_v52, 4 }
 0xa57   :  { %v4235_v6 = vpop.xlane.xlu2 %4234  ;;  %v4211_v54 = vpop.xlane.xlu0 %4210 }
 0xa58   :  { %v4195_v56 = vadd.s32 %v4194_v53, %v4193_v52  ;;  %v4214_v57 = vcvt.f32.s32 %v4211_v54  ;;  %v4237_v58 = vpop.xlane.xlu1 %4236  ;;  %v4238_v34 = vcvt.f32.s32 %v4235_v6 }
 0xa59   :  { %v4239_v59 = vcvt.f32.s32 %v4237_v58 }
 0xa5a   :  { %v4196_v61 = vrot.slane %v4195_v56, 2  ;;  %v4217_v62 = vadd.s32 %v4216_v55, %v4214_v57 }
 0xa5b   :  { %v4240_v0 = vshll.u32 %v4239_v59, 16 }
 0xa5c   :  { %v4218_v1 = vrot.slane %v4217_v62, 4  ;;  %v4197_v21 = vadd.s32 %v4196_v61, %v4195_v56 }
 0xa5d   :  { %v4241_v2 = vadd.s32 %v4240_v0, %v4238_v34 }
 0xa5e   :  { %v4219_v3 = vadd.s32 %v4218_v1, %v4217_v62  ;;  %v4198_v5 = vrot.slane %v4197_v21, 1 }
 0xa5f   :  { %v4242_v7 = vrot.slane %v4241_v2, 4  ;;  %v4285_v8 = vpop.xlane.xlu2 %4284  ;;  %v4261_v27 = vpop.xlane.xlu0 %4260 }
 0xa60   :  { %v4220_v12 = vrot.slane %v4219_v3, 2  ;;  %v4263_v13 = vcvt.f32.s32 %v4261_v27  ;;  %v4259_v14 = vpop.xlane.xlu1 %4258  ;;  %v4199_v15 = vadd.s32 %v4198_v5, %v4197_v21  ;;  %v4287_v22 = vcvt.f32.s32 %v4285_v8 }
 0xa61   :  { %v4243_v16 = vadd.s32 %v4242_v7, %v4241_v2  ;;  %v4262_v18 = vcvt.f32.s32 %v4259_v14 }
 0xa62   :  { %v4264_v17 = vshll.u32 %v4263_v13, 16  ;;  %5677 = vpush %v4199_v15  ;;  %v4221_v19 = vadd.s32 %v4220_v12, %v4219_v3  ;;  %v4288_v30 = vshll.u32 %v4287_v22, 16 }
 0xa63   :  { %v4244_v20 = vrot.slane %v4243_v16, 2 }
 0xa64   :  { %v4265_v23 = vadd.s32 %v4264_v17, %v4262_v18  ;;  %v4222_v10 = vrot.slane %v4221_v19, 1 }
 0xa65   :  { %v4245_v24 = vadd.s32 %v4244_v20, %v4243_v16 }
 0xa66   :  { %v4266_v25 = vrot.slane %v4265_v23, 4  ;;  %v4223_v26 = vadd.s32 %v4222_v10, %v4221_v19 }
 0xa67   :  { %v4307_v28 = vpop.xlane.xlu2 %4306  ;;  %v4283_v29 = vpop.xlane.xlu0 %4282  ;;  %v4246_v45 = vrot.slane %v4245_v24, 1 }
 0xa68   :  { %v4267_v31 = vadd.s32 %v4266_v25, %v4265_v23  ;;  %v4286_v32 = vcvt.f32.s32 %v4283_v29  ;;  %v4309_v4 = vpop.xlane.xlu1 %4308  ;;  %5679 = vpush %v4223_v26  ;;  %v4310_v39 = vcvt.f32.s32 %v4307_v28 }
 0xa69   :  { %v4311_v35 = vcvt.f32.s32 %v4309_v4  ;;  %v4247_v36 = vadd.s32 %v4246_v45, %v4245_v24 }
 0xa6a   :  { %v4268_v37 = vrot.slane %v4267_v31, 2  ;;  %v4289_v38 = vadd.s32 %v4288_v30, %v4286_v32 }
 0xa6b   :  { %v4312_v40 = vshll.u32 %v4311_v35, 16  ;;  %5681 = vpush %v4247_v36 }
 0xa6c   :  { %v4290_v41 = vrot.slane %v4289_v38, 4  ;;  %v4269_v42 = vadd.s32 %v4268_v37, %v4267_v31 }
 0xa6d   :  { %v4313_v43 = vadd.s32 %v4312_v40, %v4310_v39 }
 0xa6e   :  { %v4291_v44 = vadd.s32 %v4290_v41, %v4289_v38  ;;  %v4270_v46 = vrot.slane %v4269_v42, 1 }
 0xa6f   :  { %v4314_v60 = vrot.slane %v4313_v43, 4  ;;  %v4357_v47 = vpop.xlane.xlu2 %4356  ;;  %v4333_v63 = vpop.xlane.xlu0 %4332 }
 0xa70   :  { %v4292_v48 = vrot.slane %v4291_v44, 2  ;;  %v4335_v49 = vcvt.f32.s32 %v4333_v63  ;;  %v4331_v50 = vpop.xlane.xlu1 %4330  ;;  %v4271_v51 = vadd.s32 %v4270_v46, %v4269_v42  ;;  %v4359_v56 = vcvt.f32.s32 %v4357_v47 }
 0xa71   :  { %v4315_v52 = vadd.s32 %v4314_v60, %v4313_v43  ;;  %v4334_v6 = vcvt.f32.s32 %v4331_v50 }
 0xa72   :  { %v4336_v53 = vshll.u32 %v4335_v49, 16  ;;  %5683 = vpush %v4271_v51  ;;  %v4293_v54 = vadd.s32 %v4292_v48, %v4291_v44  ;;  %v4360_v21 = vshll.u32 %v4359_v56, 16 }
 0xa73   :  { %v4316_v55 = vrot.slane %v4315_v52, 2 }
 0xa74   :  { %v4337_v57 = vadd.s32 %v4336_v53, %v4334_v6  ;;  %v4294_v58 = vrot.slane %v4293_v54, 1 }
 0xa75   :  { %v4317_v59 = vadd.s32 %v4316_v55, %v4315_v52 }
 0xa76   :  { %v4338_v61 = vrot.slane %v4337_v57, 4  ;;  %v4295_v62 = vadd.s32 %v4294_v58, %v4293_v54 }
 0xa77   :  { %v4379_v34 = vpop.xlane.xlu2 %4378  ;;  %v4355_v0 = vpop.xlane.xlu0 %4354  ;;  %v4318_v1 = vrot.slane %v4317_v59, 1 }
 0xa78   :  { %v4339_v2 = vadd.s32 %v4338_v61, %v4337_v57  ;;  %v4358_v3 = vcvt.f32.s32 %v4355_v0  ;;  %v4381_v5 = vpop.xlane.xlu1 %4380  ;;  %5685 = vpush %v4295_v62  ;;  %v4382_v13 = vcvt.f32.s32 %v4379_v34 }
 0xa79   :  { %v4383_v7 = vcvt.f32.s32 %v4381_v5  ;;  %v4319_v8 = vadd.s32 %v4318_v1, %v4317_v59 }
 0xa7a   :  { %v4340_v27 = vrot.slane %v4339_v2, 2  ;;  %v4361_v12 = vadd.s32 %v4360_v21, %v4358_v3 }
 0xa7b   :  { %v4384_v14 = vshll.u32 %v4383_v7, 16  ;;  %5687 = vpush %v4319_v8 }
 0xa7c   :  { %v4362_v15 = vrot.slane %v4361_v12, 4  ;;  %v4341_v16 = vadd.s32 %v4340_v27, %v4339_v2 }
 0xa7d   :  { %v4385_v17 = vadd.s32 %v4384_v14, %v4382_v13 }
 0xa7e   :  { %v4363_v18 = vadd.s32 %v4362_v15, %v4361_v12  ;;  %v4342_v19 = vrot.slane %v4341_v16, 1 }
 0xa7f   :  { %v4386_v20 = vrot.slane %v4385_v17, 4  ;;  %v4429_v22 = vpop.xlane.xlu2 %4428  ;;  %v4405_v23 = vpop.xlane.xlu0 %4404 }
 0xa80   :  { %v4364_v10 = vrot.slane %v4363_v18, 2  ;;  %v4407_v24 = vcvt.f32.s32 %v4405_v23  ;;  %v4403_v25 = vpop.xlane.xlu1 %4402  ;;  %v4343_v26 = vadd.s32 %v4342_v19, %v4341_v16  ;;  %v4431_v32 = vcvt.f32.s32 %v4429_v22 }
 0xa81   :  { %v4387_v28 = vadd.s32 %v4386_v20, %v4385_v17  ;;  %v4406_v45 = vcvt.f32.s32 %v4403_v25 }
 0xa82   :  { %v4408_v29 = vshll.u32 %v4407_v24, 16  ;;  %5689 = vpush %v4343_v26  ;;  %v4365_v30 = vadd.s32 %v4364_v10, %v4363_v18  ;;  %v4432_v42 = vshll.u32 %v4431_v32, 16 }
 0xa83   :  { %v4388_v31 = vrot.slane %v4387_v28, 2 }
 0xa84   :  { %v4409_v4 = vadd.s32 %v4408_v29, %v4406_v45  ;;  %v4366_v35 = vrot.slane %v4365_v30, 1 }
 0xa85   :  { %v4389_v36 = vadd.s32 %v4388_v31, %v4387_v28 }
 0xa86   :  { %v4410_v37 = vrot.slane %v4409_v4, 4  ;;  %v4367_v38 = vadd.s32 %v4366_v35, %v4365_v30 }
 0xa87   :  { %v4451_v39 = vpop.xlane.xlu2 %4450  ;;  %v4427_v40 = vpop.xlane.xlu0 %4426  ;;  %v4390_v41 = vrot.slane %v4389_v36, 1 }
 0xa88   :  { %v4411_v43 = vadd.s32 %v4410_v37, %v4409_v4  ;;  %v4430_v44 = vcvt.f32.s32 %v4427_v40  ;;  %v4453_v46 = vpop.xlane.xlu1 %4452  ;;  %5691 = vpush %v4367_v38  ;;  %v4454_v49 = vcvt.f32.s32 %v4451_v39 }
 0xa89   :  { %v4455_v60 = vcvt.f32.s32 %v4453_v46  ;;  %v4391_v47 = vadd.s32 %v4390_v41, %v4389_v36 }
 0xa8a   :  { %v4412_v63 = vrot.slane %v4411_v43, 2  ;;  %v4433_v48 = vadd.s32 %v4432_v42, %v4430_v44 }
 0xa8b   :  { %v4456_v50 = vshll.u32 %v4455_v60, 16  ;;  %5693 = vpush %v4391_v47 }
 0xa8c   :  { %v4434_v51 = vrot.slane %v4433_v48, 4  ;;  %v4413_v52 = vadd.s32 %v4412_v63, %v4411_v43 }
 0xa8d   :  { %v4457_v53 = vadd.s32 %v4456_v50, %v4454_v49 }
 0xa8e   :  { %v4435_v6 = vadd.s32 %v4434_v51, %v4433_v48  ;;  %v4414_v54 = vrot.slane %v4413_v52, 1 }
 0xa8f   :  { %v4458_v55 = vrot.slane %v4457_v53, 4  ;;  %v4501_v56 = vpop.xlane.xlu2 %4500  ;;  %v4477_v57 = vpop.xlane.xlu0 %4476 }
 0xa90   :  { %v4436_v58 = vrot.slane %v4435_v6, 2  ;;  %v4479_v59 = vcvt.f32.s32 %v4477_v57  ;;  %v4475_v61 = vpop.xlane.xlu1 %4474  ;;  %v4415_v62 = vadd.s32 %v4414_v54, %v4413_v52  ;;  %v4503_v3 = vcvt.f32.s32 %v4501_v56 }
 0xa91   :  { %v4459_v34 = vadd.s32 %v4458_v55, %v4457_v53  ;;  %v4478_v1 = vcvt.f32.s32 %v4475_v61 }
 0xa92   :  { %v4480_v0 = vshll.u32 %v4479_v59, 16  ;;  %5695 = vpush %v4415_v62  ;;  %v4437_v21 = vadd.s32 %v4436_v58, %v4435_v6  ;;  %v4504_v15 = vshll.u32 %v4503_v3, 16 }
 0xa93   :  { %v4460_v2 = vrot.slane %v4459_v34, 2  ;;  %s6886_s30 = spop %5677 }
 0xa94   :  { %v4481_v5 = vadd.s32 %v4480_v0, %v4478_v1  ;;  %p4537_p4 = scmp.ge.s32.totalorder %s6886_s30, %s6884_s10  ;;  %v4438_v7 = vrot.slane %v4437_v21, 1 }
 0xa95   :  { %v4461_v8 = vadd.s32 %v4460_v2, %v4459_v34 }
 0xa96   :  { %v4482_v27 = vrot.slane %v4481_v5, 4  ;;  %v4439_v12 = vadd.s32 %v4438_v7, %v4437_v21  ;;  %s4538_s2 = scalar_select %p4537_p4, 15, 0 }
 0xa97   :  { %v4499_v13 = vpop.xlane.xlu0 %4498  ;;  %v4462_v14 = vrot.slane %v4461_v8, 1  ;;  %v4523_v17 = vpop.xlane.xlu2 %4522 }
 0xa98   :  { %v4483_v16 = vadd.s32 %v4482_v27, %v4481_v5  ;;  %v4502_v18 = vcvt.f32.s32 %v4499_v13  ;;  %v4525_v19 = vpop.xlane.xlu1 %4524  ;;  %5697 = vpush %v4439_v12  ;;  %p4541_p5 = scmp.eq.s32.totalorder %s4538_s2, 0  ;;  %v4526_v24 = vcvt.f32.s32 %v4523_v17 }
 0xa99   :  { %v4527_v20 = vcvt.f32.s32 %v4525_v19  ;;  %s5680_s24 = spop %5679  ;;  %v4463_v22 = vadd.s32 %v4462_v14, %v4461_v8 }
 0xa9a   :  { %v4484_v23 = vrot.slane %v4483_v16, 2  ;;  %v4505_v10 = vadd.s32 %v4504_v15, %v4502_v18  ;;  %s6891_s28 = sadd.s32 %s5680_s24, %s6886_s30 }
 0xa9b   :  { %v4528_v25 = vshll.u32 %v4527_v20, 16  ;;  %p4540_p6 = scmp.ge.s32.totalorder %s6891_s28, %s6884_s10  ;;  %5699 = vpush %v4463_v22 }
 0xa9c   :  { %v4506_v26 = vrot.slane %v4505_v10, 4  ;;  %s5682_s17 = spop %5681  ;;  %v4485_v28 = vadd.s32 %v4484_v23, %v4483_v16 }
 0xa9d   :  { %v4529_v29 = vadd.s32 %v4528_v25, %v4526_v24  ;;  %p6895_p7 = pnand %p4541_p5, %p4540_p6  ;;  %s6900_s18 = sadd.s32 %s5682_s17, %s6891_s28 }
 0xa9e   :  { %v4507_v45 = vadd.s32 %v4506_v26, %v4505_v10  ;;  %v4486_v30 = vrot.slane %v4485_v28, 1  ;;  %p4547_p9 = scmp.ge.s32.totalorder %s6900_s18, %s6884_s10 }
 0xa9f   :  { %v4530_v31 = vrot.slane %v4529_v29, 4  ;;  %s7567_s2 = smov (!%p6895_p7, %s4538_s2), 14  ;;  %s7569_s30 = smov (%p6895_p7, %s6886_s30), 0 }
 0xaa0   :  { %v4508_v32 = vrot.slane %v4507_v45, 2  ;;  %v4487_v4 = vadd.s32 %v4486_v30, %v4485_v28  ;;  %p4548_p8 = scmp.eq.s32.totalorder %s7567_s2, 0 }
 0xaa1   :  { %v4531_v35 = vadd.s32 %v4530_v31, %v4529_v29 }
 0xaa2   :  { %5701 = vpush %v4487_v4  ;;  %v4509_v36 = vadd.s32 %v4508_v32, %v4507_v45  ;;  %p4549_p10 = pnand %p4548_p8, %p4547_p9 }
 0xaa3   :  { %v4532_v37 = vrot.slane %v4531_v35, 2  ;;  %s5684_s7 = spop %5683 }
 0xaa4   :  { %s4553_s29 = sadd.s32 %s5684_s7, %s6900_s18  ;;  %v4510_v38 = vrot.slane %v4509_v36, 1  ;;  %s7571_s2 = smov (!%p4549_p10, %s7567_s2), 13 }
 0xaa5   :  { %v4533_v39 = vadd.s32 %v4532_v37, %v4531_v35  ;;  %s7573_s30 = smov (!%p4549_p10, %s7569_s30), %s6891_s28  ;;  %p4555_p11 = scmp.eq.s32.totalorder %s7571_s2, 0 }
 0xaa6   :  { %v4511_v40 = vadd.s32 %v4510_v38, %v4509_v36  ;;  %p4554_p12 = scmp.ge.s32.totalorder %s4553_s29, %s6884_s10 }
 0xaa7   :  { %v4534_v41 = vrot.slane %v4533_v39, 1 }
 0xaa8   :  { %5703 = vpush %v4511_v40  ;;  %p6912_p13 = pnand %p4555_p11, %p4554_p12 }
 0xaa9   :  { %s5686_s25 = spop %5685  ;;  %v4535_v42 = vadd.s32 %v4534_v41, %v4533_v39 }
 0xaaa   :  { %s4560_s23 = sadd.s32 %s5686_s25, %s4553_s29  ;;  %s7575_s2 = smov (!%p6912_p13, %s7571_s2), 12 }
 0xaab   :  { %5705 = vpush %v4535_v42  ;;  %s7577_s30 = smov (!%p6912_p13, %s7573_s30), %s6900_s18  ;;  %p4561_p0 = scmp.ge.s32.totalorder %s4560_s23, %s6884_s10 }
 0xaac   :  { %p4562_p1 = scmp.eq.s32.totalorder %s7575_s2, 0  ;;  %s5688_s13 = spop %5687 }
 0xaad   :  { %s4567_s15 = sadd.s32 %s5688_s13, %s4560_s23 }
 0xaae   :  { %p4563_p2 = pnand %p4562_p1, %p4561_p0  ;;  %p4568_p3 = scmp.ge.s32.totalorder %s4567_s15, %s6884_s10 }
 0xab0   :  { %s7579_s2 = smov (!%p4563_p2, %s7575_s2), 11  ;;  %s7581_s30 = smov (!%p4563_p2, %s7577_s30), %s4553_s29 }
 0xab1   :  { %p4569_p4 = scmp.eq.s32.totalorder %s7579_s2, 0 }
 0xab3   :  { %s5690_s16 = spop %5689  ;;  %p4570_p5 = pnand %p4569_p4, %p4568_p3 }
 0xab4   :  { %s4574_s5 = sadd.s32 %s5690_s16, %s4567_s15 }
 0xab5   :  { %p4575_p6 = scmp.ge.s32.totalorder %s4574_s5, %s6884_s10  ;;  %s7583_s2 = smov (!%p4570_p5, %s7579_s2), 10 }
 0xab6   :  { %s7585_s30 = smov (!%p4570_p5, %s7581_s30), %s4560_s23  ;;  %p4576_p7 = scmp.eq.s32.totalorder %s7583_s2, 0 }
 0xab8   :  { %p4577_p8 = pnand %p4576_p7, %p4575_p6 }
 0xab9   :  { %s5692_s19 = spop %5691 }
 0xaba   :  { %s4581_s3 = sadd.s32 %s5692_s19, %s4574_s5  ;;  %s7587_s2 = smov (!%p4577_p8, %s7583_s2), 9 }
 0xabb   :  { %p4582_p9 = scmp.ge.s32.totalorder %s4581_s3, %s6884_s10  ;;  %s7589_s30 = smov (!%p4577_p8, %s7585_s30), %s4567_s15 }
 0xabc   :  { %s5694_s6 = spop %5693  ;;  %p4583_p10 = scmp.eq.s32.totalorder %s7587_s2, 0 }
 0xabd   :  { %s4588_s4 = sadd.s32 %s5694_s6, %s4581_s3 }
 0xabe   :  { %p4584_p11 = pnand %p4583_p10, %p4582_p9  ;;  %p4589_p12 = scmp.ge.s32.totalorder %s4588_s4, %s6884_s10 }
 0xac0   :  { %s7591_s2 = smov (!%p4584_p11, %s7587_s2), 8  ;;  %s7593_s30 = smov (!%p4584_p11, %s7589_s30), %s4574_s5 }
 0xac1   :  { %p4590_p13 = scmp.eq.s32.totalorder %s7591_s2, 0 }
 0xac3   :  { %s5696_s27 = spop %5695  ;;  %p4591_p0 = pnand %p4590_p13, %p4589_p12 }
 0xac4   :  { %s4595_s22 = sadd.s32 %s5696_s27, %s4588_s4 }
 0xac5   :  { %p4596_p1 = scmp.ge.s32.totalorder %s4595_s22, %s6884_s10  ;;  %s7595_s2 = smov (!%p4591_p0, %s7591_s2), 7 }
 0xac6   :  { %s7597_s30 = smov (!%p4591_p0, %s7593_s30), %s4581_s3  ;;  %p4597_p2 = scmp.eq.s32.totalorder %s7595_s2, 0 }
 0xac8   :  { %p4598_p3 = pnand %p4597_p2, %p4596_p1 }
 0xac9   :  { %s5698_s20 = spop %5697 }
 0xaca   :  { %s4602_s21 = sadd.s32 %s5698_s20, %s4595_s22  ;;  %s7599_s2 = smov (!%p4598_p3, %s7595_s2), 6 }
 0xacb   :  { %p4603_p4 = scmp.ge.s32.totalorder %s4602_s21, %s6884_s10  ;;  %s7601_s30 = smov (!%p4598_p3, %s7597_s30), %s4588_s4 }
 0xacc   :  { %s5700_s11 = spop %5699  ;;  %p4604_p5 = scmp.eq.s32.totalorder %s7599_s2, 0 }
 0xacd   :  { %s4609_s9 = sadd.s32 %s5700_s11, %s4602_s21 }
 0xace   :  { %p4605_p6 = pnand %p4604_p5, %p4603_p4  ;;  %p4610_p7 = scmp.ge.s32.totalorder %s4609_s9, %s6884_s10 }
 0xad0   :  { %s7603_s2 = smov (!%p4605_p6, %s7599_s2), 5  ;;  %s7605_s30 = smov (!%p4605_p6, %s7601_s30), %s4595_s22 }
 0xad1   :  { %p4611_p8 = scmp.eq.s32.totalorder %s7603_s2, 0 }
 0xad3   :  { %s5702_s12 = spop %5701  ;;  %p4612_p9 = pnand %p4611_p8, %p4610_p7 }
 0xad4   :  { %s4616_s24 = sadd.s32 %s5702_s12, %s4609_s9 }
 0xad5   :  { %p4617_p10 = scmp.ge.s32.totalorder %s4616_s24, %s6884_s10  ;;  %s7607_s2 = smov (!%p4612_p9, %s7603_s2), 4 }
 0xad6   :  { %s7609_s30 = smov (!%p4612_p9, %s7605_s30), %s4602_s21  ;;  %p4618_p11 = scmp.eq.s32.totalorder %s7607_s2, 0 }
 0xad8   :  { %p4619_p12 = pnand %p4618_p11, %p4617_p10 }
 0xad9   :  { %s5704_s28 = spop %5703 }
 0xada   :  { %s4623_s17 = sadd.s32 %s5704_s28, %s4616_s24  ;;  %s7611_s2 = smov (!%p4619_p12, %s7607_s2), 3 }
 0xadb   :  { %p4624_p13 = scmp.ge.s32.totalorder %s4623_s17, %s6884_s10  ;;  %s7613_s30 = smov (!%p4619_p12, %s7609_s30), %s4609_s9 }
 0xadc   :  { %p4625_p0 = scmp.eq.s32.totalorder %s7611_s2, 0  ;;  %s5706_s14 = spop %5705 }
 0xadd   :  { %s4630_s18 = sadd.s32 %s5706_s14, %s4623_s17 }
 0xade   :  { %p4626_p1 = pnand %p4625_p0, %p4624_p13  ;;  %p4631_p2 = scmp.ge.s32.totalorder %s4630_s18, %s6884_s10 }
 0xae0   :  { %s7615_s2 = smov (!%p4626_p1, %s7611_s2), 2  ;;  %s7617_s30 = smov (!%p4626_p1, %s7613_s30), %s4616_s24 }
 0xae1   :  { %p4632_p3 = scmp.eq.s32.totalorder %s7615_s2, 0 }
 0xae3   :  { %p4633_p4 = pnand %p4632_p3, %p4631_p2 }
 0xae5   :  { %s7619_s2 = smov (!%p4633_p4, %s7615_s2), 1  ;;  %s7621_s30 = smov (!%p4633_p4, %s7617_s30), %s4623_s17 }
 0xae6   :  { %p4637_p5 = scmp.eq.s32.totalorder %s7619_s2, 0  ;;  %s4640_s7 = sshll.u32 %s7619_s2, 4 }
 0xae7   :  { %s6933_s29 = sor.u32 %s4640_s7, %s6815_s26 }
 0xae8   :  { %s7623_s18 = smov (!%p4637_p5, %s4630_s18), %s7621_s30  ;;  %s4666_s0 = sor.u32 14, %s6933_s29 }
 0xae9   :  { %s4642_s25 = sor.u32 15, %s6933_s29  ;;  %v4667_v43 = vstv %s4666_s0  ;;  %s4690_s23 = sor.u32 13, %s6933_s29 }
 0xaea   :  { %v4643_v44 = vstv %s4642_s25  ;;  %vm4668_vm4 = vcmp.eq.s32.totalorder %v6715_v33, %v4667_v43  ;;  %v4691_v46 = vstv %s4690_s23  ;;  %s4738_s26 = sor.u32 11, %s6933_s29  ;;  %s4714_s30 = sor.u32 12, %s6933_s29 }
 0xaeb   :  { %vm4644_vm5 = vcmp.eq.s32.totalorder %v6715_v33, %v4643_v44  ;;  %v4669_v60 = vsel %vm4668_vm4, 1, %v5794_v11  ;;  %vm4692_vm6 = vcmp.eq.s32.totalorder %v6715_v33, %v4691_v46  ;;  %v4739_v55 = vstv %s4738_s26  ;;  %s4762_s2 = sor.u32 10, %s6933_s29  ;;  %s4810_s13 = sor.u32 8, %s6933_s29 }
 0xaec   :  { %v4645_v47 = vsel %vm4644_vm5, 1, %v5794_v11  ;;  %v4670_v63 = vsel %vm40_vm2, %v4669_v60, 0  ;;  %v4693_v52 = vsel %vm4692_vm6, 1, %v5794_v11  ;;  %v4715_v57 = vstv %s4714_s30  ;;  %s4786_s15 = sor.u32 9, %s6933_s29  ;;  %s4834_s16 = sor.u32 7, %s6933_s29 }
 0xaed   :  { %v4646_v48 = vsel %vm40_vm2, %v4645_v47, 0  ;;  %v4672_v49 = vshrl.u32 %v4670_v63, 16  ;;  %v4694_v56 = vsel %vm40_vm2, %v4693_v52, 0  ;;  %vm4740_vm7 = vcmp.eq.s32.totalorder %v6715_v33, %v4739_v55  ;;  %s4882_s5 = sor.u32 5, %s6933_s29  ;;  %s4858_s19 = sor.u32 6, %s6933_s29 }
 0xaee   :  { %v4648_v50 = vshrl.u32 %v4646_v48, 16  ;;  %v4647_v51 = vand.u32 65535, %v4646_v48  ;;  %vm4716_vm8 = vcmp.eq.s32.totalorder %v6715_v33, %v4715_v57  ;;  %v4695_v58 = vand.u32 65535, %v4694_v56  ;;  %s4906_s3 = sor.u32 4, %s6933_s29  ;;  %s4954_s6 = sor.u32 2, %s6933_s29 }
 0xaef   :  { %v4674_v53 = vcvt.s32.f32 %v4672_v49  ;;  %v4671_v59 = vand.u32 65535, %v4670_v63  ;;  %v4696_v61 = vshrl.u32 %v4694_v56, 16  ;;  %v4741_v62 = vsel %vm4740_vm7, 1, %v5794_v11  ;;  %s4930_s4 = sor.u32 3, %s6933_s29  ;;  %s4978_s27 = sor.u32 1, %s6933_s29 }
 0xaf0   :  { %v4650_v6 = vcvt.s32.f32 %v4648_v50  ;;  %v4649_v54 = vcvt.s32.f32 %v4647_v51  ;;  %v4717_v34 = vsel %vm4716_vm8, 1, %v5794_v11  ;;  %v4697_v0 = vcvt.s32.f32 %v4695_v58  ;;  %s6999_s22 = ssub.s32 %s6884_s10, %s7623_s18 }
 0xaf1   :  { %4677 = vadd.xlane.f32.xlu2 %v4674_v53  ;;  %v4673_v1 = vcvt.s32.f32 %v4671_v59  ;;  %v4763_v21 = vstv %s4762_s2  ;;  %v4698_v2 = vcvt.s32.f32 %v4696_v61  ;;  %v4742_v3 = vsel %vm40_vm2, %v4741_v62, 0 }
 0xaf2   :  { %4653 = vadd.xlane.f32.xlu0 %v4650_v6  ;;  %4651 = vadd.xlane.f32.xlu1 %v4649_v54  ;;  %v4718_v5 = vsel %vm40_vm2, %v4717_v34, 0  ;;  %vm4764_vm9 = vcmp.eq.s32.totalorder %v6715_v33, %v4763_v21  ;;  %v4744_v7 = vshrl.u32 %v4742_v3, 16  ;;  %v4811_v15 = vstv %s4810_s13 }
 0xaf3   :  { %v4720_v8 = vshrl.u32 %v4718_v5, 16  ;;  %v4719_v27 = vand.u32 65535, %v4718_v5  ;;  %v4765_v12 = vsel %vm4764_vm9, 1, %v5794_v11  ;;  %v4787_v16 = vstv %s4786_s15 }
 0xaf4   :  { %v4746_v13 = vcvt.s32.f32 %v4744_v7  ;;  %v4766_v18 = vsel %vm40_vm2, %v4765_v12, 0  ;;  %vm4812_vm10 = vcmp.eq.s32.totalorder %v6715_v33, %v4811_v15  ;;  %vm4788_vm11 = vcmp.eq.s32.totalorder %v6715_v33, %v4787_v16 }
 0xaf5   :  { %v4722_v14 = vcvt.s32.f32 %v4720_v8  ;;  %v4721_v17 = vcvt.s32.f32 %v4719_v27  ;;  %v4767_v19 = vand.u32 65535, %v4766_v18  ;;  %v4743_v20 = vand.u32 65535, %v4742_v3 }
 0xaf6   :  { %v4768_v22 = vshrl.u32 %v4766_v18, 16  ;;  %v4813_v23 = vsel %vm4812_vm10, 1, %v5794_v11  ;;  %v4789_v10 = vsel %vm4788_vm11, 1, %v5794_v11  ;;  %v4835_v26 = vstv %s4834_s16 }
 0xaf7   :  { %v4769_v24 = vcvt.s32.f32 %v4767_v19  ;;  %v4745_v25 = vcvt.s32.f32 %v4743_v20  ;;  %v4814_v29 = vsel %vm40_vm2, %v4813_v23, 0  ;;  %v4790_v45 = vsel %vm40_vm2, %v4789_v10, 0 }
 0xaf8   :  { %v4770_v28 = vcvt.s32.f32 %v4768_v22  ;;  %vm4836_vm12 = vcmp.eq.s32.totalorder %v6715_v33, %v4835_v26  ;;  %v4816_v30 = vshrl.u32 %v4814_v29, 16  ;;  %v4792_v31 = vshrl.u32 %v4790_v45, 16 }
 0xaf9   :  { %4699 = vadd.xlane.f32.xlu2 %v4697_v0  ;;  %v4791_v32 = vand.u32 65535, %v4790_v45  ;;  %v4837_v4 = vsel %vm4836_vm12, 1, %v5794_v11  ;;  %v4883_v37 = vstv %s4882_s5  ;;  %v4859_v38 = vstv %s4858_s19 }
 0xafa   :  { %4675 = vadd.xlane.f32.xlu0 %v4673_v1  ;;  %4701 = vadd.xlane.f32.xlu1 %v4698_v2  ;;  %v4818_v35 = vcvt.s32.f32 %v4816_v30  ;;  %v4794_v36 = vcvt.s32.f32 %v4792_v31  ;;  %v4838_v40 = vsel %vm40_vm2, %v4837_v4, 0  ;;  %vm4884_vm13 = vcmp.eq.s32.totalorder %v6715_v33, %v4883_v37 }
 0xafb   :  { %v4793_v39 = vcvt.s32.f32 %v4791_v32  ;;  %vm4860_vm14 = vcmp.eq.s32.totalorder %v6715_v33, %v4859_v38  ;;  %v4839_v41 = vand.u32 65535, %v4838_v40  ;;  %v4815_v42 = vand.u32 65535, %v4814_v29 }
 0xafc   :  { %v4840_v43 = vshrl.u32 %v4838_v40, 16  ;;  %v4885_v44 = vsel %vm4884_vm13, 1, %v5794_v11  ;;  %v4861_v46 = vsel %vm4860_vm14, 1, %v5794_v11  ;;  %v4907_v63 = vstv %s4906_s3 }
 0xafd   :  { %v4841_v60 = vcvt.s32.f32 %v4839_v41  ;;  %v4817_v47 = vcvt.s32.f32 %v4815_v42  ;;  %v4886_v49 = vsel %vm40_vm2, %v4885_v44, 0  ;;  %v4862_v50 = vsel %vm40_vm2, %v4861_v46, 0 }
 0xafe   :  { %v4842_v48 = vcvt.s32.f32 %v4840_v43  ;;  %vm4908_vm15 = vcmp.eq.s32.totalorder %v6715_v33, %v4907_v63  ;;  %v4888_v51 = vshrl.u32 %v4886_v49, 16  ;;  %v4864_v52 = vshrl.u32 %v4862_v50, 16 }
 0xaff   :  { %v4863_v53 = vand.u32 65535, %v4862_v50  ;;  %v4909_v6 = vsel %vm4908_vm15, 1, %v5794_v11  ;;  %v4955_v56 = vstv %s4954_s6  ;;  %v4931_v57 = vstv %s4930_s4 }
 0xb00   :  { %v4890_v54 = vcvt.s32.f32 %v4888_v51  ;;  %v4866_v55 = vcvt.s32.f32 %v4864_v52  ;;  %v4910_v59 = vsel %vm40_vm2, %v4909_v6, 0  ;;  %vm4956_vm0 = vcmp.eq.s32.totalorder %v6715_v33, %v4955_v56 }
 0xb01   :  { %4749 = vadd.xlane.f32.xlu2 %v4746_v13  ;;  %v4865_v58 = vcvt.s32.f32 %v4863_v53  ;;  %vm4932_vm1 = vcmp.eq.s32.totalorder %v6715_v33, %v4931_v57  ;;  %v4911_v61 = vand.u32 65535, %v4910_v59  ;;  %v4887_v62 = vand.u32 65535, %v4886_v49 }
 0xb02   :  { %4725 = vadd.xlane.f32.xlu0 %v4722_v14  ;;  %4723 = vadd.xlane.f32.xlu1 %v4721_v17  ;;  %v4912_v34 = vshrl.u32 %v4910_v59, 16  ;;  %v4957_v0 = vsel %vm4956_vm0, 1, %v5794_v11  ;;  %v4933_v1 = vsel %vm4932_vm1, 1, %v5794_v11  ;;  %v4979_v3 = vstv %s4978_s27 }
 0xb03   :  { %v4913_v21 = vcvt.s32.f32 %v4911_v61  ;;  %v4889_v2 = vcvt.s32.f32 %v4887_v62  ;;  %v4958_v7 = vsel %vm40_vm2, %v4957_v0, 0  ;;  %v4934_v8 = vsel %vm40_vm2, %v4933_v1, 0 }
 0xb04   :  { %v4914_v5 = vcvt.s32.f32 %v4912_v34  ;;  %vm4980_vm3 = vcmp.eq.s32.totalorder %v6715_v33, %v4979_v3  ;;  %v4960_v27 = vshrl.u32 %v4958_v7, 16  ;;  %v4936_v12 = vshrl.u32 %v4934_v8, 16 }
 0xb05   :  { %v4935_v13 = vand.u32 65535, %v4934_v8  ;;  %v4981_v14 = vsel %vm4980_vm3, 1, %v5794_v11  ;;  %v4959_v20 = vand.u32 65535, %v4958_v7 }
 0xb06   :  { %v4962_v15 = vcvt.s32.f32 %v4960_v27  ;;  %v4938_v16 = vcvt.s32.f32 %v4936_v12  ;;  %v4982_v18 = vsel %vm40_vm2, %v4981_v14, 0 }
 0xb07   :  { %v4937_v17 = vcvt.s32.f32 %v4935_v13  ;;  %v4983_v19 = vand.u32 65535, %v4982_v18  ;;  %v4984_v22 = vshrl.u32 %v4982_v18, 16  ;;  %v4961_v10 = vcvt.s32.f32 %v4959_v20 }
 0xb09   :  { %4771 = vadd.xlane.f32.xlu2 %v4769_v24  ;;  %v4985_v23 = vcvt.s32.f32 %v4983_v19  ;;  %v4986_v24 = vcvt.s32.f32 %v4984_v22 }
 0xb0a   :  { %4747 = vadd.xlane.f32.xlu0 %v4745_v25  ;;  %4773 = vadd.xlane.f32.xlu1 %v4770_v28 }
 0xb11   :  { %4821 = vadd.xlane.f32.xlu2 %v4818_v35 }
 0xb12   :  { %4797 = vadd.xlane.f32.xlu0 %v4794_v36  ;;  %4795 = vadd.xlane.f32.xlu1 %v4793_v39 }
 0xb19   :  { %4843 = vadd.xlane.f32.xlu2 %v4841_v60 }
 0xb1a   :  { %4819 = vadd.xlane.f32.xlu0 %v4817_v47  ;;  %4845 = vadd.xlane.f32.xlu1 %v4842_v48 }
 0xb21   :  { %4893 = vadd.xlane.f32.xlu2 %v4890_v54 }
 0xb22   :  { %4869 = vadd.xlane.f32.xlu0 %v4866_v55  ;;  %4867 = vadd.xlane.f32.xlu1 %v4865_v58 }
 0xb29   :  { %4915 = vadd.xlane.f32.xlu2 %v4913_v21 }
 0xb2a   :  { %4891 = vadd.xlane.f32.xlu0 %v4889_v2  ;;  %4917 = vadd.xlane.f32.xlu1 %v4914_v5 }
 0xb31   :  { %4965 = vadd.xlane.f32.xlu2 %v4962_v15 }
 0xb32   :  { %4941 = vadd.xlane.f32.xlu0 %v4938_v16  ;;  %4939 = vadd.xlane.f32.xlu1 %v4937_v17 }
 0xb39   :  { %4987 = vadd.xlane.f32.xlu2 %v4985_v23 }
 0xb3a   :  { %4963 = vadd.xlane.f32.xlu0 %v4961_v10  ;;  %4989 = vadd.xlane.f32.xlu1 %v4986_v24 }
 0xb64   :  { %v4678_v25 = vpop.xlane.xlu2 %4677 }
 0xb65   :  { %v4654_v26 = vpop.xlane.xlu0 %4653  ;;  %v4652_v28 = vpop.xlane.xlu1 %4651  ;;  %v4680_v30 = vcvt.f32.s32 %v4678_v25 }
 0xb66   :  { %v4656_v11 = vcvt.f32.s32 %v4654_v26  ;;  %v4655_v45 = vcvt.f32.s32 %v4652_v28 }
 0xb67   :  { %v4681_v36 = vshll.u32 %v4680_v30, 16 }
 0xb68   :  { %v4657_v29 = vshll.u32 %v4656_v11, 16 }
 0xb6a   :  { %v4658_v31 = vadd.s32 %v4657_v29, %v4655_v45 }
 0xb6c   :  { %v4659_v32 = vrot.slane %v4658_v31, 4  ;;  %v4700_v4 = vpop.xlane.xlu2 %4699 }
 0xb6d   :  { %v4676_v35 = vpop.xlane.xlu0 %4675  ;;  %v4702_v39 = vpop.xlane.xlu1 %4701  ;;  %v4703_v43 = vcvt.f32.s32 %v4700_v4 }
 0xb6e   :  { %v4660_v37 = vadd.s32 %v4659_v32, %v4658_v31  ;;  %v4679_v38 = vcvt.f32.s32 %v4676_v35  ;;  %v4704_v40 = vcvt.f32.s32 %v4702_v39 }
 0xb70   :  { %v4661_v41 = vrot.slane %v4660_v37, 2  ;;  %v4682_v42 = vadd.s32 %v4681_v36, %v4679_v38  ;;  %v4705_v44 = vshll.u32 %v4704_v40, 16 }
 0xb72   :  { %v4683_v46 = vrot.slane %v4682_v42, 4  ;;  %v4662_v60 = vadd.s32 %v4661_v41, %v4660_v37  ;;  %v4706_v47 = vadd.s32 %v4705_v44, %v4703_v43 }
 0xb74   :  { %v4684_v63 = vadd.s32 %v4683_v46, %v4682_v42  ;;  %v4663_v48 = vrot.slane %v4662_v60, 1  ;;  %v4707_v49 = vrot.slane %v4706_v47, 4  ;;  %v4750_v50 = vpop.xlane.xlu2 %4749 }
 0xb75   :  { %v4726_v51 = vpop.xlane.xlu0 %4725  ;;  %v4724_v6 = vpop.xlane.xlu1 %4723  ;;  %v4752_v61 = vcvt.f32.s32 %v4750_v50 }
 0xb76   :  { %v4685_v52 = vrot.slane %v4684_v63, 2  ;;  %v4728_v53 = vcvt.f32.s32 %v4726_v51  ;;  %v4664_v54 = vadd.s32 %v4663_v48, %v4662_v60  ;;  %v4708_v55 = vadd.s32 %v4707_v49, %v4706_v47 }
 0xb77   :  { %v4727_v57 = vcvt.f32.s32 %v4724_v6  ;;  %v4753_v7 = vshll.u32 %v4752_v61, 16 }
 0xb78   :  { %v4729_v56 = vshll.u32 %v4728_v53, 16  ;;  %5707 = vpush %v4664_v54  ;;  %v4686_v58 = vadd.s32 %v4685_v52, %v4684_v63  ;;  %v4709_v59 = vrot.slane %v4708_v55, 2 }
 0xb7a   :  { %v4730_v62 = vadd.s32 %v4729_v56, %v4727_v57  ;;  %v4687_v34 = vrot.slane %v4686_v58, 1  ;;  %v4710_v0 = vadd.s32 %v4709_v59, %v4708_v55 }
 0xb7c   :  { %v4731_v1 = vrot.slane %v4730_v62, 4  ;;  %v4688_v21 = vadd.s32 %v4687_v34, %v4686_v58  ;;  %v4772_v2 = vpop.xlane.xlu2 %4771  ;;  %v4711_v5 = vrot.slane %v4710_v0, 1 }
 0xb7d   :  { %v4748_v3 = vpop.xlane.xlu0 %4747  ;;  %v4774_v12 = vpop.xlane.xlu1 %4773  ;;  %v4775_v17 = vcvt.f32.s32 %v4772_v2 }
 0xb7e   :  { %v4732_v8 = vadd.s32 %v4731_v1, %v4730_v62  ;;  %v4751_v27 = vcvt.f32.s32 %v4748_v3  ;;  %5709 = vpush %v4688_v21  ;;  %v4776_v13 = vcvt.f32.s32 %v4774_v12  ;;  %v4712_v14 = vadd.s32 %v4711_v5, %v4710_v0 }
 0xb80   :  { %v4733_v15 = vrot.slane %v4732_v8, 2  ;;  %v4754_v16 = vadd.s32 %v4753_v7, %v4751_v27  ;;  %v4777_v18 = vshll.u32 %v4776_v13, 16  ;;  %5711 = vpush %v4712_v14 }
 0xb82   :  { %v4755_v19 = vrot.slane %v4754_v16, 4  ;;  %v4734_v20 = vadd.s32 %v4733_v15, %v4732_v8  ;;  %v4778_v22 = vadd.s32 %v4777_v18, %v4775_v17 }
 0xb84   :  { %v4756_v23 = vadd.s32 %v4755_v19, %v4754_v16  ;;  %v4735_v10 = vrot.slane %v4734_v20, 1  ;;  %v4779_v24 = vrot.slane %v4778_v22, 4  ;;  %v4822_v25 = vpop.xlane.xlu2 %4821 }
 0xb85   :  { %v4798_v26 = vpop.xlane.xlu0 %4797  ;;  %v4796_v29 = vpop.xlane.xlu1 %4795  ;;  %v4824_v36 = vcvt.f32.s32 %v4822_v25 }
 0xb86   :  { %v4757_v11 = vrot.slane %v4756_v23, 2  ;;  %v4800_v28 = vcvt.f32.s32 %v4798_v26  ;;  %v4736_v45 = vadd.s32 %v4735_v10, %v4734_v20  ;;  %v4780_v30 = vadd.s32 %v4779_v24, %v4778_v22 }
 0xb87   :  { %v4799_v32 = vcvt.f32.s32 %v4796_v29  ;;  %v4825_v46 = vshll.u32 %v4824_v36, 16 }
 0xb88   :  { %v4801_v31 = vshll.u32 %v4800_v28, 16  ;;  %5713 = vpush %v4736_v45  ;;  %v4758_v4 = vadd.s32 %v4757_v11, %v4756_v23  ;;  %v4781_v35 = vrot.slane %v4780_v30, 2 }
 0xb8a   :  { %v4802_v37 = vadd.s32 %v4801_v31, %v4799_v32  ;;  %v4759_v38 = vrot.slane %v4758_v4, 1  ;;  %v4782_v39 = vadd.s32 %v4781_v35, %v4780_v30 }
 0xb8c   :  { %v4803_v40 = vrot.slane %v4802_v37, 4  ;;  %v4760_v41 = vadd.s32 %v4759_v38, %v4758_v4  ;;  %v4844_v42 = vpop.xlane.xlu2 %4843  ;;  %v4783_v44 = vrot.slane %v4782_v39, 1 }
 0xb8d   :  { %v4820_v43 = vpop.xlane.xlu0 %4819  ;;  %v4846_v63 = vpop.xlane.xlu1 %4845  ;;  %v4847_v52 = vcvt.f32.s32 %v4844_v42 }
 0xb8e   :  { %v4804_v60 = vadd.s32 %v4803_v40, %v4802_v37  ;;  %v4823_v47 = vcvt.f32.s32 %v4820_v43  ;;  %5715 = vpush %v4760_v41  ;;  %v4848_v48 = vcvt.f32.s32 %v4846_v63  ;;  %v4784_v49 = vadd.s32 %v4783_v44, %v4782_v39 }
 0xb90   :  { %v4805_v50 = vrot.slane %v4804_v60, 2  ;;  %v4826_v51 = vadd.s32 %v4825_v46, %v4823_v47  ;;  %v4849_v53 = vshll.u32 %v4848_v48, 16  ;;  %5717 = vpush %v4784_v49 }
 0xb92   :  { %v4827_v6 = vrot.slane %v4826_v51, 4  ;;  %v4806_v54 = vadd.s32 %v4805_v50, %v4804_v60  ;;  %v4850_v55 = vadd.s32 %v4849_v53, %v4847_v52 }
 0xb94   :  { %v4828_v56 = vadd.s32 %v4827_v6, %v4826_v51  ;;  %v4807_v57 = vrot.slane %v4806_v54, 1  ;;  %v4851_v58 = vrot.slane %v4850_v55, 4  ;;  %v4894_v59 = vpop.xlane.xlu2 %4893 }
 0xb95   :  { %v4870_v61 = vpop.xlane.xlu0 %4869  ;;  %v4868_v0 = vpop.xlane.xlu1 %4867  ;;  %v4896_v8 = vcvt.f32.s32 %v4894_v59 }
 0xb96   :  { %v4829_v62 = vrot.slane %v4828_v56, 2  ;;  %v4872_v34 = vcvt.f32.s32 %v4870_v61  ;;  %v4808_v1 = vadd.s32 %v4807_v57, %v4806_v54  ;;  %v4852_v21 = vadd.s32 %v4851_v58, %v4850_v55 }
 0xb97   :  { %v4871_v3 = vcvt.f32.s32 %v4868_v0  ;;  %v4897_v19 = vshll.u32 %v4896_v8, 16 }
 0xb98   :  { %v4873_v2 = vshll.u32 %v4872_v34, 16  ;;  %5719 = vpush %v4808_v1  ;;  %v4830_v5 = vadd.s32 %v4829_v62, %v4828_v56  ;;  %v4853_v7 = vrot.slane %v4852_v21, 2 }
 0xb9a   :  { %v4874_v27 = vadd.s32 %v4873_v2, %v4871_v3  ;;  %v4831_v12 = vrot.slane %v4830_v5, 1  ;;  %v4854_v13 = vadd.s32 %v4853_v7, %v4852_v21 }
 0xb9c   :  { %v4875_v14 = vrot.slane %v4874_v27, 4  ;;  %v4832_v15 = vadd.s32 %v4831_v12, %v4830_v5  ;;  %v4916_v16 = vpop.xlane.xlu2 %4915  ;;  %v4855_v18 = vrot.slane %v4854_v13, 1 }
 0xb9d   :  { %v4892_v17 = vpop.xlane.xlu0 %4891  ;;  %v4918_v23 = vpop.xlane.xlu1 %4917  ;;  %v4919_v11 = vcvt.f32.s32 %v4916_v16 }
 0xb9e   :  { %v4876_v20 = vadd.s32 %v4875_v14, %v4874_v27  ;;  %v4895_v22 = vcvt.f32.s32 %v4892_v17  ;;  %5721 = vpush %v4832_v15  ;;  %v4920_v10 = vcvt.f32.s32 %v4918_v23  ;;  %v4856_v24 = vadd.s32 %v4855_v18, %v4854_v13 }
 0xb9f   :  { %v5796_v23 = vmov 0.0  }
 0xba0   :  { %v4877_v25 = vrot.slane %v4876_v20, 2  ;;  %v4898_v26 = vadd.s32 %v4897_v19, %v4895_v22  ;;  %v4921_v28 = vshll.u32 %v4920_v10, 16  ;;  %5723 = vpush %v4856_v24  ;;  %v3735_v19 = vxor.u32 2147483648, %v5813_v9 }
 0xba2   :  { %v4899_v29 = vrot.slane %v4898_v26, 4  ;;  %v4878_v45 = vadd.s32 %v4877_v25, %v4876_v20  ;;  %v4922_v30 = vadd.s32 %v4921_v28, %v4919_v11 }
 0xba4   :  { %v4900_v31 = vadd.s32 %v4899_v29, %v4898_v26  ;;  %v4879_v32 = vrot.slane %v4878_v45, 1  ;;  %v4923_v4 = vrot.slane %v4922_v30, 4  ;;  %v4966_v35 = vpop.xlane.xlu2 %4965 }
 0xba5   :  { %v4942_v36 = vpop.xlane.xlu0 %4941  ;;  %v4940_v39 = vpop.xlane.xlu1 %4939  ;;  %v4968_v60 = vcvt.f32.s32 %v4966_v35 }
 0xba6   :  { %v4901_v37 = vrot.slane %v4900_v31, 2  ;;  %v4944_v38 = vcvt.f32.s32 %v4942_v36  ;;  %v4880_v40 = vadd.s32 %v4879_v32, %v4878_v45  ;;  %v4924_v41 = vadd.s32 %v4923_v4, %v4922_v30 }
 0xba7   :  { %v4943_v43 = vcvt.f32.s32 %v4940_v39  ;;  %v4969_v53 = vshll.u32 %v4968_v60, 16 }
 0xba8   :  { %v4945_v42 = vshll.u32 %v4944_v38, 16  ;;  %5725 = vpush %v4880_v40  ;;  %v4902_v44 = vadd.s32 %v4901_v37, %v4900_v31  ;;  %v4925_v46 = vrot.slane %v4924_v41, 2 }
 0xba9   :  { %s5708_s20 = spop %5707 }
 0xbaa   :  { %v4946_v47 = vadd.s32 %v4945_v42, %v4943_v43  ;;  %p5002_p6 = scmp.ge.s32.totalorder %s5708_s20, %s6999_s22  ;;  %v4903_v63 = vrot.slane %v4902_v44, 1  ;;  %v4926_v48 = vadd.s32 %v4925_v46, %v4924_v41 }
 0xbac   :  { %v4947_v49 = vrot.slane %v4946_v47, 4  ;;  %v4904_v50 = vadd.s32 %v4903_v63, %v4902_v44  ;;  %s5003_s21 = scalar_select %p5002_p6, 15, 0  ;;  %v4927_v52 = vrot.slane %v4926_v48, 1  ;;  %v4988_v54 = vpop.xlane.xlu2 %4987 }
 0xbad   :  { %v4964_v51 = vpop.xlane.xlu0 %4963  ;;  %v4990_v56 = vpop.xlane.xlu1 %4989  ;;  %v4991_v62 = vcvt.f32.s32 %v4988_v54 }
 0xbae   :  { %v4948_v6 = vadd.s32 %v4947_v49, %v4946_v47  ;;  %v4967_v55 = vcvt.f32.s32 %v4964_v51  ;;  %5727 = vpush %v4904_v50  ;;  %v4992_v57 = vcvt.f32.s32 %v4990_v56  ;;  %v4928_v58 = vadd.s32 %v4927_v52, %v4926_v48  ;;  %p5006_p7 = scmp.eq.s32.totalorder %s5003_s21, 0 }
 0xbaf   :  { %s5710_s10 = spop %5709 }
 0xbb0   :  { %v4949_v59 = vrot.slane %v4948_v6, 2  ;;  %v4970_v61 = vadd.s32 %v4969_v53, %v4967_v55  ;;  %s5004_s11 = sadd.s32 %s5710_s10, %s5708_s20  ;;  %v4993_v34 = vshll.u32 %v4992_v57, 16  ;;  %5729 = vpush %v4928_v58 }
 0xbb1   :  { %p5005_p8 = scmp.ge.s32.totalorder %s5004_s11, %s6999_s22  ;;  %s5712_s9 = spop %5711 }
 0xbb2   :  { %v4971_v0 = vrot.slane %v4970_v61, 4  ;;  %v4950_v1 = vadd.s32 %v4949_v59, %v4948_v6  ;;  %v4994_v21 = vadd.s32 %v4993_v34, %v4991_v62  ;;  %s5010_s12 = sadd.s32 %s5712_s9, %s5004_s11  ;;  %s3736_s9 = sxor.u32 2147483648, %s6709_s8 }
 0xbb3   :  { %p5007_p9 = pnand %p5006_p7, %p5005_p8  ;;  %p5011_p10 = scmp.ge.s32.totalorder %s5010_s12, %s6999_s22  ;;  %v3737_v20 = vstv %s3736_s9 }
 0xbb4   :  { %v4972_v2 = vadd.s32 %v4971_v0, %v4970_v61  ;;  %v4951_v3 = vrot.slane %v4950_v1, 1  ;;  %v4995_v5 = vrot.slane %v4994_v21, 4  ;;  %vm3738_vm2 = vcmp.gt.s32.totalorder %v3735_v19, %v3737_v20 }
 0xbb5   :  { %s7625_s21 = smov (!%p5007_p9, %s5003_s21), 14 }
 0xbb6   :  { %v4973_v7 = vrot.slane %v4972_v2, 2  ;;  %v4952_v8 = vadd.s32 %v4951_v3, %v4950_v1  ;;  %v4996_v27 = vadd.s32 %v4995_v5, %v4994_v21  ;;  %p5012_p11 = scmp.eq.s32.totalorder %s7625_s21, 0 }
 0xbb8   :  { %v4974_v12 = vadd.s32 %v4973_v7, %v4972_v2  ;;  %5731 = vpush %v4952_v8  ;;  %v4997_v13 = vrot.slane %v4996_v27, 2  ;;  %p5013_p12 = pnand %p5012_p11, %p5011_p10 }
 0xbb9   :  { %s5714_s24 = spop %5713 }
 0xbba   :  { %s5016_s28 = sadd.s32 %s5714_s24, %s5010_s12  ;;  %v4975_v14 = vrot.slane %v4974_v12, 1  ;;  %s7627_s21 = smov (!%p5013_p12, %s7625_s21), 13  ;;  %v4998_v15 = vadd.s32 %v4997_v13, %v4996_v27 }
 0xbbb   :  { %p5017_p13 = scmp.ge.s32.totalorder %s5016_s28, %s6999_s22  ;;  %p5018_p0 = scmp.eq.s32.totalorder %s7627_s21, 0 }
 0xbbc   :  { %v4976_v16 = vadd.s32 %v4975_v14, %v4974_v12  ;;  %v4999_v17 = vrot.slane %v4998_v15, 1 }
 0xbbd   :  { %p5019_p1 = pnand %p5018_p0, %p5017_p13 }
 0xbbe   :  { %5733 = vpush %v4976_v16  ;;  %v5000_v18 = vadd.s32 %v4999_v17, %v4998_v15 }
 0xbbf   :  { %s5716_s17 = spop %5715  ;;  %s7629_s21 = smov (!%p5019_p1, %s7627_s21), 12 }
 0xbc0   :  { %s5022_s14 = sadd.s32 %s5716_s17, %s5016_s28  ;;  %5735 = vpush %v5000_v18  ;;  %p5024_p3 = scmp.eq.s32.totalorder %s7629_s21, 0 }
 0xbc1   :  { %s5718_s18 = spop %5717  ;;  %p5023_p2 = scmp.ge.s32.totalorder %s5022_s14, %s6999_s22 }
 0xbc2   :  { %s5028_s7 = sadd.s32 %s5718_s18, %s5022_s14  ;;  %s5102_s28 = sshll.u32 %s7024_s1, 4  ;;  %s5103_s28 = int_to_ptr.hbm [resolvable:$true] %s5102_s28 }
 0xbc3   :  { %p5025_p4 = pnand %p5024_p3, %p5023_p2  ;;  %p5029_p5 = scmp.ge.s32.totalorder %s5028_s7, %s6999_s22 }
 0xbc4   :  { %s5795_s14 = smov [#allocation5]  }
 0xbc5   :  { %s7631_s21 = smov (!%p5025_p4, %s7629_s21), 11  ;;  %s5100_s18 = sshll.u32 %s5795_s14, 4  ;;  %s5101_s18 = int_to_ptr.vmem [resolvable:$true] %s5100_s18 }
 0xbc6   :  { %p5030_p6 = scmp.eq.s32.totalorder %s7631_s21, 0 }
 0xbc8   :  { %p5031_p7 = pnand %p5030_p6, %p5029_p5 }
 0xbc9   :  { %s5720_s0 = spop %5719 }
 0xbca   :  { %s5034_s25 = sadd.s32 %s5720_s0, %s5028_s7  ;;  %s7633_s21 = smov (!%p5031_p7, %s7631_s21), 10 }
 0xbcb   :  { %p5035_p8 = scmp.ge.s32.totalorder %s5034_s25, %s6999_s22  ;;  %p5036_p9 = scmp.eq.s32.totalorder %s7633_s21, 0 }
 0xbcd   :  { %p5037_p10 = pnand %p5036_p9, %p5035_p8 }
 0xbcf   :  { %s5722_s23 = spop %5721  ;;  %s7635_s21 = smov (!%p5037_p10, %s7633_s21), 9 }
 0xbd0   :  { %s5040_s26 = sadd.s32 %s5722_s23, %s5034_s25  ;;  %p5042_p12 = scmp.eq.s32.totalorder %s7635_s21, 0 }
 0xbd1   :  { %p5041_p11 = scmp.ge.s32.totalorder %s5040_s26, %s6999_s22  ;;  %s5724_s30 = spop %5723 }
 0xbd2   :  { %s5046_s2 = sadd.s32 %s5724_s30, %s5040_s26 }
 0xbd3   :  { %p5043_p13 = pnand %p5042_p12, %p5041_p11  ;;  %p5047_p0 = scmp.ge.s32.totalorder %s5046_s2, %s6999_s22 }
 0xbd5   :  { %s7637_s21 = smov (!%p5043_p13, %s7635_s21), 8 }
 0xbd6   :  { %p5048_p1 = scmp.eq.s32.totalorder %s7637_s21, 0 }
 0xbd8   :  { %p5049_p2 = pnand %p5048_p1, %p5047_p0 }
 0xbd9   :  { %s5726_s13 = spop %5725 }
 0xbda   :  { %s5052_s15 = sadd.s32 %s5726_s13, %s5046_s2  ;;  %s7639_s21 = smov (!%p5049_p2, %s7637_s21), 7 }
 0xbdb   :  { %p5053_p3 = scmp.ge.s32.totalorder %s5052_s15, %s6999_s22  ;;  %p5054_p4 = scmp.eq.s32.totalorder %s7639_s21, 0 }
 0xbdd   :  { %p5055_p5 = pnand %p5054_p4, %p5053_p3 }
 0xbdf   :  { %s5728_s16 = spop %5727  ;;  %s7641_s21 = smov (!%p5055_p5, %s7639_s21), 6 }
 0xbe0   :  { %s5058_s5 = sadd.s32 %s5728_s16, %s5052_s15  ;;  %p5060_p7 = scmp.eq.s32.totalorder %s7641_s21, 0 }
 0xbe1   :  { %s5730_s19 = spop %5729  ;;  %p5059_p6 = scmp.ge.s32.totalorder %s5058_s5, %s6999_s22 }
 0xbe2   :  { %s5064_s3 = sadd.s32 %s5730_s19, %s5058_s5 }
 0xbe3   :  { %p5061_p8 = pnand %p5060_p7, %p5059_p6  ;;  %p5065_p9 = scmp.ge.s32.totalorder %s5064_s3, %s6999_s22 }
 0xbe5   :  { %s7643_s21 = smov (!%p5061_p8, %s7641_s21), 5 }
 0xbe6   :  { %p5066_p10 = scmp.eq.s32.totalorder %s7643_s21, 0 }
 0xbe8   :  { %p5067_p11 = pnand %p5066_p10, %p5065_p9 }
 0xbe9   :  { %s5732_s6 = spop %5731 }
 0xbea   :  { %s5070_s4 = sadd.s32 %s5732_s6, %s5064_s3  ;;  %s7645_s21 = smov (!%p5067_p11, %s7643_s21), 4 }
 0xbeb   :  { %p5071_p12 = scmp.ge.s32.totalorder %s5070_s4, %s6999_s22  ;;  %p5072_p13 = scmp.eq.s32.totalorder %s7645_s21, 0 }
 0xbed   :  { %p5073_p0 = pnand %p5072_p13, %p5071_p12 }
 0xbef   :  { %s5734_s27 = spop %5733  ;;  %s7647_s21 = smov (!%p5073_p0, %s7645_s21), 3 }
 0xbf0   :  { %s5076_s20 = sadd.s32 %s5734_s27, %s5070_s4  ;;  %p5078_p2 = scmp.eq.s32.totalorder %s7647_s21, 0 }
 0xbf1   :  { %p5077_p1 = scmp.ge.s32.totalorder %s5076_s20, %s6999_s22  ;;  %s5736_s10 = spop %5735 }
 0xbf2   :  { %s5082_s11 = sadd.s32 %s5736_s10, %s5076_s20 }
 0xbf3   :  { %p5079_p3 = pnand %p5078_p2, %p5077_p1  ;;  %p5083_p4 = scmp.ge.s32.totalorder %s5082_s11, %s6999_s22 }
 0xbf5   :  { %s7649_s21 = smov (!%p5079_p3, %s7647_s21), 2 }
 0xbf6   :  { %p5084_p5 = scmp.eq.s32.totalorder %s7649_s21, 0 }
 0xbf8   :  { %p5085_p6 = pnand %p5084_p5, %p5083_p4 }
 0xbfa   :  { %s7651_s21 = smov (!%p5085_p6, %s7649_s21), 1 }
 0xbfb   :  { %s5088_s17 = sor.u32 %s7651_s21, %s6933_s29 }
 0xbfc   :  { %v5089_v22 = vstv %s5088_s17 }
 0xbfd   :  { %vm5090_vm4 = vcmp.ge.s32.totalorder %v6715_v33, %v5089_v22 }
 0xbfe   :  { %vm5091_vm5 = vmor %vm3738_vm2, %vm5090_vm4 }
 0xbff   :  { %v5406_v10 = vsel %vm5091_vm5, 1.0, %v5796_v23 }
 0xc00   :  { %5094 = vst [vmem:[#allocation5] sm:$0x7] %v5406_v10 }
 0xc01   :  { %5105 = dma.vmem_to_hbm [thread:$0]  %s5101_s18, 64, %s5103_s28, [#allocation4]  }
 0xc02   :  { %5791 = dma.done.wait [#allocation4], 64  }
 0xc03   :  { %5792 = vsyncadd [#allocation4], 4294967232 }
 0xc04   :  { %5110 = vsyncpa [#allocation3], 1 }
 0xc05   :  { %5111 = vsyncpa [#allocation4], 1 }

</bundles_post_ra>
